<compile_context>
chip_gen: v6e
topology: v6e:2x2x1
jax: 0.10.0
libtpu: 0.0.40
codegen_flags: <defaults>
</compile_context>

<pallas_src>
import jax
import jax.numpy as jnp
from jax.experimental import pallas as pl
from jax.experimental.pallas import tpu as pltpu

HIDDEN = 1000       # logical hidden width (from the module definition)
HIDDEN_PAD = 1024   # padded to a multiple of 128 lanes
OUT = 2             # logical output width
OUT_PAD = 128       # padded so the final store is a full lane tile


def _round_up(x, m):
    return ((x + m - 1) // m) * m


def _leaky_relu(x, slope=0.2):
    return jnp.where(x > 0, x, slope * x)


def discriminator_kernel(
    z_ref,
    w0_ref, b0_ref,
    w1_ref, b1_ref,
    w2_ref, b2_ref,
    w3_ref, b3_ref,
    w4_ref, b4_ref,
    w5_ref, b5_ref,
    out_ref,
):
    """Fused 6-layer MLP: Linear -> LeakyReLU(0.2) x5 -> Linear(1000, 2)."""

    def layer(h_bf16, w_ref, b_ref, activate):
        # bf16 x bf16 matmul on the MXU, f32 accumulate, f32 bias add.
        y = jnp.dot(h_bf16, w_ref[...], preferred_element_type=jnp.float32)
        y = y + b_ref[...]
        if activate:
            y = _leaky_relu(y)
            y = y.astype(jnp.bfloat16)   # feed next MXU pass in bf16
        return y

    h = z_ref[...].astype(jnp.bfloat16)
    h = layer(h, w0_ref, b0_ref, True)
    h = layer(h, w1_ref, b1_ref, True)
    h = layer(h, w2_ref, b2_ref, True)
    h = layer(h, w3_ref, b3_ref, True)
    h = layer(h, w4_ref, b4_ref, True)
    logits = layer(h, w5_ref, b5_ref, False)   # f32, (tb, OUT_PAD)

    out_ref[...] = logits.astype(out_ref.dtype)


def init_discriminator_params(key, z_dim):
    """normal_init: weights ~ N(0, 0.02), biases = 0 (matches the module).

    Weights are zero-padded to lane-aligned shapes and cast to bfloat16;
    biases are zero-padded and kept in float32.  The zero padding carries
    zeros through the whole MLP so the logical math is unchanged.
    """
    dims = [
        (z_dim, HIDDEN, z_dim, HIDDEN_PAD),
        (HIDDEN, HIDDEN, HIDDEN_PAD, HIDDEN_PAD),
        (HIDDEN, HIDDEN, HIDDEN_PAD, HIDDEN_PAD),
        (HIDDEN, HIDDEN, HIDDEN_PAD, HIDDEN_PAD),
        (HIDDEN, HIDDEN, HIDDEN_PAD, HIDDEN_PAD),
        (HIDDEN, OUT, HIDDEN_PAD, OUT_PAD),
    ]
    params = []
    for d_in, d_out, d_in_pad, d_out_pad in dims:
        key, sub = jax.random.split(key)
        w = 0.02 * jax.random.normal(sub, (d_in, d_out), dtype=jnp.float32)
        w = jnp.pad(w, ((0, d_in_pad - d_in), (0, d_out_pad - d_out)))
        w = w.astype(jnp.bfloat16)
        b = jnp.zeros((1, d_out_pad), dtype=jnp.float32)
        params.append((w, b))
    return params


def discriminator_forward(z, params, *, block_batch=256):
    """Runs the fused Pallas kernel.  Returns logits with PyTorch .squeeze()."""
    batch, z_dim = z.shape

    # Pick a batch tile: full (8-aligned) batch for small inputs, 256-row
    # tiles (MXU-height on v6e/v7x) for larger batches.
    if batch <= block_batch:
        tb = _round_up(batch, 8)
    else:
        tb = block_batch
    padded_batch = _round_up(batch, tb)
    if padded_batch != batch:
        z = jnp.pad(z, ((0, padded_batch - batch), (0, 0)))

    grid = (padded_batch // tb,)

    flat = []
    weight_specs = []
    for w, b in params:
        flat.extend([w, b])
        # Constant block index -> weights/biases stay resident across the
        # batch grid (fetched once, not re-streamed per tile).
        weight_specs.append(pl.BlockSpec(w.shape, lambda i: (0, 0)))
        weight_specs.append(pl.BlockSpec(b.shape, lambda i: (0, 0)))

    in_specs = [pl.BlockSpec((tb, z_dim), lambda i: (i, 0))] + weight_specs
    out_specs = pl.BlockSpec((tb, OUT_PAD), lambda i: (i, 0))

    out = pl.pallas_call(
        discriminator_kernel,
        out_shape=jax.ShapeDtypeStruct((padded_batch, OUT_PAD), jnp.float32),
        grid=grid,
        in_specs=in_specs,
        out_specs=out_specs,
        compiler_params=pltpu.CompilerParams(
            dimension_semantics=("parallel",),
            # ~8.5 MiB of bf16 weights (double-buffered) + activations; 48 MiB
            # leaves headroom and fits v7x's 64 MiB physical VMEM.
            vmem_limit_bytes=48 << 20,
        ),
    )(z, *flat)

    out = out[:batch, :OUT]
    # PyTorch forward ends with .squeeze(); glue stays in plain JAX.
    return jnp.squeeze(out)


if __name__ == "__main__":
    key = jax.random.PRNGKey(0)
    z_dim = 32
    batch = 8

    k_params, k_input = jax.random.split(key)
    params = init_discriminator_params(k_params, z_dim)
    z = jax.random.normal(k_input, (batch, z_dim), dtype=jnp.float32)

    out = discriminator_forward(z, params)
    out = jax.block_until_ready(out)

    # Pure-JAX reference using the same (padded, bf16) weights / bf16
    # activation casts, so it matches the kernel's numerics.
    ref = z
    for i, (w, b) in enumerate(params):
        ref = jnp.dot(ref.astype(jnp.bfloat16), w,
                      preferred_element_type=jnp.float32) + b
        if i < len(params) - 1:
            ref = jnp.where(ref > 0, ref, 0.2 * ref)
    ref = jnp.squeeze(ref[:, :OUT])

    assert out.shape == (batch, OUT), out.shape
    assert jnp.allclose(out, ref, atol=2e-3, rtol=2e-3), (
        float(jnp.max(jnp.abs(out - ref))))

    print("KERNEL_OK")
</pallas_src>

<mosaic_0001>
module attributes {stable_mosaic.version = 11 : i64} {
  func.func @discriminator_kernel(%arg0: i32, %arg1: memref<8x32xf32, #tpu.memory_space<vmem>>, %arg2: memref<32x1024xbf16, #tpu.memory_space<vmem>>, %arg3: memref<1x1024xf32, #tpu.memory_space<vmem>>, %arg4: memref<1024x1024xbf16, #tpu.memory_space<vmem>>, %arg5: memref<1x1024xf32, #tpu.memory_space<vmem>>, %arg6: memref<1024x1024xbf16, #tpu.memory_space<vmem>>, %arg7: memref<1x1024xf32, #tpu.memory_space<vmem>>, %arg8: memref<1024x1024xbf16, #tpu.memory_space<vmem>>, %arg9: memref<1x1024xf32, #tpu.memory_space<vmem>>, %arg10: memref<1024x1024xbf16, #tpu.memory_space<vmem>>, %arg11: memref<1x1024xf32, #tpu.memory_space<vmem>>, %arg12: memref<1024x128xbf16, #tpu.memory_space<vmem>>, %arg13: memref<1x128xf32, #tpu.memory_space<vmem>>, %arg14: memref<8x128xf32, #tpu.memory_space<vmem>>) attributes {dimension_semantics = [#tpu.dimension_semantics<parallel>], iteration_bounds = array<i64: 1>, scalar_prefetch = 0 : i64, scratch_operands = 0 : i64, tpu.core_type = #tpu.core_type<tc>, window_params = [{transform_indices = @transform_0, window_bounds = array<i64: 8, 32>}, {pipeline_mode = #tpu.pipeline_mode<synchronous>, transform_indices = @transform_1, window_bounds = array<i64: 32, 1024>}, {pipeline_mode = #tpu.pipeline_mode<synchronous>, transform_indices = @transform_2, window_bounds = array<i64: 1, 1024>}, {pipeline_mode = #tpu.pipeline_mode<synchronous>, transform_indices = @transform_3, window_bounds = array<i64: 1024, 1024>}, {pipeline_mode = #tpu.pipeline_mode<synchronous>, transform_indices = @transform_4, window_bounds = array<i64: 1, 1024>}, {pipeline_mode = #tpu.pipeline_mode<synchronous>, transform_indices = @transform_5, window_bounds = array<i64: 1024, 1024>}, {pipeline_mode = #tpu.pipeline_mode<synchronous>, transform_indices = @transform_6, window_bounds = array<i64: 1, 1024>}, {pipeline_mode = #tpu.pipeline_mode<synchronous>, transform_indices = @transform_7, window_bounds = array<i64: 1024, 1024>}, {pipeline_mode = #tpu.pipeline_mode<synchronous>, transform_indices = @transform_8, window_bounds = array<i64: 1, 1024>}, {pipeline_mode = #tpu.pipeline_mode<synchronous>, transform_indices = @transform_9, window_bounds = array<i64: 1024, 1024>}, {pipeline_mode = #tpu.pipeline_mode<synchronous>, transform_indices = @transform_10, window_bounds = array<i64: 1, 1024>}, {pipeline_mode = #tpu.pipeline_mode<synchronous>, transform_indices = @transform_11, window_bounds = array<i64: 1024, 128>}, {pipeline_mode = #tpu.pipeline_mode<synchronous>, transform_indices = @transform_12, window_bounds = array<i64: 1, 128>}, {transform_indices = @transform_13, window_bounds = array<i64: 8, 128>}]} {
    %c0 = arith.constant 0 : index
    %c0_0 = arith.constant 0 : index
    %0 = vector.load %arg1[%c0, %c0_0] : memref<8x32xf32, #tpu.memory_space<vmem>>, vector<8x32xf32>
    %1 = arith.truncf %0 : vector<8x32xf32> to vector<8x32xbf16>
    %c0_1 = arith.constant 0 : index
    %c0_2 = arith.constant 0 : index
    %2 = vector.load %arg2[%c0_1, %c0_2] : memref<32x1024xbf16, #tpu.memory_space<vmem>>, vector<32x1024xbf16>
    %cst = arith.constant dense<0.000000e+00> : vector<8x1024xf32>
    %3 = tpu.matmul %1, %2, %cst {dimension_numbers = #tpu.dot_dimension_numbers<[1], [0], [0], [1], [0, 0, 1, 1], [], []>} : vector<8x32xbf16>, vector<32x1024xbf16>, vector<8x1024xf32> -> vector<8x1024xf32>
    %c0_3 = arith.constant 0 : index
    %c0_4 = arith.constant 0 : index
    %4 = vector.load %arg3[%c0_3, %c0_4] : memref<1x1024xf32, #tpu.memory_space<vmem>>, vector<1x1024xf32>
    %5 = vector.broadcast %4 : vector<1x1024xf32> to vector<8x1024xf32>
    %6 = arith.addf %3, %5 : vector<8x1024xf32>
    %cst_5 = arith.constant 0.000000e+00 : f32
    %7 = vector.broadcast %cst_5 : f32 to vector<8x1024xf32>
    %8 = arith.cmpf ogt, %6, %7 : vector<8x1024xf32>
    %cst_6 = arith.constant 2.000000e-01 : f32
    %9 = vector.broadcast %cst_6 : f32 to vector<8x1024xf32>
    %10 = arith.mulf %9, %6 : vector<8x1024xf32>
    %11 = arith.select %8, %6, %10 : vector<8x1024xi1>, vector<8x1024xf32>
    %12 = arith.truncf %11 : vector<8x1024xf32> to vector<8x1024xbf16>
    %c0_7 = arith.constant 0 : index
    %c0_8 = arith.constant 0 : index
    %13 = vector.load %arg4[%c0_7, %c0_8] : memref<1024x1024xbf16, #tpu.memory_space<vmem>>, vector<1024x1024xbf16>
    %cst_9 = arith.constant dense<0.000000e+00> : vector<8x1024xf32>
    %14 = tpu.matmul %12, %13, %cst_9 {dimension_numbers = #tpu.dot_dimension_numbers<[1], [0], [0], [1], [0, 0, 1, 1], [], []>} : vector<8x1024xbf16>, vector<1024x1024xbf16>, vector<8x1024xf32> -> vector<8x1024xf32>
    %c0_10 = arith.constant 0 : index
    %c0_11 = arith.constant 0 : index
    %15 = vector.load %arg5[%c0_10, %c0_11] : memref<1x1024xf32, #tpu.memory_space<vmem>>, vector<1x1024xf32>
    %16 = vector.broadcast %15 : vector<1x1024xf32> to vector<8x1024xf32>
    %17 = arith.addf %14, %16 : vector<8x1024xf32>
    %cst_12 = arith.constant 0.000000e+00 : f32
    %18 = vector.broadcast %cst_12 : f32 to vector<8x1024xf32>
    %19 = arith.cmpf ogt, %17, %18 : vector<8x1024xf32>
    %cst_13 = arith.constant 2.000000e-01 : f32
    %20 = vector.broadcast %cst_13 : f32 to vector<8x1024xf32>
    %21 = arith.mulf %20, %17 : vector<8x1024xf32>
    %22 = arith.select %19, %17, %21 : vector<8x1024xi1>, vector<8x1024xf32>
    %23 = arith.truncf %22 : vector<8x1024xf32> to vector<8x1024xbf16>
    %c0_14 = arith.constant 0 : index
    %c0_15 = arith.constant 0 : index
    %24 = vector.load %arg6[%c0_14, %c0_15] : memref<1024x1024xbf16, #tpu.memory_space<vmem>>, vector<1024x1024xbf16>
    %cst_16 = arith.constant dense<0.000000e+00> : vector<8x1024xf32>
    %25 = tpu.matmul %23, %24, %cst_16 {dimension_numbers = #tpu.dot_dimension_numbers<[1], [0], [0], [1], [0, 0, 1, 1], [], []>} : vector<8x1024xbf16>, vector<1024x1024xbf16>, vector<8x1024xf32> -> vector<8x1024xf32>
    %c0_17 = arith.constant 0 : index
    %c0_18 = arith.constant 0 : index
    %26 = vector.load %arg7[%c0_17, %c0_18] : memref<1x1024xf32, #tpu.memory_space<vmem>>, vector<1x1024xf32>
    %27 = vector.broadcast %26 : vector<1x1024xf32> to vector<8x1024xf32>
    %28 = arith.addf %25, %27 : vector<8x1024xf32>
    %cst_19 = arith.constant 0.000000e+00 : f32
    %29 = vector.broadcast %cst_19 : f32 to vector<8x1024xf32>
    %30 = arith.cmpf ogt, %28, %29 : vector<8x1024xf32>
    %cst_20 = arith.constant 2.000000e-01 : f32
    %31 = vector.broadcast %cst_20 : f32 to vector<8x1024xf32>
    %32 = arith.mulf %31, %28 : vector<8x1024xf32>
    %33 = arith.select %30, %28, %32 : vector<8x1024xi1>, vector<8x1024xf32>
    %34 = arith.truncf %33 : vector<8x1024xf32> to vector<8x1024xbf16>
    %c0_21 = arith.constant 0 : index
    %c0_22 = arith.constant 0 : index
    %35 = vector.load %arg8[%c0_21, %c0_22] : memref<1024x1024xbf16, #tpu.memory_space<vmem>>, vector<1024x1024xbf16>
    %cst_23 = arith.constant dense<0.000000e+00> : vector<8x1024xf32>
    %36 = tpu.matmul %34, %35, %cst_23 {dimension_numbers = #tpu.dot_dimension_numbers<[1], [0], [0], [1], [0, 0, 1, 1], [], []>} : vector<8x1024xbf16>, vector<1024x1024xbf16>, vector<8x1024xf32> -> vector<8x1024xf32>
    %c0_24 = arith.constant 0 : index
    %c0_25 = arith.constant 0 : index
    %37 = vector.load %arg9[%c0_24, %c0_25] : memref<1x1024xf32, #tpu.memory_space<vmem>>, vector<1x1024xf32>
    %38 = vector.broadcast %37 : vector<1x1024xf32> to vector<8x1024xf32>
    %39 = arith.addf %36, %38 : vector<8x1024xf32>
    %cst_26 = arith.constant 0.000000e+00 : f32
    %40 = vector.broadcast %cst_26 : f32 to vector<8x1024xf32>
    %41 = arith.cmpf ogt, %39, %40 : vector<8x1024xf32>
    %cst_27 = arith.constant 2.000000e-01 : f32
    %42 = vector.broadcast %cst_27 : f32 to vector<8x1024xf32>
    %43 = arith.mulf %42, %39 : vector<8x1024xf32>
    %44 = arith.select %41, %39, %43 : vector<8x1024xi1>, vector<8x1024xf32>
    %45 = arith.truncf %44 : vector<8x1024xf32> to vector<8x1024xbf16>
    %c0_28 = arith.constant 0 : index
    %c0_29 = arith.constant 0 : index
    %46 = vector.load %arg10[%c0_28, %c0_29] : memref<1024x1024xbf16, #tpu.memory_space<vmem>>, vector<1024x1024xbf16>
    %cst_30 = arith.constant dense<0.000000e+00> : vector<8x1024xf32>
    %47 = tpu.matmul %45, %46, %cst_30 {dimension_numbers = #tpu.dot_dimension_numbers<[1], [0], [0], [1], [0, 0, 1, 1], [], []>} : vector<8x1024xbf16>, vector<1024x1024xbf16>, vector<8x1024xf32> -> vector<8x1024xf32>
    %c0_31 = arith.constant 0 : index
    %c0_32 = arith.constant 0 : index
    %48 = vector.load %arg11[%c0_31, %c0_32] : memref<1x1024xf32, #tpu.memory_space<vmem>>, vector<1x1024xf32>
    %49 = vector.broadcast %48 : vector<1x1024xf32> to vector<8x1024xf32>
    %50 = arith.addf %47, %49 : vector<8x1024xf32>
    %cst_33 = arith.constant 0.000000e+00 : f32
    %51 = vector.broadcast %cst_33 : f32 to vector<8x1024xf32>
    %52 = arith.cmpf ogt, %50, %51 : vector<8x1024xf32>
    %cst_34 = arith.constant 2.000000e-01 : f32
    %53 = vector.broadcast %cst_34 : f32 to vector<8x1024xf32>
    %54 = arith.mulf %53, %50 : vector<8x1024xf32>
    %55 = arith.select %52, %50, %54 : vector<8x1024xi1>, vector<8x1024xf32>
    %56 = arith.truncf %55 : vector<8x1024xf32> to vector<8x1024xbf16>
    %c0_35 = arith.constant 0 : index
    %c0_36 = arith.constant 0 : index
    %57 = vector.load %arg12[%c0_35, %c0_36] : memref<1024x128xbf16, #tpu.memory_space<vmem>>, vector<1024x128xbf16>
    %cst_37 = arith.constant dense<0.000000e+00> : vector<8x128xf32>
    %58 = tpu.matmul %56, %57, %cst_37 {dimension_numbers = #tpu.dot_dimension_numbers<[1], [0], [0], [1], [0, 0, 1, 1], [], []>} : vector<8x1024xbf16>, vector<1024x128xbf16>, vector<8x128xf32> -> vector<8x128xf32>
    %c0_38 = arith.constant 0 : index
    %c0_39 = arith.constant 0 : index
    %59 = vector.load %arg13[%c0_38, %c0_39] : memref<1x128xf32, #tpu.memory_space<vmem>>, vector<1x128xf32>
    %60 = vector.broadcast %59 : vector<1x128xf32> to vector<8x128xf32>
    %61 = arith.addf %58, %60 : vector<8x128xf32>
    %c0_40 = arith.constant 0 : index
    %c0_41 = arith.constant 0 : index
    %62 = vector.load %arg14[%c0_40, %c0_41] : memref<8x128xf32, #tpu.memory_space<vmem>>, vector<8x128xf32>
    tpu.vector_store %arg14[%c0_40, %c0_41], %61 {strides = array<i32>} : memref<8x128xf32, #tpu.memory_space<vmem>>, vector<8x128xf32>,
    return
  }
  func.func @transform_0(%arg0: i32) -> (i32, i32) {
    %c0_i32 = arith.constant 0 : i32
    %c0_i32_0 = arith.constant 0 : i32
    return %arg0, %c0_i32 : i32, i32
  }
  func.func @transform_1(%arg0: i32) -> (i32, i32) {
    %c0_i32 = arith.constant 0 : i32
    %c0_i32_0 = arith.constant 0 : i32
    %c0_i32_1 = arith.constant 0 : i32
    return %c0_i32, %c0_i32_0 : i32, i32
  }
  func.func @transform_2(%arg0: i32) -> (i32, i32) {
    %c0_i32 = arith.constant 0 : i32
    %c0_i32_0 = arith.constant 0 : i32
    %c0_i32_1 = arith.constant 0 : i32
    return %c0_i32, %c0_i32_0 : i32, i32
  }
  func.func @transform_3(%arg0: i32) -> (i32, i32) {
    %c0_i32 = arith.constant 0 : i32
    %c0_i32_0 = arith.constant 0 : i32
    %c0_i32_1 = arith.constant 0 : i32
    return %c0_i32, %c0_i32_0 : i32, i32
  }
  func.func @transform_4(%arg0: i32) -> (i32, i32) {
    %c0_i32 = arith.constant 0 : i32
    %c0_i32_0 = arith.constant 0 : i32
    %c0_i32_1 = arith.constant 0 : i32
    return %c0_i32, %c0_i32_0 : i32, i32
  }
  func.func @transform_5(%arg0: i32) -> (i32, i32) {
    %c0_i32 = arith.constant 0 : i32
    %c0_i32_0 = arith.constant 0 : i32
    %c0_i32_1 = arith.constant 0 : i32
    return %c0_i32, %c0_i32_0 : i32, i32
  }
  func.func @transform_6(%arg0: i32) -> (i32, i32) {
    %c0_i32 = arith.constant 0 : i32
    %c0_i32_0 = arith.constant 0 : i32
    %c0_i32_1 = arith.constant 0 : i32
    return %c0_i32, %c0_i32_0 : i32, i32
  }
  func.func @transform_7(%arg0: i32) -> (i32, i32) {
    %c0_i32 = arith.constant 0 : i32
    %c0_i32_0 = arith.constant 0 : i32
    %c0_i32_1 = arith.constant 0 : i32
    return %c0_i32, %c0_i32_0 : i32, i32
  }
  func.func @transform_8(%arg0: i32) -> (i32, i32) {
    %c0_i32 = arith.constant 0 : i32
    %c0_i32_0 = arith.constant 0 : i32
    %c0_i32_1 = arith.constant 0 : i32
    return %c0_i32, %c0_i32_0 : i32, i32
  }
  func.func @transform_9(%arg0: i32) -> (i32, i32) {
    %c0_i32 = arith.constant 0 : i32
    %c0_i32_0 = arith.constant 0 : i32
    %c0_i32_1 = arith.constant 0 : i32
    return %c0_i32, %c0_i32_0 : i32, i32
  }
  func.func @transform_10(%arg0: i32) -> (i32, i32) {
    %c0_i32 = arith.constant 0 : i32
    %c0_i32_0 = arith.constant 0 : i32
    %c0_i32_1 = arith.constant 0 : i32
    return %c0_i32, %c0_i32_0 : i32, i32
  }
  func.func @transform_11(%arg0: i32) -> (i32, i32) {
    %c0_i32 = arith.constant 0 : i32
    %c0_i32_0 = arith.constant 0 : i32
    %c0_i32_1 = arith.constant 0 : i32
    return %c0_i32, %c0_i32_0 : i32, i32
  }
  func.func @transform_12(%arg0: i32) -> (i32, i32) {
    %c0_i32 = arith.constant 0 : i32
    %c0_i32_0 = arith.constant 0 : i32
    %c0_i32_1 = arith.constant 0 : i32
    return %c0_i32, %c0_i32_0 : i32, i32
  }
  func.func @transform_13(%arg0: i32) -> (i32, i32) {
    %c0_i32 = arith.constant 0 : i32
    %c0_i32_0 = arith.constant 0 : i32
    return %arg0, %c0_i32 : i32, i32
  }
}

</mosaic_0001>

<bundles_post_ra>
// kernel: tpu_custom_call.1
= control target key start
LH: loop header
LB: loop body
LE: loop exit
PB: predicated region body
PF: predicated region fallthrough
CT: control target
= control target key end

     0   :  { %18 = vsyncpa [#allocation3], 0  ;;  %s19876_s0 = inlined_call_operand.hbm [shape: f32[8,32], index: 0, kind: input, shape index: {}]   ;;  %s19877_s1 = inlined_call_operand.hbm [shape: bf16[32,1024], index: 1, kind: input, shape index: {}]   ;;  %s19878_s2 = inlined_call_operand.hbm [shape: f32[1,1024], index: 2, kind: input, shape index: {}]   ;;  %s19879_s3 = inlined_call_operand.hbm [shape: bf16[1024,1024], index: 3, kind: input, shape index: {}]   ;;  %s19880_s4 = inlined_call_operand.hbm [shape: f32[1,1024], index: 4, kind: input, shape index: {}]   ;;  %s19881_s5 = inlined_call_operand.hbm [shape: bf16[1024,1024], index: 5, kind: input, shape index: {}]   ;;  %s19882_s6 = inlined_call_operand.hbm [shape: f32[1,1024], index: 6, kind: input, shape index: {}]   ;;  %s19883_s7 = inlined_call_operand.hbm [shape: bf16[1024,1024], index: 7, kind: input, shape index: {}]   ;;  %s19884_s8 = inlined_call_operand.hbm [shape: f32[1,1024], index: 8, kind: input, shape index: {}]   ;;  %s19885_s9 = inlined_call_operand.hbm [shape: bf16[1024,1024], index: 9, kind: input, shape index: {}]   ;;  %s19886_s10 = inlined_call_operand.hbm [shape: f32[1,1024], index: 10, kind: input, shape index: {}]   ;;  %s19887_s11 = inlined_call_operand.hbm [shape: bf16[1024,128], index: 11, kind: input, shape index: {}]   ;;  %s19888_s12 = inlined_call_operand.hbm [shape: f32[1,128], index: 12, kind: input, shape index: {}]   ;;  %s19889_s13 = inlined_call_operand.hbm [shape: f32[8,128], index: 13, kind: output, shape index: {}]  }
   0x1   :  { %19 = vsyncpa [#allocation6], 0 }
   0x2   :  { %20 = vsyncpa [#allocation9], 0 }
   0x3   :  { %21 = vsyncpa [#allocation12], 0 }
   0x4   :  { %22 = vsyncpa [#allocation15], 0 }
   0x5   :  { %23 = vsyncpa [#allocation18], 0 }
   0x6   :  { %24 = vsyncpa [#allocation21], 0 }
   0x7   :  { %25 = vsyncpa [#allocation4], 0  ;;  %s19064_s25 = smov [#allocation5]  }
   0x8   :  { %s41_s26 = sshll.u32 %s19064_s25, 4  ;;  %s42_s26 = int_to_ptr.vmem [resolvable:$true] %s41_s26 }
   0x9   :  { %s18776_s27 = scalar_lea.vmem %s42_s26, 2048  ;;  %p18781_p1 = scmp.lt.s32.totalorder %s42_s26, %s42_s26 }
   0xa   :  { %p18777_p0 = scmp.ne.s32.totalorder %s42_s26, %s18776_s27  ;;  %p18782_p2 = scmp.lt.s32.totalorder %s18776_s27, %s18776_s27 }
   0xc   :  { %p18783_p3 = por %p18782_p2, %p18781_p1 }
   0xe   :  { %p18784_p4 = pnand %p18783_p3, %p18777_p0 }
  0x10   :  { %18787 = shalt.err (!%p18784_p4)
}
  0x11   :  { %s19065_s28 = smov 512   ;;  %s19066_s29 = smov 32  }
  0x12   :  { %47 = dma.hbm_to_vmem [thread:$0]  %s19877_s1, 2048, %s42_s26, [#allocation6], %s19065_s28, %s19065_s28, %s19066_s29  }
  0x13   :  { %s19067_s15 = smov [#allocation8]   ;;  %s19068_s17 = smov [#allocation11]  }
  0x14   :  { %s63_s16 = sshll.u32 %s19067_s15, 4  ;;  %s85_s18 = sshll.u32 %s19068_s17, 4  ;;  %s64_s16 = int_to_ptr.vmem [resolvable:$true] %s63_s16  ;;  %s86_s18 = int_to_ptr.vmem [resolvable:$true] %s85_s18 }
  0x15   :  { %s18796_s19 = scalar_lea.vmem %s64_s16, 65536  ;;  %p18801_p6 = scmp.lt.s32.totalorder %s64_s16, %s64_s16 }
  0x16   :  { %p18797_p5 = scmp.ne.s32.totalorder %s64_s16, %s18796_s19  ;;  %p18802_p7 = scmp.lt.s32.totalorder %s18796_s19, %s18796_s19 }
  0x18   :  { %p18803_p8 = por %p18802_p7, %p18801_p6 }
  0x1a   :  { %p18804_p9 = pnand %p18803_p8, %p18797_p5 }
  0x1c   :  { %18807 = shalt.err (!%p18804_p9)
}
  0x1d   :  { %69 = dma.hbm_to_vmem [thread:$0]  %s19879_s3, 65536, %s64_s16, [#allocation9], %s19065_s28, %s19065_s28, %s19066_s29  }
  0x1e   :  { %s18816_s1 = scalar_lea.vmem %s86_s18, 65536  ;;  %p18821_p11 = scmp.lt.s32.totalorder %s86_s18, %s86_s18 }
  0x1f   :  { %p18817_p10 = scmp.ne.s32.totalorder %s86_s18, %s18816_s1  ;;  %p18822_p12 = scmp.lt.s32.totalorder %s18816_s1, %s18816_s1 }
  0x21   :  { %p18823_p13 = por %p18822_p12, %p18821_p11 }
  0x23   :  { %p18824_p0 = pnand %p18823_p13, %p18817_p10 }
  0x25   :  { %18827 = shalt.err (!%p18824_p0)
}
  0x26   :  { %91 = dma.hbm_to_vmem [thread:$0]  %s19881_s5, 65536, %s86_s18, [#allocation12], %s19065_s28, %s19065_s28, %s19066_s29  }
  0x27   :  { %s19069_s24 = smov [#allocation14]   ;;  %s19070_s26 = smov [#allocation17]  }
  0x28   :  { %s107_s25 = sshll.u32 %s19069_s24, 4  ;;  %s129_s3 = sshll.u32 %s19070_s26, 4  ;;  %s108_s25 = int_to_ptr.vmem [resolvable:$true] %s107_s25  ;;  %s130_s3 = int_to_ptr.vmem [resolvable:$true] %s129_s3 }
  0x29   :  { %s18836_s27 = scalar_lea.vmem %s108_s25, 65536  ;;  %p18841_p2 = scmp.lt.s32.totalorder %s108_s25, %s108_s25 }
  0x2a   :  { %p18837_p1 = scmp.ne.s32.totalorder %s108_s25, %s18836_s27  ;;  %p18842_p3 = scmp.lt.s32.totalorder %s18836_s27, %s18836_s27 }
  0x2c   :  { %p18843_p4 = por %p18842_p3, %p18841_p2 }
  0x2e   :  { %p18844_p5 = pnand %p18843_p4, %p18837_p1 }
  0x30   :  { %18847 = shalt.err (!%p18844_p5)
}
  0x31   :  { %113 = dma.hbm_to_vmem [thread:$0]  %s19883_s7, 65536, %s108_s25, [#allocation15], %s19065_s28, %s19065_s28, %s19066_s29  }
  0x32   :  { %s18856_s5 = scalar_lea.vmem %s130_s3, 65536  ;;  %p18861_p7 = scmp.lt.s32.totalorder %s130_s3, %s130_s3 }
  0x33   :  { %p18857_p6 = scmp.ne.s32.totalorder %s130_s3, %s18856_s5  ;;  %p18862_p8 = scmp.lt.s32.totalorder %s18856_s5, %s18856_s5 }
  0x35   :  { %p18863_p9 = por %p18862_p8, %p18861_p7 }
  0x37   :  { %p18864_p10 = pnand %p18863_p9, %p18857_p6 }
  0x39   :  { %18867 = shalt.err (!%p18864_p10)
}
  0x3a   :  { %135 = dma.hbm_to_vmem [thread:$0]  %s19885_s9, 65536, %s130_s3, [#allocation18], %s19065_s28, %s19065_s28, %s19066_s29  }
  0x3b   :  { %s19071_s17 = smov [#allocation20]  }
  0x3c   :  { %s151_s18 = sshll.u32 %s19071_s17, 4  ;;  %s152_s18 = int_to_ptr.vmem [resolvable:$true] %s151_s18 }
  0x3d   :  { %s18876_s19 = scalar_lea.vmem %s152_s18, 8192  ;;  %p18881_p12 = scmp.lt.s32.totalorder %s152_s18, %s152_s18 }
  0x3e   :  { %p18877_p11 = scmp.ne.s32.totalorder %s152_s18, %s18876_s19  ;;  %p18882_p13 = scmp.lt.s32.totalorder %s18876_s19, %s18876_s19 }
  0x40   :  { %p18883_p0 = por %p18882_p13, %p18881_p12 }
  0x42   :  { %p18884_p1 = pnand %p18883_p0, %p18877_p11 }
  0x44   :  { %18887 = shalt.err (!%p18884_p1)
}
  0x45   :  { %s19072_s7 = smov 64   ;;  %s19073_s20 = smov 4  }
  0x46   :  { %157 = dma.hbm_to_vmem [thread:$0]  %s19887_s11, 8192, %s152_s18, [#allocation21], %s19072_s7, %s19072_s7, %s19073_s20  }
  0x47   :  { %s19074_s22 = smov [#allocation2]   ;;  %s19075_s24 = smov [#allocation7]  }
  0x48   :  { %s32_s23 = sshll.u32 %s19074_s22, 4  ;;  %s54_s9 = sshll.u32 %s19075_s24, 4  ;;  %s33_s23 = int_to_ptr.vmem [resolvable:$true] %s32_s23  ;;  %s55_s9 = int_to_ptr.vmem [resolvable:$true] %s54_s9 }
  0x49   :  { %s18896_s28 = scalar_lea.vmem %s33_s23, 128  ;;  %p18901_p3 = scmp.lt.s32.totalorder %s33_s23, %s33_s23 }
  0x4a   :  { %p18897_p2 = scmp.ne.s32.totalorder %s33_s23, %s18896_s28  ;;  %p18902_p4 = scmp.lt.s32.totalorder %s18896_s28, %s18896_s28 }
  0x4c   :  { %p18903_p5 = por %p18902_p4, %p18901_p3 }
  0x4e   :  { %p18904_p6 = pnand %p18903_p5, %p18897_p2 }
  0x50   :  { %18907 = shalt.err (!%p18904_p6)
}
  0x51   :  { %35 = dma.hbm_to_vmem [thread:$0]  %s19876_s0, 128, %s33_s23, [#allocation3]  }
  0x52   :  { %s18916_s26 = scalar_lea.vmem %s55_s9, 128  ;;  %p18921_p8 = scmp.lt.s32.totalorder %s55_s9, %s55_s9 }
  0x53   :  { %p18917_p7 = scmp.ne.s32.totalorder %s55_s9, %s18916_s26  ;;  %p18922_p9 = scmp.lt.s32.totalorder %s18916_s26, %s18916_s26 }
  0x55   :  { %p18923_p10 = por %p18922_p9, %p18921_p8 }
  0x57   :  { %p18924_p11 = pnand %p18923_p10, %p18917_p7 }
  0x59   :  { %18927 = shalt.err (!%p18924_p11)
}
  0x5a   :  { %57 = dma.hbm_to_vmem [thread:$0]  %s19878_s2, 128, %s55_s9, [#allocation6]  }
  0x5b   :  { %s19076_s27 = smov [#allocation10]   ;;  %s19077_s14 = smov [#allocation13]  }
  0x5c   :  { %s76_s30 = sshll.u32 %s19076_s27, 4  ;;  %s98_s5 = sshll.u32 %s19077_s14, 4  ;;  %s77_s30 = int_to_ptr.vmem [resolvable:$true] %s76_s30  ;;  %s99_s5 = int_to_ptr.vmem [resolvable:$true] %s98_s5 }
  0x5d   :  { %s18936_s15 = scalar_lea.vmem %s77_s30, 128  ;;  %p18941_p13 = scmp.lt.s32.totalorder %s77_s30, %s77_s30 }
  0x5e   :  { %p18937_p12 = scmp.ne.s32.totalorder %s77_s30, %s18936_s15  ;;  %p18942_p0 = scmp.lt.s32.totalorder %s18936_s15, %s18936_s15 }
  0x60   :  { %p18943_p1 = por %p18942_p0, %p18941_p13 }
  0x62   :  { %p18944_p2 = pnand %p18943_p1, %p18937_p12 }
  0x64   :  { %18947 = shalt.err (!%p18944_p2)
}
  0x65   :  { %79 = dma.hbm_to_vmem [thread:$0]  %s19880_s4, 128, %s77_s30, [#allocation9]  }
  0x66   :  { %s18956_s17 = scalar_lea.vmem %s99_s5, 128  ;;  %p18961_p4 = scmp.lt.s32.totalorder %s99_s5, %s99_s5 }
  0x67   :  { %p18957_p3 = scmp.ne.s32.totalorder %s99_s5, %s18956_s17  ;;  %p18962_p5 = scmp.lt.s32.totalorder %s18956_s17, %s18956_s17 }
  0x69   :  { %p18963_p6 = por %p18962_p5, %p18961_p4 }
  0x6b   :  { %p18964_p7 = pnand %p18963_p6, %p18957_p3 }
  0x6d   :  { %18967 = shalt.err (!%p18964_p7)
}
  0x6e   :  { %101 = dma.hbm_to_vmem [thread:$0]  %s19882_s6, 128, %s99_s5, [#allocation12]  }
  0x6f   :  { %s19078_s19 = smov [#allocation16]   ;;  %s19079_s20 = smov [#allocation19]  }
  0x70   :  { %s120_s7 = sshll.u32 %s19078_s19, 4  ;;  %s142_s21 = sshll.u32 %s19079_s20, 4  ;;  %s121_s7 = int_to_ptr.vmem [resolvable:$true] %s120_s7  ;;  %s143_s21 = int_to_ptr.vmem [resolvable:$true] %s142_s21 }
  0x71   :  { %s18976_s1 = scalar_lea.vmem %s121_s7, 128  ;;  %p18981_p9 = scmp.lt.s32.totalorder %s121_s7, %s121_s7 }
  0x72   :  { %p18977_p8 = scmp.ne.s32.totalorder %s121_s7, %s18976_s1  ;;  %p18982_p10 = scmp.lt.s32.totalorder %s18976_s1, %s18976_s1 }
  0x74   :  { %p18983_p11 = por %p18982_p10, %p18981_p9 }
  0x76   :  { %p18984_p12 = pnand %p18983_p11, %p18977_p8 }
  0x78   :  { %18987 = shalt.err (!%p18984_p12)
}
  0x79   :  { %123 = dma.hbm_to_vmem [thread:$0]  %s19884_s8, 128, %s121_s7, [#allocation15]  }
  0x7a   :  { %s18996_s23 = scalar_lea.vmem %s143_s21, 128  ;;  %p19001_p0 = scmp.lt.s32.totalorder %s143_s21, %s143_s21 }
  0x7b   :  { %p18997_p13 = scmp.ne.s32.totalorder %s143_s21, %s18996_s23  ;;  %p19002_p1 = scmp.lt.s32.totalorder %s18996_s23, %s18996_s23 }
  0x7d   :  { %p19003_p2 = por %p19002_p1, %p19001_p0 }
  0x7f   :  { %p19004_p3 = pnand %p19003_p2, %p18997_p13 }
  0x81   :  { %19007 = shalt.err (!%p19004_p3)
}
  0x82   :  { %145 = dma.hbm_to_vmem [thread:$0]  %s19886_s10, 128, %s143_s21, [#allocation18]  }
  0x83   :  { %s19080_s9 = smov [#allocation22]  }
  0x84   :  { %s164_s28 = sshll.u32 %s19080_s9, 4  ;;  %s165_s28 = int_to_ptr.vmem [resolvable:$true] %s164_s28 }
  0x85   :  { %s19016_s29 = scalar_lea.vmem %s165_s28, 16  ;;  %s19020_s25 = scalar_lea.vmem %s165_s28, 32 }
  0x86   :  { %p19017_p4 = scmp.ne.s32.totalorder %s165_s28, %s19016_s29  ;;  %p19021_p5 = scmp.lt.s32.totalorder %s165_s28, %s165_s28 }
  0x87   :  { %p19022_p6 = scmp.lt.s32.totalorder %s19020_s25, %s19016_s29 }
  0x89   :  { %p19023_p7 = por %p19022_p6, %p19021_p5 }
  0x8b   :  { %p19024_p8 = pnand %p19023_p7, %p19017_p4 }
  0x8d   :  { %19027 = shalt.err (!%p19024_p8)
}
  0x8e   :  { %167 = dma.hbm_to_vmem [thread:$0]  %s19888_s12, 16, %s165_s28, [#allocation21]  }
  0x8f   :  { %19048 = dma.done.wait [#allocation3], 128  }
  0x90   :  { %19049 = vsyncadd [#allocation3], 4294967168 }
  0x91   :  { %19050 = dma.done.wait [#allocation6], 2176  }
  0x92   :  { %19051 = vsyncadd [#allocation6], 4294965120 }
  0x93   :  { %19052 = dma.done.wait [#allocation9], 65664  }
  0x94   :  { %19053 = vsyncadd [#allocation9], 4294901632 }
  0x95   :  { %19054 = dma.done.wait [#allocation12], 65664  }
  0x96   :  { %19055 = vsyncadd [#allocation12], 4294901632 }
  0x97   :  { %19056 = dma.done.wait [#allocation15], 65664  }
  0x98   :  { %19057 = vsyncadd [#allocation15], 4294901632 }
  0x99   :  { %19058 = dma.done.wait [#allocation18], 65664  }
  0x9a   :  { %19059 = vsyncadd [#allocation18], 4294901632 }
  0x9b   :  { %19060 = dma.done.wait [#allocation21], 8208  }
  0x9c   :  { %19061 = vsyncadd [#allocation21], 4294959088  ;;  %v19081_v0 = vmov 0   ;;  %v218_v1 = vld [vmem:[#allocation5 + $0x40] sm:$0xff]  ;;  %v219_v3 = vld [vmem:[#allocation5 + $0x48] sm:$0xff]  ;;  %vm348_vm0 = vcmask 261120  }
  0x9d   :  { %384 = vmatprep.mubr.bf16.mxu0 %v19081_v0  ;;  %425 = vmatprep.mubr.bf16.mxu1 %v19081_v0  ;;  %v222_v2 = vld [vmem:[#allocation5 + $0x60] sm:$0xff]  ;;  %v223_v5 = vld [vmem:[#allocation5 + $0x68] sm:$0xff]  ;;  %v220_v15 = vld [vmem:[#allocation5 + $0x50] sm:$0xff]  ;;  %s19082_s10 = smov [#allocation23]  }
  0x9e   :  { %v16466_v4 = vcombine.high %v218_v1, %v222_v2  ;;  %v16465_v6 = vcombine.low %v218_v1, %v222_v2  ;;  %v210_v7 = vld [vmem:[#allocation5] sm:$0xff]  ;;  %v16468_v9 = vcombine.high %v219_v3, %v223_v5  ;;  %v16467_v10 = vcombine.low %v219_v3, %v223_v5  ;;  %v211_v12 = vld [vmem:[#allocation5 + $0x8] sm:$0xff]  ;;  %v224_v16 = vld [vmem:[#allocation5 + $0x70] sm:$0xff]  ;;  %s16442_s12 = sshll.u32 %s19082_s10, 4  ;;  %s16443_s12 = int_to_ptr.vmem [resolvable:$true] %s16442_s12 }
  0x9f   :  { %v214_v8 = vld [vmem:[#allocation5 + $0x20] sm:$0xff]  ;;  %v215_v13 = vld [vmem:[#allocation5 + $0x28] sm:$0xff]  ;;  %v221_v17 = vld [vmem:[#allocation5 + $0x58] sm:$0xff]  ;;  %v16470_v22 = vcombine.high %v220_v15, %v224_v16  ;;  %v16469_v29 = vcombine.low %v220_v15, %v224_v16  ;;  %s19028_s11 = scalar_lea.vmem %s16443_s12, 128  ;;  %p19033_p10 = scmp.lt.s32.totalorder %s16443_s12, %s16443_s12 }
  0xa0   :  { %v16458_v11 = vcombine.high %v210_v7, %v214_v8  ;;  %364 = vmatprep.subr.bf16.mxu0 %v16466_v4  ;;  %v16460_v14 = vcombine.high %v211_v12, %v215_v13  ;;  %405 = vmatprep.subr.bf16.mxu1 %v16468_v9  ;;  %v16457_v18 = vcombine.low %v210_v7, %v214_v8  ;;  %v208_v19 = vld [vmem:[#allocation2] sm:$0xff]  ;;  %v212_v24 = vld [vmem:[#allocation5 + $0x10] sm:$0xff]  ;;  %v604_v33 = vld [vmem:[#allocation8 + $0x1c0] sm:$0xff]  ;;  %p19029_p9 = scmp.ne.s32.totalorder %s16443_s12, %s19028_s11  ;;  %p19034_p11 = scmp.lt.s32.totalorder %s19028_s11, %s19028_s11 }
  0xa1   :  { %365 = vmatpush1.bf16.msra.mxu0 %v16465_v6  ;;  %v225_v20 = vld [vmem:[#allocation5 + $0x78] sm:$0xff]  ;;  %406 = vmatpush1.bf16.msra.mxu1 %v16467_v10  ;;  %v16459_v21 = vcombine.low %v211_v12, %v215_v13  ;;  %v216_v25 = vld [vmem:[#allocation5 + $0x30] sm:$0xff]  ;;  %v209_v26 = vpack.c.bf16 %v208_v19, %v208_v19  ;;  %v608_v34 = vld [vmem:[#allocation8 + $0x1e0] sm:$0xff] }
  0xa2   :  { %366 = vmatprep.subr.bf16.mxu0 %v16458_v11  ;;  %407 = vmatprep.subr.bf16.mxu1 %v16460_v14  ;;  %v16472_v23 = vcombine.high %v221_v17, %v225_v20  ;;  %v213_v27 = vld [vmem:[#allocation5 + $0x18] sm:$0xff]  ;;  %v16471_v30 = vcombine.low %v221_v17, %v225_v20  ;;  %v16462_v31 = vcombine.high %v212_v24, %v216_v25  ;;  %v732_v35 = vld [vmem:[#allocation8 + $0x5c0] sm:$0xff]  ;;  %p19035_p12 = por %p19034_p11, %p19033_p10 }
  0xa3   :  { %v217_v28 = vld [vmem:[#allocation5 + $0x38] sm:$0xff]  ;;  %v736_v36 = vld [vmem:[#allocation8 + $0x5e0] sm:$0xff]  ;;  %v16461_v37 = vcombine.low %v212_v24, %v216_v25  ;;  %v16534_v39 = vcombine.high %v604_v33, %v608_v34  ;;  %v16533_v45 = vcombine.low %v604_v33, %v608_v34 }
  0xa4   :  { %v16464_v32 = vcombine.high %v213_v27, %v217_v28  ;;  %v16463_v38 = vcombine.low %v213_v27, %v217_v28  ;;  %v16662_v40 = vcombine.high %v732_v35, %v736_v36  ;;  %v596_v41 = vld [vmem:[#allocation8 + $0x180] sm:$0xff]  ;;  %v16661_v46 = vcombine.low %v732_v35, %v736_v36  ;;  %p19036_p13 = pnand %p19035_p12, %p19029_p9 }
  0xa5   :  { %367 = vmatpush1.bf16.msra.mxu0 %v16457_v18  ;;  %408 = vmatpush1.bf16.msra.mxu1 %v16459_v21  ;;  %v600_v42 = vld [vmem:[#allocation8 + $0x1a0] sm:$0xff] }
  0xa6   :  { %446 = vmatprep.subr.bf16.mxu0 %v16470_v22  ;;  %487 = vmatprep.subr.bf16.mxu1 %v16472_v23  ;;  %v724_v43 = vld [vmem:[#allocation8 + $0x580] sm:$0xff]  ;;  %v16526_v47 = vcombine.high %v596_v41, %v600_v42  ;;  %v16525_v53 = vcombine.low %v596_v41, %v600_v42 }
  0xa7   :  { %v728_v44 = vld [vmem:[#allocation8 + $0x5a0] sm:$0xff] }
  0xa8   :  { %16473 = vmatmul.mubr.msk.bf16.vlgmr.msra.gmra.mxu0 %vm348_vm0, %v209_v26  ;;  %16474 = vmatmul.mubr.msk.bf16.vlgmr.msra.gmra.mxu1 %vm348_vm0, %v209_v26  ;;  %v16654_v48 = vcombine.high %v724_v43, %v728_v44  ;;  %v588_v49 = vld [vmem:[#allocation8 + $0x140] sm:$0xff]  ;;  %v16653_v54 = vcombine.low %v724_v43, %v728_v44 }
  0xa9   :  { %447 = vmatpush1.bf16.msra.mxu0 %v16469_v29  ;;  %488 = vmatpush1.bf16.msra.mxu1 %v16471_v30  ;;  %v592_v50 = vld [vmem:[#allocation8 + $0x160] sm:$0xff] }
  0xaa   :  { %448 = vmatprep.subr.bf16.mxu0 %v16462_v31  ;;  %489 = vmatprep.subr.bf16.mxu1 %v16464_v32  ;;  %v716_v51 = vld [vmem:[#allocation8 + $0x540] sm:$0xff]  ;;  %v16518_v55 = vcombine.high %v588_v49, %v592_v50  ;;  %v16517_v61 = vcombine.low %v588_v49, %v592_v50 }
  0xab   :  { %466 = vmatprep.mubr.bf16.mxu0 %v19081_v0  ;;  %507 = vmatprep.mubr.bf16.mxu1 %v19081_v0  ;;  %v720_v52 = vld [vmem:[#allocation8 + $0x560] sm:$0xff] }
  0xac   :  { %v16646_v56 = vcombine.high %v716_v51, %v720_v52  ;;  %v580_v57 = vld [vmem:[#allocation8 + $0x100] sm:$0xff]  ;;  %v16645_v0 = vcombine.low %v716_v51, %v720_v52 }
  0xad   :  { %449 = vmatpush1.bf16.msra.mxu0 %v16461_v37  ;;  %490 = vmatpush1.bf16.msra.mxu1 %v16463_v38  ;;  %v584_v58 = vld [vmem:[#allocation8 + $0x120] sm:$0xff] }
  0xae   :  { %3662 = vmatprep.subr.bf16.mxu0 %v16534_v39  ;;  %3703 = vmatprep.subr.bf16.mxu1 %v16662_v40  ;;  %v708_v59 = vld [vmem:[#allocation8 + $0x500] sm:$0xff]  ;;  %v16510_v1 = vcombine.high %v580_v57, %v584_v58  ;;  %v16509_v5 = vcombine.low %v580_v57, %v584_v58 }
  0xaf   :  { %v712_v60 = vld [vmem:[#allocation8 + $0x520] sm:$0xff] }
  0xb0   :  { %16475 = vmatmul.mubr.msk.bf16.vlgmr.msra.gmra.mxu0 %vm348_vm0, %v209_v26  ;;  %16476 = vmatmul.mubr.msk.bf16.vlgmr.msra.gmra.mxu1 %vm348_vm0, %v209_v26  ;;  %v572_v62 = vld [vmem:[#allocation8 + $0xc0] sm:$0xff]  ;;  %v16638_v4 = vcombine.high %v708_v59, %v712_v60  ;;  %v16637_v8 = vcombine.low %v708_v59, %v712_v60 }
  0xb1   :  { %3663 = vmatpush1.bf16.msra.mxu0 %v16533_v45  ;;  %3704 = vmatpush1.bf16.msra.mxu1 %v16661_v46  ;;  %v576_v63 = vld [vmem:[#allocation8 + $0xe0] sm:$0xff] }
  0xb2   :  { %3664 = vmatprep.subr.bf16.mxu0 %v16526_v47  ;;  %3705 = vmatprep.subr.bf16.mxu1 %v16654_v48  ;;  %v700_v2 = vld [vmem:[#allocation8 + $0x4c0] sm:$0xff]  ;;  %v16502_v9 = vcombine.high %v572_v62, %v576_v63  ;;  %v16501_v13 = vcombine.low %v572_v62, %v576_v63 }
  0xb3   :  { %v704_v3 = vld [vmem:[#allocation8 + $0x4e0] sm:$0xff] }
  0xb4   :  { %v564_v6 = vld [vmem:[#allocation8 + $0x80] sm:$0xff]  ;;  %v16630_v12 = vcombine.high %v700_v2, %v704_v3  ;;  %v16629_v16 = vcombine.low %v700_v2, %v704_v3 }
  0xb5   :  { %3665 = vmatpush1.bf16.msra.mxu0 %v16525_v53  ;;  %3706 = vmatpush1.bf16.msra.mxu1 %v16653_v54  ;;  %v568_v7 = vld [vmem:[#allocation8 + $0xa0] sm:$0xff] }
  0xb6   :  { %3666 = vmatprep.subr.bf16.mxu0 %v16518_v55  ;;  %3707 = vmatprep.subr.bf16.mxu1 %v16646_v56  ;;  %v692_v10 = vld [vmem:[#allocation8 + $0x480] sm:$0xff]  ;;  %v16494_v17 = vcombine.high %v564_v6, %v568_v7  ;;  %v16493_v21 = vcombine.low %v564_v6, %v568_v7 }
  0xb7   :  { %v696_v11 = vld [vmem:[#allocation8 + $0x4a0] sm:$0xff] }
  0xb8   :  { %v556_v14 = vld [vmem:[#allocation8 + $0x40] sm:$0xff]  ;;  %v16622_v20 = vcombine.high %v692_v10, %v696_v11  ;;  %v16621_v24 = vcombine.low %v692_v10, %v696_v11 }
  0xb9   :  { %3667 = vmatpush1.bf16.msra.mxu0 %v16517_v61  ;;  %3708 = vmatpush1.bf16.msra.mxu1 %v16645_v0  ;;  %v560_v15 = vld [vmem:[#allocation8 + $0x60] sm:$0xff] }
  0xba   :  { %3668 = vmatprep.subr.bf16.mxu0 %v16510_v1  ;;  %3709 = vmatprep.subr.bf16.mxu1 %v16638_v4  ;;  %v684_v18 = vld [vmem:[#allocation8 + $0x440] sm:$0xff]  ;;  %v16486_v25 = vcombine.high %v556_v14, %v560_v15  ;;  %v16485_v29 = vcombine.low %v556_v14, %v560_v15 }
  0xbb   :  { %v688_v19 = vld [vmem:[#allocation8 + $0x460] sm:$0xff] }
  0xbc   :  { %v548_v22 = vld [vmem:[#allocation8] sm:$0xff]  ;;  %v16614_v28 = vcombine.high %v684_v18, %v688_v19  ;;  %v16613_v32 = vcombine.low %v684_v18, %v688_v19 }
  0xbd   :  { %3669 = vmatpush1.bf16.msra.mxu0 %v16509_v5  ;;  %3710 = vmatpush1.bf16.msra.mxu1 %v16637_v8  ;;  %v552_v23 = vld [vmem:[#allocation8 + $0x20] sm:$0xff] }
  0xbe   :  { %3670 = vmatprep.subr.bf16.mxu0 %v16502_v9  ;;  %3711 = vmatprep.subr.bf16.mxu1 %v16630_v12  ;;  %v676_v26 = vld [vmem:[#allocation8 + $0x400] sm:$0xff]  ;;  %v16478_v33 = vcombine.high %v548_v22, %v552_v23  ;;  %v16477_v37 = vcombine.low %v548_v22, %v552_v23 }
  0xbf   :  { %v680_v27 = vld [vmem:[#allocation8 + $0x420] sm:$0xff] }
  0xc0   :  { %v668_v30 = vld [vmem:[#allocation8 + $0x3c0] sm:$0xff]  ;;  %v16606_v36 = vcombine.high %v676_v26, %v680_v27  ;;  %v16605_v40 = vcombine.low %v676_v26, %v680_v27 }
  0xc1   :  { %3671 = vmatpush1.bf16.msra.mxu0 %v16501_v13  ;;  %3712 = vmatpush1.bf16.msra.mxu1 %v16629_v16  ;;  %v672_v31 = vld [vmem:[#allocation8 + $0x3e0] sm:$0xff] }
  0xc2   :  { %3672 = vmatprep.subr.bf16.mxu0 %v16494_v17  ;;  %3713 = vmatprep.subr.bf16.mxu1 %v16622_v20  ;;  %v796_v34 = vld [vmem:[#allocation8 + $0x7c0] sm:$0xff]  ;;  %v16598_v41 = vcombine.high %v668_v30, %v672_v31  ;;  %v16597_v45 = vcombine.low %v668_v30, %v672_v31 }
  0xc3   :  { %v800_v35 = vld [vmem:[#allocation8 + $0x7e0] sm:$0xff] }
  0xc4   :  { %v660_v38 = vld [vmem:[#allocation8 + $0x380] sm:$0xff]  ;;  %v16726_v44 = vcombine.high %v796_v34, %v800_v35  ;;  %v16725_v48 = vcombine.low %v796_v34, %v800_v35 }
  0xc5   :  { %3673 = vmatpush1.bf16.msra.mxu0 %v16493_v21  ;;  %3714 = vmatpush1.bf16.msra.mxu1 %v16621_v24  ;;  %v664_v39 = vld [vmem:[#allocation8 + $0x3a0] sm:$0xff] }
  0xc6   :  { %3674 = vmatprep.subr.bf16.mxu0 %v16486_v25  ;;  %3715 = vmatprep.subr.bf16.mxu1 %v16614_v28  ;;  %v788_v42 = vld [vmem:[#allocation8 + $0x780] sm:$0xff]  ;;  %v16590_v49 = vcombine.high %v660_v38, %v664_v39  ;;  %v16589_v53 = vcombine.low %v660_v38, %v664_v39 }
  0xc7   :  { %v792_v43 = vld [vmem:[#allocation8 + $0x7a0] sm:$0xff] }
  0xc8   :  { %v652_v46 = vld [vmem:[#allocation8 + $0x340] sm:$0xff]  ;;  %v16718_v52 = vcombine.high %v788_v42, %v792_v43  ;;  %v16717_v56 = vcombine.low %v788_v42, %v792_v43  ;;  %v228_v43 = vlaneseq }
  0xc9   :  { %3675 = vmatpush1.bf16.msra.mxu0 %v16485_v29  ;;  %3716 = vmatpush1.bf16.msra.mxu1 %v16613_v32  ;;  %v656_v47 = vld [vmem:[#allocation8 + $0x360] sm:$0xff] }
  0xca   :  { %3676 = vmatprep.subr.bf16.mxu0 %v16478_v33  ;;  %3717 = vmatprep.subr.bf16.mxu1 %v16606_v36  ;;  %v780_v50 = vld [vmem:[#allocation8 + $0x740] sm:$0xff]  ;;  %v16582_v57 = vcombine.high %v652_v46, %v656_v47  ;;  %v16581_v61 = vcombine.low %v652_v46, %v656_v47  ;;  %v19232_v46 = vld [vmem:[#allocation7] sm:$0xff] }
  0xcb   :  { %v784_v51 = vld [vmem:[#allocation8 + $0x760] sm:$0xff] }
  0xcc   :  { %v644_v54 = vld [vmem:[#allocation8 + $0x300] sm:$0xff]  ;;  %v16710_v60 = vcombine.high %v780_v50, %v784_v51  ;;  %v16709_v0 = vcombine.low %v780_v50, %v784_v51 }
  0xcd   :  { %3677 = vmatpush1.bf16.msra.mxu0 %v16477_v37  ;;  %3718 = vmatpush1.bf16.msra.mxu1 %v16605_v40  ;;  %v648_v55 = vld [vmem:[#allocation8 + $0x320] sm:$0xff] }
  0xce   :  { %3678 = vmatprep.subr.bf16.mxu0 %v16598_v41  ;;  %3719 = vmatprep.subr.bf16.mxu1 %v16726_v44  ;;  %v772_v58 = vld [vmem:[#allocation8 + $0x700] sm:$0xff]  ;;  %v16574_v1 = vcombine.high %v644_v54, %v648_v55  ;;  %v16573_v5 = vcombine.low %v644_v54, %v648_v55  ;;  %v19227_v44 = vshrl.u32 %v228_v43, 7 }
  0xcf   :  { %v776_v59 = vld [vmem:[#allocation8 + $0x720] sm:$0xff] }
  0xd0   :  { %v636_v62 = vld [vmem:[#allocation8 + $0x2c0] sm:$0xff]  ;;  %v16702_v4 = vcombine.high %v772_v58, %v776_v59  ;;  %v16701_v8 = vcombine.low %v772_v58, %v776_v59  ;;  %v19235_v47 = vsub.s32 2, %v19227_v44 }
  0xd1   :  { %3679 = vmatpush2.bf16.msra.mxu0 %v16597_v45  ;;  %3720 = vmatpush2.bf16.msra.mxu1 %v16725_v48  ;;  %v640_v63 = vld [vmem:[#allocation8 + $0x2e0] sm:$0xff]  ;;  %v19230_v45 = vsub.s32 0, %v19227_v44  ;;  %v19238_v48 = vsub.s32 1, %v19227_v44 }
  0xd2   :  { %3680 = vmatprep.subr.bf16.mxu0 %v16590_v49  ;;  %3721 = vmatprep.subr.bf16.mxu1 %v16718_v52  ;;  %v764_v2 = vld [vmem:[#allocation8 + $0x6c0] sm:$0xff]  ;;  %v16566_v9 = vcombine.high %v636_v62, %v640_v63  ;;  %v16565_v13 = vcombine.low %v636_v62, %v640_v63  ;;  %v19241_v49 = vsub.s32 3, %v19227_v44  ;;  %v239_v51 = vrot.slane %v19232_v46, %v19235_v47 }
  0xd3   :  { %v768_v3 = vld [vmem:[#allocation8 + $0x6e0] sm:$0xff]  ;;  %v231_v50 = vrot.slane %v19232_v46, %v19230_v45  ;;  %v235_v52 = vrot.slane %v19232_v46, %v19238_v48  ;;  %v19252_v62 = vsub.s32 5, %v19227_v44 }
  0xd4   :  { %v628_v6 = vld [vmem:[#allocation8 + $0x280] sm:$0xff]  ;;  %v16694_v12 = vcombine.high %v764_v2, %v768_v3  ;;  %v16693_v14 = vcombine.low %v764_v2, %v768_v3  ;;  %v243_v54 = vrot.slane %v19232_v46, %v19241_v49  ;;  %v19255_v2 = vsub.s32 7, %v19227_v44 }
  0xd5   :  { %3681 = vmatpush2.bf16.msra.mxu0 %v16589_v53  ;;  %3722 = vmatpush2.bf16.msra.mxu1 %v16717_v56  ;;  %v632_v7 = vld [vmem:[#allocation8 + $0x2a0] sm:$0xff] }
  0xd6   :  { %3682 = vmatprep.subr.bf16.mxu0 %v16582_v57  ;;  %3723 = vmatprep.subr.bf16.mxu1 %v16710_v60  ;;  %v756_v10 = vld [vmem:[#allocation8 + $0x680] sm:$0xff]  ;;  %v16558_v15 = vcombine.high %v628_v6, %v632_v7  ;;  %v16557_v17 = vcombine.low %v628_v6, %v632_v7 }
  0xd7   :  { %v760_v11 = vld [vmem:[#allocation8 + $0x6a0] sm:$0xff] }
  0xd8   :  { %v16686_v16 = vcombine.high %v756_v10, %v760_v11  ;;  %v16685_v18 = vcombine.low %v756_v10, %v760_v11  ;;  %v620_v19 = vld [vmem:[#allocation8 + $0x240] sm:$0xff] }
  0xd9   :  { %3683 = vmatpush2.bf16.msra.mxu0 %v16581_v61  ;;  %3724 = vmatpush2.bf16.msra.mxu1 %v16709_v0  ;;  %v624_v20 = vld [vmem:[#allocation8 + $0x260] sm:$0xff] }
  0xda   :  { %3684 = vmatprep.subr.bf16.mxu0 %v16574_v1  ;;  %3725 = vmatprep.subr.bf16.mxu1 %v16702_v4  ;;  %v748_v21 = vld [vmem:[#allocation8 + $0x640] sm:$0xff]  ;;  %v16550_v22 = vcombine.high %v620_v19, %v624_v20  ;;  %v16549_v24 = vcombine.low %v620_v19, %v624_v20  ;;  %v259_v19 = vrot.slane %v19232_v46, %v19255_v2 }
  0xdb   :  { %v752_v23 = vld [vmem:[#allocation8 + $0x660] sm:$0xff] }
  0xdc   :  { %v16677_v25 = vcombine.low %v748_v21, %v752_v23  ;;  %v16678_v26 = vcombine.high %v748_v21, %v752_v23  ;;  %v612_v27 = vld [vmem:[#allocation8 + $0x200] sm:$0xff] }
  0xdd   :  { %3685 = vmatpush2.bf16.msra.mxu0 %v16573_v5  ;;  %3726 = vmatpush2.bf16.msra.mxu1 %v16701_v8  ;;  %v616_v28 = vld [vmem:[#allocation8 + $0x220] sm:$0xff] }
  0xde   :  { %3686 = vmatprep.subr.bf16.mxu0 %v16566_v9  ;;  %3727 = vmatprep.subr.bf16.mxu1 %v16694_v12  ;;  %v740_v29 = vld [vmem:[#allocation8 + $0x600] sm:$0xff]  ;;  %v16542_v30 = vcombine.high %v612_v27, %v616_v28  ;;  %v16541_v32 = vcombine.low %v612_v27, %v616_v28 }
  0xdf   :  { %v744_v31 = vld [vmem:[#allocation8 + $0x620] sm:$0xff] }
  0xe0   :  { %v16669_v33 = vcombine.low %v740_v29, %v744_v31  ;;  %v16670_v34 = vcombine.high %v740_v29, %v744_v31  ;;  %v19211_v35 = vld [vmem:[#allocation8 + $0x9c0] sm:$0xff] }
  0xe1   :  { %3687 = vmatpush2.bf16.msra.mxu0 %v16565_v13  ;;  %3728 = vmatpush2.bf16.msra.mxu1 %v16693_v14  ;;  %v19213_v36 = vld [vmem:[#allocation8 + $0x9e0] sm:$0xff] }
  0xe2   :  { %3688 = vmatprep.subr.bf16.mxu0 %v16558_v15  ;;  %3729 = vmatprep.subr.bf16.mxu1 %v16686_v16  ;;  %v19215_v37 = vld [vmem:[#allocation8 + $0xdc0] sm:$0xff]  ;;  %v16790_v38 = vcombine.high %v19211_v35, %v19213_v36  ;;  %v16789_v40 = vcombine.low %v19211_v35, %v19213_v36  ;;  %v251_v15 = vrot.slane %v19232_v46, %v19252_v62 }
  0xe3   :  { %v19219_v39 = vld [vmem:[#allocation8 + $0xde0] sm:$0xff] }
  0xe4   :  { %v16917_v41 = vcombine.low %v19215_v37, %v19219_v39  ;;  %v16918_v42 = vcombine.high %v19215_v37, %v19219_v39  ;;  %v852_v8 = vld [vmem:[#allocation8 + $0x980] sm:$0xff] }
  0xe5   :  { %3689 = vmatpush2.bf16.msra.mxu0 %v16557_v17  ;;  %3730 = vmatpush2.bf16.msra.mxu1 %v16685_v18  ;;  %v856_v9 = vld [vmem:[#allocation8 + $0x9a0] sm:$0xff] }
  0xe6   :  { %3690 = vmatprep.subr.bf16.mxu0 %v16550_v22  ;;  %3731 = vmatprep.subr.bf16.mxu1 %v16678_v26  ;;  %v980_v13 = vld [vmem:[#allocation8 + $0xd80] sm:$0xff]  ;;  %v16782_v22 = vcombine.high %v852_v8, %v856_v9 }
  0xe7   :  { %v984_v14 = vld [vmem:[#allocation8 + $0xda0] sm:$0xff] }
  0xe8   :  { %v844_v26 = vld [vmem:[#allocation8 + $0x940] sm:$0xff] }
  0xe9   :  { %3691 = vmatpush2.bf16.msra.mxu0 %v16549_v24  ;;  %3732 = vmatpush2.bf16.msra.mxu1 %v16677_v25  ;;  %v16910_v25 = vcombine.high %v980_v13, %v984_v14  ;;  %v848_v27 = vld [vmem:[#allocation8 + $0x960] sm:$0xff] }
  0xea   :  { %3692 = vmatprep.subr.bf16.mxu0 %v16542_v30  ;;  %3733 = vmatprep.subr.bf16.mxu1 %v16670_v34  ;;  %v972_v29 = vld [vmem:[#allocation8 + $0xd40] sm:$0xff]  ;;  %v16774_v43 = vcombine.high %v844_v26, %v848_v27  ;;  %v16773_v37 = vcombine.low %v844_v26, %v848_v27 }
  0xeb   :  { %v976_v30 = vld [vmem:[#allocation8 + $0xd60] sm:$0xff] }
  0xed   :  { %3693 = vmatpush2.bf16.msra.mxu0 %v16541_v32  ;;  %3734 = vmatpush2.bf16.msra.mxu1 %v16669_v33  ;;  %v16781_v33 = vcombine.low %v852_v8, %v856_v9  ;;  %v820_v8 = vld [vmem:[#allocation8 + $0x880] sm:$0xff] }
  0xee   :  { %3744 = vmatprep.subr.bf16.mxu0 %v16790_v38  ;;  %3785 = vmatprep.subr.bf16.mxu1 %v16918_v42  ;;  %v16909_v42 = vcombine.low %v980_v13, %v984_v14  ;;  %v824_v9 = vld [vmem:[#allocation8 + $0x8a0] sm:$0xff] }
  0xef   :  { %v16750_v14 = vcombine.high %v820_v8, %v824_v9  ;;  %v16749_v26 = vcombine.low %v820_v8, %v824_v9  ;;  %v900_v8 = vld [vmem:[#allocation8 + $0xb00] sm:$0xff] }
  0xf0   :  { %v904_v9 = vld [vmem:[#allocation8 + $0xb20] sm:$0xff] }
 0x168   :  { %v386_v53 = vpop.f32.mrf.mxu0  ;;  %v427_v56 = vpop.f32.mrf.mxu1 }
 0x169   :  { %v387_v55 = vadd.f32 %v386_v53, %v231_v50  ;;  %v428_v57 = vadd.f32 %v427_v56, %v239_v51  ;;  %v836_v53 = vld [vmem:[#allocation8 + $0x900] sm:$0xff] }
 0x16a   :  { %v388_v58 = vpop.f32.mrf.mxu0  ;;  %v429_v61 = vpop.f32.mrf.mxu1 }
 0x16b   :  { %vm516_vm1 = vcmp.gt.f32.partialorder %v387_v55, 0.0  ;;  %v524_v59 = vmul.f32 0.2, %v387_v55  ;;  %v389_v60 = vadd.f32 %v388_v58, %v235_v52  ;;  %vm518_vm2 = vcmp.gt.f32.partialorder %v428_v57, 0.0 }
 0x16c   :  { %v526_v63 = vmul.f32 0.2, %v428_v57  ;;  %v430_v0 = vadd.f32 %v429_v61, %v243_v54  ;;  %v390_v1 = vpop.f32.mrf.mxu0  ;;  %v431_v4 = vpop.f32.mrf.mxu1  ;;  %v16902_v52 = vcombine.high %v972_v29, %v976_v30  ;;  %v840_v54 = vld [vmem:[#allocation8 + $0x920] sm:$0xff]  ;;  %v16901_v58 = vcombine.low %v972_v29, %v976_v30 }
 0x16d   :  { %vm517_vm3 = vcmp.gt.f32.partialorder %v389_v60, 0.0  ;;  %v525_v3 = vmul.f32 0.2, %v389_v60  ;;  %v532_v5 = vsel %vm516_vm1, %v387_v55, %v524_v59  ;;  %v968_v55 = vld [vmem:[#allocation8 + $0xd20] sm:$0xff]  ;;  %v16766_v59 = vcombine.high %v836_v53, %v840_v54 }
 0x16e   :  { %vm519_vm4 = vcmp.gt.f32.partialorder %v430_v0, 0.0  ;;  %v527_v6 = vmul.f32 0.2, %v430_v0  ;;  %v391_v7 = vpop.f32.mrf.mxu0  ;;  %v534_v10 = vsel %vm518_vm2, %v428_v57, %v526_v63  ;;  %v432_v12 = vpop.f32.mrf.mxu1  ;;  %v19265_v20 = vpack.c.bf16 %v532_v5, %v532_v5  ;;  %v828_v63 = vld [vmem:[#allocation8 + $0x8c0] sm:$0xff] }
 0x16f   :  { %v533_v11 = vsel %vm517_vm3, %v389_v60, %v525_v3  ;;  %v19271_v24 = vpack.c.bf16 %v534_v10, %v534_v10  ;;  %v956_v1 = vld [vmem:[#allocation8 + $0xcc0] sm:$0xff]  ;;  %v16765_v4 = vcombine.low %v836_v53, %v840_v54 }
 0x170   :  { %v19259_v16 = vpack.c.bf16 %v533_v11, %v533_v11  ;;  %v535_v17 = vsel %vm519_vm4, %v430_v0, %v527_v6  ;;  %v19261_v18 = vpop.f32.mrf.mxu0  ;;  %v19269_v23 = vpop.f32.mrf.mxu1  ;;  %v832_v0 = vld [vmem:[#allocation8 + $0x8e0] sm:$0xff] }
 0x171   :  { %v19267_v21 = vpack.c.bf16 %v535_v17, %v535_v17  ;;  %v960_v3 = vld [vmem:[#allocation8 + $0xce0] sm:$0xff]  ;;  %v16758_v6 = vcombine.high %v828_v63, %v832_v0  ;;  %v16757_v12 = vcombine.low %v828_v63, %v832_v0 }
 0x172   :  { %3694 = vmatprep.mubr.bf16.mxu0 %v19259_v16  ;;  %v470_v28 = vpop.f32.mrf.mxu0  ;;  %v511_v32 = vpop.f32.mrf.mxu1  ;;  %v16886_v7 = vcombine.high %v956_v1, %v960_v3  ;;  %v948_v10 = vld [vmem:[#allocation8 + $0xc80] sm:$0xff]  ;;  %v16885_v13 = vcombine.low %v956_v1, %v960_v3 }
 0x173   :  { %3735 = vmatprep.mubr.bf16.mxu1 %v19267_v21  ;;  %3695 = vmatmul.mubr.bf16.vlgmr.msra.gmra.mxu0 %v19265_v20  ;;  %v471_v31 = vadd.f32 %v470_v28, %v251_v15  ;;  %v512_v38 = vadd.f32 %v511_v32, %v259_v19  ;;  %v952_v11 = vld [vmem:[#allocation8 + $0xca0] sm:$0xff] }
 0x174   :  { %3736 = vmatmul.mubr.bf16.vlgmr.msra.gmra.mxu1 %v19271_v24  ;;  %3745 = vmatpush1.bf16.msra.mxu0 %v16789_v40  ;;  %v472_v34 = vpop.f32.mrf.mxu0  ;;  %v513_v51 = vpop.f32.mrf.mxu1  ;;  %v964_v40 = vld [vmem:[#allocation8 + $0xd00] sm:$0xff]  ;;  %v16878_v15 = vcombine.high %v948_v10, %v952_v11  ;;  %v16877_v27 = vcombine.low %v948_v10, %v952_v11 }
 0x175   :  { %3786 = vmatpush1.bf16.msra.mxu1 %v16917_v41  ;;  %3746 = vmatprep.subr.bf16.mxu0 %v16782_v22  ;;  %vm521_vm5 = vcmp.gt.f32.partialorder %v471_v31, 0.0  ;;  %v529_v50 = vmul.f32 0.2, %v471_v31  ;;  %vm523_vm6 = vcmp.gt.f32.partialorder %v512_v38, 0.0  ;;  %v531_v35 = vmul.f32 0.2, %v512_v38 }
 0x176   :  { %3787 = vmatprep.subr.bf16.mxu1 %v16910_v25  ;;  %v473_v36 = vpop.f32.mrf.mxu0  ;;  %v514_v57 = vpop.f32.mrf.mxu1  ;;  %v16894_v61 = vcombine.high %v964_v40, %v968_v55  ;;  %v16893_v5 = vcombine.low %v964_v40, %v968_v55  ;;  %v812_v17 = vld [vmem:[#allocation8 + $0x840] sm:$0xff] }
 0x177   :  { %v537_v56 = vsel %vm521_vm5, %v471_v31, %v529_v50  ;;  %v539_v41 = vsel %vm523_vm6, %v512_v38, %v531_v35  ;;  %v816_v19 = vld [vmem:[#allocation8 + $0x860] sm:$0xff] }
 0x178   :  { %3747 = vmatpush1.bf16.msra.mxu0 %v16781_v33  ;;  %v19283_v39 = vpack.c.bf16 %v537_v56, %v537_v56  ;;  %v19285_v60 = vpack.c.bf16 %v539_v41, %v539_v41  ;;  %v940_v22 = vld [vmem:[#allocation8 + $0xc40] sm:$0xff]  ;;  %v16742_v28 = vcombine.high %v812_v17, %v816_v19  ;;  %v16741_v34 = vcombine.low %v812_v17, %v816_v19 }
 0x179   :  { %3788 = vmatpush1.bf16.msra.mxu1 %v16909_v42  ;;  %3748 = vmatprep.subr.bf16.mxu0 %v16774_v43  ;;  %v944_v25 = vld [vmem:[#allocation8 + $0xc60] sm:$0xff] }
 0x17a   :  { %3789 = vmatprep.subr.bf16.mxu1 %v16902_v52  ;;  %3776 = vmatprep.mubr.bf16.mxu0 %v19283_v39  ;;  %v16870_v29 = vcombine.high %v940_v22, %v944_v25  ;;  %v804_v30 = vld [vmem:[#allocation8 + $0x800] sm:$0xff]  ;;  %v16869_v38 = vcombine.low %v940_v22, %v944_v25 }
 0x17b   :  { %3817 = vmatprep.mubr.bf16.mxu1 %v19285_v60  ;;  %v808_v31 = vld [vmem:[#allocation8 + $0x820] sm:$0xff] }
 0x17c   :  { %3749 = vmatpush1.bf16.msra.mxu0 %v16773_v37  ;;  %v932_v32 = vld [vmem:[#allocation8 + $0xc00] sm:$0xff]  ;;  %v16734_v42 = vcombine.high %v804_v30, %v808_v31  ;;  %v16733_v54 = vcombine.low %v804_v30, %v808_v31 }
 0x17d   :  { %3790 = vmatpush1.bf16.msra.mxu1 %v16901_v58  ;;  %3750 = vmatprep.subr.bf16.mxu0 %v16766_v59  ;;  %v936_v33 = vld [vmem:[#allocation8 + $0xc20] sm:$0xff] }
 0x17e   :  { %3791 = vmatprep.subr.bf16.mxu1 %v16894_v61  ;;  %v16862_v43 = vcombine.high %v932_v32, %v936_v33  ;;  %v924_v50 = vld [vmem:[#allocation8 + $0xbc0] sm:$0xff]  ;;  %v16861_v35 = vcombine.low %v932_v32, %v936_v33  ;;  %v19293_v33 = vsub.s32 6, %v19227_v44 }
 0x17f   :  { %v928_v51 = vld [vmem:[#allocation8 + $0xbe0] sm:$0xff] }
 0x180   :  { %3751 = vmatpush1.bf16.msra.mxu0 %v16765_v4  ;;  %v1052_v52 = vld [vmem:[#allocation8 + $0xfc0] sm:$0xff]  ;;  %v16854_v36 = vcombine.high %v924_v50, %v928_v51  ;;  %v16853_v41 = vcombine.low %v924_v50, %v928_v51 }
 0x181   :  { %3792 = vmatpush1.bf16.msra.mxu1 %v16893_v5  ;;  %3752 = vmatprep.subr.bf16.mxu0 %v16758_v6  ;;  %v1056_v53 = vld [vmem:[#allocation8 + $0xfe0] sm:$0xff] }
 0x182   :  { %3793 = vmatprep.subr.bf16.mxu1 %v16886_v7  ;;  %v16982_v40 = vcombine.high %v1052_v52, %v1056_v53  ;;  %v916_v55 = vld [vmem:[#allocation8 + $0xb80] sm:$0xff]  ;;  %v16981_v58 = vcombine.low %v1052_v52, %v1056_v53 }
 0x183   :  { %v920_v56 = vld [vmem:[#allocation8 + $0xba0] sm:$0xff] }
 0x184   :  { %3753 = vmatpush1.bf16.msra.mxu0 %v16757_v12  ;;  %v1044_v57 = vld [vmem:[#allocation8 + $0xf80] sm:$0xff]  ;;  %v16846_v59 = vcombine.high %v916_v55, %v920_v56  ;;  %v16845_v4 = vcombine.low %v916_v55, %v920_v56 }
 0x185   :  { %3794 = vmatpush1.bf16.msra.mxu1 %v16885_v13  ;;  %3754 = vmatprep.subr.bf16.mxu0 %v16750_v14  ;;  %v1048_v37 = vld [vmem:[#allocation8 + $0xfa0] sm:$0xff]  ;;  %v16830_v14 = vcombine.high %v900_v8, %v904_v9 }
 0x186   :  { %3795 = vmatprep.subr.bf16.mxu1 %v16878_v15  ;;  %v16974_v61 = vcombine.high %v1044_v57, %v1048_v37  ;;  %v908_v63 = vld [vmem:[#allocation8 + $0xb40] sm:$0xff]  ;;  %v16973_v5 = vcombine.low %v1044_v57, %v1048_v37 }
 0x187   :  { %v912_v0 = vld [vmem:[#allocation8 + $0xb60] sm:$0xff] }
 0x188   :  { %3755 = vmatpush1.bf16.msra.mxu0 %v16749_v26  ;;  %v1036_v1 = vld [vmem:[#allocation8 + $0xf40] sm:$0xff]  ;;  %v16838_v6 = vcombine.high %v908_v63, %v912_v0  ;;  %v16837_v12 = vcombine.low %v908_v63, %v912_v0  ;;  %v16829_v26 = vcombine.low %v900_v8, %v904_v9  ;;  %v737_v8 = vld [vmem:[#allocation8 + $0x5e8] sm:$0xff] }
 0x189   :  { %3796 = vmatpush1.bf16.msra.mxu1 %v16877_v27  ;;  %3756 = vmatprep.subr.bf16.mxu0 %v16742_v28  ;;  %v1040_v3 = vld [vmem:[#allocation8 + $0xf60] sm:$0xff] }
 0x18a   :  { %3797 = vmatprep.subr.bf16.mxu1 %v16870_v29  ;;  %v16966_v7 = vcombine.high %v1036_v1, %v1040_v3  ;;  %v1028_v10 = vld [vmem:[#allocation8 + $0xf00] sm:$0xff]  ;;  %v16965_v13 = vcombine.low %v1036_v1, %v1040_v3  ;;  %v19290_v29 = vsub.s32 4, %v19227_v44 }
 0x18b   :  { %v1032_v11 = vld [vmem:[#allocation8 + $0xf20] sm:$0xff] }
 0x18c   :  { %3757 = vmatpush1.bf16.msra.mxu0 %v16741_v34  ;;  %v16958_v15 = vcombine.high %v1028_v10, %v1032_v11  ;;  %v892_v17 = vld [vmem:[#allocation8 + $0xac0] sm:$0xff]  ;;  %v16957_v27 = vcombine.low %v1028_v10, %v1032_v11  ;;  %v247_v51 = vrot.slane %v19232_v46, %v19290_v29 }
 0x18d   :  { %3798 = vmatpush1.bf16.msra.mxu1 %v16869_v38  ;;  %3758 = vmatprep.subr.bf16.mxu0 %v16734_v42  ;;  %v896_v19 = vld [vmem:[#allocation8 + $0xae0] sm:$0xff] }
 0x18e   :  { %3799 = vmatprep.subr.bf16.mxu1 %v16862_v43  ;;  %v1020_v22 = vld [vmem:[#allocation8 + $0xec0] sm:$0xff]  ;;  %v16822_v28 = vcombine.high %v892_v17, %v896_v19  ;;  %v16821_v42 = vcombine.low %v892_v17, %v896_v19  ;;  %v469_v57 = vadd.f32 %v19261_v18, %v247_v51  ;;  %v725_v19 = vld [vmem:[#allocation8 + $0x588] sm:$0xff] }
 0x18f   :  { %v1024_v25 = vld [vmem:[#allocation8 + $0xee0] sm:$0xff] }
 0x190   :  { %3759 = vmatpush1.bf16.msra.mxu0 %v16733_v54  ;;  %v16950_v30 = vcombine.high %v1020_v22, %v1024_v25  ;;  %v884_v31 = vld [vmem:[#allocation8 + $0xa80] sm:$0xff]  ;;  %v16949_v43 = vcombine.low %v1020_v22, %v1024_v25  ;;  %v528_v3 = vmul.f32 0.2, %v469_v57  ;;  %vm520_vm7 = vcmp.gt.f32.partialorder %v469_v57, 0.0  ;;  %v729_v22 = vld [vmem:[#allocation8 + $0x5a8] sm:$0xff] }
 0x191   :  { %3800 = vmatpush1.bf16.msra.mxu1 %v16861_v35  ;;  %3760 = vmatprep.subr.bf16.mxu0 %v16854_v36  ;;  %v888_v32 = vld [vmem:[#allocation8 + $0xaa0] sm:$0xff]  ;;  %v255_v35 = vrot.slane %v19232_v46, %v19293_v33 }
 0x192   :  { %3801 = vmatprep.subr.bf16.mxu1 %v16982_v40  ;;  %v1012_v34 = vld [vmem:[#allocation8 + $0xe80] sm:$0xff]  ;;  %v16814_v50 = vcombine.high %v884_v31, %v888_v32  ;;  %v16813_v40 = vcombine.low %v884_v31, %v888_v32  ;;  %v536_v11 = vsel %vm520_vm7, %v469_v57, %v528_v3  ;;  %v593_v31 = vld [vmem:[#allocation8 + $0x168] sm:$0xff]  ;;  %v16656_v32 = vcombine.high %v725_v19, %v729_v22 }
 0x193   :  { %v1016_v38 = vld [vmem:[#allocation8 + $0xea0] sm:$0xff]  ;;  %v19301_v25 = vpack.c.bf16 %v536_v11, %v536_v11  ;;  %v577_v57 = vld [vmem:[#allocation8 + $0xe8] sm:$0xff] }
 0x194   :  { %3761 = vmatpush2.bf16.msra.mxu0 %v16853_v41  ;;  %v16942_v52 = vcombine.high %v1012_v34, %v1016_v38  ;;  %v876_v53 = vld [vmem:[#allocation8 + $0xa40] sm:$0xff]  ;;  %v16941_v55 = vcombine.low %v1012_v34, %v1016_v38  ;;  %v717_v34 = vld [vmem:[#allocation8 + $0x548] sm:$0xff] }
 0x195   :  { %3802 = vmatpush2.bf16.msra.mxu1 %v16981_v58  ;;  %3762 = vmatprep.subr.bf16.mxu0 %v16846_v59  ;;  %v880_v54 = vld [vmem:[#allocation8 + $0xa60] sm:$0xff]  ;;  %v510_v59 = vadd.f32 %v19269_v23, %v255_v35  ;;  %v721_v38 = vld [vmem:[#allocation8 + $0x568] sm:$0xff] }
 0x196   :  { %3803 = vmatprep.subr.bf16.mxu1 %v16974_v61  ;;  %v1004_v44 = vld [vmem:[#allocation8 + $0xe40] sm:$0xff]  ;;  %v16806_v56 = vcombine.high %v876_v53, %v880_v54  ;;  %v16805_v46 = vcombine.low %v876_v53, %v880_v54  ;;  %v16648_v51 = vcombine.high %v717_v34, %v721_v38  ;;  %v585_v53 = vld [vmem:[#allocation8 + $0x128] sm:$0xff] }
 0x197   :  { %v1008_v36 = vld [vmem:[#allocation8 + $0xe60] sm:$0xff]  ;;  %v530_v18 = vmul.f32 0.2, %v510_v59  ;;  %vm522_vm8 = vcmp.gt.f32.partialorder %v510_v59, 0.0  ;;  %v709_v54 = vld [vmem:[#allocation8 + $0x508] sm:$0xff] }
 0x198   :  { %3763 = vmatpush2.bf16.msra.mxu0 %v16845_v4  ;;  %v16934_v37 = vcombine.high %v1004_v44, %v1008_v36  ;;  %v868_v41 = vld [vmem:[#allocation8 + $0xa00] sm:$0xff]  ;;  %v16933_v0 = vcombine.low %v1004_v44, %v1008_v36  ;;  %v713_v35 = vld [vmem:[#allocation8 + $0x528] sm:$0xff]  ;;  %v16647_v36 = vcombine.low %v717_v34, %v721_v38 }
 0x199   :  { %3804 = vmatpush2.bf16.msra.mxu1 %v16973_v5  ;;  %3764 = vmatprep.subr.bf16.mxu0 %v16838_v6  ;;  %v872_v58 = vld [vmem:[#allocation8 + $0xa20] sm:$0xff]  ;;  %v605_v5 = vld [vmem:[#allocation8 + $0x1c8] sm:$0xff] }
 0x19a   :  { %3805 = vmatprep.subr.bf16.mxu1 %v16966_v7  ;;  %v996_v61 = vld [vmem:[#allocation8 + $0xe00] sm:$0xff]  ;;  %v16798_v1 = vcombine.high %v868_v41, %v872_v58  ;;  %v609_v6 = vld [vmem:[#allocation8 + $0x1e8] sm:$0xff]  ;;  %v16797_v23 = vcombine.low %v868_v41, %v872_v58 }
 0x19b   :  { %v1000_v63 = vld [vmem:[#allocation8 + $0xe20] sm:$0xff]  ;;  %v733_v7 = vld [vmem:[#allocation8 + $0x5c8] sm:$0xff]  ;;  %v16536_v10 = vcombine.high %v605_v5, %v609_v6  ;;  %v16535_v17 = vcombine.low %v605_v5, %v609_v6 }
 0x19c   :  { %3765 = vmatpush2.bf16.msra.mxu0 %v16837_v12  ;;  %v16926_v4 = vcombine.high %v996_v61, %v1000_v63  ;;  %v16925_v9 = vcombine.low %v996_v61, %v1000_v63  ;;  %v16664_v12 = vcombine.high %v733_v7, %v737_v8  ;;  %v705_v41 = vld [vmem:[#allocation8 + $0x4e8] sm:$0xff] }
 0x19d   :  { %3806 = vmatpush2.bf16.msra.mxu1 %v16965_v13  ;;  %3766 = vmatprep.subr.bf16.mxu0 %v16830_v14  ;;  %v538_v13 = vsel %vm522_vm8, %v510_v59, %v530_v18  ;;  %v597_v14 = vld [vmem:[#allocation8 + $0x188] sm:$0xff]  ;;  %v16639_v59 = vcombine.low %v709_v54, %v713_v35 }
 0x19e   :  { %3807 = vmatprep.subr.bf16.mxu1 %v16958_v15  ;;  %v601_v15 = vld [vmem:[#allocation8 + $0x1a8] sm:$0xff] }
 0x19f   :  { %v697_v3 = vld [vmem:[#allocation8 + $0x4a8] sm:$0xff] }
 0x1a0   :  { %3767 = vmatpush2.bf16.msra.mxu0 %v16829_v26  ;;  %v16663_v26 = vcombine.low %v733_v7, %v737_v8  ;;  %v557_v7 = vld [vmem:[#allocation8 + $0x48] sm:$0xff] }
 0x1a1   :  { %3808 = vmatpush2.bf16.msra.mxu1 %v16957_v27  ;;  %3768 = vmatprep.subr.bf16.mxu0 %v16822_v28  ;;  %v19303_v27 = vpack.c.bf16 %v538_v13, %v538_v13  ;;  %v16528_v28 = vcombine.high %v597_v14, %v601_v15  ;;  %v561_v8 = vld [vmem:[#allocation8 + $0x68] sm:$0xff] }
 0x1a2   :  { %3809 = vmatprep.subr.bf16.mxu1 %v16950_v30  ;;  %v589_v30 = vld [vmem:[#allocation8 + $0x148] sm:$0xff] }
 0x1a3   :  { %v16519_v44 = vcombine.low %v589_v30, %v593_v31  ;;  %v797_v34 = vld [vmem:[#allocation8 + $0x7c8] sm:$0xff] }
 0x1a4   :  { %3769 = vmatpush2.bf16.msra.mxu0 %v16821_v42  ;;  %v16527_v42 = vcombine.low %v597_v14, %v601_v15  ;;  %v549_v14 = vld [vmem:[#allocation8 + $0x8] sm:$0xff] }
 0x1a5   :  { %3810 = vmatpush2.bf16.msra.mxu1 %v16949_v43  ;;  %3770 = vmatprep.subr.bf16.mxu0 %v16814_v50  ;;  %v16655_v43 = vcombine.low %v725_v19, %v729_v22  ;;  %v16520_v50 = vcombine.high %v589_v30, %v593_v31  ;;  %v553_v15 = vld [vmem:[#allocation8 + $0x28] sm:$0xff]  ;;  %v16487_v22 = vcombine.low %v557_v7, %v561_v8 }
 0x1a6   :  { %3811 = vmatprep.subr.bf16.mxu1 %v16942_v52  ;;  %v581_v52 = vld [vmem:[#allocation8 + $0x108] sm:$0xff] }
 0x1a7   :  { %v16511_v58 = vcombine.low %v581_v52, %v585_v53  ;;  %v681_v19 = vld [vmem:[#allocation8 + $0x428] sm:$0xff] }
 0x1a8   :  { %3771 = vmatpush2.bf16.msra.mxu0 %v16813_v40  ;;  %v16512_v40 = vcombine.high %v581_v52, %v585_v53  ;;  %v669_v31 = vld [vmem:[#allocation8 + $0x3c8] sm:$0xff] }
 0x1a9   :  { %3812 = vmatpush2.bf16.msra.mxu1 %v16941_v55  ;;  %3772 = vmatprep.subr.bf16.mxu0 %v16806_v56  ;;  %v16640_v55 = vcombine.high %v709_v54, %v713_v35  ;;  %v573_v56 = vld [vmem:[#allocation8 + $0xc8] sm:$0xff] }
 0x1aa   :  { %3813 = vmatprep.subr.bf16.mxu1 %v16934_v37  ;;  %v701_v37 = vld [vmem:[#allocation8 + $0x4c8] sm:$0xff]  ;;  %v16504_v61 = vcombine.high %v573_v56, %v577_v57 }
 0x1ab   :  { %v16632_v63 = vcombine.high %v701_v37, %v705_v41  ;;  %v16631_v5 = vcombine.low %v701_v37, %v705_v41  ;;  %v801_v38 = vld [vmem:[#allocation8 + $0x7e8] sm:$0xff] }
 0x1ac   :  { %3773 = vmatpush2.bf16.msra.mxu0 %v16805_v46  ;;  %v565_v46 = vld [vmem:[#allocation8 + $0x88] sm:$0xff] }
 0x1ad   :  { %3814 = vmatpush2.bf16.msra.mxu1 %v16933_v0  ;;  %3774 = vmatprep.subr.bf16.mxu0 %v16798_v1  ;;  %v569_v0 = vld [vmem:[#allocation8 + $0xa8] sm:$0xff] }
 0x1ae   :  { %3815 = vmatprep.subr.bf16.mxu1 %v16926_v4  ;;  %v693_v1 = vld [vmem:[#allocation8 + $0x488] sm:$0xff]  ;;  %v16503_v4 = vcombine.low %v573_v56, %v577_v57  ;;  %v16496_v6 = vcombine.high %v565_v46, %v569_v0 }
 0x1af   :  { %v16624_v18 = vcombine.high %v693_v1, %v697_v3  ;;  %v16623_v11 = vcombine.low %v693_v1, %v697_v3  ;;  %v661_v52 = vld [vmem:[#allocation8 + $0x388] sm:$0xff] }
 0x1b0   :  { %3775 = vmatpush2.bf16.msra.mxu0 %v16797_v23  ;;  %v685_v23 = vld [vmem:[#allocation8 + $0x448] sm:$0xff] }
 0x1b1   :  { %3816 = vmatpush2.bf16.msra.mxu1 %v16925_v9  ;;  %3826 = vmatprep.subr.bf16.mxu0 %v16536_v10  ;;  %v689_v9 = vld [vmem:[#allocation8 + $0x468] sm:$0xff]  ;;  %v16495_v10 = vcombine.low %v565_v46, %v569_v0 }
 0x1b2   :  { %3867 = vmatprep.subr.bf16.mxu1 %v16664_v12  ;;  %v16488_v12 = vcombine.high %v557_v7, %v561_v8  ;;  %v16616_v13 = vcombine.high %v685_v23, %v689_v9  ;;  %v665_v53 = vld [vmem:[#allocation8 + $0x3a8] sm:$0xff] }
 0x1b3   :  { %3777 = vmatmul.mubr.bf16.vlgmr.msra.gmra.mxu0 %v19301_v25  ;;  %v789_v54 = vld [vmem:[#allocation8 + $0x788] sm:$0xff] }
 0x1b4   :  { %3818 = vmatmul.mubr.bf16.vlgmr.msra.gmra.mxu1 %v19303_v27  ;;  %3827 = vmatpush1.bf16.msra.mxu0 %v16535_v17  ;;  %v677_v17 = vld [vmem:[#allocation8 + $0x408] sm:$0xff] }
 0x1b5   :  { %3858 = vmatprep.mubr.bf16.mxu0 %v19259_v16  ;;  %3868 = vmatpush1.bf16.msra.mxu1 %v16663_v26  ;;  %v16615_v26 = vcombine.low %v685_v23, %v689_v9  ;;  %v16608_v30 = vcombine.high %v677_v17, %v681_v19  ;;  %v793_v35 = vld [vmem:[#allocation8 + $0x7a8] sm:$0xff] }
 0x1b6   :  { %3899 = vmatprep.mubr.bf16.mxu1 %v19267_v21  ;;  %3828 = vmatprep.subr.bf16.mxu0 %v16528_v28  ;;  %v16480_v28 = vcombine.high %v549_v14, %v553_v15  ;;  %v653_v56 = vld [vmem:[#allocation8 + $0x348] sm:$0xff] }
 0x1b7   :  { %3869 = vmatprep.subr.bf16.mxu1 %v16656_v32  ;;  %v673_v32 = vld [vmem:[#allocation8 + $0x3e8] sm:$0xff] }
 0x1b8   :  { %3829 = vmatpush1.bf16.msra.mxu0 %v16527_v42  ;;  %v16479_v42 = vcombine.low %v549_v14, %v553_v15  ;;  %v657_v57 = vld [vmem:[#allocation8 + $0x368] sm:$0xff] }
 0x1b9   :  { %3870 = vmatpush1.bf16.msra.mxu1 %v16655_v43  ;;  %3830 = vmatprep.subr.bf16.mxu0 %v16520_v50  ;;  %v16607_v43 = vcombine.low %v677_v17, %v681_v19  ;;  %v16600_v50 = vcombine.high %v669_v31, %v673_v32  ;;  %v781_v37 = vld [vmem:[#allocation8 + $0x748] sm:$0xff] }
 0x1ba   :  { %3871 = vmatprep.subr.bf16.mxu1 %v16648_v51  ;;  %v16728_v51 = vcombine.high %v797_v34, %v801_v38  ;;  %v785_v41 = vld [vmem:[#allocation8 + $0x768] sm:$0xff] }
 0x1bb   :  { %v645_v46 = vld [vmem:[#allocation8 + $0x308] sm:$0xff] }
 0x1bc   :  { %3831 = vmatpush1.bf16.msra.mxu0 %v16519_v44  ;;  %v16599_v44 = vcombine.low %v669_v31, %v673_v32  ;;  %v649_v0 = vld [vmem:[#allocation8 + $0x328] sm:$0xff] }
 0x1bd   :  { %3872 = vmatpush1.bf16.msra.mxu1 %v16647_v36  ;;  %3832 = vmatprep.subr.bf16.mxu0 %v16512_v40  ;;  %v16727_v36 = vcombine.low %v797_v34, %v801_v38  ;;  %v16592_v40 = vcombine.high %v661_v52, %v665_v53  ;;  %v773_v1 = vld [vmem:[#allocation8 + $0x708] sm:$0xff] }
 0x1be   :  { %3873 = vmatprep.subr.bf16.mxu1 %v16640_v55  ;;  %v16720_v55 = vcombine.high %v789_v54, %v793_v35  ;;  %v777_v3 = vld [vmem:[#allocation8 + $0x728] sm:$0xff] }
 0x1bf   :  { %v637_v7 = vld [vmem:[#allocation8 + $0x2c8] sm:$0xff] }
 0x1c0   :  { %3833 = vmatpush1.bf16.msra.mxu0 %v16511_v58  ;;  %v16591_v58 = vcombine.low %v661_v52, %v665_v53  ;;  %v641_v8 = vld [vmem:[#allocation8 + $0x2e8] sm:$0xff] }
 0x1c1   :  { %3874 = vmatpush1.bf16.msra.mxu1 %v16639_v59  ;;  %3834 = vmatprep.subr.bf16.mxu0 %v16504_v61  ;;  %v16719_v59 = vcombine.low %v789_v54, %v793_v35  ;;  %v16584_v61 = vcombine.high %v653_v56, %v657_v57  ;;  %v765_v23 = vld [vmem:[#allocation8 + $0x6c8] sm:$0xff] }
 0x1c2   :  { %3875 = vmatprep.subr.bf16.mxu1 %v16632_v63  ;;  %v16712_v63 = vcombine.high %v781_v37, %v785_v41  ;;  %v769_v9 = vld [vmem:[#allocation8 + $0x6e8] sm:$0xff] }
 0x1c3   :  { %v629_v14 = vld [vmem:[#allocation8 + $0x288] sm:$0xff] }
 0x1c4   :  { %3835 = vmatpush1.bf16.msra.mxu0 %v16503_v4  ;;  %v16583_v4 = vcombine.low %v653_v56, %v657_v57  ;;  %v633_v15 = vld [vmem:[#allocation8 + $0x2a8] sm:$0xff] }
 0x1c5   :  { %3876 = vmatpush1.bf16.msra.mxu1 %v16631_v5  ;;  %3836 = vmatprep.subr.bf16.mxu0 %v16496_v6  ;;  %v16711_v5 = vcombine.low %v781_v37, %v785_v41  ;;  %v16576_v6 = vcombine.high %v645_v46, %v649_v0  ;;  %v757_v17 = vld [vmem:[#allocation8 + $0x688] sm:$0xff] }
 0x1c6   :  { %3877 = vmatprep.subr.bf16.mxu1 %v16624_v18  ;;  %v16704_v18 = vcombine.high %v773_v1, %v777_v3  ;;  %v761_v19 = vld [vmem:[#allocation8 + $0x6a8] sm:$0xff] }
 0x1c7   :  { %v621_v31 = vld [vmem:[#allocation8 + $0x248] sm:$0xff] }
 0x1c8   :  { %3837 = vmatpush1.bf16.msra.mxu0 %v16495_v10  ;;  %v16575_v10 = vcombine.low %v645_v46, %v649_v0  ;;  %v625_v32 = vld [vmem:[#allocation8 + $0x268] sm:$0xff] }
 0x1c9   :  { %3878 = vmatpush1.bf16.msra.mxu1 %v16623_v11  ;;  %3838 = vmatprep.subr.bf16.mxu0 %v16488_v12  ;;  %v16703_v11 = vcombine.low %v773_v1, %v777_v3  ;;  %v16568_v12 = vcombine.high %v637_v7, %v641_v8  ;;  %v749_v34 = vld [vmem:[#allocation8 + $0x648] sm:$0xff] }
 0x1ca   :  { %3879 = vmatprep.subr.bf16.mxu1 %v16616_v13  ;;  %v16696_v13 = vcombine.high %v765_v23, %v769_v9  ;;  %v753_v38 = vld [vmem:[#allocation8 + $0x668] sm:$0xff] }
 0x1cb   :  { %v613_v52 = vld [vmem:[#allocation8 + $0x208] sm:$0xff] }
 0x1cc   :  { %3839 = vmatpush1.bf16.msra.mxu0 %v16487_v22  ;;  %v16567_v22 = vcombine.low %v637_v7, %v641_v8  ;;  %v617_v53 = vld [vmem:[#allocation8 + $0x228] sm:$0xff] }
 0x1cd   :  { %3880 = vmatpush1.bf16.msra.mxu1 %v16615_v26  ;;  %3840 = vmatprep.subr.bf16.mxu0 %v16480_v28  ;;  %v16695_v26 = vcombine.low %v765_v23, %v769_v9  ;;  %v16560_v28 = vcombine.high %v629_v14, %v633_v15  ;;  %v741_v54 = vld [vmem:[#allocation8 + $0x608] sm:$0xff] }
 0x1ce   :  { %3881 = vmatprep.subr.bf16.mxu1 %v16608_v30  ;;  %v16688_v30 = vcombine.high %v757_v17, %v761_v19  ;;  %v745_v35 = vld [vmem:[#allocation8 + $0x628] sm:$0xff] }
 0x1cf   :  { %v861_v56 = vld [vmem:[#allocation8 + $0x9c8] sm:$0xff] }
 0x1d0   :  { %3841 = vmatpush1.bf16.msra.mxu0 %v16479_v42  ;;  %v16559_v42 = vcombine.low %v629_v14, %v633_v15  ;;  %v865_v57 = vld [vmem:[#allocation8 + $0x9e8] sm:$0xff] }
 0x1d1   :  { %3882 = vmatpush1.bf16.msra.mxu1 %v16607_v43  ;;  %3842 = vmatprep.subr.bf16.mxu0 %v16600_v50  ;;  %v16687_v43 = vcombine.low %v757_v17, %v761_v19  ;;  %v16552_v50 = vcombine.high %v621_v31, %v625_v32  ;;  %v989_v37 = vld [vmem:[#allocation8 + $0xdc8] sm:$0xff]  ;;  %v16791_v1 = vcombine.low %v861_v56, %v865_v57 }
 0x1d2   :  { %3883 = vmatprep.subr.bf16.mxu1 %v16728_v51  ;;  %v16680_v51 = vcombine.high %v749_v34, %v753_v38  ;;  %v993_v41 = vld [vmem:[#allocation8 + $0xde8] sm:$0xff] }
 0x1d3   :  { %v853_v46 = vld [vmem:[#allocation8 + $0x988] sm:$0xff] }
 0x1d4   :  { %3843 = vmatpush2.bf16.msra.mxu0 %v16599_v44  ;;  %v16551_v44 = vcombine.low %v621_v31, %v625_v32  ;;  %v857_v0 = vld [vmem:[#allocation8 + $0x9a8] sm:$0xff] }
 0x1d5   :  { %3884 = vmatpush2.bf16.msra.mxu1 %v16727_v36  ;;  %3844 = vmatprep.subr.bf16.mxu0 %v16592_v40  ;;  %v16679_v36 = vcombine.low %v749_v34, %v753_v38  ;;  %v16544_v40 = vcombine.high %v613_v52, %v617_v53  ;;  %v981_v3 = vld [vmem:[#allocation8 + $0xd88] sm:$0xff] }
 0x1d6   :  { %3885 = vmatprep.subr.bf16.mxu1 %v16720_v55  ;;  %v16672_v55 = vcombine.high %v741_v54, %v745_v35  ;;  %v849_v7 = vld [vmem:[#allocation8 + $0x968] sm:$0xff] }
 0x1d7   :  { %v973_v23 = vld [vmem:[#allocation8 + $0xd48] sm:$0xff] }
 0x1d8   :  { %3845 = vmatpush2.bf16.msra.mxu0 %v16591_v58  ;;  %v16543_v58 = vcombine.low %v613_v52, %v617_v53  ;;  %v977_v9 = vld [vmem:[#allocation8 + $0xd68] sm:$0xff] }
 0x1d9   :  { %3886 = vmatpush2.bf16.msra.mxu1 %v16719_v59  ;;  %3846 = vmatprep.subr.bf16.mxu0 %v16584_v61  ;;  %v16671_v59 = vcombine.low %v741_v54, %v745_v35  ;;  %v16792_v61 = vcombine.high %v861_v56, %v865_v57  ;;  %v837_v14 = vld [vmem:[#allocation8 + $0x908] sm:$0xff] }
 0x1da   :  { %3887 = vmatprep.subr.bf16.mxu1 %v16712_v63  ;;  %v16920_v63 = vcombine.high %v989_v37, %v993_v41  ;;  %v841_v15 = vld [vmem:[#allocation8 + $0x928] sm:$0xff] }
 0x1db   :  { %v965_v17 = vld [vmem:[#allocation8 + $0xd08] sm:$0xff] }
 0x1dc   :  { %3847 = vmatpush2.bf16.msra.mxu0 %v16583_v4  ;;  %v985_v4 = vld [vmem:[#allocation8 + $0xda8] sm:$0xff] }
 0x1dd   :  { %3888 = vmatpush2.bf16.msra.mxu1 %v16711_v5  ;;  %3848 = vmatprep.subr.bf16.mxu0 %v16576_v6  ;;  %v16919_v5 = vcombine.low %v989_v37, %v993_v41  ;;  %v16784_v6 = vcombine.high %v853_v46, %v857_v0  ;;  %v16912_v8 = vcombine.high %v981_v3, %v985_v4  ;;  %v969_v19 = vld [vmem:[#allocation8 + $0xd28] sm:$0xff] }
 0x1de   :  { %3889 = vmatprep.subr.bf16.mxu1 %v16704_v18  ;;  %v845_v18 = vld [vmem:[#allocation8 + $0x948] sm:$0xff] }
 0x1df   :  { %v829_v31 = vld [vmem:[#allocation8 + $0x8c8] sm:$0xff] }
 0x1e0   :  { %3849 = vmatpush2.bf16.msra.mxu0 %v16575_v10  ;;  %v16783_v10 = vcombine.low %v853_v46, %v857_v0  ;;  %v833_v32 = vld [vmem:[#allocation8 + $0x8e8] sm:$0xff] }
 0x1e1   :  { %3890 = vmatpush2.bf16.msra.mxu1 %v16703_v11  ;;  %3850 = vmatprep.subr.bf16.mxu0 %v16568_v12  ;;  %v16911_v11 = vcombine.low %v981_v3, %v985_v4  ;;  %v16776_v12 = vcombine.high %v845_v18, %v849_v7  ;;  %v957_v34 = vld [vmem:[#allocation8 + $0xcc8] sm:$0xff] }
 0x1e2   :  { %3891 = vmatprep.subr.bf16.mxu1 %v16696_v13  ;;  %v16904_v13 = vcombine.high %v973_v23, %v977_v9  ;;  %v961_v38 = vld [vmem:[#allocation8 + $0xce8] sm:$0xff] }
 0x1e3   :  { %v821_v52 = vld [vmem:[#allocation8 + $0x888] sm:$0xff] }
 0x1e4   :  { %3851 = vmatpush2.bf16.msra.mxu0 %v16567_v22  ;;  %v16775_v22 = vcombine.low %v845_v18, %v849_v7  ;;  %v825_v53 = vld [vmem:[#allocation8 + $0x8a8] sm:$0xff] }
 0x1e5   :  { %3892 = vmatpush2.bf16.msra.mxu1 %v16695_v26  ;;  %3852 = vmatprep.subr.bf16.mxu0 %v16560_v28  ;;  %v16903_v26 = vcombine.low %v973_v23, %v977_v9  ;;  %v16768_v28 = vcombine.high %v837_v14, %v841_v15  ;;  %v949_v54 = vld [vmem:[#allocation8 + $0xc88] sm:$0xff] }
 0x1e6   :  { %3893 = vmatprep.subr.bf16.mxu1 %v16688_v30  ;;  %v16896_v30 = vcombine.high %v965_v17, %v969_v19  ;;  %v953_v35 = vld [vmem:[#allocation8 + $0xca8] sm:$0xff] }
 0x1e7   :  { %v813_v56 = vld [vmem:[#allocation8 + $0x848] sm:$0xff] }
 0x1e8   :  { %3853 = vmatpush2.bf16.msra.mxu0 %v16559_v42  ;;  %v16767_v42 = vcombine.low %v837_v14, %v841_v15  ;;  %v817_v57 = vld [vmem:[#allocation8 + $0x868] sm:$0xff] }
 0x1e9   :  { %3894 = vmatpush2.bf16.msra.mxu1 %v16687_v43  ;;  %3854 = vmatprep.subr.bf16.mxu0 %v16552_v50  ;;  %v16895_v43 = vcombine.low %v965_v17, %v969_v19  ;;  %v16760_v50 = vcombine.high %v829_v31, %v833_v32  ;;  %v941_v37 = vld [vmem:[#allocation8 + $0xc48] sm:$0xff]  ;;  %v16743_v4 = vcombine.low %v813_v56, %v817_v57 }
 0x1ea   :  { %3895 = vmatprep.subr.bf16.mxu1 %v16680_v51  ;;  %v16888_v51 = vcombine.high %v957_v34, %v961_v38  ;;  %v945_v41 = vld [vmem:[#allocation8 + $0xc68] sm:$0xff] }
 0x1eb   :  { %v805_v46 = vld [vmem:[#allocation8 + $0x808] sm:$0xff] }
 0x1ec   :  { %3855 = vmatpush2.bf16.msra.mxu0 %v16551_v44  ;;  %v16759_v44 = vcombine.low %v829_v31, %v833_v32  ;;  %v809_v0 = vld [vmem:[#allocation8 + $0x828] sm:$0xff] }
 0x1ed   :  { %3896 = vmatpush2.bf16.msra.mxu1 %v16679_v36  ;;  %3856 = vmatprep.subr.bf16.mxu0 %v16544_v40  ;;  %v16887_v36 = vcombine.low %v957_v34, %v961_v38  ;;  %v16752_v40 = vcombine.high %v821_v52, %v825_v53  ;;  %v937_v3 = vld [vmem:[#allocation8 + $0xc28] sm:$0xff] }
 0x1ee   :  { %3897 = vmatprep.subr.bf16.mxu1 %v16672_v55  ;;  %v16880_v55 = vcombine.high %v949_v54, %v953_v35  ;;  %v925_v7 = vld [vmem:[#allocation8 + $0xbc8] sm:$0xff] }
 0x1ef   :  { %v1053_v23 = vld [vmem:[#allocation8 + $0xfc8] sm:$0xff] }
 0x1f0   :  { %3857 = vmatpush2.bf16.msra.mxu0 %v16543_v58  ;;  %v16751_v58 = vcombine.low %v821_v52, %v825_v53  ;;  %v1057_v9 = vld [vmem:[#allocation8 + $0xfe8] sm:$0xff] }
 0x1f1   :  { %3898 = vmatpush2.bf16.msra.mxu1 %v16671_v59  ;;  %3908 = vmatprep.subr.bf16.mxu0 %v16792_v61  ;;  %v16879_v59 = vcombine.low %v949_v54, %v953_v35  ;;  %v16744_v61 = vcombine.high %v813_v56, %v817_v57  ;;  %v917_v14 = vld [vmem:[#allocation8 + $0xb88] sm:$0xff] }
 0x1f2   :  { %3949 = vmatprep.subr.bf16.mxu1 %v16920_v63  ;;  %v16872_v63 = vcombine.high %v941_v37, %v945_v41  ;;  %v921_v15 = vld [vmem:[#allocation8 + $0xba8] sm:$0xff] }
 0x1f3   :  { %3859 = vmatmul.mubr.bf16.vlgmr.msra.gmra.mxu0 %v19265_v20  ;;  %v1045_v17 = vld [vmem:[#allocation8 + $0xf88] sm:$0xff] }
 0x1f4   :  { %3900 = vmatmul.mubr.bf16.vlgmr.msra.gmra.mxu1 %v19271_v24  ;;  %3909 = vmatpush1.bf16.msra.mxu0 %v16791_v1  ;;  %v933_v1 = vld [vmem:[#allocation8 + $0xc08] sm:$0xff] }
 0x1f5   :  { %3940 = vmatprep.mubr.bf16.mxu0 %v19283_v39  ;;  %3950 = vmatpush1.bf16.msra.mxu1 %v16919_v5  ;;  %v16871_v5 = vcombine.low %v941_v37, %v945_v41  ;;  %v16864_v18 = vcombine.high %v933_v1, %v937_v3  ;;  %v1049_v19 = vld [vmem:[#allocation8 + $0xfa8] sm:$0xff] }
 0x1f6   :  { %3981 = vmatprep.mubr.bf16.mxu1 %v19285_v60  ;;  %3910 = vmatprep.subr.bf16.mxu0 %v16784_v6  ;;  %v16736_v6 = vcombine.high %v805_v46, %v809_v0  ;;  %v909_v31 = vld [vmem:[#allocation8 + $0xb48] sm:$0xff] }
 0x1f7   :  { %3951 = vmatprep.subr.bf16.mxu1 %v16912_v8  ;;  %v929_v8 = vld [vmem:[#allocation8 + $0xbe8] sm:$0xff] }
 0x1f8   :  { %3911 = vmatpush1.bf16.msra.mxu0 %v16783_v10  ;;  %v16735_v10 = vcombine.low %v805_v46, %v809_v0  ;;  %v913_v32 = vld [vmem:[#allocation8 + $0xb68] sm:$0xff] }
 0x1f9   :  { %3952 = vmatpush1.bf16.msra.mxu1 %v16911_v11  ;;  %3912 = vmatprep.subr.bf16.mxu0 %v16776_v12  ;;  %v16863_v11 = vcombine.low %v933_v1, %v937_v3  ;;  %v16856_v12 = vcombine.high %v925_v7, %v929_v8  ;;  %v1037_v34 = vld [vmem:[#allocation8 + $0xf48] sm:$0xff] }
 0x1fa   :  { %3953 = vmatprep.subr.bf16.mxu1 %v16904_v13  ;;  %v16984_v13 = vcombine.high %v1053_v23, %v1057_v9  ;;  %v1041_v38 = vld [vmem:[#allocation8 + $0xf68] sm:$0xff] }
 0x1fb   :  { %v901_v52 = vld [vmem:[#allocation8 + $0xb08] sm:$0xff] }
 0x1fc   :  { %3913 = vmatpush1.bf16.msra.mxu0 %v16775_v22  ;;  %v16855_v22 = vcombine.low %v925_v7, %v929_v8  ;;  %v905_v53 = vld [vmem:[#allocation8 + $0xb28] sm:$0xff] }
 0x1fd   :  { %3954 = vmatpush1.bf16.msra.mxu1 %v16903_v26  ;;  %3914 = vmatprep.subr.bf16.mxu0 %v16768_v28  ;;  %v16983_v26 = vcombine.low %v1053_v23, %v1057_v9  ;;  %v16848_v28 = vcombine.high %v917_v14, %v921_v15  ;;  %v1029_v54 = vld [vmem:[#allocation8 + $0xf08] sm:$0xff] }
 0x1fe   :  { %3955 = vmatprep.subr.bf16.mxu1 %v16896_v30  ;;  %v16976_v30 = vcombine.high %v1045_v17, %v1049_v19  ;;  %v1033_v35 = vld [vmem:[#allocation8 + $0xf28] sm:$0xff] }
 0x1ff   :  { %v893_v56 = vld [vmem:[#allocation8 + $0xac8] sm:$0xff] }
 0x200   :  { %3915 = vmatpush1.bf16.msra.mxu0 %v16767_v42  ;;  %v16847_v42 = vcombine.low %v917_v14, %v921_v15  ;;  %v897_v57 = vld [vmem:[#allocation8 + $0xae8] sm:$0xff] }
 0x201   :  { %3956 = vmatpush1.bf16.msra.mxu1 %v16895_v43  ;;  %3916 = vmatprep.subr.bf16.mxu0 %v16760_v50  ;;  %v16975_v43 = vcombine.low %v1045_v17, %v1049_v19  ;;  %v16840_v50 = vcombine.high %v909_v31, %v913_v32  ;;  %v1021_v37 = vld [vmem:[#allocation8 + $0xec8] sm:$0xff] }
 0x202   :  { %3957 = vmatprep.subr.bf16.mxu1 %v16888_v51  ;;  %v16968_v51 = vcombine.high %v1037_v34, %v1041_v38  ;;  %v1025_v41 = vld [vmem:[#allocation8 + $0xee8] sm:$0xff] }
 0x203   :  { %v885_v46 = vld [vmem:[#allocation8 + $0xa88] sm:$0xff] }
 0x204   :  { %3917 = vmatpush1.bf16.msra.mxu0 %v16759_v44  ;;  %v16839_v44 = vcombine.low %v909_v31, %v913_v32  ;;  %v889_v0 = vld [vmem:[#allocation8 + $0xaa8] sm:$0xff]  ;;  %v606_v31 = vld [vmem:[#allocation8 + $0x1d0] sm:$0xff] }
 0x205   :  { %3958 = vmatpush1.bf16.msra.mxu1 %v16887_v36  ;;  %3918 = vmatprep.subr.bf16.mxu0 %v16752_v40  ;;  %v16967_v36 = vcombine.low %v1037_v34, %v1041_v38  ;;  %v16832_v40 = vcombine.high %v901_v52, %v905_v53  ;;  %v1013_v1 = vld [vmem:[#allocation8 + $0xe88] sm:$0xff]  ;;  %v610_v32 = vld [vmem:[#allocation8 + $0x1f0] sm:$0xff] }
 0x206   :  { %3959 = vmatprep.subr.bf16.mxu1 %v16880_v55  ;;  %v16960_v55 = vcombine.high %v1029_v54, %v1033_v35  ;;  %v1017_v3 = vld [vmem:[#allocation8 + $0xea8] sm:$0xff]  ;;  %v734_v34 = vld [vmem:[#allocation8 + $0x5d0] sm:$0xff] }
 0x207   :  { %v877_v7 = vld [vmem:[#allocation8 + $0xa48] sm:$0xff]  ;;  %v738_v38 = vld [vmem:[#allocation8 + $0x5f0] sm:$0xff] }
 0x208   :  { %3919 = vmatpush1.bf16.msra.mxu0 %v16751_v58  ;;  %v16831_v58 = vcombine.low %v901_v52, %v905_v53  ;;  %v881_v8 = vld [vmem:[#allocation8 + $0xa68] sm:$0xff]  ;;  %v16666_v52 = vcombine.high %v734_v34, %v738_v38  ;;  %v598_v53 = vld [vmem:[#allocation8 + $0x190] sm:$0xff] }
 0x209   :  { %3960 = vmatpush1.bf16.msra.mxu1 %v16879_v59  ;;  %3920 = vmatprep.subr.bf16.mxu0 %v16744_v61  ;;  %v16959_v59 = vcombine.low %v1029_v54, %v1033_v35  ;;  %v16824_v61 = vcombine.high %v893_v56, %v897_v57  ;;  %v1005_v23 = vld [vmem:[#allocation8 + $0xe48] sm:$0xff]  ;;  %v602_v54 = vld [vmem:[#allocation8 + $0x1b0] sm:$0xff]  ;;  %v16537_v35 = vcombine.low %v606_v31, %v610_v32 }
 0x20a   :  { %3961 = vmatprep.subr.bf16.mxu1 %v16872_v63  ;;  %v16952_v63 = vcombine.high %v1021_v37, %v1025_v41  ;;  %v1009_v9 = vld [vmem:[#allocation8 + $0xe68] sm:$0xff] }
 0x20b   :  { %v869_v14 = vld [vmem:[#allocation8 + $0xa08] sm:$0xff] }
 0x20c   :  { %3921 = vmatpush1.bf16.msra.mxu0 %v16743_v4  ;;  %v16823_v4 = vcombine.low %v893_v56, %v897_v57  ;;  %v873_v15 = vld [vmem:[#allocation8 + $0xa28] sm:$0xff]  ;;  %v16530_v57 = vcombine.high %v598_v53, %v602_v54 }
 0x20d   :  { %3962 = vmatpush1.bf16.msra.mxu1 %v16871_v5  ;;  %3922 = vmatprep.subr.bf16.mxu0 %v16736_v6  ;;  %v16951_v5 = vcombine.low %v1021_v37, %v1025_v41  ;;  %v16816_v6 = vcombine.high %v885_v46, %v889_v0  ;;  %v997_v17 = vld [vmem:[#allocation8 + $0xe08] sm:$0xff]  ;;  %v590_v37 = vld [vmem:[#allocation8 + $0x150] sm:$0xff] }
 0x20e   :  { %3963 = vmatprep.subr.bf16.mxu1 %v16864_v18  ;;  %v16944_v18 = vcombine.high %v1013_v1, %v1017_v3  ;;  %v1001_v19 = vld [vmem:[#allocation8 + $0xe28] sm:$0xff]  ;;  %v594_v41 = vld [vmem:[#allocation8 + $0x170] sm:$0xff] }
 0x210   :  { %3923 = vmatpush1.bf16.msra.mxu0 %v16735_v10  ;;  %v16815_v10 = vcombine.low %v885_v46, %v889_v0 }
 0x211   :  { %3964 = vmatpush1.bf16.msra.mxu1 %v16863_v11  ;;  %3924 = vmatprep.subr.bf16.mxu0 %v16856_v12  ;;  %v16943_v11 = vcombine.low %v1013_v1, %v1017_v3  ;;  %v16808_v12 = vcombine.high %v877_v7, %v881_v8  ;;  %v16529_v1 = vcombine.low %v598_v53, %v602_v54  ;;  %v570_v53 = vld [vmem:[#allocation8 + $0xb0] sm:$0xff] }
 0x212   :  { %3965 = vmatprep.subr.bf16.mxu1 %v16984_v13  ;;  %v16936_v13 = vcombine.high %v1005_v23, %v1009_v9  ;;  %v694_v54 = vld [vmem:[#allocation8 + $0x490] sm:$0xff] }
 0x214   :  { %3925 = vmatpush2.bf16.msra.mxu0 %v16855_v22  ;;  %v16807_v22 = vcombine.low %v877_v7, %v881_v8 }
 0x215   :  { %3966 = vmatpush2.bf16.msra.mxu1 %v16983_v26  ;;  %3926 = vmatprep.subr.bf16.mxu0 %v16848_v28  ;;  %v16935_v26 = vcombine.low %v1005_v23, %v1009_v9  ;;  %v16800_v28 = vcombine.high %v869_v14, %v873_v15  ;;  %v582_v23 = vld [vmem:[#allocation8 + $0x110] sm:$0xff] }
 0x216   :  { %3967 = vmatprep.subr.bf16.mxu1 %v16976_v30  ;;  %v16928_v30 = vcombine.high %v997_v17, %v1001_v19  ;;  %v586_v9 = vld [vmem:[#allocation8 + $0x130] sm:$0xff] }
 0x218   :  { %3927 = vmatpush2.bf16.msra.mxu0 %v16847_v42  ;;  %v16799_v42 = vcombine.low %v869_v14, %v873_v15  ;;  %v16521_v15 = vcombine.low %v590_v37, %v594_v41 }
 0x219   :  { %3968 = vmatpush2.bf16.msra.mxu1 %v16975_v43  ;;  %3928 = vmatprep.subr.bf16.mxu0 %v16840_v50  ;;  %v16927_v43 = vcombine.low %v997_v17, %v1001_v19  ;;  %v16538_v50 = vcombine.high %v606_v31, %v610_v32  ;;  %v578_v31 = vld [vmem:[#allocation8 + $0xf0] sm:$0xff] }
 0x21a   :  { %3969 = vmatprep.subr.bf16.mxu1 %v16968_v51  ;;  %v19313_v51 = vld [vmem:[#allocation10] sm:$0xff]  ;;  %v702_v32 = vld [vmem:[#allocation8 + $0x4d0] sm:$0xff] }
 0x21b   :  { %v1069_v56 = vrot.slane %v19313_v51, %v19238_v48 }
 0x21c   :  { %3929 = vmatpush2.bf16.msra.mxu0 %v16839_v44  ;;  %v1065_v44 = vrot.slane %v19313_v51, %v19230_v45 }
 0x21d   :  { %3970 = vmatpush2.bf16.msra.mxu1 %v16967_v36  ;;  %3930 = vmatprep.subr.bf16.mxu0 %v16832_v40  ;;  %v726_v36 = vld [vmem:[#allocation8 + $0x590] sm:$0xff] }
 0x21e   :  { %3971 = vmatprep.subr.bf16.mxu1 %v16960_v55  ;;  %v730_v40 = vld [vmem:[#allocation8 + $0x5b0] sm:$0xff]  ;;  %v16665_v55 = vcombine.low %v734_v34, %v738_v38  ;;  %v16513_v38 = vcombine.low %v582_v23, %v586_v9 }
 0x21f   :  { %v706_v34 = vld [vmem:[#allocation8 + $0x4f0] sm:$0xff] }
 0x220   :  { %3931 = vmatpush2.bf16.msra.mxu0 %v16831_v58 }
 0x221   :  { %3972 = vmatpush2.bf16.msra.mxu1 %v16959_v59  ;;  %3932 = vmatprep.subr.bf16.mxu0 %v16824_v61  ;;  %v16658_v59 = vcombine.high %v726_v36, %v730_v40  ;;  %v718_v61 = vld [vmem:[#allocation8 + $0x550] sm:$0xff] }
 0x222   :  { %3973 = vmatprep.subr.bf16.mxu1 %v16952_v63  ;;  %v722_v63 = vld [vmem:[#allocation8 + $0x570] sm:$0xff] }
 0x223   :  { %v16650_v8 = vcombine.high %v718_v61, %v722_v63  ;;  %v16649_v19 = vcombine.low %v718_v61, %v722_v63 }
 0x224   :  { %3933 = vmatpush2.bf16.msra.mxu0 %v16823_v4  ;;  %v16657_v4 = vcombine.low %v726_v36, %v730_v40  ;;  %v16633_v36 = vcombine.low %v702_v32, %v706_v34 }
 0x225   :  { %3974 = vmatpush2.bf16.msra.mxu1 %v16951_v5  ;;  %3934 = vmatprep.subr.bf16.mxu0 %v16816_v6  ;;  %v16522_v5 = vcombine.high %v590_v37, %v594_v41  ;;  %v686_v37 = vld [vmem:[#allocation8 + $0x450] sm:$0xff] }
 0x226   :  { %3975 = vmatprep.subr.bf16.mxu1 %v16944_v18  ;;  %v690_v41 = vld [vmem:[#allocation8 + $0x470] sm:$0xff] }
 0x227   :  { %v16618_v63 = vcombine.high %v686_v37, %v690_v41 }
 0x228   :  { %3935 = vmatpush2.bf16.msra.mxu0 %v16815_v10 }
 0x229   :  { %3976 = vmatpush2.bf16.msra.mxu1 %v16943_v11  ;;  %3936 = vmatprep.subr.bf16.mxu0 %v16808_v12  ;;  %v710_v11 = vld [vmem:[#allocation8 + $0x510] sm:$0xff] }
 0x22a   :  { %3977 = vmatprep.subr.bf16.mxu1 %v16936_v13  ;;  %v714_v12 = vld [vmem:[#allocation8 + $0x530] sm:$0xff] }
 0x22c   :  { %3937 = vmatpush2.bf16.msra.mxu0 %v16807_v22  ;;  %v16514_v22 = vcombine.high %v582_v23, %v586_v9  ;;  %v674_v23 = vld [vmem:[#allocation8 + $0x3f0] sm:$0xff] }
 0x22d   :  { %3978 = vmatpush2.bf16.msra.mxu1 %v16935_v26  ;;  %3938 = vmatprep.subr.bf16.mxu0 %v16800_v28  ;;  %v16642_v28 = vcombine.high %v710_v11, %v714_v12  ;;  %v798_v9 = vld [vmem:[#allocation8 + $0x7d0] sm:$0xff] }
 0x22e   :  { %3979 = vmatprep.subr.bf16.mxu1 %v16928_v30  ;;  %v574_v30 = vld [vmem:[#allocation8 + $0xd0] sm:$0xff] }
 0x230   :  { %3939 = vmatpush2.bf16.msra.mxu0 %v16799_v42  ;;  %v16641_v42 = vcombine.low %v710_v11, %v714_v12 }
 0x231   :  { %3980 = vmatpush2.bf16.msra.mxu1 %v16927_v43  ;;  %3990 = vmatprep.subr.bf16.mxu0 %v16538_v50  ;;  %v16506_v43 = vcombine.high %v574_v30, %v578_v31  ;;  %v16634_v50 = vcombine.high %v702_v32, %v706_v34  ;;  %v654_v34 = vld [vmem:[#allocation8 + $0x350] sm:$0xff] }
 0x232   :  { %4031 = vmatprep.subr.bf16.mxu1 %v16666_v52  ;;  %v566_v52 = vld [vmem:[#allocation8 + $0x90] sm:$0xff] }
 0x233   :  { %3941 = vmatmul.mubr.bf16.vlgmr.msra.gmra.mxu0 %v19301_v25  ;;  %v3696_v58 = vpop.f32.mrf.mxu0  ;;  %v16498_v40 = vcombine.high %v566_v52, %v570_v53 }
 0x234   :  { %3982 = vmatmul.mubr.bf16.vlgmr.msra.gmra.mxu1 %v19303_v27  ;;  %v3697_v46 = vadd.f32 %v3696_v58, %v1065_v44  ;;  %v3737_v0 = vpop.f32.mrf.mxu1  ;;  %3991 = vmatpush1.bf16.msra.mxu0 %v16537_v35  ;;  %v698_v35 = vld [vmem:[#allocation8 + $0x4b0] sm:$0xff]  ;;  %v16505_v44 = vcombine.low %v574_v30, %v578_v31  ;;  %v16497_v58 = vcombine.low %v566_v52, %v570_v53 }
 0x235   :  { %4022 = vmatprep.mubr.bf16.mxu0 %v19259_v16  ;;  %4032 = vmatpush1.bf16.msra.mxu1 %v16665_v55  ;;  %v3698_v3 = vpop.f32.mrf.mxu0  ;;  %v16626_v55 = vcombine.high %v694_v54, %v698_v35 }
 0x236   :  { %v19322_v6 = vadd.f32 %v3737_v0, %v3697_v46  ;;  %4063 = vmatprep.mubr.bf16.mxu1 %v19267_v21  ;;  %v3699_v18 = vadd.f32 %v3698_v3, %v1069_v56  ;;  %v3739_v7 = vpop.f32.mrf.mxu1  ;;  %3992 = vmatprep.subr.bf16.mxu0 %v16530_v57  ;;  %v558_v56 = vld [vmem:[#allocation8 + $0x50] sm:$0xff] }
 0x237   :  { %4033 = vmatprep.subr.bf16.mxu1 %v16658_v59  ;;  %v3700_v10 = vpop.f32.mrf.mxu0  ;;  %v562_v57 = vld [vmem:[#allocation8 + $0x70] sm:$0xff]  ;;  %v16625_v59 = vcombine.low %v694_v54, %v698_v35 }
 0x238   :  { %v19325_v13 = vadd.f32 %v3739_v7, %v3699_v18  ;;  %v3741_v14 = vpop.f32.mrf.mxu1  ;;  %3993 = vmatpush1.bf16.msra.mxu0 %v16529_v1  ;;  %v16490_v61 = vcombine.high %v558_v56, %v562_v57  ;;  %v550_v46 = vld [vmem:[#allocation8 + $0x10] sm:$0xff] }
 0x239   :  { %4034 = vmatpush1.bf16.msra.mxu1 %v16657_v4  ;;  %v3701_v17 = vpop.f32.mrf.mxu0  ;;  %3994 = vmatprep.subr.bf16.mxu0 %v16522_v5  ;;  %v554_v0 = vld [vmem:[#allocation8 + $0x30] sm:$0xff]  ;;  %v16489_v4 = vcombine.low %v558_v56, %v562_v57  ;;  %v16617_v5 = vcombine.low %v686_v37, %v690_v41 }
 0x23a   :  { %v3742_v26 = vpop.f32.mrf.mxu1  ;;  %4035 = vmatprep.subr.bf16.mxu1 %v16650_v8  ;;  %v678_v1 = vld [vmem:[#allocation8 + $0x410] sm:$0xff]  ;;  %v16482_v18 = vcombine.high %v550_v46, %v554_v0  ;;  %v16481_v11 = vcombine.low %v550_v46, %v554_v0 }
 0x23b   :  { %v682_v3 = vld [vmem:[#allocation8 + $0x430] sm:$0xff] }
 0x23c   :  { %3995 = vmatpush1.bf16.msra.mxu0 %v16521_v15  ;;  %v16610_v7 = vcombine.high %v678_v1, %v682_v3  ;;  %v670_v8 = vld [vmem:[#allocation8 + $0x3d0] sm:$0xff]  ;;  %v16609_v12 = vcombine.low %v678_v1, %v682_v3 }
 0x23d   :  { %4036 = vmatpush1.bf16.msra.mxu1 %v16649_v19  ;;  %3996 = vmatprep.subr.bf16.mxu0 %v16514_v22  ;;  %v802_v10 = vld [vmem:[#allocation8 + $0x7f0] sm:$0xff]  ;;  %v16602_v14 = vcombine.high %v670_v8, %v674_v23 }
 0x23e   :  { %4037 = vmatprep.subr.bf16.mxu1 %v16642_v28  ;;  %v16730_v15 = vcombine.high %v798_v9, %v802_v10  ;;  %v662_v17 = vld [vmem:[#allocation8 + $0x390] sm:$0xff]  ;;  %v16601_v28 = vcombine.low %v670_v8, %v674_v23  ;;  %v16729_v30 = vcombine.low %v798_v9, %v802_v10 }
 0x23f   :  { %v666_v19 = vld [vmem:[#allocation8 + $0x3b0] sm:$0xff] }
 0x240   :  { %3997 = vmatpush1.bf16.msra.mxu0 %v16513_v38  ;;  %v790_v22 = vld [vmem:[#allocation8 + $0x790] sm:$0xff]  ;;  %v16594_v31 = vcombine.high %v662_v17, %v666_v19 }
 0x241   :  { %4038 = vmatpush1.bf16.msra.mxu1 %v16641_v42  ;;  %3998 = vmatprep.subr.bf16.mxu0 %v16506_v43  ;;  %v794_v26 = vld [vmem:[#allocation8 + $0x7b0] sm:$0xff] }
 0x242   :  { %4039 = vmatprep.subr.bf16.mxu1 %v16634_v50  ;;  %v16722_v32 = vcombine.high %v790_v22, %v794_v26  ;;  %v658_v38 = vld [vmem:[#allocation8 + $0x370] sm:$0xff]  ;;  %v16593_v50 = vcombine.low %v662_v17, %v666_v19  ;;  %v16721_v52 = vcombine.low %v790_v22, %v794_v26 }
 0x243   :  { %v782_v42 = vld [vmem:[#allocation8 + $0x750] sm:$0xff]  ;;  %v16586_v53 = vcombine.high %v654_v34, %v658_v38 }
 0x244   :  { %3999 = vmatpush1.bf16.msra.mxu0 %v16505_v44  ;;  %v786_v43 = vld [vmem:[#allocation8 + $0x770] sm:$0xff] }
 0x245   :  { %4040 = vmatpush1.bf16.msra.mxu1 %v16633_v36  ;;  %4000 = vmatprep.subr.bf16.mxu0 %v16498_v40  ;;  %v16714_v54 = vcombine.high %v782_v42, %v786_v43  ;;  %v646_v35 = vld [vmem:[#allocation8 + $0x310] sm:$0xff]  ;;  %v16713_v56 = vcombine.low %v782_v42, %v786_v43 }
 0x246   :  { %4041 = vmatprep.subr.bf16.mxu1 %v16626_v55  ;;  %v650_v44 = vld [vmem:[#allocation8 + $0x330] sm:$0xff]  ;;  %v16585_v55 = vcombine.low %v654_v34, %v658_v38 }
 0x247   :  { %v774_v36 = vld [vmem:[#allocation8 + $0x710] sm:$0xff]  ;;  %v16578_v57 = vcombine.high %v646_v35, %v650_v44 }
 0x248   :  { %4001 = vmatpush1.bf16.msra.mxu0 %v16497_v58  ;;  %v778_v40 = vld [vmem:[#allocation8 + $0x730] sm:$0xff] }
 0x249   :  { %4042 = vmatpush1.bf16.msra.mxu1 %v16625_v59  ;;  %4002 = vmatprep.subr.bf16.mxu0 %v16490_v61  ;;  %v16706_v37 = vcombine.high %v774_v36, %v778_v40  ;;  %v638_v41 = vld [vmem:[#allocation8 + $0x2d0] sm:$0xff]  ;;  %v16705_v46 = vcombine.low %v774_v36, %v778_v40 }
 0x24a   :  { %4043 = vmatprep.subr.bf16.mxu1 %v16618_v63  ;;  %v642_v58 = vld [vmem:[#allocation8 + $0x2f0] sm:$0xff]  ;;  %v16577_v63 = vcombine.low %v646_v35, %v650_v44 }
 0x24b   :  { %v766_v59 = vld [vmem:[#allocation8 + $0x6d0] sm:$0xff]  ;;  %v16570_v0 = vcombine.high %v638_v41, %v642_v58 }
 0x24c   :  { %4003 = vmatpush1.bf16.msra.mxu0 %v16489_v4  ;;  %v770_v61 = vld [vmem:[#allocation8 + $0x6f0] sm:$0xff] }
 0x24d   :  { %4044 = vmatpush1.bf16.msra.mxu1 %v16617_v5  ;;  %4004 = vmatprep.subr.bf16.mxu0 %v16482_v18  ;;  %v16698_v1 = vcombine.high %v766_v59, %v770_v61  ;;  %v630_v3 = vld [vmem:[#allocation8 + $0x290] sm:$0xff]  ;;  %v16697_v8 = vcombine.low %v766_v59, %v770_v61 }
 0x24e   :  { %4045 = vmatprep.subr.bf16.mxu1 %v16610_v7  ;;  %v634_v4 = vld [vmem:[#allocation8 + $0x2b0] sm:$0xff]  ;;  %v16569_v7 = vcombine.low %v638_v41, %v642_v58 }
 0x24f   :  { %v758_v5 = vld [vmem:[#allocation8 + $0x690] sm:$0xff]  ;;  %v16562_v23 = vcombine.high %v630_v3, %v634_v4 }
 0x250   :  { %4005 = vmatpush1.bf16.msra.mxu0 %v16481_v11  ;;  %v762_v18 = vld [vmem:[#allocation8 + $0x6b0] sm:$0xff] }
 0x251   :  { %4046 = vmatpush1.bf16.msra.mxu1 %v16609_v12  ;;  %4006 = vmatprep.subr.bf16.mxu0 %v16602_v14  ;;  %v16690_v9 = vcombine.high %v758_v5, %v762_v18  ;;  %v622_v10 = vld [vmem:[#allocation8 + $0x250] sm:$0xff]  ;;  %v16689_v17 = vcombine.low %v758_v5, %v762_v18 }
 0x252   :  { %4047 = vmatprep.subr.bf16.mxu1 %v16730_v15  ;;  %v626_v11 = vld [vmem:[#allocation8 + $0x270] sm:$0xff]  ;;  %v16561_v15 = vcombine.low %v630_v3, %v634_v4 }
 0x253   :  { %v750_v12 = vld [vmem:[#allocation8 + $0x650] sm:$0xff]  ;;  %v16554_v19 = vcombine.high %v622_v10, %v626_v11 }
 0x254   :  { %4007 = vmatpush2.bf16.msra.mxu0 %v16601_v28  ;;  %v754_v14 = vld [vmem:[#allocation8 + $0x670] sm:$0xff] }
 0x255   :  { %4048 = vmatpush2.bf16.msra.mxu1 %v16729_v30  ;;  %4008 = vmatprep.subr.bf16.mxu0 %v16594_v31  ;;  %v16682_v22 = vcombine.high %v750_v12, %v754_v14  ;;  %v614_v26 = vld [vmem:[#allocation8 + $0x210] sm:$0xff]  ;;  %v16681_v34 = vcombine.low %v750_v12, %v754_v14 }
 0x256   :  { %4049 = vmatprep.subr.bf16.mxu1 %v16722_v32  ;;  %v618_v28 = vld [vmem:[#allocation8 + $0x230] sm:$0xff]  ;;  %v16553_v32 = vcombine.low %v622_v10, %v626_v11 }
 0x257   :  { %v742_v30 = vld [vmem:[#allocation8 + $0x610] sm:$0xff]  ;;  %v16546_v38 = vcombine.high %v614_v26, %v618_v28 }
 0x258   :  { %4009 = vmatpush2.bf16.msra.mxu0 %v16593_v50  ;;  %v746_v31 = vld [vmem:[#allocation8 + $0x630] sm:$0xff] }
 0x259   :  { %4050 = vmatpush2.bf16.msra.mxu1 %v16721_v52  ;;  %4010 = vmatprep.subr.bf16.mxu0 %v16586_v53  ;;  %v16674_v42 = vcombine.high %v742_v30, %v746_v31  ;;  %v862_v43 = vld [vmem:[#allocation8 + $0x9d0] sm:$0xff]  ;;  %v16673_v35 = vcombine.low %v742_v30, %v746_v31 }
 0x25a   :  { %4051 = vmatprep.subr.bf16.mxu1 %v16714_v54  ;;  %v866_v50 = vld [vmem:[#allocation8 + $0x9f0] sm:$0xff]  ;;  %v16545_v54 = vcombine.low %v614_v26, %v618_v28 }
 0x25b   :  { %v990_v52 = vld [vmem:[#allocation8 + $0xdd0] sm:$0xff]  ;;  %v16794_v44 = vcombine.high %v862_v43, %v866_v50 }
 0x25c   :  { %4011 = vmatpush2.bf16.msra.mxu0 %v16585_v55  ;;  %v994_v53 = vld [vmem:[#allocation8 + $0xdf0] sm:$0xff] }
 0x25d   :  { %4052 = vmatpush2.bf16.msra.mxu1 %v16713_v56  ;;  %4012 = vmatprep.subr.bf16.mxu0 %v16578_v57  ;;  %v16922_v36 = vcombine.high %v990_v52, %v994_v53  ;;  %v854_v40 = vld [vmem:[#allocation8 + $0x990] sm:$0xff]  ;;  %v16793_v56 = vcombine.low %v862_v43, %v866_v50  ;;  %v16921_v41 = vcombine.low %v990_v52, %v994_v53 }
 0x25e   :  { %4053 = vmatprep.subr.bf16.mxu1 %v16706_v37  ;;  %v858_v55 = vld [vmem:[#allocation8 + $0x9b0] sm:$0xff] }
 0x25f   :  { %v982_v57 = vld [vmem:[#allocation8 + $0xd90] sm:$0xff]  ;;  %v16786_v58 = vcombine.high %v854_v40, %v858_v55  ;;  %v16785_v5 = vcombine.low %v854_v40, %v858_v55 }
 0x260   :  { %4013 = vmatpush2.bf16.msra.mxu0 %v16577_v63  ;;  %v986_v37 = vld [vmem:[#allocation8 + $0xdb0] sm:$0xff] }
 0x261   :  { %4054 = vmatpush2.bf16.msra.mxu1 %v16705_v46  ;;  %4014 = vmatprep.subr.bf16.mxu0 %v16570_v0  ;;  %v846_v59 = vld [vmem:[#allocation8 + $0x950] sm:$0xff]  ;;  %v16914_v46 = vcombine.high %v982_v57, %v986_v37 }
 0x262   :  { %4055 = vmatprep.subr.bf16.mxu1 %v16698_v1  ;;  %v850_v61 = vld [vmem:[#allocation8 + $0x970] sm:$0xff] }
 0x263   :  { %v974_v0 = vld [vmem:[#allocation8 + $0xd50] sm:$0xff]  ;;  %v16777_v26 = vcombine.low %v846_v59, %v850_v61 }
 0x264   :  { %4015 = vmatpush2.bf16.msra.mxu0 %v16569_v7  ;;  %v978_v1 = vld [vmem:[#allocation8 + $0xd70] sm:$0xff]  ;;  %v16913_v7 = vcombine.low %v982_v57, %v986_v37 }
 0x265   :  { %4056 = vmatpush2.bf16.msra.mxu1 %v16697_v8  ;;  %4016 = vmatprep.subr.bf16.mxu0 %v16562_v23  ;;  %v16778_v8 = vcombine.high %v846_v59, %v850_v61  ;;  %v838_v11 = vld [vmem:[#allocation8 + $0x910] sm:$0xff]  ;;  %v16905_v30 = vcombine.low %v974_v0, %v978_v1 }
 0x266   :  { %4057 = vmatprep.subr.bf16.mxu1 %v16690_v9  ;;  %v842_v12 = vld [vmem:[#allocation8 + $0x930] sm:$0xff] }
 0x267   :  { %v16770_v31 = vcombine.high %v838_v11, %v842_v12  ;;  %v962_v43 = vld [vmem:[#allocation8 + $0xcf0] sm:$0xff]  ;;  %v16769_v50 = vcombine.low %v838_v11, %v842_v12 }
 0x268   :  { %4017 = vmatpush2.bf16.msra.mxu0 %v16561_v15  ;;  %v966_v15 = vld [vmem:[#allocation8 + $0xd10] sm:$0xff] }
 0x269   :  { %4058 = vmatpush2.bf16.msra.mxu1 %v16689_v17  ;;  %4018 = vmatprep.subr.bf16.mxu0 %v16554_v19  ;;  %v970_v17 = vld [vmem:[#allocation8 + $0xd30] sm:$0xff] }
 0x26a   :  { %4059 = vmatprep.subr.bf16.mxu1 %v16682_v22  ;;  %v16897_v52 = vcombine.low %v966_v15, %v970_v17  ;;  %v954_v40 = vld [vmem:[#allocation8 + $0xcb0] sm:$0xff] }
 0x26b   :  { %v942_v59 = vld [vmem:[#allocation8 + $0xc50] sm:$0xff] }
 0x26c   :  { %4019 = vmatpush2.bf16.msra.mxu0 %v16553_v32  ;;  %v16898_v32 = vcombine.high %v966_v15, %v970_v17  ;;  %v946_v61 = vld [vmem:[#allocation8 + $0xc70] sm:$0xff] }
 0x26d   :  { %4060 = vmatpush2.bf16.msra.mxu1 %v16681_v34  ;;  %4020 = vmatprep.subr.bf16.mxu0 %v16546_v38  ;;  %v830_v34 = vld [vmem:[#allocation8 + $0x8d0] sm:$0xff] }
 0x26e   :  { %4061 = vmatprep.subr.bf16.mxu1 %v16674_v42  ;;  %v834_v38 = vld [vmem:[#allocation8 + $0x8f0] sm:$0xff] }
 0x26f   :  { %v958_v42 = vld [vmem:[#allocation8 + $0xcd0] sm:$0xff]  ;;  %v16762_v53 = vcombine.high %v830_v34, %v834_v38  ;;  %v16761_v55 = vcombine.low %v830_v34, %v834_v38 }
 0x270   :  { %4021 = vmatpush2.bf16.msra.mxu0 %v16545_v54  ;;  %v16890_v54 = vcombine.high %v958_v42, %v962_v43  ;;  %v930_v11 = vld [vmem:[#allocation8 + $0xbf0] sm:$0xff] }
 0x271   :  { %4062 = vmatpush2.bf16.msra.mxu1 %v16673_v35  ;;  %4072 = vmatprep.subr.bf16.mxu0 %v16794_v44  ;;  %v822_v35 = vld [vmem:[#allocation8 + $0x890] sm:$0xff] }
 0x272   :  { %4113 = vmatprep.subr.bf16.mxu1 %v16922_v36  ;;  %v826_v44 = vld [vmem:[#allocation8 + $0x8b0] sm:$0xff] }
 0x273   :  { %v3778_v63 = vpop.f32.mrf.mxu0  ;;  %4023 = vmatmul.mubr.bf16.vlgmr.msra.gmra.mxu0 %v19265_v20  ;;  %v950_v36 = vld [vmem:[#allocation8 + $0xc90] sm:$0xff]  ;;  %v16754_v57 = vcombine.high %v822_v35, %v826_v44 }
 0x274   :  { %v3779_v3 = vadd.f32 %v3778_v63, %v19322_v6  ;;  %v3819_v4 = vpop.f32.mrf.mxu1  ;;  %4064 = vmatmul.mubr.bf16.vlgmr.msra.gmra.mxu1 %v19271_v24  ;;  %4073 = vmatpush1.bf16.msra.mxu0 %v16793_v56  ;;  %v16906_v6 = vcombine.high %v974_v0, %v978_v1  ;;  %v16889_v56 = vcombine.low %v958_v42, %v962_v43  ;;  %v1054_v12 = vld [vmem:[#allocation8 + $0xfd0] sm:$0xff] }
 0x275   :  { %4104 = vmatprep.mubr.bf16.mxu0 %v19283_v39  ;;  %4114 = vmatpush1.bf16.msra.mxu1 %v16921_v41  ;;  %v3780_v18 = vpop.f32.mrf.mxu0  ;;  %v16882_v37 = vcombine.high %v950_v36, %v954_v40  ;;  %v814_v41 = vld [vmem:[#allocation8 + $0x850] sm:$0xff]  ;;  %v16753_v63 = vcombine.low %v822_v35, %v826_v44  ;;  %v16874_v1 = vcombine.high %v942_v59, %v946_v61 }
 0x276   :  { %v19331_v23 = vadd.f32 %v3819_v4, %v3779_v3  ;;  %4145 = vmatprep.mubr.bf16.mxu1 %v19285_v60  ;;  %v3781_v9 = vadd.f32 %v3780_v18, %v19325_v13  ;;  %v3821_v10 = vpop.f32.mrf.mxu1  ;;  %4074 = vmatprep.subr.bf16.mxu0 %v16786_v58  ;;  %v818_v58 = vld [vmem:[#allocation8 + $0x870] sm:$0xff] }
 0x277   :  { %v3782_v14 = vpop.f32.mrf.mxu0  ;;  %4115 = vmatprep.subr.bf16.mxu1 %v16914_v46  ;;  %v16881_v46 = vcombine.low %v950_v36, %v954_v40  ;;  %v16746_v0 = vcombine.high %v814_v41, %v818_v58  ;;  %v806_v3 = vld [vmem:[#allocation8 + $0x810] sm:$0xff] }
 0x278   :  { %v19335_v19 = vadd.f32 %v3821_v10, %v3781_v9  ;;  %v3823_v22 = vpop.f32.mrf.mxu1  ;;  %4075 = vmatpush1.bf16.msra.mxu0 %v16785_v5  ;;  %v810_v4 = vld [vmem:[#allocation8 + $0x830] sm:$0xff]  ;;  %vm4318_vm11 = vcmp.gt.f32.partialorder %v19331_v23, 0.0 }
 0x279   :  { %4116 = vmatpush1.bf16.msra.mxu1 %v16913_v7  ;;  %v3783_v28 = vpop.f32.mrf.mxu0  ;;  %4076 = vmatprep.subr.bf16.mxu0 %v16778_v8  ;;  %v934_v5 = vld [vmem:[#allocation8 + $0xc10] sm:$0xff]  ;;  %v16745_v7 = vcombine.low %v814_v41, %v818_v58  ;;  %v16873_v8 = vcombine.low %v942_v59, %v946_v61  ;;  %v16738_v9 = vcombine.high %v806_v3, %v810_v4 }
 0x27a   :  { %v3824_v13 = vpop.f32.mrf.mxu1  ;;  %4117 = vmatprep.subr.bf16.mxu1 %v16906_v6  ;;  %v938_v18 = vld [vmem:[#allocation8 + $0xc30] sm:$0xff]  ;;  %v16737_v15 = vcombine.low %v806_v3, %v810_v4  ;;  %vm4319_vm9 = vcmp.gt.f32.partialorder %v19335_v19, 0.0 }
 0x27b   :  { %v16866_v10 = vcombine.high %v934_v5, %v938_v18  ;;  %v926_v6 = vld [vmem:[#allocation8 + $0xbd0] sm:$0xff]  ;;  %v16865_v17 = vcombine.low %v934_v5, %v938_v18 }
 0x27c   :  { %4077 = vmatpush1.bf16.msra.mxu0 %v16777_v26  ;;  %v1058_v14 = vld [vmem:[#allocation8 + $0xff0] sm:$0xff]  ;;  %v16858_v22 = vcombine.high %v926_v6, %v930_v11 }
 0x27d   :  { %4118 = vmatpush1.bf16.msra.mxu1 %v16905_v30  ;;  %4078 = vmatprep.subr.bf16.mxu0 %v16770_v31  ;;  %v16986_v26 = vcombine.high %v1054_v12, %v1058_v14  ;;  %v918_v28 = vld [vmem:[#allocation8 + $0xb90] sm:$0xff]  ;;  %v16985_v34 = vcombine.low %v1054_v12, %v1058_v14 }
 0x27e   :  { %4119 = vmatprep.subr.bf16.mxu1 %v16898_v32  ;;  %v922_v30 = vld [vmem:[#allocation8 + $0xbb0] sm:$0xff]  ;;  %v16857_v32 = vcombine.low %v926_v6, %v930_v11 }
 0x27f   :  { %v1046_v31 = vld [vmem:[#allocation8 + $0xf90] sm:$0xff]  ;;  %v16850_v38 = vcombine.high %v918_v28, %v922_v30 }
 0x280   :  { %4079 = vmatpush1.bf16.msra.mxu0 %v16769_v50  ;;  %v1050_v13 = vld [vmem:[#allocation8 + $0xfb0] sm:$0xff] }
 0x281   :  { %4120 = vmatpush1.bf16.msra.mxu1 %v16897_v52  ;;  %4080 = vmatprep.subr.bf16.mxu0 %v16762_v53  ;;  %v16978_v42 = vcombine.high %v1046_v31, %v1050_v13  ;;  %v910_v43 = vld [vmem:[#allocation8 + $0xb50] sm:$0xff]  ;;  %v16977_v35 = vcombine.low %v1046_v31, %v1050_v13 }
 0x282   :  { %4121 = vmatprep.subr.bf16.mxu1 %v16890_v54  ;;  %v914_v50 = vld [vmem:[#allocation8 + $0xb70] sm:$0xff]  ;;  %v16849_v54 = vcombine.low %v918_v28, %v922_v30 }
 0x283   :  { %v1038_v52 = vld [vmem:[#allocation8 + $0xf50] sm:$0xff]  ;;  %v16842_v44 = vcombine.high %v910_v43, %v914_v50 }
 0x284   :  { %4081 = vmatpush1.bf16.msra.mxu0 %v16761_v55  ;;  %v1042_v53 = vld [vmem:[#allocation8 + $0xf70] sm:$0xff] }
 0x285   :  { %4122 = vmatpush1.bf16.msra.mxu1 %v16889_v56  ;;  %4082 = vmatprep.subr.bf16.mxu0 %v16754_v57  ;;  %v16970_v36 = vcombine.high %v1038_v52, %v1042_v53  ;;  %v902_v40 = vld [vmem:[#allocation8 + $0xb10] sm:$0xff]  ;;  %v16969_v41 = vcombine.low %v1038_v52, %v1042_v53  ;;  %v607_v53 = vld [vmem:[#allocation8 + $0x1d8] sm:$0xff] }
 0x286   :  { %4123 = vmatprep.subr.bf16.mxu1 %v16882_v37  ;;  %v906_v55 = vld [vmem:[#allocation8 + $0xb30] sm:$0xff]  ;;  %v16841_v37 = vcombine.low %v910_v43, %v914_v50 }
 0x287   :  { %v1030_v56 = vld [vmem:[#allocation8 + $0xf10] sm:$0xff]  ;;  %v16834_v58 = vcombine.high %v902_v40, %v906_v55 }
 0x288   :  { %4083 = vmatpush1.bf16.msra.mxu0 %v16753_v63  ;;  %v1034_v57 = vld [vmem:[#allocation8 + $0xf30] sm:$0xff] }
 0x289   :  { %4124 = vmatpush1.bf16.msra.mxu1 %v16881_v46  ;;  %4084 = vmatprep.subr.bf16.mxu0 %v16746_v0  ;;  %v16962_v59 = vcombine.high %v1030_v56, %v1034_v57  ;;  %v894_v61 = vld [vmem:[#allocation8 + $0xad0] sm:$0xff]  ;;  %v16961_v3 = vcombine.low %v1030_v56, %v1034_v57  ;;  %v599_v57 = vld [vmem:[#allocation8 + $0x198] sm:$0xff] }
 0x28a   :  { %4125 = vmatprep.subr.bf16.mxu1 %v16874_v1  ;;  %v898_v63 = vld [vmem:[#allocation8 + $0xaf0] sm:$0xff]  ;;  %v16833_v1 = vcombine.low %v902_v40, %v906_v55 }
 0x28b   :  { %v1022_v46 = vld [vmem:[#allocation8 + $0xed0] sm:$0xff]  ;;  %v16826_v4 = vcombine.high %v894_v61, %v898_v63 }
 0x28c   :  { %4085 = vmatpush1.bf16.msra.mxu0 %v16745_v7  ;;  %v1026_v0 = vld [vmem:[#allocation8 + $0xef0] sm:$0xff] }
 0x28d   :  { %4126 = vmatpush1.bf16.msra.mxu1 %v16873_v8  ;;  %4086 = vmatprep.subr.bf16.mxu0 %v16738_v9  ;;  %v16954_v5 = vcombine.high %v1022_v46, %v1026_v0  ;;  %v886_v18 = vld [vmem:[#allocation8 + $0xa90] sm:$0xff]  ;;  %v16953_v6 = vcombine.low %v1022_v46, %v1026_v0  ;;  %v1077_v46 = vrot.slane %v19313_v51, %v19241_v49 }
 0x28e   :  { %4127 = vmatprep.subr.bf16.mxu1 %v16866_v10  ;;  %v890_v7 = vld [vmem:[#allocation8 + $0xab0] sm:$0xff]  ;;  %v16825_v10 = vcombine.low %v894_v61, %v898_v63  ;;  %v731_v61 = vld [vmem:[#allocation8 + $0x5b8] sm:$0xff] }
 0x28f   :  { %v1014_v8 = vld [vmem:[#allocation8 + $0xe90] sm:$0xff]  ;;  %v16818_v11 = vcombine.high %v886_v18, %v890_v7 }
 0x290   :  { %4087 = vmatpush1.bf16.msra.mxu0 %v16737_v15  ;;  %v1018_v9 = vld [vmem:[#allocation8 + $0xeb0] sm:$0xff] }
 0x291   :  { %4128 = vmatpush1.bf16.msra.mxu1 %v16865_v17  ;;  %4088 = vmatprep.subr.bf16.mxu0 %v16858_v22  ;;  %v16946_v12 = vcombine.high %v1014_v8, %v1018_v9  ;;  %v878_v14 = vld [vmem:[#allocation8 + $0xa50] sm:$0xff]  ;;  %v16945_v28 = vcombine.low %v1014_v8, %v1018_v9 }
 0x292   :  { %4129 = vmatprep.subr.bf16.mxu1 %v16986_v26  ;;  %v882_v15 = vld [vmem:[#allocation8 + $0xa70] sm:$0xff]  ;;  %v16817_v26 = vcombine.low %v886_v18, %v890_v7  ;;  %v719_v18 = vld [vmem:[#allocation8 + $0x558] sm:$0xff] }
 0x293   :  { %v1006_v17 = vld [vmem:[#allocation8 + $0xe50] sm:$0xff]  ;;  %v16810_v30 = vcombine.high %v878_v14, %v882_v15  ;;  %v723_v7 = vld [vmem:[#allocation8 + $0x578] sm:$0xff] }
 0x294   :  { %4089 = vmatpush2.bf16.msra.mxu0 %v16857_v32  ;;  %v1010_v22 = vld [vmem:[#allocation8 + $0xe70] sm:$0xff] }
 0x295   :  { %4130 = vmatpush2.bf16.msra.mxu1 %v16985_v34  ;;  %4090 = vmatprep.subr.bf16.mxu0 %v16850_v38  ;;  %v16938_v31 = vcombine.high %v1006_v17, %v1010_v22  ;;  %v870_v13 = vld [vmem:[#allocation8 + $0xa10] sm:$0xff]  ;;  %v16937_v43 = vcombine.low %v1006_v17, %v1010_v22  ;;  %v16652_v17 = vcombine.high %v719_v18, %v723_v7  ;;  %v583_v22 = vld [vmem:[#allocation8 + $0x118] sm:$0xff] }
 0x296   :  { %4131 = vmatprep.subr.bf16.mxu1 %v16978_v42  ;;  %v874_v32 = vld [vmem:[#allocation8 + $0xa30] sm:$0xff]  ;;  %v16809_v42 = vcombine.low %v878_v14, %v882_v15 }
 0x297   :  { %v998_v34 = vld [vmem:[#allocation8 + $0xe10] sm:$0xff]  ;;  %v16802_v50 = vcombine.high %v870_v13, %v874_v32 }
 0x298   :  { %4091 = vmatpush2.bf16.msra.mxu0 %v16849_v54  ;;  %v1002_v38 = vld [vmem:[#allocation8 + $0xe30] sm:$0xff]  ;;  %v611_v54 = vld [vmem:[#allocation8 + $0x1f8] sm:$0xff] }
 0x299   :  { %4132 = vmatpush2.bf16.msra.mxu1 %v16977_v35  ;;  %4092 = vmatprep.subr.bf16.mxu0 %v16842_v44  ;;  %v16930_v52 = vcombine.high %v998_v34, %v1002_v38  ;;  %v735_v35 = vld [vmem:[#allocation8 + $0x5d8] sm:$0xff]  ;;  %v16929_v40 = vcombine.low %v998_v34, %v1002_v38  ;;  %v16540_v55 = vcombine.high %v607_v53, %v611_v54 }
 0x29a   :  { %4133 = vmatprep.subr.bf16.mxu1 %v16970_v36  ;;  %v739_v44 = vld [vmem:[#allocation8 + $0x5f8] sm:$0xff]  ;;  %v16801_v36 = vcombine.low %v870_v13, %v874_v32  ;;  %v16651_v38 = vcombine.low %v719_v18, %v723_v7 }
 0x29b   :  { %v16668_v56 = vcombine.high %v735_v35, %v739_v44  ;;  %v16667_v63 = vcombine.low %v735_v35, %v739_v44  ;;  %v551_v7 = vld [vmem:[#allocation8 + $0x18] sm:$0xff] }
 0x29c   :  { %4093 = vmatpush2.bf16.msra.mxu0 %v16841_v37  ;;  %v603_v37 = vld [vmem:[#allocation8 + $0x1b8] sm:$0xff] }
 0x29d   :  { %4134 = vmatpush2.bf16.msra.mxu1 %v16969_v41  ;;  %4094 = vmatprep.subr.bf16.mxu0 %v16834_v58  ;;  %v1073_v41 = vrot.slane %v19313_v51, %v19235_v47  ;;  %v16539_v58 = vcombine.low %v607_v53, %v611_v54  ;;  %v16532_v0 = vcombine.high %v599_v57, %v603_v37  ;;  %v703_v53 = vld [vmem:[#allocation8 + $0x4d8] sm:$0xff] }
 0x29e   :  { %4135 = vmatprep.subr.bf16.mxu1 %v16962_v59  ;;  %v727_v59 = vld [vmem:[#allocation8 + $0x598] sm:$0xff] }
 0x29f   :  { %v16659_v51 = vcombine.low %v727_v59, %v731_v61  ;;  %v707_v54 = vld [vmem:[#allocation8 + $0x4f8] sm:$0xff] }
 0x2a0   :  { %4095 = vmatpush2.bf16.msra.mxu0 %v16833_v1  ;;  %v591_v1 = vld [vmem:[#allocation8 + $0x158] sm:$0xff] }
 0x2a1   :  { %4136 = vmatpush2.bf16.msra.mxu1 %v16961_v3  ;;  %4096 = vmatprep.subr.bf16.mxu0 %v16826_v4  ;;  %v595_v3 = vld [vmem:[#allocation8 + $0x178] sm:$0xff] }
 0x2a2   :  { %4137 = vmatprep.subr.bf16.mxu1 %v16954_v5  ;;  %v16660_v5 = vcombine.high %v727_v59, %v731_v61  ;;  %v16523_v32 = vcombine.low %v591_v1, %v595_v3 }
 0x2a4   :  { %4097 = vmatpush2.bf16.msra.mxu0 %v16825_v10  ;;  %v16531_v10 = vcombine.low %v599_v57, %v603_v37  ;;  %v695_v57 = vld [vmem:[#allocation8 + $0x498] sm:$0xff] }
 0x2a5   :  { %4138 = vmatpush2.bf16.msra.mxu1 %v16953_v6  ;;  %4098 = vmatprep.subr.bf16.mxu0 %v16818_v11  ;;  %v16524_v11 = vcombine.high %v591_v1, %v595_v3  ;;  %v699_v37 = vld [vmem:[#allocation8 + $0x4b8] sm:$0xff] }
 0x2a6   :  { %4139 = vmatprep.subr.bf16.mxu1 %v16946_v12  ;;  %v16628_v61 = vcombine.high %v695_v57, %v699_v37  ;;  %v691_v1 = vld [vmem:[#allocation8 + $0x478] sm:$0xff] }
 0x2a8   :  { %4099 = vmatpush2.bf16.msra.mxu0 %v16817_v26  ;;  %v587_v26 = vld [vmem:[#allocation8 + $0x138] sm:$0xff] }
 0x2a9   :  { %4140 = vmatpush2.bf16.msra.mxu1 %v16945_v28  ;;  %4100 = vmatprep.subr.bf16.mxu0 %v16810_v30  ;;  %v711_v30 = vld [vmem:[#allocation8 + $0x518] sm:$0xff]  ;;  %v16515_v35 = vcombine.low %v583_v22, %v587_v26 }
 0x2aa   :  { %4141 = vmatprep.subr.bf16.mxu1 %v16938_v31  ;;  %v715_v31 = vld [vmem:[#allocation8 + $0x538] sm:$0xff] }
 0x2ab   :  { %v16643_v44 = vcombine.low %v711_v30, %v715_v31 }
 0x2ac   :  { %4101 = vmatpush2.bf16.msra.mxu0 %v16809_v42 }
 0x2ad   :  { %4142 = vmatpush2.bf16.msra.mxu1 %v16937_v43  ;;  %4102 = vmatprep.subr.bf16.mxu0 %v16802_v50  ;;  %v16644_v43 = vcombine.high %v711_v30, %v715_v31  ;;  %v575_v50 = vld [vmem:[#allocation8 + $0xd8] sm:$0xff] }
 0x2ae   :  { %4143 = vmatprep.subr.bf16.mxu1 %v16930_v52  ;;  %v579_v52 = vld [vmem:[#allocation8 + $0xf8] sm:$0xff] }
 0x2b0   :  { %4103 = vmatpush2.bf16.msra.mxu0 %v16801_v36  ;;  %v16508_v36 = vcombine.high %v575_v50, %v579_v52 }
 0x2b1   :  { %4144 = vmatpush2.bf16.msra.mxu1 %v16929_v40  ;;  %4154 = vmatprep.subr.bf16.mxu0 %v16540_v55  ;;  %v16636_v40 = vcombine.high %v703_v53, %v707_v54  ;;  %v567_v55 = vld [vmem:[#allocation8 + $0x98] sm:$0xff] }
 0x2b2   :  { %4195 = vmatprep.subr.bf16.mxu1 %v16668_v56  ;;  %v571_v56 = vld [vmem:[#allocation8 + $0xb8] sm:$0xff] }
 0x2b3   :  { %v3860_v4 = vpop.f32.mrf.mxu0  ;;  %4105 = vmatmul.mubr.bf16.vlgmr.msra.gmra.mxu0 %v19301_v25  ;;  %v16500_v59 = vcombine.high %v567_v55, %v571_v56  ;;  %v16499_v3 = vcombine.low %v567_v55, %v571_v56 }
 0x2b4   :  { %v3861_v8 = vadd.f32 %v3860_v4, %v1073_v41  ;;  %v3901_v9 = vpop.f32.mrf.mxu1  ;;  %4146 = vmatmul.mubr.bf16.vlgmr.msra.gmra.mxu1 %v19303_v27  ;;  %4155 = vmatpush1.bf16.msra.mxu0 %v16539_v58  ;;  %v16507_v41 = vcombine.low %v575_v50, %v579_v52  ;;  %v16635_v58 = vcombine.low %v703_v53, %v707_v54  ;;  %v655_v53 = vld [vmem:[#allocation8 + $0x358] sm:$0xff] }
 0x2b5   :  { %4186 = vmatprep.mubr.bf16.mxu0 %v19259_v16  ;;  %4196 = vmatpush1.bf16.msra.mxu1 %v16667_v63  ;;  %v3862_v6 = vpop.f32.mrf.mxu0  ;;  %v559_v63 = vld [vmem:[#allocation8 + $0x58] sm:$0xff]  ;;  %v16627_v4 = vcombine.low %v695_v57, %v699_v37 }
 0x2b6   :  { %v19344_v12 = vadd.f32 %v3901_v9, %v3861_v8  ;;  %4227 = vmatprep.mubr.bf16.mxu1 %v19267_v21  ;;  %v3863_v14 = vadd.f32 %v3862_v6, %v1077_v46  ;;  %v3903_v15 = vpop.f32.mrf.mxu1  ;;  %4156 = vmatprep.subr.bf16.mxu0 %v16532_v0  ;;  %v16516_v21 = vcombine.high %v583_v22, %v587_v26  ;;  %v563_v46 = vld [vmem:[#allocation8 + $0x78] sm:$0xff] }
 0x2b7   :  { %v3864_v28 = vpop.f32.mrf.mxu0  ;;  %4197 = vmatprep.subr.bf16.mxu1 %v16660_v5  ;;  %v687_v0 = vld [vmem:[#allocation8 + $0x458] sm:$0xff]  ;;  %v16492_v5 = vcombine.high %v559_v63, %v563_v46  ;;  %v16491_v6 = vcombine.low %v559_v63, %v563_v46 }
 0x2b8   :  { %v19347_v13 = vadd.f32 %v3903_v15, %v3863_v14  ;;  %v3905_v16 = vpop.f32.mrf.mxu1  ;;  %4157 = vmatpush1.bf16.msra.mxu0 %v16531_v10  ;;  %v16620_v18 = vcombine.high %v687_v0, %v691_v1  ;;  %v555_v8 = vld [vmem:[#allocation8 + $0x38] sm:$0xff] }
 0x2b9   :  { %4198 = vmatpush1.bf16.msra.mxu1 %v16659_v51  ;;  %v3865_v34 = vpop.f32.mrf.mxu0  ;;  %4158 = vmatprep.subr.bf16.mxu0 %v16524_v11  ;;  %v679_v9 = vld [vmem:[#allocation8 + $0x418] sm:$0xff]  ;;  %v16619_v51 = vcombine.low %v687_v0, %v691_v1  ;;  %v16484_v11 = vcombine.high %v551_v7, %v555_v8  ;;  %v16483_v28 = vcombine.low %v551_v7, %v555_v8 }
 0x2ba   :  { %v3906_v42 = vpop.f32.mrf.mxu1  ;;  %4199 = vmatprep.subr.bf16.mxu1 %v16652_v17  ;;  %v683_v10 = vld [vmem:[#allocation8 + $0x438] sm:$0xff] }
 0x2bb   :  { %v16612_v14 = vcombine.high %v679_v9, %v683_v10  ;;  %v671_v15 = vld [vmem:[#allocation8 + $0x3d8] sm:$0xff]  ;;  %v16611_v30 = vcombine.low %v679_v9, %v683_v10 }
 0x2bc   :  { %4159 = vmatpush1.bf16.msra.mxu0 %v16523_v32  ;;  %v675_v17 = vld [vmem:[#allocation8 + $0x3f8] sm:$0xff] }
 0x2bd   :  { %4200 = vmatpush1.bf16.msra.mxu1 %v16651_v38  ;;  %4160 = vmatprep.subr.bf16.mxu0 %v16516_v21  ;;  %v799_v22 = vld [vmem:[#allocation8 + $0x7d8] sm:$0xff]  ;;  %v16604_v31 = vcombine.high %v671_v15, %v675_v17  ;;  %v16603_v42 = vcombine.low %v671_v15, %v675_v17 }
 0x2be   :  { %4201 = vmatprep.subr.bf16.mxu1 %v16644_v43  ;;  %v803_v26 = vld [vmem:[#allocation8 + $0x7f8] sm:$0xff] }
 0x2bf   :  { %v16732_v16 = vcombine.high %v799_v22, %v803_v26  ;;  %v663_v32 = vld [vmem:[#allocation8 + $0x398] sm:$0xff]  ;;  %v16731_v43 = vcombine.low %v799_v22, %v803_v26 }
 0x2c0   :  { %4161 = vmatpush1.bf16.msra.mxu0 %v16515_v35  ;;  %v667_v34 = vld [vmem:[#allocation8 + $0x3b8] sm:$0xff] }
 0x2c1   :  { %4202 = vmatpush1.bf16.msra.mxu1 %v16643_v44  ;;  %4162 = vmatprep.subr.bf16.mxu0 %v16508_v36  ;;  %v791_v38 = vld [vmem:[#allocation8 + $0x798] sm:$0xff]  ;;  %v16596_v50 = vcombine.high %v663_v32, %v667_v34  ;;  %v16595_v36 = vcombine.low %v663_v32, %v667_v34 }
 0x2c2   :  { %4203 = vmatprep.subr.bf16.mxu1 %v16636_v40  ;;  %v795_v21 = vld [vmem:[#allocation8 + $0x7b8] sm:$0xff] }
 0x2c3   :  { %v16724_v52 = vcombine.high %v791_v38, %v795_v21  ;;  %v659_v54 = vld [vmem:[#allocation8 + $0x378] sm:$0xff]  ;;  %v16723_v40 = vcombine.low %v791_v38, %v795_v21 }
 0x2c4   :  { %4163 = vmatpush1.bf16.msra.mxu0 %v16507_v41  ;;  %v783_v35 = vld [vmem:[#allocation8 + $0x758] sm:$0xff]  ;;  %v16588_v55 = vcombine.high %v655_v53, %v659_v54 }
 0x2c5   :  { %4204 = vmatpush1.bf16.msra.mxu1 %v16635_v58  ;;  %4164 = vmatprep.subr.bf16.mxu0 %v16500_v59  ;;  %v787_v44 = vld [vmem:[#allocation8 + $0x778] sm:$0xff]  ;;  %v16587_v59 = vcombine.low %v655_v53, %v659_v54 }
 0x2c6   :  { %4205 = vmatprep.subr.bf16.mxu1 %v16628_v61  ;;  %v16716_v56 = vcombine.high %v783_v35, %v787_v44  ;;  %v647_v57 = vld [vmem:[#allocation8 + $0x318] sm:$0xff]  ;;  %v16715_v61 = vcombine.low %v783_v35, %v787_v44 }
 0x2c7   :  { %v651_v37 = vld [vmem:[#allocation8 + $0x338] sm:$0xff] }
 0x2c8   :  { %4165 = vmatpush1.bf16.msra.mxu0 %v16499_v3  ;;  %v775_v41 = vld [vmem:[#allocation8 + $0x718] sm:$0xff]  ;;  %v16580_v63 = vcombine.high %v647_v57, %v651_v37 }
 0x2c9   :  { %4206 = vmatpush1.bf16.msra.mxu1 %v16627_v4  ;;  %4166 = vmatprep.subr.bf16.mxu0 %v16492_v5  ;;  %v779_v58 = vld [vmem:[#allocation8 + $0x738] sm:$0xff]  ;;  %v16579_v5 = vcombine.low %v647_v57, %v651_v37 }
 0x2ca   :  { %4207 = vmatprep.subr.bf16.mxu1 %v16620_v18  ;;  %v16708_v46 = vcombine.high %v775_v41, %v779_v58  ;;  %v639_v0 = vld [vmem:[#allocation8 + $0x2d8] sm:$0xff]  ;;  %v16707_v18 = vcombine.low %v775_v41, %v779_v58 }
 0x2cb   :  { %v643_v1 = vld [vmem:[#allocation8 + $0x2f8] sm:$0xff] }
 0x2cc   :  { %4167 = vmatpush1.bf16.msra.mxu0 %v16491_v6  ;;  %v767_v3 = vld [vmem:[#allocation8 + $0x6d8] sm:$0xff]  ;;  %v16572_v7 = vcombine.high %v639_v0, %v643_v1 }
 0x2cd   :  { %4208 = vmatpush1.bf16.msra.mxu1 %v16619_v51  ;;  %4168 = vmatprep.subr.bf16.mxu0 %v16484_v11  ;;  %v771_v4 = vld [vmem:[#allocation8 + $0x6f8] sm:$0xff]  ;;  %v16571_v11 = vcombine.low %v639_v0, %v643_v1 }
 0x2ce   :  { %4209 = vmatprep.subr.bf16.mxu1 %v16612_v14  ;;  %v16700_v8 = vcombine.high %v767_v3, %v771_v4  ;;  %v631_v9 = vld [vmem:[#allocation8 + $0x298] sm:$0xff]  ;;  %v16699_v14 = vcombine.low %v767_v3, %v771_v4 }
 0x2cf   :  { %v635_v10 = vld [vmem:[#allocation8 + $0x2b8] sm:$0xff] }
 0x2d0   :  { %4169 = vmatpush1.bf16.msra.mxu0 %v16483_v28  ;;  %v759_v6 = vld [vmem:[#allocation8 + $0x698] sm:$0xff]  ;;  %v16564_v15 = vcombine.high %v631_v9, %v635_v10 }
 0x2d1   :  { %4210 = vmatpush1.bf16.msra.mxu1 %v16611_v30  ;;  %4170 = vmatprep.subr.bf16.mxu0 %v16604_v31  ;;  %v763_v51 = vld [vmem:[#allocation8 + $0x6b8] sm:$0xff]  ;;  %v16563_v31 = vcombine.low %v631_v9, %v635_v10 }
 0x2d2   :  { %4211 = vmatprep.subr.bf16.mxu1 %v16732_v16  ;;  %v16692_v17 = vcombine.high %v759_v6, %v763_v51  ;;  %v623_v22 = vld [vmem:[#allocation8 + $0x258] sm:$0xff]  ;;  %v16691_v16 = vcombine.low %v759_v6, %v763_v51 }
 0x2d3   :  { %v627_v26 = vld [vmem:[#allocation8 + $0x278] sm:$0xff] }
 0x2d4   :  { %4171 = vmatpush2.bf16.msra.mxu0 %v16603_v42  ;;  %v751_v28 = vld [vmem:[#allocation8 + $0x658] sm:$0xff]  ;;  %v16556_v32 = vcombine.high %v623_v22, %v627_v26 }
 0x2d5   :  { %4212 = vmatpush2.bf16.msra.mxu1 %v16731_v43  ;;  %4172 = vmatprep.subr.bf16.mxu0 %v16596_v50  ;;  %v755_v30 = vld [vmem:[#allocation8 + $0x678] sm:$0xff]  ;;  %v16555_v50 = vcombine.low %v623_v22, %v627_v26 }
 0x2d6   :  { %4213 = vmatprep.subr.bf16.mxu1 %v16724_v52  ;;  %v16684_v34 = vcombine.high %v751_v28, %v755_v30  ;;  %v615_v38 = vld [vmem:[#allocation8 + $0x218] sm:$0xff]  ;;  %v16683_v52 = vcombine.low %v751_v28, %v755_v30 }
 0x2d7   :  { %v619_v21 = vld [vmem:[#allocation8 + $0x238] sm:$0xff] }
 0x2d8   :  { %4173 = vmatpush2.bf16.msra.mxu0 %v16595_v36  ;;  %v743_v42 = vld [vmem:[#allocation8 + $0x618] sm:$0xff]  ;;  %v16548_v53 = vcombine.high %v615_v38, %v619_v21 }
 0x2d9   :  { %4214 = vmatpush2.bf16.msra.mxu1 %v16723_v40  ;;  %4174 = vmatprep.subr.bf16.mxu0 %v16588_v55  ;;  %v747_v43 = vld [vmem:[#allocation8 + $0x638] sm:$0xff]  ;;  %v16547_v55 = vcombine.low %v615_v38, %v619_v21 }
 0x2da   :  { %4215 = vmatprep.subr.bf16.mxu1 %v16716_v56  ;;  %v16676_v54 = vcombine.high %v743_v42, %v747_v43  ;;  %v863_v35 = vld [vmem:[#allocation8 + $0x9d8] sm:$0xff]  ;;  %v16675_v56 = vcombine.low %v743_v42, %v747_v43 }
 0x2db   :  { %v867_v44 = vld [vmem:[#allocation8 + $0x9f8] sm:$0xff] }
 0x2dc   :  { %4175 = vmatpush2.bf16.msra.mxu0 %v16587_v59  ;;  %v991_v36 = vld [vmem:[#allocation8 + $0xdd8] sm:$0xff]  ;;  %v16796_v57 = vcombine.high %v863_v35, %v867_v44  ;;  %v16795_v59 = vcombine.low %v863_v35, %v867_v44 }
 0x2dd   :  { %4216 = vmatpush2.bf16.msra.mxu1 %v16715_v61  ;;  %4176 = vmatprep.subr.bf16.mxu0 %v16580_v63  ;;  %v995_v40 = vld [vmem:[#allocation8 + $0xdf8] sm:$0xff] }
 0x2de   :  { %4217 = vmatprep.subr.bf16.mxu1 %v16708_v46  ;;  %v16924_v37 = vcombine.high %v991_v36, %v995_v40  ;;  %v855_v41 = vld [vmem:[#allocation8 + $0x998] sm:$0xff]  ;;  %v16923_v46 = vcombine.low %v991_v36, %v995_v40 }
 0x2df   :  { %v859_v58 = vld [vmem:[#allocation8 + $0x9b8] sm:$0xff] }
 0x2e0   :  { %4177 = vmatpush2.bf16.msra.mxu0 %v16579_v5  ;;  %v983_v61 = vld [vmem:[#allocation8 + $0xd98] sm:$0xff]  ;;  %v16788_v0 = vcombine.high %v855_v41, %v859_v58  ;;  %v16787_v10 = vcombine.low %v855_v41, %v859_v58 }
 0x2e1   :  { %4218 = vmatpush2.bf16.msra.mxu1 %v16707_v18  ;;  %4178 = vmatprep.subr.bf16.mxu0 %v16572_v7  ;;  %v987_v63 = vld [vmem:[#allocation8 + $0xdb8] sm:$0xff] }
 0x2e2   :  { %4219 = vmatprep.subr.bf16.mxu1 %v16700_v8  ;;  %v847_v1 = vld [vmem:[#allocation8 + $0x958] sm:$0xff]  ;;  %v16916_v5 = vcombine.high %v983_v61, %v987_v63  ;;  %v16915_v51 = vcombine.low %v983_v61, %v987_v63 }
 0x2e3   :  { %v851_v3 = vld [vmem:[#allocation8 + $0x978] sm:$0xff] }
 0x2e4   :  { %4179 = vmatpush2.bf16.msra.mxu0 %v16571_v11  ;;  %v975_v18 = vld [vmem:[#allocation8 + $0xd58] sm:$0xff]  ;;  %v16780_v11 = vcombine.high %v847_v1, %v851_v3  ;;  %v16779_v28 = vcombine.low %v847_v1, %v851_v3 }
 0x2e5   :  { %4220 = vmatpush2.bf16.msra.mxu1 %v16699_v14  ;;  %4180 = vmatprep.subr.bf16.mxu0 %v16564_v15  ;;  %v979_v7 = vld [vmem:[#allocation8 + $0xd78] sm:$0xff] }
 0x2e6   :  { %4221 = vmatprep.subr.bf16.mxu1 %v16692_v17  ;;  %v839_v15 = vld [vmem:[#allocation8 + $0x918] sm:$0xff] }
 0x2e7   :  { %v843_v17 = vld [vmem:[#allocation8 + $0x938] sm:$0xff] }
 0x2e8   :  { %4181 = vmatpush2.bf16.msra.mxu0 %v16563_v31  ;;  %v967_v22 = vld [vmem:[#allocation8 + $0xd18] sm:$0xff]  ;;  %v16907_v31 = vcombine.low %v975_v18, %v979_v7  ;;  %v16771_v43 = vcombine.low %v839_v15, %v843_v17 }
 0x2e9   :  { %4222 = vmatpush2.bf16.msra.mxu1 %v16691_v16  ;;  %4182 = vmatprep.subr.bf16.mxu0 %v16556_v32  ;;  %v971_v26 = vld [vmem:[#allocation8 + $0xd38] sm:$0xff]  ;;  %v16772_v16 = vcombine.high %v839_v15, %v843_v17 }
 0x2ea   :  { %4223 = vmatprep.subr.bf16.mxu1 %v16684_v34  ;;  %v831_v34 = vld [vmem:[#allocation8 + $0x8d8] sm:$0xff] }
 0x2eb   :  { %v835_v38 = vld [vmem:[#allocation8 + $0x8f8] sm:$0xff] }
 0x2ec   :  { %4183 = vmatpush2.bf16.msra.mxu0 %v16555_v50  ;;  %v959_v21 = vld [vmem:[#allocation8 + $0xcd8] sm:$0xff]  ;;  %v16899_v50 = vcombine.low %v967_v22, %v971_v26  ;;  %v16763_v40 = vcombine.low %v831_v34, %v835_v38 }
 0x2ed   :  { %4224 = vmatpush2.bf16.msra.mxu1 %v16683_v52  ;;  %4184 = vmatprep.subr.bf16.mxu0 %v16548_v53  ;;  %v963_v42 = vld [vmem:[#allocation8 + $0xcf8] sm:$0xff]  ;;  %v16764_v52 = vcombine.high %v831_v34, %v835_v38 }
 0x2ee   :  { %4225 = vmatprep.subr.bf16.mxu1 %v16676_v54  ;;  %v16892_v53 = vcombine.high %v959_v21, %v963_v42  ;;  %v823_v54 = vld [vmem:[#allocation8 + $0x898] sm:$0xff] }
 0x2ef   :  { %v827_v35 = vld [vmem:[#allocation8 + $0x8b8] sm:$0xff] }
 0x2f0   :  { %4185 = vmatpush2.bf16.msra.mxu0 %v16547_v55  ;;  %v951_v44 = vld [vmem:[#allocation8 + $0xc98] sm:$0xff]  ;;  %v16891_v55 = vcombine.low %v959_v21, %v963_v42  ;;  %v16755_v61 = vcombine.low %v823_v54, %v827_v35 }
 0x2f1   :  { %4226 = vmatpush2.bf16.msra.mxu1 %v16675_v56  ;;  %4236 = vmatprep.subr.bf16.mxu0 %v16796_v57  ;;  %v955_v36 = vld [vmem:[#allocation8 + $0xcb8] sm:$0xff]  ;;  %v16756_v56 = vcombine.high %v823_v54, %v827_v35 }
 0x2f2   :  { %4277 = vmatprep.subr.bf16.mxu1 %v16924_v37  ;;  %v16884_v57 = vcombine.high %v951_v44, %v955_v36  ;;  %v815_v37 = vld [vmem:[#allocation8 + $0x858] sm:$0xff]  ;;  %v16883_v63 = vcombine.low %v951_v44, %v955_v36 }
 0x2f3   :  { %v3942_v4 = vpop.f32.mrf.mxu0  ;;  %4187 = vmatmul.mubr.bf16.vlgmr.msra.gmra.mxu0 %v19265_v20  ;;  %v819_v41 = vld [vmem:[#allocation8 + $0x878] sm:$0xff] }
 0x2f4   :  { %v3943_v8 = vadd.f32 %v3942_v4, %v19344_v12  ;;  %v3983_v9 = vpop.f32.mrf.mxu1  ;;  %4228 = vmatmul.mubr.bf16.vlgmr.msra.gmra.mxu1 %v19271_v24  ;;  %4237 = vmatpush1.bf16.msra.mxu0 %v16795_v59  ;;  %v16908_v12 = vcombine.high %v975_v18, %v979_v7  ;;  %v943_v58 = vld [vmem:[#allocation8 + $0xc58] sm:$0xff]  ;;  %v16747_v18 = vcombine.low %v815_v37, %v819_v41 }
 0x2f5   :  { %4268 = vmatprep.mubr.bf16.mxu0 %v19283_v39  ;;  %4278 = vmatpush1.bf16.msra.mxu1 %v16923_v46  ;;  %v19353_v6 = vpop.f32.mrf.mxu0  ;;  %v947_v59 = vld [vmem:[#allocation8 + $0xc78] sm:$0xff]  ;;  %v16748_v46 = vcombine.high %v815_v37, %v819_v41 }
 0x2f6   :  { %v19355_v14 = vadd.f32 %v3983_v9, %v3943_v8  ;;  %4309 = vmatprep.mubr.bf16.mxu1 %v19285_v60  ;;  %v19358_v20 = vpop.f32.mrf.mxu1  ;;  %4238 = vmatprep.subr.bf16.mxu0 %v16788_v0  ;;  %v16900_v60 = vcombine.high %v967_v22, %v971_v26  ;;  %v16876_v0 = vcombine.high %v943_v58, %v947_v59  ;;  %v807_v1 = vld [vmem:[#allocation8 + $0x818] sm:$0xff] }
 0x2f7   :  { %v3946_v24 = vpop.f32.mrf.mxu0  ;;  %4279 = vmatprep.subr.bf16.mxu1 %v16916_v5  ;;  %v811_v3 = vld [vmem:[#allocation8 + $0x838] sm:$0xff]  ;;  %v16875_v7 = vcombine.low %v943_v58, %v947_v59 }
 0x2f8   :  { %v3987_v39 = vpop.f32.mrf.mxu1  ;;  %4239 = vmatpush1.bf16.msra.mxu0 %v16787_v10  ;;  %v935_v4 = vld [vmem:[#allocation8 + $0xc18] sm:$0xff]  ;;  %v16740_v8 = vcombine.high %v807_v1, %v811_v3  ;;  %v16739_v15 = vcombine.low %v807_v1, %v811_v3  ;;  %vm4320_vm12 = vcmp.gt.f32.partialorder %v19355_v14, 0.0 }
 0x2f9   :  { %4280 = vmatpush1.bf16.msra.mxu1 %v16915_v51  ;;  %v3947_v30 = vpop.f32.mrf.mxu0  ;;  %4240 = vmatprep.subr.bf16.mxu0 %v16780_v11  ;;  %v939_v5 = vld [vmem:[#allocation8 + $0xc38] sm:$0xff] }
 0x2fa   :  { %v3988_v32 = vpop.f32.mrf.mxu1  ;;  %4281 = vmatprep.subr.bf16.mxu1 %v16908_v12  ;;  %v16868_v9 = vcombine.high %v935_v4, %v939_v5  ;;  %v927_v10 = vld [vmem:[#allocation8 + $0xbd8] sm:$0xff]  ;;  %v16867_v17 = vcombine.low %v935_v4, %v939_v5 }
 0x2fb   :  { %v931_v51 = vld [vmem:[#allocation8 + $0xbf8] sm:$0xff] }
 0x2fc   :  { %4241 = vmatpush1.bf16.msra.mxu0 %v16779_v28  ;;  %v1055_v11 = vld [vmem:[#allocation8 + $0xfd8] sm:$0xff]  ;;  %v16860_v24 = vcombine.high %v927_v10, %v931_v51 }
 0x2fd   :  { %4282 = vmatpush1.bf16.msra.mxu1 %v16907_v31  ;;  %4242 = vmatprep.subr.bf16.mxu0 %v16772_v16  ;;  %v1059_v12 = vld [vmem:[#allocation8 + $0xff8] sm:$0xff]  ;;  %v16859_v31 = vcombine.low %v927_v10, %v931_v51 }
 0x2fe   :  { %4283 = vmatprep.subr.bf16.mxu1 %v16900_v60  ;;  %v16988_v22 = vcombine.high %v1055_v11, %v1059_v12  ;;  %v919_v26 = vld [vmem:[#allocation8 + $0xb98] sm:$0xff]  ;;  %v16987_v16 = vcombine.low %v1055_v11, %v1059_v12 }
 0x2ff   :  { %v923_v39 = vld [vmem:[#allocation8 + $0xbb8] sm:$0xff] }
 0x300   :  { %4243 = vmatpush1.bf16.msra.mxu0 %v16771_v43  ;;  %v1047_v28 = vld [vmem:[#allocation8 + $0xf98] sm:$0xff]  ;;  %v16852_v32 = vcombine.high %v919_v26, %v923_v39  ;;  %v16851_v43 = vcombine.low %v919_v26, %v923_v39 }
 0x301   :  { %4284 = vmatpush1.bf16.msra.mxu1 %v16899_v50  ;;  %4244 = vmatprep.subr.bf16.mxu0 %v16764_v52  ;;  %v1051_v30 = vld [vmem:[#allocation8 + $0xfb8] sm:$0xff] }
 0x302   :  { %4285 = vmatprep.subr.bf16.mxu1 %v16892_v53  ;;  %v16980_v60 = vcombine.high %v1047_v28, %v1051_v30  ;;  %v911_v34 = vld [vmem:[#allocation8 + $0xb58] sm:$0xff]  ;;  %v16979_v50 = vcombine.low %v1047_v28, %v1051_v30 }
 0x303   :  { %v915_v38 = vld [vmem:[#allocation8 + $0xb78] sm:$0xff] }
 0x304   :  { %4245 = vmatpush1.bf16.msra.mxu0 %v16763_v40  ;;  %v1039_v21 = vld [vmem:[#allocation8 + $0xf58] sm:$0xff]  ;;  %v16844_v52 = vcombine.high %v911_v34, %v915_v38  ;;  %v16843_v40 = vcombine.low %v911_v34, %v915_v38  ;;  %v4410_v38 = vld [vmem:[#allocation11 + $0x1e0] sm:$0xff] }
 0x305   :  { %4286 = vmatpush1.bf16.msra.mxu1 %v16891_v55  ;;  %4246 = vmatprep.subr.bf16.mxu0 %v16756_v56  ;;  %v1043_v42 = vld [vmem:[#allocation8 + $0xf78] sm:$0xff] }
 0x306   :  { %4287 = vmatprep.subr.bf16.mxu1 %v16884_v57  ;;  %v16972_v53 = vcombine.high %v1039_v21, %v1043_v42  ;;  %v903_v54 = vld [vmem:[#allocation8 + $0xb18] sm:$0xff]  ;;  %v16971_v55 = vcombine.low %v1039_v21, %v1043_v42  ;;  %v4534_v21 = vld [vmem:[#allocation11 + $0x5c0] sm:$0xff] }
 0x307   :  { %v907_v35 = vld [vmem:[#allocation8 + $0xb38] sm:$0xff]  ;;  %v4538_v42 = vld [vmem:[#allocation11 + $0x5e0] sm:$0xff] }
 0x308   :  { %4247 = vmatpush1.bf16.msra.mxu0 %v16755_v61  ;;  %v1031_v44 = vld [vmem:[#allocation8 + $0xf18] sm:$0xff]  ;;  %v16836_v56 = vcombine.high %v903_v54, %v907_v35  ;;  %v16835_v61 = vcombine.low %v903_v54, %v907_v35  ;;  %v17174_v54 = vcombine.high %v4534_v21, %v4538_v42  ;;  %v4398_v35 = vld [vmem:[#allocation11 + $0x180] sm:$0xff] }
 0x309   :  { %4288 = vmatpush1.bf16.msra.mxu1 %v16883_v63  ;;  %4248 = vmatprep.subr.bf16.mxu0 %v16748_v46  ;;  %v1035_v36 = vld [vmem:[#allocation8 + $0xf38] sm:$0xff] }
 0x30a   :  { %4289 = vmatprep.subr.bf16.mxu1 %v16876_v0  ;;  %v16964_v57 = vcombine.high %v1031_v44, %v1035_v36  ;;  %v895_v37 = vld [vmem:[#allocation8 + $0xad8] sm:$0xff]  ;;  %v16963_v63 = vcombine.low %v1031_v44, %v1035_v36  ;;  %v4402_v44 = vld [vmem:[#allocation11 + $0x1a0] sm:$0xff] }
 0x30b   :  { %v899_v41 = vld [vmem:[#allocation8 + $0xaf8] sm:$0xff] }
 0x30c   :  { %4249 = vmatpush1.bf16.msra.mxu0 %v16747_v18  ;;  %v1023_v58 = vld [vmem:[#allocation8 + $0xed8] sm:$0xff]  ;;  %v16828_v46 = vcombine.high %v895_v37, %v899_v41  ;;  %v16827_v18 = vcombine.low %v895_v37, %v899_v41  ;;  %v4530_v37 = vld [vmem:[#allocation11 + $0x5a0] sm:$0xff] }
 0x30d   :  { %4290 = vmatpush1.bf16.msra.mxu1 %v16875_v7  ;;  %4250 = vmatprep.subr.bf16.mxu0 %v16740_v8  ;;  %v1027_v59 = vld [vmem:[#allocation8 + $0xef8] sm:$0xff] }
 0x30e   :  { %4291 = vmatprep.subr.bf16.mxu1 %v16868_v9  ;;  %v16956_v0 = vcombine.high %v1023_v58, %v1027_v59  ;;  %v887_v1 = vld [vmem:[#allocation8 + $0xa98] sm:$0xff]  ;;  %v16955_v7 = vcombine.low %v1023_v58, %v1027_v59  ;;  %v17173_v58 = vcombine.low %v4534_v21, %v4538_v42  ;;  %v17038_v59 = vcombine.high %v4398_v35, %v4402_v44 }
 0x30f   :  { %v891_v3 = vld [vmem:[#allocation8 + $0xab8] sm:$0xff] }
 0x310   :  { %4251 = vmatpush1.bf16.msra.mxu0 %v16739_v15  ;;  %v1015_v4 = vld [vmem:[#allocation8 + $0xe98] sm:$0xff]  ;;  %v16820_v8 = vcombine.high %v887_v1, %v891_v3  ;;  %v16819_v15 = vcombine.low %v887_v1, %v891_v3  ;;  %v4518_v1 = vld [vmem:[#allocation11 + $0x540] sm:$0xff] }
 0x311   :  { %4292 = vmatpush1.bf16.msra.mxu1 %v16867_v17  ;;  %4252 = vmatprep.subr.bf16.mxu0 %v16860_v24  ;;  %v1019_v5 = vld [vmem:[#allocation8 + $0xeb8] sm:$0xff]  ;;  %v3945_v17 = vadd.f32 %v19353_v6, %v19347_v13  ;;  %v4406_v6 = vld [vmem:[#allocation11 + $0x1c0] sm:$0xff] }
 0x312   :  { %4293 = vmatprep.subr.bf16.mxu1 %v16988_v22  ;;  %v16948_v9 = vcombine.high %v1015_v4, %v1019_v5  ;;  %v879_v10 = vld [vmem:[#allocation8 + $0xa58] sm:$0xff]  ;;  %v16947_v24 = vcombine.low %v1015_v4, %v1019_v5  ;;  %v4522_v3 = vld [vmem:[#allocation11 + $0x560] sm:$0xff] }
 0x313   :  { %v883_v51 = vld [vmem:[#allocation8 + $0xa78] sm:$0xff] }
 0x314   :  { %4253 = vmatpush2.bf16.msra.mxu0 %v16859_v31  ;;  %v1007_v11 = vld [vmem:[#allocation8 + $0xe58] sm:$0xff]  ;;  %v16812_v22 = vcombine.high %v879_v10, %v883_v51 }
 0x315   :  { %4294 = vmatpush2.bf16.msra.mxu1 %v16987_v16  ;;  %4254 = vmatprep.subr.bf16.mxu0 %v16852_v32  ;;  %v1011_v12 = vld [vmem:[#allocation8 + $0xe78] sm:$0xff]  ;;  %v16811_v16 = vcombine.low %v879_v10, %v883_v51  ;;  %v3986_v32 = vadd.f32 %v19358_v20, %v3945_v17  ;;  %v4510_v17 = vld [vmem:[#allocation11 + $0x500] sm:$0xff] }
 0x316   :  { %4295 = vmatprep.subr.bf16.mxu1 %v16980_v60  ;;  %v16940_v26 = vcombine.high %v1007_v11, %v1011_v12  ;;  %v871_v39 = vld [vmem:[#allocation8 + $0xa18] sm:$0xff]  ;;  %v16939_v60 = vcombine.low %v1007_v11, %v1011_v12  ;;  %v17158_v11 = vcombine.high %v4518_v1, %v4522_v3  ;;  %v4382_v12 = vld [vmem:[#allocation11 + $0x100] sm:$0xff] }
 0x317   :  { %v875_v28 = vld [vmem:[#allocation8 + $0xa38] sm:$0xff]  ;;  %vm4321_vm10 = vcmp.gt.f32.partialorder %v3986_v32, 0.0 }
 0x318   :  { %4255 = vmatpush2.bf16.msra.mxu0 %v16851_v43  ;;  %v999_v30 = vld [vmem:[#allocation8 + $0xe18] sm:$0xff]  ;;  %v16804_v34 = vcombine.high %v871_v39, %v875_v28  ;;  %v4327_v43 = vmul.f32 0.2, %v19335_v19 }
 0x319   :  { %4296 = vmatpush2.bf16.msra.mxu1 %v16979_v50  ;;  %4256 = vmatprep.subr.bf16.mxu0 %v16844_v52  ;;  %v1003_v31 = vld [vmem:[#allocation8 + $0xe38] sm:$0xff]  ;;  %v16803_v50 = vcombine.low %v871_v39, %v875_v28  ;;  %v4329_v52 = vmul.f32 0.2, %v3986_v32  ;;  %v17157_v28 = vcombine.low %v4518_v1, %v4522_v3 }
 0x31a   :  { %4297 = vmatprep.subr.bf16.mxu1 %v16972_v53  ;;  %v16932_v13 = vcombine.high %v999_v30, %v1003_v31  ;;  %v16931_v20 = vcombine.low %v999_v30, %v1003_v31  ;;  %v17046_v53 = vcombine.high %v4406_v6, %v4410_v38  ;;  %v4335_v36 = vsel %vm4319_vm9, %v19335_v19, %v4327_v43  ;;  %v4366_v43 = vld [vmem:[#allocation11 + $0x80] sm:$0xff] }
 0x31b   :  { %v4337_v41 = vsel %vm4321_vm10, %v3986_v32, %v4329_v52  ;;  %v4374_v32 = vld [vmem:[#allocation11 + $0xc0] sm:$0xff] }
 0x31c   :  { %4257 = vmatpush2.bf16.msra.mxu0 %v16843_v40  ;;  %v19366_v40 = vld [vmem:[#allocation10] sm:$0xff]  ;;  %v19373_v4 = vpack.c.bf16 %v4337_v41, %v4337_v41  ;;  %v4494_v52 = vld [vmem:[#allocation11 + $0x480] sm:$0xff] }
 0x31d   :  { %4298 = vmatpush2.bf16.msra.mxu1 %v16971_v55  ;;  %4258 = vmatprep.subr.bf16.mxu0 %v16836_v56  ;;  %v1081_v55 = vrot.slane %v19366_v40, %v19290_v29  ;;  %v17045_v56 = vcombine.low %v4406_v6, %v4410_v38 }
 0x31e   :  { %4299 = vmatprep.subr.bf16.mxu1 %v16964_v57  ;;  %v4526_v57 = vld [vmem:[#allocation11 + $0x580] sm:$0xff] }
 0x320   :  { %4259 = vmatpush2.bf16.msra.mxu0 %v16835_v61  ;;  %v4390_v61 = vld [vmem:[#allocation11 + $0x140] sm:$0xff] }
 0x321   :  { %4300 = vmatpush2.bf16.msra.mxu1 %v16963_v63  ;;  %4260 = vmatprep.subr.bf16.mxu0 %v16828_v46  ;;  %v4394_v63 = vld [vmem:[#allocation11 + $0x160] sm:$0xff]  ;;  %v19370_v46 = vpack.c.bf16 %v4335_v36, %v4335_v36 }
 0x322   :  { %4301 = vmatprep.subr.bf16.mxu1 %v16956_v0  ;;  %v17166_v0 = vcombine.high %v4526_v57, %v4530_v37  ;;  %v17030_v10 = vcombine.high %v4390_v61, %v4394_v63  ;;  %v4358_v36 = vld [vmem:[#allocation11 + $0x40] sm:$0xff] }
 0x324   :  { %4261 = vmatpush2.bf16.msra.mxu0 %v16827_v18 }
 0x325   :  { %4302 = vmatpush2.bf16.msra.mxu1 %v16955_v7  ;;  %4262 = vmatprep.subr.bf16.mxu0 %v16820_v8  ;;  %v17037_v7 = vcombine.low %v4398_v35, %v4402_v44 }
 0x326   :  { %4303 = vmatprep.subr.bf16.mxu1 %v16948_v9  ;;  %v17165_v9 = vcombine.low %v4526_v57, %v4530_v37  ;;  %v4490_v57 = vld [vmem:[#allocation11 + $0x460] sm:$0xff] }
 0x328   :  { %4263 = vmatpush2.bf16.msra.mxu0 %v16819_v15  ;;  %v4386_v15 = vld [vmem:[#allocation11 + $0x120] sm:$0xff] }
 0x329   :  { %4304 = vmatpush2.bf16.msra.mxu1 %v16947_v24  ;;  %4264 = vmatprep.subr.bf16.mxu0 %v16812_v22  ;;  %v4514_v24 = vld [vmem:[#allocation11 + $0x520] sm:$0xff]  ;;  %v17022_v30 = vcombine.high %v4382_v12, %v4386_v15  ;;  %v17021_v6 = vcombine.low %v4382_v12, %v4386_v15 }
 0x32a   :  { %4305 = vmatprep.subr.bf16.mxu1 %v16940_v26  ;;  %v17029_v26 = vcombine.low %v4390_v61, %v4394_v63  ;;  %v17149_v38 = vcombine.low %v4510_v17, %v4514_v24  ;;  %v4350_v61 = vld [vmem:[#allocation11] sm:$0xff] }
 0x32b   :  { %v4354_v63 = vld [vmem:[#allocation11 + $0x20] sm:$0xff] }
 0x32c   :  { %4265 = vmatpush2.bf16.msra.mxu0 %v16811_v16  ;;  %v17150_v16 = vcombine.high %v4510_v17, %v4514_v24  ;;  %v16989_v12 = vcombine.low %v4350_v61, %v4354_v63  ;;  %v4462_v24 = vld [vmem:[#allocation11 + $0x380] sm:$0xff] }
 0x32d   :  { %4306 = vmatpush2.bf16.msra.mxu1 %v16939_v60  ;;  %4266 = vmatprep.subr.bf16.mxu0 %v16804_v34  ;;  %v4378_v60 = vld [vmem:[#allocation11 + $0xe0] sm:$0xff] }
 0x32e   :  { %4307 = vmatprep.subr.bf16.mxu1 %v16932_v13  ;;  %v4502_v34 = vld [vmem:[#allocation11 + $0x4c0] sm:$0xff]  ;;  %v17014_v21 = vcombine.high %v4374_v32, %v4378_v60 }
 0x32f   :  { %v4506_v13 = vld [vmem:[#allocation11 + $0x4e0] sm:$0xff] }
 0x330   :  { %4267 = vmatpush2.bf16.msra.mxu0 %v16803_v50  ;;  %v17142_v42 = vcombine.high %v4502_v34, %v4506_v13  ;;  %v4370_v50 = vld [vmem:[#allocation11 + $0xa0] sm:$0xff] }
 0x331   :  { %4308 = vmatpush2.bf16.msra.mxu1 %v16931_v20  ;;  %7464 = vmatprep.subr.bf16.mxu0 %v17046_v53  ;;  %v4498_v20 = vld [vmem:[#allocation11 + $0x4a0] sm:$0xff]  ;;  %v17013_v53 = vcombine.low %v4374_v32, %v4378_v60  ;;  %v17006_v35 = vcombine.high %v4366_v43, %v4370_v50  ;;  %v17005_v37 = vcombine.low %v4366_v43, %v4370_v50 }
 0x332   :  { %7505 = vmatprep.subr.bf16.mxu1 %v17174_v54  ;;  %v17141_v54 = vcombine.low %v4502_v34, %v4506_v13  ;;  %v17134_v44 = vcombine.high %v4494_v52, %v4498_v20  ;;  %v17133_v41 = vcombine.low %v4494_v52, %v4498_v20  ;;  %v4454_v32 = vld [vmem:[#allocation11 + $0x340] sm:$0xff] }
 0x333   :  { %v4024_v19 = vpop.f32.mrf.mxu0  ;;  %4269 = vmatmul.mubr.bf16.vlgmr.msra.gmra.mxu0 %v19301_v25  ;;  %v4458_v60 = vld [vmem:[#allocation11 + $0x360] sm:$0xff] }
 0x334   :  { %v4025_v5 = vadd.f32 %v4024_v19, %v1081_v55  ;;  %v4065_v18 = vpop.f32.mrf.mxu1  ;;  %4310 = vmatmul.mubr.bf16.vlgmr.msra.gmra.mxu1 %v19303_v27  ;;  %7465 = vmatpush1.bf16.msra.mxu0 %v17045_v56  ;;  %v4362_v55 = vld [vmem:[#allocation11 + $0x60] sm:$0xff] }
 0x335   :  { %7496 = vmatprep.mubr.bf16.mxu0 %v19370_v46  ;;  %7506 = vmatpush1.bf16.msra.mxu1 %v17173_v58  ;;  %v19377_v8 = vpop.f32.mrf.mxu0  ;;  %v4486_v56 = vld [vmem:[#allocation11 + $0x440] sm:$0xff]  ;;  %v16998_v58 = vcombine.high %v4358_v36, %v4362_v55  ;;  %v16997_v1 = vcombine.low %v4358_v36, %v4362_v55 }
 0x336   :  { %v19379_v51 = vadd.f32 %v4065_v18, %v4025_v5  ;;  %7537 = vmatprep.mubr.bf16.mxu1 %v19373_v4  ;;  %v19382_v25 = vpop.f32.mrf.mxu1  ;;  %7466 = vmatprep.subr.bf16.mxu0 %v17038_v59  ;;  %v17126_v59 = vcombine.high %v4486_v56, %v4490_v57  ;;  %v4478_v19 = vld [vmem:[#allocation11 + $0x400] sm:$0xff]  ;;  %v17125_v3 = vcombine.low %v4486_v56, %v4490_v57 }
 0x337   :  { %v4028_v27 = vpop.f32.mrf.mxu0  ;;  %7507 = vmatprep.subr.bf16.mxu1 %v17166_v0  ;;  %v4482_v0 = vld [vmem:[#allocation11 + $0x420] sm:$0xff]  ;;  %v16990_v5 = vcombine.high %v4350_v61, %v4354_v63 }
 0x338   :  { %v4069_v22 = vpop.f32.mrf.mxu1  ;;  %7467 = vmatpush1.bf16.msra.mxu0 %v17037_v7  ;;  %v17118_v18 = vcombine.high %v4478_v19, %v4482_v0  ;;  %v4470_v7 = vld [vmem:[#allocation11 + $0x3c0] sm:$0xff]  ;;  %v17117_v15 = vcombine.low %v4478_v19, %v4482_v0 }
 0x339   :  { %7508 = vmatpush1.bf16.msra.mxu1 %v17165_v9  ;;  %v4029_v39 = vpop.f32.mrf.mxu0  ;;  %7468 = vmatprep.subr.bf16.mxu0 %v17030_v10  ;;  %v4474_v9 = vld [vmem:[#allocation11 + $0x3e0] sm:$0xff] }
 0x33a   :  { %v4070_v31 = vpop.f32.mrf.mxu1  ;;  %7509 = vmatprep.subr.bf16.mxu1 %v17158_v11  ;;  %v4598_v10 = vld [vmem:[#allocation11 + $0x7c0] sm:$0xff]  ;;  %v17110_v27 = vcombine.high %v4470_v7, %v4474_v9 }
 0x33b   :  { %v4602_v11 = vld [vmem:[#allocation11 + $0x7e0] sm:$0xff] }
 0x33c   :  { %7469 = vmatpush1.bf16.msra.mxu0 %v17029_v26  ;;  %v17238_v17 = vcombine.high %v4598_v10, %v4602_v11  ;;  %v4466_v22 = vld [vmem:[#allocation11 + $0x3a0] sm:$0xff] }
 0x33d   :  { %7510 = vmatpush1.bf16.msra.mxu1 %v17157_v28  ;;  %7470 = vmatprep.subr.bf16.mxu0 %v17022_v30  ;;  %v4590_v26 = vld [vmem:[#allocation11 + $0x780] sm:$0xff]  ;;  %v17109_v28 = vcombine.low %v4470_v7, %v4474_v9  ;;  %v17237_v30 = vcombine.low %v4598_v10, %v4602_v11  ;;  %v17102_v31 = vcombine.high %v4462_v24, %v4466_v22 }
 0x33e   :  { %7511 = vmatprep.subr.bf16.mxu1 %v17150_v16  ;;  %v4594_v39 = vld [vmem:[#allocation11 + $0x7a0] sm:$0xff] }
 0x33f   :  { %v17230_v16 = vcombine.high %v4590_v26, %v4594_v39  ;;  %v4582_v34 = vld [vmem:[#allocation11 + $0x740] sm:$0xff] }
 0x340   :  { %7471 = vmatpush1.bf16.msra.mxu0 %v17021_v6  ;;  %v4586_v13 = vld [vmem:[#allocation11 + $0x760] sm:$0xff]  ;;  %v17101_v6 = vcombine.low %v4462_v24, %v4466_v22 }
 0x341   :  { %7512 = vmatpush1.bf16.msra.mxu1 %v17149_v38  ;;  %7472 = vmatprep.subr.bf16.mxu0 %v17014_v21  ;;  %v17229_v38 = vcombine.low %v4590_v26, %v4594_v39  ;;  %v17094_v21 = vcombine.high %v4454_v32, %v4458_v60  ;;  %v4446_v43 = vld [vmem:[#allocation11 + $0x300] sm:$0xff] }
 0x342   :  { %7513 = vmatprep.subr.bf16.mxu1 %v17142_v42  ;;  %v17222_v42 = vcombine.high %v4582_v34, %v4586_v13  ;;  %v4450_v50 = vld [vmem:[#allocation11 + $0x320] sm:$0xff] }
 0x343   :  { %v4574_v52 = vld [vmem:[#allocation11 + $0x700] sm:$0xff] }
 0x344   :  { %7473 = vmatpush1.bf16.msra.mxu0 %v17013_v53  ;;  %v4578_v20 = vld [vmem:[#allocation11 + $0x720] sm:$0xff]  ;;  %v17093_v53 = vcombine.low %v4454_v32, %v4458_v60 }
 0x345   :  { %7514 = vmatpush1.bf16.msra.mxu1 %v17141_v54  ;;  %7474 = vmatprep.subr.bf16.mxu0 %v17006_v35  ;;  %v17221_v54 = vcombine.low %v4582_v34, %v4586_v13  ;;  %v17086_v35 = vcombine.high %v4446_v43, %v4450_v50  ;;  %v4438_v36 = vld [vmem:[#allocation11 + $0x2c0] sm:$0xff]  ;;  %v4328_v13 = vmul.f32 0.2, %v19355_v14 }
 0x346   :  { %7515 = vmatprep.subr.bf16.mxu1 %v17134_v44  ;;  %v17214_v44 = vcombine.high %v4574_v52, %v4578_v20  ;;  %v4442_v55 = vld [vmem:[#allocation11 + $0x2e0] sm:$0xff] }
 0x347   :  { %v4566_v56 = vld [vmem:[#allocation11 + $0x6c0] sm:$0xff] }
 0x348   :  { %7475 = vmatpush1.bf16.msra.mxu0 %v17005_v37  ;;  %v4570_v57 = vld [vmem:[#allocation11 + $0x6e0] sm:$0xff]  ;;  %v17085_v37 = vcombine.low %v4446_v43, %v4450_v50 }
 0x349   :  { %7516 = vmatpush1.bf16.msra.mxu1 %v17133_v41  ;;  %7476 = vmatprep.subr.bf16.mxu0 %v16998_v58  ;;  %v17213_v41 = vcombine.low %v4574_v52, %v4578_v20  ;;  %v17078_v58 = vcombine.high %v4438_v36, %v4442_v55  ;;  %v4430_v61 = vld [vmem:[#allocation11 + $0x280] sm:$0xff] }
 0x34a   :  { %7517 = vmatprep.subr.bf16.mxu1 %v17126_v59  ;;  %v17206_v59 = vcombine.high %v4566_v56, %v4570_v57  ;;  %v4434_v63 = vld [vmem:[#allocation11 + $0x2a0] sm:$0xff] }
 0x34b   :  { %v4558_v19 = vld [vmem:[#allocation11 + $0x680] sm:$0xff] }
 0x34c   :  { %7477 = vmatpush1.bf16.msra.mxu0 %v16997_v1  ;;  %v4562_v0 = vld [vmem:[#allocation11 + $0x6a0] sm:$0xff]  ;;  %v17077_v1 = vcombine.low %v4438_v36, %v4442_v55 }
 0x34d   :  { %7518 = vmatpush1.bf16.msra.mxu1 %v17125_v3  ;;  %7478 = vmatprep.subr.bf16.mxu0 %v16990_v5  ;;  %v17205_v3 = vcombine.low %v4566_v56, %v4570_v57  ;;  %v17070_v5 = vcombine.high %v4430_v61, %v4434_v63  ;;  %v4422_v7 = vld [vmem:[#allocation11 + $0x240] sm:$0xff] }
 0x34e   :  { %7519 = vmatprep.subr.bf16.mxu1 %v17118_v18  ;;  %v17198_v18 = vcombine.high %v4558_v19, %v4562_v0  ;;  %v4426_v9 = vld [vmem:[#allocation11 + $0x260] sm:$0xff] }
 0x34f   :  { %v4550_v10 = vld [vmem:[#allocation11 + $0x640] sm:$0xff] }
 0x350   :  { %7479 = vmatpush1.bf16.msra.mxu0 %v16989_v12  ;;  %v4554_v11 = vld [vmem:[#allocation11 + $0x660] sm:$0xff]  ;;  %v17069_v12 = vcombine.low %v4430_v61, %v4434_v63 }
 0x351   :  { %7520 = vmatpush1.bf16.msra.mxu1 %v17117_v15  ;;  %7480 = vmatprep.subr.bf16.mxu0 %v17110_v27  ;;  %v17197_v15 = vcombine.low %v4558_v19, %v4562_v0  ;;  %v17062_v27 = vcombine.high %v4422_v7, %v4426_v9  ;;  %v4414_v24 = vld [vmem:[#allocation11 + $0x200] sm:$0xff] }
 0x352   :  { %7521 = vmatprep.subr.bf16.mxu1 %v17238_v17  ;;  %v17190_v17 = vcombine.high %v4550_v10, %v4554_v11  ;;  %v4418_v22 = vld [vmem:[#allocation11 + $0x220] sm:$0xff] }
 0x353   :  { %v4542_v26 = vld [vmem:[#allocation11 + $0x600] sm:$0xff] }
 0x354   :  { %7481 = vmatpush2.bf16.msra.mxu0 %v17109_v28  ;;  %v4546_v39 = vld [vmem:[#allocation11 + $0x620] sm:$0xff]  ;;  %v17061_v28 = vcombine.low %v4422_v7, %v4426_v9 }
 0x355   :  { %7522 = vmatpush2.bf16.msra.mxu1 %v17237_v30  ;;  %7482 = vmatprep.subr.bf16.mxu0 %v17102_v31  ;;  %v17189_v30 = vcombine.low %v4550_v10, %v4554_v11  ;;  %v17054_v31 = vcombine.high %v4414_v24, %v4418_v22  ;;  %v17182_v32 = vcombine.high %v4542_v26, %v4546_v39  ;;  %v4662_v60 = vld [vmem:[#allocation11 + $0x9c0] sm:$0xff] }
 0x356   :  { %7523 = vmatprep.subr.bf16.mxu1 %v17230_v16  ;;  %v4326_v16 = vmul.f32 0.2, %v19331_v23  ;;  %v4666_v34 = vld [vmem:[#allocation11 + $0x9e0] sm:$0xff]  ;;  %v17181_v43 = vcombine.low %v4542_v26, %v4546_v39 }
 0x357   :  { %v17302_v50 = vcombine.high %v4662_v60, %v4666_v34  ;;  %v4654_v20 = vld [vmem:[#allocation11 + $0x980] sm:$0xff] }
 0x358   :  { %7483 = vmatpush2.bf16.msra.mxu0 %v17101_v6  ;;  %v4790_v6 = vld [vmem:[#allocation11 + $0xdc0] sm:$0xff]  ;;  %v4334_v52 = vsel %vm4318_vm11, %v19331_v23, %v4326_v16 }
 0x359   :  { %7524 = vmatpush2.bf16.msra.mxu1 %v17229_v38  ;;  %7484 = vmatprep.subr.bf16.mxu0 %v17094_v21  ;;  %v4794_v38 = vld [vmem:[#allocation11 + $0xde0] sm:$0xff]  ;;  %v1085_v21 = vrot.slane %v19366_v40, %v19252_v62  ;;  %v17301_v40 = vcombine.low %v4662_v60, %v4666_v34  ;;  %v19393_v56 = vpack.c.bf16 %v4334_v52, %v4334_v52 }
 0x35a   :  { %7525 = vmatprep.subr.bf16.mxu1 %v17222_v42  ;;  %v17053_v42 = vcombine.low %v4414_v24, %v4418_v22  ;;  %v4786_v36 = vld [vmem:[#allocation11 + $0xda0] sm:$0xff] }
 0x35b   :  { %v4027_v55 = vadd.f32 %v19377_v8, %v1085_v21  ;;  %v4646_v23 = vld [vmem:[#allocation11 + $0x940] sm:$0xff] }
 0x35c   :  { %7485 = vmatpush2.bf16.msra.mxu0 %v17093_v53  ;;  %v4658_v53 = vld [vmem:[#allocation11 + $0x9a0] sm:$0xff] }
 0x35d   :  { %7526 = vmatpush2.bf16.msra.mxu1 %v17221_v54  ;;  %7486 = vmatprep.subr.bf16.mxu0 %v17086_v35  ;;  %v17430_v54 = vcombine.high %v4790_v6, %v4794_v38  ;;  %v4336_v35 = vsel %vm4320_vm12, %v19355_v14, %v4328_v13  ;;  %v17294_v57 = vcombine.high %v4654_v20, %v4658_v53  ;;  %v4774_v14 = vld [vmem:[#allocation11 + $0xd40] sm:$0xff] }
 0x35e   :  { %7527 = vmatprep.subr.bf16.mxu1 %v17214_v44  ;;  %v4782_v44 = vld [vmem:[#allocation11 + $0xd80] sm:$0xff]  ;;  %v4068_v63 = vadd.f32 %v19382_v25, %v4027_v55  ;;  %v17293_v0 = vcombine.low %v4654_v20, %v4658_v53  ;;  %v19406_v20 = vld [vmem:[#allocation11 + $0x5c8] sm:$0xff] }
 0x35f   :  { %v4778_v8 = vld [vmem:[#allocation11 + $0xd60] sm:$0xff]  ;;  %v19408_v53 = vld [vmem:[#allocation11 + $0x5e8] sm:$0xff] }
 0x360   :  { %7487 = vmatpush2.bf16.msra.mxu0 %v17085_v37  ;;  %v17429_v37 = vcombine.low %v4790_v6, %v4794_v38  ;;  %v4638_v9 = vld [vmem:[#allocation11 + $0x900] sm:$0xff]  ;;  %v17414_v11 = vcombine.high %v4774_v14, %v4778_v8  ;;  %v17413_v39 = vcombine.low %v4774_v14, %v4778_v8 }
 0x361   :  { %7528 = vmatpush2.bf16.msra.mxu1 %v17213_v41  ;;  %7488 = vmatprep.subr.bf16.mxu0 %v17078_v58  ;;  %v19395_v41 = vpack.c.bf16 %v4336_v35, %v4336_v35  ;;  %v4650_v58 = vld [vmem:[#allocation11 + $0x960] sm:$0xff] }
 0x362   :  { %7529 = vmatprep.subr.bf16.mxu1 %v17206_v59  ;;  %v17422_v59 = vcombine.high %v4782_v44, %v4786_v36  ;;  %v4642_v10 = vld [vmem:[#allocation11 + $0x920] sm:$0xff]  ;;  %v17285_v24 = vcombine.low %v4646_v23, %v4650_v58 }
 0x363   :  { %v4770_v25 = vld [vmem:[#allocation11 + $0xd20] sm:$0xff]  ;;  %v17278_v26 = vcombine.high %v4638_v9, %v4642_v10  ;;  %v17277_v6 = vcombine.low %v4638_v9, %v4642_v10 }
 0x364   :  { %7489 = vmatpush2.bf16.msra.mxu0 %v17077_v1  ;;  %v4634_v16 = vld [vmem:[#allocation11 + $0x8e0] sm:$0xff] }
 0x365   :  { %7530 = vmatpush2.bf16.msra.mxu1 %v17205_v3  ;;  %7490 = vmatprep.subr.bf16.mxu0 %v17070_v5  ;;  %v17286_v3 = vcombine.high %v4646_v23, %v4650_v58  ;;  %v17421_v5 = vcombine.low %v4782_v44, %v4786_v36  ;;  %v4758_v60 = vld [vmem:[#allocation11 + $0xcc0] sm:$0xff]  ;;  %v17175_v44 = vcombine.low %v19406_v20, %v19408_v53 }
 0x366   :  { %7531 = vmatprep.subr.bf16.mxu1 %v17198_v18  ;;  %v4762_v34 = vld [vmem:[#allocation11 + $0xce0] sm:$0xff] }
 0x367   :  { %v17398_v52 = vcombine.high %v4758_v60, %v4762_v34  ;;  %v4754_v35 = vld [vmem:[#allocation11 + $0xca0] sm:$0xff] }
 0x368   :  { %7491 = vmatpush2.bf16.msra.mxu0 %v17069_v12  ;;  %v4742_v58 = vld [vmem:[#allocation11 + $0xc40] sm:$0xff] }
 0x369   :  { %7532 = vmatpush2.bf16.msra.mxu1 %v17197_v15  ;;  %7492 = vmatprep.subr.bf16.mxu0 %v17062_v27  ;;  %v4766_v15 = vld [vmem:[#allocation11 + $0xd00] sm:$0xff] }
 0x36a   :  { %7533 = vmatprep.subr.bf16.mxu1 %v17190_v17 }
 0x36c   :  { %7493 = vmatpush2.bf16.msra.mxu0 %v17061_v28 }
 0x36d   :  { %7534 = vmatpush2.bf16.msra.mxu1 %v17189_v30  ;;  %7494 = vmatprep.subr.bf16.mxu0 %v17054_v31  ;;  %v4630_v31 = vld [vmem:[#allocation11 + $0x8c0] sm:$0xff] }
 0x36e   :  { %7535 = vmatprep.subr.bf16.mxu1 %v17182_v32  ;;  %v17406_v32 = vcombine.high %v4766_v15, %v4770_v25  ;;  %v17270_v21 = vcombine.high %v4630_v31, %v4634_v16  ;;  %v17269_v36 = vcombine.low %v4630_v31, %v4634_v16  ;;  %v4850_v31 = vld [vmem:[#allocation11 + $0xfa0] sm:$0xff] }
 0x370   :  { %7495 = vmatpush2.bf16.msra.mxu0 %v17053_v42  ;;  %v4622_v42 = vld [vmem:[#allocation11 + $0x880] sm:$0xff] }
 0x371   :  { %7536 = vmatpush2.bf16.msra.mxu1 %v17181_v43  ;;  %7546 = vmatprep.subr.bf16.mxu0 %v17302_v50  ;;  %v17405_v43 = vcombine.low %v4766_v15, %v4770_v25  ;;  %v4626_v50 = vld [vmem:[#allocation11 + $0x8a0] sm:$0xff] }
 0x372   :  { %7587 = vmatprep.subr.bf16.mxu1 %v17430_v54  ;;  %v4750_v54 = vld [vmem:[#allocation11 + $0xc80] sm:$0xff]  ;;  %v17262_v55 = vcombine.high %v4622_v42, %v4626_v50  ;;  %v17261_v14 = vcombine.low %v4622_v42, %v4626_v50 }
 0x373   :  { %v19397_v61 = vpop.f32.mrf.mxu0  ;;  %7497 = vmatmul.mubr.bf16.vlgmr.msra.gmra.mxu0 %v19393_v56  ;;  %v17390_v23 = vcombine.high %v4750_v54, %v4754_v35  ;;  %v4854_v25 = vld [vmem:[#allocation11 + $0xfc0] sm:$0xff] }
 0x374   :  { %v19401_v19 = vpop.f32.mrf.mxu1  ;;  %7538 = vmatmul.mubr.bf16.vlgmr.msra.gmra.mxu1 %v19395_v41  ;;  %7547 = vmatpush1.bf16.msra.mxu0 %v17301_v40  ;;  %v17397_v40 = vcombine.low %v4758_v60, %v4762_v34  ;;  %v4710_v34 = vld [vmem:[#allocation11 + $0xb40] sm:$0xff] }
 0x375   :  { %v4108_v1 = vpop.f32.mrf.mxu0  ;;  %7548 = vmatprep.subr.bf16.mxu0 %v17294_v57  ;;  %7588 = vmatpush1.bf16.msra.mxu1 %v17429_v37  ;;  %v4614_v57 = vld [vmem:[#allocation11 + $0x840] sm:$0xff] }
 0x376   :  { %v4109_v18 = vadd.f32 %v4108_v1, %v4068_v63  ;;  %v4149_v7 = vpop.f32.mrf.mxu1  ;;  %7589 = vmatprep.subr.bf16.mxu1 %v17422_v59  ;;  %v4618_v37 = vld [vmem:[#allocation11 + $0x860] sm:$0xff]  ;;  %v17389_v63 = vcombine.low %v4750_v54, %v4754_v35 }
 0x377   :  { %v4110_v12 = vpop.f32.mrf.mxu0  ;;  %v4746_v59 = vld [vmem:[#allocation11 + $0xc60] sm:$0xff]  ;;  %v17254_v8 = vcombine.high %v4614_v57, %v4618_v37 }
 0x378   :  { %v4150_v27 = vadd.f32 %v4149_v7, %v4109_v18  ;;  %v4151_v17 = vpop.f32.mrf.mxu1  ;;  %7549 = vmatpush1.bf16.msra.mxu0 %v17293_v0  ;;  %v4606_v0 = vld [vmem:[#allocation11 + $0x800] sm:$0xff]  ;;  %v17253_v7 = vcombine.low %v4614_v57, %v4618_v37  ;;  %v17381_v10 = vcombine.low %v4742_v58, %v4746_v59 }
 0x379   :  { %v4111_v22 = vpop.f32.mrf.mxu0  ;;  %7550 = vmatprep.subr.bf16.mxu0 %v17286_v3  ;;  %7590 = vmatpush1.bf16.msra.mxu1 %v17421_v5  ;;  %v4610_v1 = vld [vmem:[#allocation11 + $0x820] sm:$0xff]  ;;  %v17382_v3 = vcombine.high %v4742_v58, %v4746_v59 }
 0x37a   :  { %vm4323_vm13 = vcmp.gt.f32.partialorder %v4150_v27, 0.0  ;;  %v4331_v28 = vmul.f32 0.2, %v4150_v27  ;;  %v4152_v30 = vpop.f32.mrf.mxu1  ;;  %7591 = vmatprep.subr.bf16.mxu1 %v17414_v11  ;;  %v4734_v5 = vld [vmem:[#allocation11 + $0xc00] sm:$0xff]  ;;  %v17246_v9 = vcombine.high %v4606_v0, %v4610_v1  ;;  %v17245_v17 = vcombine.low %v4606_v0, %v4610_v1 }
 0x37b   :  { %v4738_v18 = vld [vmem:[#allocation11 + $0xc20] sm:$0xff] }
 0x37c   :  { %v4339_v13 = vsel %vm4323_vm13, %v4150_v27, %v4331_v28  ;;  %7551 = vmatpush1.bf16.msra.mxu0 %v17285_v24  ;;  %v4726_v11 = vld [vmem:[#allocation11 + $0xbc0] sm:$0xff]  ;;  %v17374_v15 = vcombine.high %v4734_v5, %v4738_v18  ;;  %v17373_v22 = vcombine.low %v4734_v5, %v4738_v18 }
 0x37d   :  { %v19404_v38 = vpack.c.bf16 %v4339_v13, %v4339_v13  ;;  %7552 = vmatprep.subr.bf16.mxu0 %v17278_v26  ;;  %7592 = vmatpush1.bf16.msra.mxu1 %v17413_v39  ;;  %v4730_v12 = vld [vmem:[#allocation11 + $0xbe0] sm:$0xff] }
 0x37e   :  { %7593 = vmatprep.subr.bf16.mxu1 %v17406_v32  ;;  %v4858_v27 = vld [vmem:[#allocation11 + $0xfe0] sm:$0xff]  ;;  %v17366_v24 = vcombine.high %v4726_v11, %v4730_v12  ;;  %v17365_v16 = vcombine.low %v4726_v11, %v4730_v12 }
 0x37f   :  { %7578 = vmatprep.mubr.bf16.mxu0 %v19404_v38  ;;  %v4718_v26 = vld [vmem:[#allocation11 + $0xb80] sm:$0xff]  ;;  %v17494_v28 = vcombine.high %v4854_v25, %v4858_v27  ;;  %v17493_v60 = vcombine.low %v4854_v25, %v4858_v27  ;;  %v4107_v25 = vadd.f32 %v19397_v61, %v19379_v51 }
 0x380   :  { %7553 = vmatpush1.bf16.msra.mxu0 %v17277_v6  ;;  %v4722_v39 = vld [vmem:[#allocation11 + $0xba0] sm:$0xff] }
 0x381   :  { %7554 = vmatprep.subr.bf16.mxu0 %v17270_v21  ;;  %7594 = vmatpush1.bf16.msra.mxu1 %v17405_v43  ;;  %v4846_v30 = vld [vmem:[#allocation11 + $0xf80] sm:$0xff]  ;;  %v17358_v32 = vcombine.high %v4718_v26, %v4722_v39  ;;  %v17357_v43 = vcombine.low %v4718_v26, %v4722_v39 }
 0x382   :  { %7595 = vmatprep.subr.bf16.mxu1 %v17398_v52  ;;  %v4714_v13 = vld [vmem:[#allocation11 + $0xb60] sm:$0xff]  ;;  %v17486_v6 = vcombine.high %v4846_v30, %v4850_v31  ;;  %v17485_v52 = vcombine.low %v4846_v30, %v4850_v31  ;;  %v4148_v31 = vadd.f32 %v19401_v19, %v4107_v25  ;;  %v4375_v25 = vld [vmem:[#allocation11 + $0xc8] sm:$0xff] }
 0x383   :  { %v4838_v21 = vld [vmem:[#allocation11 + $0xf40] sm:$0xff]  ;;  %v17350_v50 = vcombine.high %v4710_v34, %v4714_v13  ;;  %v17349_v57 = vcombine.low %v4710_v34, %v4714_v13 }
 0x384   :  { %7555 = vmatpush1.bf16.msra.mxu0 %v17269_v36  ;;  %v4842_v42 = vld [vmem:[#allocation11 + $0xf60] sm:$0xff]  ;;  %vm4322_vm14 = vcmp.gt.f32.partialorder %v4148_v31, 0.0 }
 0x385   :  { %7556 = vmatprep.subr.bf16.mxu0 %v17262_v55  ;;  %7596 = vmatpush1.bf16.msra.mxu1 %v17397_v40  ;;  %v4702_v54 = vld [vmem:[#allocation11 + $0xb00] sm:$0xff]  ;;  %v17478_v36 = vcombine.high %v4838_v21, %v4842_v42 }
 0x386   :  { %7597 = vmatprep.subr.bf16.mxu1 %v17390_v23  ;;  %v4706_v35 = vld [vmem:[#allocation11 + $0xb20] sm:$0xff]  ;;  %v17477_v23 = vcombine.low %v4838_v21, %v4842_v42  ;;  %v4330_v21 = vmul.f32 0.2, %v4148_v31  ;;  %v4407_v42 = vld [vmem:[#allocation11 + $0x1c8] sm:$0xff] }
 0x387   :  { %v4830_v55 = vld [vmem:[#allocation11 + $0xf00] sm:$0xff]  ;;  %v17342_v37 = vcombine.high %v4702_v54, %v4706_v35  ;;  %v17341_v0 = vcombine.low %v4702_v54, %v4706_v35 }
 0x388   :  { %7557 = vmatpush1.bf16.msra.mxu0 %v17261_v14  ;;  %v4834_v40 = vld [vmem:[#allocation11 + $0xf20] sm:$0xff]  ;;  %v4338_v35 = vsel %vm4322_vm14, %v4148_v31, %v4330_v21  ;;  %v4363_v31 = vld [vmem:[#allocation11 + $0x68] sm:$0xff] }
 0x389   :  { %7558 = vmatprep.subr.bf16.mxu0 %v17254_v8  ;;  %7598 = vmatpush1.bf16.msra.mxu1 %v17389_v63  ;;  %v4694_v58 = vld [vmem:[#allocation11 + $0xac0] sm:$0xff]  ;;  %v17470_v14 = vcombine.high %v4830_v55, %v4834_v40 }
 0x38a   :  { %7599 = vmatprep.subr.bf16.mxu1 %v17382_v3  ;;  %v4698_v59 = vld [vmem:[#allocation11 + $0xae0] sm:$0xff]  ;;  %v17469_v3 = vcombine.low %v4830_v55, %v4834_v40  ;;  %v4403_v55 = vld [vmem:[#allocation11 + $0x1a8] sm:$0xff]  ;;  %v17176_v40 = vcombine.high %v19406_v20, %v19408_v53 }
 0x38b   :  { %v4822_v8 = vld [vmem:[#allocation11 + $0xec0] sm:$0xff]  ;;  %v17334_v1 = vcombine.high %v4694_v58, %v4698_v59  ;;  %v17333_v11 = vcombine.low %v4694_v58, %v4698_v59  ;;  %v4391_v58 = vld [vmem:[#allocation11 + $0x148] sm:$0xff] }
 0x38c   :  { %7559 = vmatpush1.bf16.msra.mxu0 %v17253_v7  ;;  %v4826_v63 = vld [vmem:[#allocation11 + $0xee0] sm:$0xff]  ;;  %v4395_v59 = vld [vmem:[#allocation11 + $0x168] sm:$0xff] }
 0x38d   :  { %7560 = vmatprep.subr.bf16.mxu0 %v17246_v9  ;;  %7600 = vmatpush1.bf16.msra.mxu1 %v17381_v10  ;;  %v4686_v5 = vld [vmem:[#allocation11 + $0xa80] sm:$0xff]  ;;  %v17462_v7 = vcombine.high %v4822_v8, %v4826_v63  ;;  %v4607_v53 = vld [vmem:[#allocation11 + $0x808] sm:$0xff] }
 0x38e   :  { %7601 = vmatprep.subr.bf16.mxu1 %v17374_v15  ;;  %v4690_v18 = vld [vmem:[#allocation11 + $0xaa0] sm:$0xff]  ;;  %v17461_v15 = vcombine.low %v4822_v8, %v4826_v63 }
 0x38f   :  { %v4814_v9 = vld [vmem:[#allocation11 + $0xe80] sm:$0xff]  ;;  %v17326_v12 = vcombine.high %v4686_v5, %v4690_v18  ;;  %v17325_v39 = vcombine.low %v4686_v5, %v4690_v18  ;;  %v4383_v5 = vld [vmem:[#allocation11 + $0x108] sm:$0xff] }
 0x390   :  { %7561 = vmatpush1.bf16.msra.mxu0 %v17245_v17  ;;  %v4818_v10 = vld [vmem:[#allocation11 + $0xea0] sm:$0xff]  ;;  %v4387_v18 = vld [vmem:[#allocation11 + $0x128] sm:$0xff] }
 0x391   :  { %7562 = vmatprep.subr.bf16.mxu0 %v17366_v24  ;;  %7602 = vmatpush1.bf16.msra.mxu1 %v17373_v22  ;;  %v4678_v27 = vld [vmem:[#allocation11 + $0xa40] sm:$0xff]  ;;  %v17454_v24 = vcombine.high %v4814_v9, %v4818_v10  ;;  %v17453_v30 = vcombine.low %v4814_v9, %v4818_v10  ;;  %v17031_v10 = vcombine.low %v4391_v58, %v4395_v59 }
 0x392   :  { %7603 = vmatprep.subr.bf16.mxu1 %v17494_v28  ;;  %v4682_v17 = vld [vmem:[#allocation11 + $0xa60] sm:$0xff] }
 0x393   :  { %v4806_v22 = vld [vmem:[#allocation11 + $0xe40] sm:$0xff]  ;;  %v17318_v28 = vcombine.high %v4678_v27, %v4682_v17  ;;  %v17317_v61 = vcombine.low %v4678_v27, %v4682_v17  ;;  %v4379_v27 = vld [vmem:[#allocation11 + $0xe8] sm:$0xff]  ;;  %v17023_v17 = vcombine.low %v4383_v5, %v4387_v18 }
 0x394   :  { %7563 = vmatpush2.bf16.msra.mxu0 %v17365_v16  ;;  %v4810_v26 = vld [vmem:[#allocation11 + $0xe60] sm:$0xff] }
 0x395   :  { %7564 = vmatprep.subr.bf16.mxu0 %v17358_v32  ;;  %7604 = vmatpush2.bf16.msra.mxu1 %v17493_v60  ;;  %v4670_v16 = vld [vmem:[#allocation11 + $0xa00] sm:$0xff]  ;;  %v17446_v60 = vcombine.high %v4806_v22, %v4810_v26 }
 0x396   :  { %7605 = vmatprep.subr.bf16.mxu1 %v17486_v6  ;;  %v4674_v32 = vld [vmem:[#allocation11 + $0xa20] sm:$0xff]  ;;  %v17445_v6 = vcombine.low %v4806_v22, %v4810_v26  ;;  %v4367_v22 = vld [vmem:[#allocation11 + $0x88] sm:$0xff] }
 0x397   :  { %v4798_v34 = vld [vmem:[#allocation11 + $0xe00] sm:$0xff]  ;;  %v17310_v13 = vcombine.high %v4670_v16, %v4674_v32  ;;  %v17309_v19 = vcombine.low %v4670_v16, %v4674_v32  ;;  %v4371_v26 = vld [vmem:[#allocation11 + $0xa8] sm:$0xff] }
 0x398   :  { %7565 = vmatpush2.bf16.msra.mxu0 %v17357_v43  ;;  %v4802_v51 = vld [vmem:[#allocation11 + $0xe20] sm:$0xff]  ;;  %v4411_v43 = vld [vmem:[#allocation11 + $0x1e8] sm:$0xff]  ;;  %v17007_v16 = vcombine.low %v4367_v22, %v4371_v26 }
 0x399   :  { %7566 = vmatprep.subr.bf16.mxu0 %v17350_v50  ;;  %7606 = vmatpush2.bf16.msra.mxu1 %v17485_v52  ;;  %v17438_v50 = vcombine.high %v4798_v34, %v4802_v51  ;;  %v17048_v52 = vcombine.high %v4407_v42, %v4411_v43  ;;  %v17437_v54 = vcombine.low %v4798_v34, %v4802_v51  ;;  %v4355_v34 = vld [vmem:[#allocation11 + $0x28] sm:$0xff] }
 0x39a   :  { %7607 = vmatprep.subr.bf16.mxu1 %v17478_v36  ;;  %v4399_v36 = vld [vmem:[#allocation11 + $0x188] sm:$0xff] }
 0x39b   :  { %v17039_v63 = vcombine.low %v4399_v36, %v4403_v55 }
 0x39c   :  { %7567 = vmatpush2.bf16.msra.mxu0 %v17349_v57  ;;  %v17047_v57 = vcombine.low %v4407_v42, %v4411_v43  ;;  %v4463_v43 = vld [vmem:[#allocation11 + $0x388] sm:$0xff] }
 0x39d   :  { %7568 = vmatprep.subr.bf16.mxu0 %v17342_v37  ;;  %7608 = vmatpush2.bf16.msra.mxu1 %v17477_v23  ;;  %v19418_v37 = vpack.c.bf16 %v4338_v35, %v4338_v35  ;;  %v17040_v23 = vcombine.high %v4399_v36, %v4403_v55  ;;  %v4459_v35 = vld [vmem:[#allocation11 + $0x368] sm:$0xff] }
 0x39e   :  { %7609 = vmatprep.subr.bf16.mxu1 %v17470_v14 }
 0x3a0   :  { %7569 = vmatpush2.bf16.msra.mxu0 %v17341_v0 }
 0x3a1   :  { %7570 = vmatprep.subr.bf16.mxu0 %v17334_v1  ;;  %7610 = vmatpush2.bf16.msra.mxu1 %v17469_v3  ;;  %v17032_v1 = vcombine.high %v4391_v58, %v4395_v59  ;;  %v4439_v59 = vld [vmem:[#allocation11 + $0x2c8] sm:$0xff] }
 0x3a2   :  { %7611 = vmatprep.subr.bf16.mxu1 %v17462_v7 }
 0x3a4   :  { %7571 = vmatpush2.bf16.msra.mxu0 %v17333_v11 }
 0x3a5   :  { %7572 = vmatprep.subr.bf16.mxu0 %v17326_v12  ;;  %7612 = vmatpush2.bf16.msra.mxu1 %v17461_v15  ;;  %v17024_v12 = vcombine.high %v4383_v5, %v4387_v18  ;;  %v4431_v18 = vld [vmem:[#allocation11 + $0x288] sm:$0xff] }
 0x3a6   :  { %7613 = vmatprep.subr.bf16.mxu1 %v17454_v24  ;;  %v17016_v24 = vcombine.high %v4375_v25, %v4379_v27 }
 0x3a8   :  { %7573 = vmatpush2.bf16.msra.mxu0 %v17325_v39  ;;  %v17015_v39 = vcombine.low %v4375_v25, %v4379_v27  ;;  %v4415_v27 = vld [vmem:[#allocation11 + $0x208] sm:$0xff] }
 0x3a9   :  { %7574 = vmatprep.subr.bf16.mxu0 %v17318_v28  ;;  %7614 = vmatpush2.bf16.msra.mxu1 %v17453_v30  ;;  %v17008_v28 = vcombine.high %v4367_v22, %v4371_v26  ;;  %v4359_v30 = vld [vmem:[#allocation11 + $0x48] sm:$0xff]  ;;  %v18762_v26 = vld [vmem:[#allocation10] sm:$0xff] }
 0x3aa   :  { %7615 = vmatprep.subr.bf16.mxu1 %v17446_v60  ;;  %v17000_v32 = vcombine.high %v4359_v30, %v4363_v31  ;;  %v4351_v60 = vld [vmem:[#allocation11 + $0x8] sm:$0xff]  ;;  %v16999_v51 = vcombine.low %v4359_v30, %v4363_v31  ;;  %v1093_v31 = vrot.slane %v18762_v26, %v19255_v2 }
 0x3ab   :  { %v16991_v21 = vcombine.low %v4351_v60, %v4355_v34  ;;  %v4667_v30 = vld [vmem:[#allocation11 + $0x9e8] sm:$0xff] }
 0x3ac   :  { %7575 = vmatpush2.bf16.msra.mxu0 %v17317_v61  ;;  %v16992_v61 = vcombine.high %v4351_v60, %v4355_v34  ;;  %v4655_v34 = vld [vmem:[#allocation11 + $0x988] sm:$0xff] }
 0x3ad   :  { %7576 = vmatprep.subr.bf16.mxu0 %v17310_v13  ;;  %7616 = vmatpush2.bf16.msra.mxu1 %v17445_v6  ;;  %v4471_v13 = vld [vmem:[#allocation11 + $0x3c8] sm:$0xff] }
 0x3ae   :  { %7617 = vmatprep.subr.bf16.mxu1 %v17438_v50  ;;  %v4475_v6 = vld [vmem:[#allocation11 + $0x3e8] sm:$0xff] }
 0x3af   :  { %v17112_v42 = vcombine.high %v4471_v13, %v4475_v6  ;;  %v4467_v50 = vld [vmem:[#allocation11 + $0x3a8] sm:$0xff] }
 0x3b0   :  { %7577 = vmatpush2.bf16.msra.mxu0 %v17309_v19  ;;  %v17111_v19 = vcombine.low %v4471_v13, %v4475_v6  ;;  %v17103_v36 = vcombine.low %v4463_v43, %v4467_v50 }
 0x3b1   :  { %7628 = vmatprep.subr.bf16.mxu0 %v17048_v52  ;;  %7618 = vmatpush2.bf16.msra.mxu1 %v17437_v54  ;;  %v17104_v52 = vcombine.high %v4463_v43, %v4467_v50  ;;  %v4455_v54 = vld [vmem:[#allocation11 + $0x348] sm:$0xff] }
 0x3b2   :  { %7669 = vmatprep.subr.bf16.mxu1 %v17176_v40  ;;  %v17096_v55 = vcombine.high %v4455_v54, %v4459_v35  ;;  %v4447_v40 = vld [vmem:[#allocation11 + $0x308] sm:$0xff] }
 0x3b3   :  { %v19420_v14 = vpop.f32.mrf.mxu0  ;;  %7579 = vmatmul.mubr.bf16.vlgmr.msra.gmra.mxu0 %v19418_v37  ;;  %v4651_v43 = vld [vmem:[#allocation11 + $0x968] sm:$0xff] }
 0x3b4   :  { %v19423_v8 = vpop.f32.mrf.mxu1  ;;  %7629 = vmatpush1.bf16.msra.mxu0 %v17047_v57  ;;  %7660 = vmatprep.mubr.bf16.mxu0 %v19370_v46  ;;  %v4451_v57 = vld [vmem:[#allocation11 + $0x328] sm:$0xff] }
 0x3b5   :  { %v19426_v0 = vpop.f32.mrf.mxu0  ;;  %7630 = vmatprep.subr.bf16.mxu0 %v17040_v23  ;;  %v17095_v23 = vcombine.low %v4455_v54, %v4459_v35  ;;  %v17088_v58 = vcombine.high %v4447_v40, %v4451_v57 }
 0x3b6   :  { %v19428_v3 = vpop.f32.mrf.mxu1 }
 0x3b7   :  { %v4192_v7 = vpop.f32.mrf.mxu0 }
 0x3b8   :  { %v4233_v9 = vpop.f32.mrf.mxu1  ;;  %7631 = vmatpush1.bf16.msra.mxu0 %v17039_v63  ;;  %v4443_v63 = vld [vmem:[#allocation11 + $0x2e8] sm:$0xff] }
 0x3b9   :  { %v4193_v11 = vpop.f32.mrf.mxu0  ;;  %7632 = vmatprep.subr.bf16.mxu0 %v17032_v1  ;;  %v17087_v1 = vcombine.low %v4447_v40, %v4451_v57  ;;  %v17080_v5 = vcombine.high %v4439_v59, %v4443_v63  ;;  %v4435_v7 = vld [vmem:[#allocation11 + $0x2a8] sm:$0xff]  ;;  %v17079_v9 = vcombine.low %v4439_v59, %v4443_v63 }
 0x3ba   :  { %v4234_v15 = vpop.f32.mrf.mxu1  ;;  %v4423_v11 = vld [vmem:[#allocation11 + $0x248] sm:$0xff] }
 0x3bb   :  { %v17071_v15 = vcombine.low %v4431_v18, %v4435_v7  ;;  %v4643_v57 = vld [vmem:[#allocation11 + $0x928] sm:$0xff] }
 0x3bc   :  { %7633 = vmatpush1.bf16.msra.mxu0 %v17031_v10  ;;  %v17072_v10 = vcombine.high %v4431_v18, %v4435_v7 }
 0x3bd   :  { %7634 = vmatprep.subr.bf16.mxu0 %v17024_v12  ;;  %v4427_v12 = vld [vmem:[#allocation11 + $0x268] sm:$0xff] }
 0x3be   :  { %v17064_v25 = vcombine.high %v4423_v11, %v4427_v12 }
 0x3c0   :  { %7635 = vmatpush1.bf16.msra.mxu0 %v17023_v17  ;;  %v4419_v17 = vld [vmem:[#allocation11 + $0x228] sm:$0xff] }
 0x3c1   :  { %7636 = vmatprep.subr.bf16.mxu0 %v17016_v24  ;;  %v17063_v24 = vcombine.low %v4423_v11, %v4427_v12  ;;  %v17056_v22 = vcombine.high %v4415_v27, %v4419_v17  ;;  %v4531_v11 = vld [vmem:[#allocation11 + $0x5a8] sm:$0xff] }
 0x3c2   :  { %v4631_v12 = vld [vmem:[#allocation11 + $0x8c8] sm:$0xff] }
 0x3c4   :  { %7637 = vmatpush1.bf16.msra.mxu0 %v17015_v39  ;;  %v1089_v39 = vrot.slane %v18762_v26, %v19293_v33 }
 0x3c5   :  { %7638 = vmatprep.subr.bf16.mxu0 %v17008_v28  ;;  %v4663_v28 = vld [vmem:[#allocation11 + $0x9c8] sm:$0xff] }
 0x3c6   :  { %v4189_v60 = vadd.f32 %v19420_v14, %v1089_v39  ;;  %v17303_v13 = vcombine.low %v4663_v28, %v4667_v30  ;;  %v4623_v39 = vld [vmem:[#allocation11 + $0x888] sm:$0xff] }
 0x3c8   :  { %7639 = vmatpush1.bf16.msra.mxu0 %v17007_v16  ;;  %v17055_v16 = vcombine.low %v4415_v27, %v4419_v17 }
 0x3c9   :  { %7640 = vmatprep.subr.bf16.mxu0 %v17000_v32  ;;  %v17304_v32 = vcombine.high %v4663_v28, %v4667_v30  ;;  %v4627_v28 = vld [vmem:[#allocation11 + $0x8a8] sm:$0xff] }
 0x3ca   :  { %v4519_v30 = vld [vmem:[#allocation11 + $0x548] sm:$0xff] }
 0x3cc   :  { %7641 = vmatpush1.bf16.msra.mxu0 %v16999_v51  ;;  %v4659_v51 = vld [vmem:[#allocation11 + $0x9a8] sm:$0xff] }
 0x3cd   :  { %7642 = vmatprep.subr.bf16.mxu0 %v16992_v61  ;;  %v4191_v61 = vadd.f32 %v19426_v0, %v1093_v31  ;;  %v17296_v6 = vcombine.high %v4655_v34, %v4659_v51  ;;  %v17295_v14 = vcombine.low %v4655_v34, %v4659_v51  ;;  %v4523_v31 = vld [vmem:[#allocation11 + $0x568] sm:$0xff] }
 0x3ce   :  { %v17160_v34 = vcombine.high %v4519_v30, %v4523_v31  ;;  %v4615_v51 = vld [vmem:[#allocation11 + $0x848] sm:$0xff] }
 0x3d0   :  { %7643 = vmatpush1.bf16.msra.mxu0 %v16991_v21  ;;  %v4230_v21 = vadd.f32 %v19423_v8, %v4189_v60  ;;  %v4639_v8 = vld [vmem:[#allocation11 + $0x908] sm:$0xff]  ;;  %v17264_v60 = vcombine.high %v4623_v39, %v4627_v28 }
 0x3d1   :  { %7644 = vmatprep.subr.bf16.mxu0 %v17112_v42  ;;  %v4647_v42 = vld [vmem:[#allocation11 + $0x948] sm:$0xff]  ;;  %v17279_v27 = vcombine.low %v4639_v8, %v4643_v57 }
 0x3d2   :  { %v17288_v35 = vcombine.high %v4647_v42, %v4651_v43 }
 0x3d4   :  { %7645 = vmatpush2.bf16.msra.mxu0 %v17111_v19  ;;  %v4232_v19 = vadd.f32 %v19428_v3, %v4191_v61  ;;  %v17287_v3 = vcombine.low %v4647_v42, %v4651_v43  ;;  %v4619_v61 = vld [vmem:[#allocation11 + $0x868] sm:$0xff]  ;;  %v17159_v42 = vcombine.low %v4519_v30, %v4523_v31 }
 0x3d5   :  { %7646 = vmatprep.subr.bf16.mxu0 %v17104_v52  ;;  %v17256_v43 = vcombine.high %v4615_v51, %v4619_v61  ;;  %v4599_v30 = vld [vmem:[#allocation11 + $0x7c8] sm:$0xff] }
 0x3d6   :  { %v4603_v31 = vld [vmem:[#allocation11 + $0x7e8] sm:$0xff] }
 0x3d8   :  { %7647 = vmatpush2.bf16.msra.mxu0 %v17103_v36 }
 0x3d9   :  { %7648 = vmatprep.subr.bf16.mxu0 %v17096_v55 }
 0x3dc   :  { %7649 = vmatpush2.bf16.msra.mxu0 %v17095_v23 }
 0x3dd   :  { %7650 = vmatprep.subr.bf16.mxu0 %v17088_v58 }
 0x3e0   :  { %7651 = vmatpush2.bf16.msra.mxu0 %v17087_v1 }
 0x3e1   :  { %7652 = vmatprep.subr.bf16.mxu0 %v17080_v5  ;;  %v17280_v5 = vcombine.high %v4639_v8, %v4643_v57 }
 0x3e4   :  { %7653 = vmatpush2.bf16.msra.mxu0 %v17079_v9  ;;  %v4527_v9 = vld [vmem:[#allocation11 + $0x588] sm:$0xff] }
 0x3e5   :  { %7654 = vmatprep.subr.bf16.mxu0 %v17072_v10 }
 0x3e8   :  { %7655 = vmatpush2.bf16.msra.mxu0 %v17071_v15  ;;  %v4635_v15 = vld [vmem:[#allocation11 + $0x8e8] sm:$0xff] }
 0x3e9   :  { %7656 = vmatprep.subr.bf16.mxu0 %v17064_v25  ;;  %v17272_v26 = vcombine.high %v4631_v12, %v4635_v15 }
 0x3ec   :  { %7657 = vmatpush2.bf16.msra.mxu0 %v17063_v24 }
 0x3ed   :  { %7658 = vmatprep.subr.bf16.mxu0 %v17056_v22  ;;  %v17168_v22 = vcombine.high %v4527_v9, %v4531_v11 }
 0x3f0   :  { %7659 = vmatpush2.bf16.msra.mxu0 %v17055_v16  ;;  %v17271_v16 = vcombine.low %v4631_v12, %v4635_v15  ;;  %v4479_v12 = vld [vmem:[#allocation11 + $0x408] sm:$0xff] }
 0x3f1   :  { %7710 = vmatprep.subr.bf16.mxu0 %v17304_v32  ;;  %v17167_v32 = vcombine.low %v4527_v9, %v4531_v11  ;;  %v4715_v11 = vld [vmem:[#allocation11 + $0xb68] sm:$0xff] }
 0x3f2   :  { %v4483_v15 = vld [vmem:[#allocation11 + $0x428] sm:$0xff] }
 0x3f3   :  { %v4270_v50 = vpop.f32.mrf.mxu0  ;;  %7661 = vmatmul.mubr.bf16.vlgmr.msra.gmra.mxu0 %v19393_v56 }
 0x3f4   :  { %v4271_v52 = vadd.f32 %v4270_v50, %v4230_v21  ;;  %v4311_v54 = vpop.f32.mrf.mxu1  ;;  %7711 = vmatpush1.bf16.msra.mxu0 %v17303_v13  ;;  %7742 = vmatprep.mubr.bf16.mxu0 %v19404_v38  ;;  %v4511_v13 = vld [vmem:[#allocation11 + $0x508] sm:$0xff]  ;;  %v17263_v21 = vcombine.low %v4623_v39, %v4627_v28 }
 0x3f5   :  { %v4272_v0 = vpop.f32.mrf.mxu0  ;;  %7712 = vmatprep.subr.bf16.mxu0 %v17296_v6  ;;  %v4515_v6 = vld [vmem:[#allocation11 + $0x528] sm:$0xff] }
 0x3f6   :  { %v4312_v36 = vadd.f32 %v4311_v54, %v4271_v52  ;;  %v4273_v55 = vadd.f32 %v4272_v0, %v4232_v19  ;;  %v4313_v40 = vpop.f32.mrf.mxu1  ;;  %v17152_v20 = vcombine.high %v4511_v13, %v4515_v6  ;;  %v4503_v50 = vld [vmem:[#allocation11 + $0x4c8] sm:$0xff]  ;;  %v17255_v52 = vcombine.low %v4615_v51, %v4619_v61 }
 0x3f7   :  { %v4274_v23 = vpop.f32.mrf.mxu0  ;;  %v4507_v19 = vld [vmem:[#allocation11 + $0x4e8] sm:$0xff]  ;;  %v17151_v54 = vcombine.low %v4511_v13, %v4515_v6 }
 0x3f8   :  { %vm4324_vm15 = vcmp.gt.f32.partialorder %v4312_v36, 0.0  ;;  %v4332_v58 = vmul.f32 0.2, %v4312_v36  ;;  %v4314_v59 = vadd.f32 %v4313_v40, %v4273_v55  ;;  %v4315_v63 = vpop.f32.mrf.mxu1  ;;  %7713 = vmatpush1.bf16.msra.mxu0 %v17295_v14  ;;  %v17144_v0 = vcombine.high %v4503_v50, %v4507_v19  ;;  %v4495_v55 = vld [vmem:[#allocation11 + $0x488] sm:$0xff] }
 0x3f9   :  { %v4275_v1 = vpop.f32.mrf.mxu0  ;;  %7714 = vmatprep.subr.bf16.mxu0 %v17288_v35  ;;  %v4727_v35 = vld [vmem:[#allocation11 + $0xbc8] sm:$0xff]  ;;  %v17143_v57 = vcombine.low %v4503_v50, %v4507_v19 }
 0x3fa   :  { %vm4325_vm0 = vcmp.gt.f32.partialorder %v4314_v59, 0.0  ;;  %v4333_v18 = vmul.f32 0.2, %v4314_v59  ;;  %v4316_v7 = vpop.f32.mrf.mxu1  ;;  %v4340_v10 = vsel %vm4324_vm15, %v4312_v36, %v4332_v58  ;;  %v4731_v36 = vld [vmem:[#allocation11 + $0xbe8] sm:$0xff] }
 0x3fb   :  { %v19440_v24 = vpack.c.bf16 %v4340_v10, %v4340_v10  ;;  %v4499_v40 = vld [vmem:[#allocation11 + $0x4a8] sm:$0xff]  ;;  %v17368_v23 = vcombine.high %v4727_v35, %v4731_v36 }
 0x3fc   :  { %v4341_v25 = vsel %vm4325_vm0, %v4314_v59, %v4333_v18  ;;  %7715 = vmatpush1.bf16.msra.mxu0 %v17287_v3  ;;  %v17136_v58 = vcombine.high %v4495_v55, %v4499_v40  ;;  %v4719_v59 = vld [vmem:[#allocation11 + $0xb88] sm:$0xff]  ;;  %v17135_v18 = vcombine.low %v4495_v55, %v4499_v40 }
 0x3fd   :  { %v19438_v17 = vpack.c.bf16 %v4341_v25, %v4341_v25  ;;  %7716 = vmatprep.subr.bf16.mxu0 %v17280_v5  ;;  %v4723_v63 = vld [vmem:[#allocation11 + $0xba8] sm:$0xff]  ;;  %v17367_v5 = vcombine.low %v4727_v35, %v4731_v36 }
 0x3fe   :  { %v4487_v3 = vld [vmem:[#allocation11 + $0x448] sm:$0xff]  ;;  %v17360_v7 = vcombine.high %v4719_v59, %v4723_v63  ;;  %v17359_v25 = vcombine.low %v4719_v59, %v4723_v63 }
 0x3ff   :  { %7619 = vmatprep.mubr.bf16.mxu1 %v19438_v17  ;;  %v4491_v1 = vld [vmem:[#allocation11 + $0x468] sm:$0xff] }
 0x400   :  { %7620 = vmatmul.mubr.bf16.vlgmr.msra.gmra.mxu1 %v19440_v24  ;;  %7717 = vmatpush1.bf16.msra.mxu0 %v17279_v27  ;;  %v17128_v9 = vcombine.high %v4487_v3, %v4491_v1  ;;  %v4711_v10 = vld [vmem:[#allocation11 + $0xb48] sm:$0xff]  ;;  %v17127_v27 = vcombine.low %v4487_v3, %v4491_v1 }
 0x401   :  { %7670 = vmatpush1.bf16.msra.mxu1 %v17175_v44  ;;  %7701 = vmatprep.mubr.bf16.mxu1 %v19373_v4  ;;  %v4611_v44 = vld [vmem:[#allocation11 + $0x828] sm:$0xff] }
 0x402   :  { %7671 = vmatprep.subr.bf16.mxu1 %v17168_v22  ;;  %7718 = vmatprep.subr.bf16.mxu0 %v17272_v26  ;;  %v17248_v14 = vcombine.high %v4607_v53, %v4611_v44  ;;  %v17247_v8 = vcombine.low %v4607_v53, %v4611_v44  ;;  %v17352_v22 = vcombine.high %v4711_v10, %v4715_v11  ;;  %v4703_v39 = vld [vmem:[#allocation11 + $0xb08] sm:$0xff] }
 0x403   :  { %v17120_v26 = vcombine.high %v4479_v12, %v4483_v15  ;;  %v4707_v28 = vld [vmem:[#allocation11 + $0xb28] sm:$0xff] }
 0x404   :  { %7719 = vmatpush1.bf16.msra.mxu0 %v17271_v16  ;;  %v17351_v16 = vcombine.low %v4711_v10, %v4715_v11  ;;  %v4695_v51 = vld [vmem:[#allocation11 + $0xac8] sm:$0xff]  ;;  %v4408_v10 = vld [vmem:[#allocation11 + $0x1d0] sm:$0xff] }
 0x405   :  { %7672 = vmatpush1.bf16.msra.mxu1 %v17167_v32  ;;  %7720 = vmatprep.subr.bf16.mxu0 %v17264_v60  ;;  %v17119_v32 = vcombine.low %v4479_v12, %v4483_v15  ;;  %v17344_v60 = vcombine.high %v4703_v39, %v4707_v28  ;;  %v4699_v61 = vld [vmem:[#allocation11 + $0xae8] sm:$0xff]  ;;  %v4412_v11 = vld [vmem:[#allocation11 + $0x1f0] sm:$0xff] }
 0x406   :  { %7673 = vmatprep.subr.bf16.mxu1 %v17160_v34  ;;  %v17240_v34 = vcombine.high %v4599_v30, %v4603_v31  ;;  %v4591_v13 = vld [vmem:[#allocation11 + $0x788] sm:$0xff] }
 0x407   :  { %v4595_v6 = vld [vmem:[#allocation11 + $0x7a8] sm:$0xff] }
 0x408   :  { %7721 = vmatpush1.bf16.msra.mxu0 %v17263_v21  ;;  %v17343_v21 = vcombine.low %v4703_v39, %v4707_v28  ;;  %v4687_v53 = vld [vmem:[#allocation11 + $0xa88] sm:$0xff]  ;;  %v4400_v28 = vld [vmem:[#allocation11 + $0x190] sm:$0xff] }
 0x409   :  { %7674 = vmatpush1.bf16.msra.mxu1 %v17159_v42  ;;  %7722 = vmatprep.subr.bf16.mxu0 %v17256_v43  ;;  %v17239_v42 = vcombine.low %v4599_v30, %v4603_v31  ;;  %v17336_v43 = vcombine.high %v4695_v51, %v4699_v61  ;;  %v4691_v44 = vld [vmem:[#allocation11 + $0xaa8] sm:$0xff]  ;;  %v4404_v30 = vld [vmem:[#allocation11 + $0x1b0] sm:$0xff] }
 0x40a   :  { %7675 = vmatprep.subr.bf16.mxu1 %v17152_v20  ;;  %v17232_v20 = vcombine.high %v4591_v13, %v4595_v6  ;;  %v4583_v50 = vld [vmem:[#allocation11 + $0x748] sm:$0xff] }
 0x40b   :  { %v4587_v19 = vld [vmem:[#allocation11 + $0x768] sm:$0xff] }
 0x40c   :  { %7723 = vmatpush1.bf16.msra.mxu0 %v17255_v52  ;;  %v17335_v52 = vcombine.low %v4695_v51, %v4699_v61  ;;  %v4679_v35 = vld [vmem:[#allocation11 + $0xa48] sm:$0xff]  ;;  %v17042_v51 = vcombine.high %v4400_v28, %v4404_v30 }
 0x40d   :  { %7676 = vmatpush1.bf16.msra.mxu1 %v17151_v54  ;;  %7724 = vmatprep.subr.bf16.mxu0 %v17248_v14  ;;  %v17231_v54 = vcombine.low %v4591_v13, %v4595_v6  ;;  %v17328_v14 = vcombine.high %v4687_v53, %v4691_v44  ;;  %v4683_v36 = vld [vmem:[#allocation11 + $0xa68] sm:$0xff]  ;;  %v4392_v6 = vld [vmem:[#allocation11 + $0x150] sm:$0xff] }
 0x40e   :  { %7677 = vmatprep.subr.bf16.mxu1 %v17144_v0  ;;  %v17224_v0 = vcombine.high %v4583_v50, %v4587_v19  ;;  %v4575_v55 = vld [vmem:[#allocation11 + $0x708] sm:$0xff] }
 0x40f   :  { %v4579_v40 = vld [vmem:[#allocation11 + $0x728] sm:$0xff] }
 0x410   :  { %7725 = vmatpush1.bf16.msra.mxu0 %v17247_v8  ;;  %v17327_v8 = vcombine.low %v4687_v53, %v4691_v44  ;;  %v4671_v59 = vld [vmem:[#allocation11 + $0xa08] sm:$0xff] }
 0x411   :  { %7678 = vmatpush1.bf16.msra.mxu1 %v17143_v57  ;;  %7726 = vmatprep.subr.bf16.mxu0 %v17368_v23  ;;  %v17223_v57 = vcombine.low %v4583_v50, %v4587_v19  ;;  %v17320_v23 = vcombine.high %v4679_v35, %v4683_v36  ;;  %v4675_v63 = vld [vmem:[#allocation11 + $0xa28] sm:$0xff]  ;;  %v17041_v50 = vcombine.low %v4400_v28, %v4404_v30 }
 0x412   :  { %7679 = vmatprep.subr.bf16.mxu1 %v17136_v58  ;;  %v17216_v58 = vcombine.high %v4575_v55, %v4579_v40  ;;  %v4567_v3 = vld [vmem:[#allocation11 + $0x6c8] sm:$0xff] }
 0x413   :  { %v4571_v1 = vld [vmem:[#allocation11 + $0x6e8] sm:$0xff] }
 0x414   :  { %7727 = vmatpush2.bf16.msra.mxu0 %v17367_v5  ;;  %v17319_v5 = vcombine.low %v4679_v35, %v4683_v36  ;;  %v4559_v12 = vld [vmem:[#allocation11 + $0x688] sm:$0xff] }
 0x415   :  { %7680 = vmatpush1.bf16.msra.mxu1 %v17135_v18  ;;  %7728 = vmatprep.subr.bf16.mxu0 %v17360_v7  ;;  %v17215_v18 = vcombine.low %v4575_v55, %v4579_v40  ;;  %v17312_v7 = vcombine.high %v4671_v59, %v4675_v63  ;;  %v4563_v15 = vld [vmem:[#allocation11 + $0x6a8] sm:$0xff]  ;;  %v4384_v55 = vld [vmem:[#allocation11 + $0x110] sm:$0xff] }
 0x416   :  { %7681 = vmatprep.subr.bf16.mxu1 %v17128_v9  ;;  %v17208_v9 = vcombine.high %v4567_v3, %v4571_v1  ;;  %v17200_v39 = vcombine.high %v4559_v12, %v4563_v15  ;;  %v4551_v31 = vld [vmem:[#allocation11 + $0x648] sm:$0xff]  ;;  %v4388_v40 = vld [vmem:[#allocation11 + $0x130] sm:$0xff] }
 0x417   :  { %v4775_v28 = vld [vmem:[#allocation11 + $0xd48] sm:$0xff] }
 0x418   :  { %7729 = vmatpush2.bf16.msra.mxu0 %v17359_v25  ;;  %v17311_v25 = vcombine.low %v4671_v59, %v4675_v63  ;;  %v4779_v30 = vld [vmem:[#allocation11 + $0xd68] sm:$0xff] }
 0x419   :  { %7682 = vmatpush1.bf16.msra.mxu1 %v17127_v27  ;;  %7730 = vmatprep.subr.bf16.mxu0 %v17352_v22  ;;  %v17207_v27 = vcombine.low %v4567_v3, %v4571_v1  ;;  %v4862_v22 = vld [vmem:[#allocation13] sm:$0xff] }
 0x41a   :  { %7683 = vmatprep.subr.bf16.mxu1 %v17120_v26  ;;  %v17050_v26 = vcombine.high %v4408_v10, %v4412_v11  ;;  %v4871_v61 = vrot.slane %v4862_v22, %v19238_v48 }
 0x41c   :  { %7731 = vmatpush2.bf16.msra.mxu0 %v17351_v16  ;;  %v4555_v16 = vld [vmem:[#allocation11 + $0x668] sm:$0xff] }
 0x41d   :  { %7684 = vmatpush1.bf16.msra.mxu1 %v17119_v32  ;;  %7732 = vmatprep.subr.bf16.mxu0 %v17344_v60  ;;  %v4867_v32 = vrot.slane %v4862_v22, %v19230_v45  ;;  %v17049_v60 = vcombine.low %v4408_v10, %v4412_v11  ;;  %v17192_v13 = vcombine.high %v4551_v31, %v4555_v16  ;;  %v4787_v10 = vld [vmem:[#allocation11 + $0xda8] sm:$0xff]  ;;  %v4376_v11 = vld [vmem:[#allocation11 + $0xd0] sm:$0xff] }
 0x41e   :  { %7685 = vmatprep.subr.bf16.mxu1 %v17240_v34  ;;  %v17199_v34 = vcombine.low %v4559_v12, %v4563_v15  ;;  %v4380_v12 = vld [vmem:[#allocation11 + $0xf0] sm:$0xff]  ;;  %v17025_v15 = vcombine.low %v4384_v55, %v4388_v40 }
 0x41f   :  { %v17018_v22 = vcombine.high %v4376_v11, %v4380_v12 }
 0x420   :  { %7733 = vmatpush2.bf16.msra.mxu0 %v17343_v21  ;;  %v4396_v21 = vld [vmem:[#allocation11 + $0x170] sm:$0xff] }
 0x421   :  { %7686 = vmatpush2.bf16.msra.mxu1 %v17239_v42  ;;  %7734 = vmatprep.subr.bf16.mxu0 %v17336_v43  ;;  %v4543_v43 = vld [vmem:[#allocation11 + $0x608] sm:$0xff]  ;;  %v17033_v63 = vcombine.low %v4392_v6, %v4396_v21 }
 0x422   :  { %7687 = vmatprep.subr.bf16.mxu1 %v17232_v20  ;;  %v4547_v20 = vld [vmem:[#allocation11 + $0x628] sm:$0xff] }
 0x423   :  { %v17184_v36 = vcombine.high %v4543_v43, %v4547_v20  ;;  %v17183_v1 = vcombine.low %v4543_v43, %v4547_v20  ;;  %v4352_v20 = vld [vmem:[#allocation11 + $0x10] sm:$0xff] }
 0x424   :  { %7735 = vmatpush2.bf16.msra.mxu0 %v17335_v52  ;;  %v17191_v52 = vcombine.low %v4551_v31, %v4555_v16  ;;  %v17017_v31 = vcombine.low %v4376_v11, %v4380_v12  ;;  %v4456_v11 = vld [vmem:[#allocation11 + $0x350] sm:$0xff] }
 0x425   :  { %7688 = vmatpush2.bf16.msra.mxu1 %v17231_v54  ;;  %7736 = vmatprep.subr.bf16.mxu0 %v17328_v14  ;;  %v17034_v54 = vcombine.high %v4392_v6, %v4396_v21  ;;  %v17415_v21 = vcombine.low %v4775_v28, %v4779_v30  ;;  %v4460_v12 = vld [vmem:[#allocation11 + $0x370] sm:$0xff] }
 0x426   :  { %7689 = vmatprep.subr.bf16.mxu1 %v17224_v0 }
 0x428   :  { %7737 = vmatpush2.bf16.msra.mxu0 %v17327_v8 }
 0x429   :  { %7690 = vmatpush2.bf16.msra.mxu1 %v17223_v57  ;;  %7738 = vmatprep.subr.bf16.mxu0 %v17320_v23  ;;  %v4791_v57 = vld [vmem:[#allocation11 + $0xdc8] sm:$0xff] }
 0x42a   :  { %7691 = vmatprep.subr.bf16.mxu1 %v17216_v58  ;;  %v4795_v23 = vld [vmem:[#allocation11 + $0xde8] sm:$0xff] }
 0x42c   :  { %7739 = vmatpush2.bf16.msra.mxu0 %v17319_v5  ;;  %v17026_v5 = vcombine.high %v4384_v55, %v4388_v40  ;;  %v4751_v55 = vld [vmem:[#allocation11 + $0xc88] sm:$0xff] }
 0x42d   :  { %7692 = vmatpush2.bf16.msra.mxu1 %v17215_v18  ;;  %7740 = vmatprep.subr.bf16.mxu0 %v17312_v7  ;;  %v17432_v7 = vcombine.high %v4791_v57, %v4795_v23  ;;  %v4755_v40 = vld [vmem:[#allocation11 + $0xca8] sm:$0xff] }
 0x42e   :  { %7693 = vmatprep.subr.bf16.mxu1 %v17208_v9  ;;  %v4783_v9 = vld [vmem:[#allocation11 + $0xd88] sm:$0xff] }
 0x42f   :  { %v17423_v16 = vcombine.low %v4783_v9, %v4787_v10 }
 0x430   :  { %7741 = vmatpush2.bf16.msra.mxu0 %v17311_v25  ;;  %v17431_v25 = vcombine.low %v4791_v57, %v4795_v23 }
 0x431   :  { %7694 = vmatpush2.bf16.msra.mxu1 %v17207_v27  ;;  %7792 = vmatprep.subr.bf16.mxu0 %v17050_v26  ;;  %v17424_v27 = vcombine.high %v4783_v9, %v4787_v10  ;;  %v4368_v26 = vld [vmem:[#allocation11 + $0x90] sm:$0xff] }
 0x432   :  { %7695 = vmatprep.subr.bf16.mxu1 %v17200_v39  ;;  %v4372_v39 = vld [vmem:[#allocation11 + $0xb0] sm:$0xff] }
 0x433   :  { %v7498_v42 = vpop.f32.mrf.mxu0  ;;  %7743 = vmatmul.mubr.bf16.vlgmr.msra.gmra.mxu0 %v19418_v37  ;;  %v17009_v6 = vcombine.low %v4368_v26, %v4372_v39 }
 0x434   :  { %v7499_v53 = vadd.f32 %v7498_v42, %v4867_v32  ;;  %v7539_v44 = vpop.f32.mrf.mxu1  ;;  %7793 = vmatpush1.bf16.msra.mxu0 %v17049_v60  ;;  %7824 = vmatprep.mubr.bf16.mxu0 %v19370_v46  ;;  %v17010_v32 = vcombine.high %v4368_v26, %v4372_v39  ;;  %v17416_v60 = vcombine.high %v4775_v28, %v4779_v30  ;;  %v4448_v28 = vld [vmem:[#allocation11 + $0x310] sm:$0xff] }
 0x435   :  { %7696 = vmatpush2.bf16.msra.mxu1 %v17199_v34  ;;  %v7500_v19 = vpop.f32.mrf.mxu0  ;;  %7794 = vmatprep.subr.bf16.mxu0 %v17042_v51  ;;  %v4360_v34 = vld [vmem:[#allocation11 + $0x50] sm:$0xff]  ;;  %v17098_v26 = vcombine.high %v4456_v11, %v4460_v12 }
 0x436   :  { %v19452_v14 = vadd.f32 %v7539_v44, %v7499_v53  ;;  %v7501_v0 = vadd.f32 %v7500_v19, %v4871_v61  ;;  %v7541_v35 = vpop.f32.mrf.mxu1  ;;  %7697 = vmatprep.subr.bf16.mxu1 %v17192_v13  ;;  %v4364_v51 = vld [vmem:[#allocation11 + $0x70] sm:$0xff]  ;;  %v4767_v61 = vld [vmem:[#allocation11 + $0xd08] sm:$0xff] }
 0x437   :  { %v7502_v8 = vpop.f32.mrf.mxu0  ;;  %v4771_v13 = vld [vmem:[#allocation11 + $0xd28] sm:$0xff]  ;;  %v17002_v42 = vcombine.high %v4360_v34, %v4364_v51  ;;  %v4356_v53 = vld [vmem:[#allocation11 + $0x30] sm:$0xff]  ;;  %v17001_v19 = vcombine.low %v4360_v34, %v4364_v51 }
 0x438   :  { %v19454_v58 = vadd.f32 %v7541_v35, %v7501_v0  ;;  %v7543_v59 = vpop.f32.mrf.mxu1  ;;  %7795 = vmatpush1.bf16.msra.mxu0 %v17041_v50  ;;  %v17408_v43 = vcombine.high %v4767_v61, %v4771_v13  ;;  %v4759_v44 = vld [vmem:[#allocation11 + $0xcc8] sm:$0xff]  ;;  %v4472_v35 = vld [vmem:[#allocation11 + $0x3d0] sm:$0xff]  ;;  %v16993_v8 = vcombine.low %v4352_v20, %v4356_v53 }
 0x439   :  { %7698 = vmatpush2.bf16.msra.mxu1 %v17191_v52  ;;  %v7503_v3 = vpop.f32.mrf.mxu0  ;;  %7796 = vmatprep.subr.bf16.mxu0 %v17034_v54  ;;  %v4763_v50 = vld [vmem:[#allocation11 + $0xce8] sm:$0xff]  ;;  %v17407_v52 = vcombine.low %v4767_v61, %v4771_v13  ;;  %v16994_v54 = vcombine.high %v4352_v20, %v4356_v53  ;;  %v17392_v59 = vcombine.high %v4751_v55, %v4755_v40  ;;  %v4452_v30 = vld [vmem:[#allocation11 + $0x330] sm:$0xff] }
 0x43a   :  { %v7544_v18 = vpop.f32.mrf.mxu1  ;;  %7699 = vmatprep.subr.bf16.mxu1 %v17184_v36  ;;  %v17400_v0 = vcombine.high %v4759_v44, %v4763_v50  ;;  %v4476_v36 = vld [vmem:[#allocation11 + $0x3f0] sm:$0xff]  ;;  %v17399_v57 = vcombine.low %v4759_v44, %v4763_v50  ;;  %v17090_v34 = vcombine.high %v4448_v28, %v4452_v30 }
 0x43b   :  { %v17114_v23 = vcombine.high %v4472_v35, %v4476_v36  ;;  %v4468_v3 = vld [vmem:[#allocation11 + $0x3b0] sm:$0xff]  ;;  %v17113_v18 = vcombine.low %v4472_v35, %v4476_v36 }
 0x43c   :  { %7797 = vmatpush1.bf16.msra.mxu0 %v17033_v63  ;;  %v4464_v63 = vld [vmem:[#allocation11 + $0x390] sm:$0xff] }
 0x43d   :  { %7700 = vmatpush2.bf16.msra.mxu1 %v17183_v1  ;;  %7798 = vmatprep.subr.bf16.mxu0 %v17026_v5  ;;  %v4743_v1 = vld [vmem:[#allocation11 + $0xc48] sm:$0xff]  ;;  %v17106_v9 = vcombine.high %v4464_v63, %v4468_v3  ;;  %v4440_v61 = vld [vmem:[#allocation11 + $0x2d0] sm:$0xff] }
 0x43e   :  { %7751 = vmatprep.subr.bf16.mxu1 %v17432_v7  ;;  %v4747_v5 = vld [vmem:[#allocation11 + $0xc68] sm:$0xff]  ;;  %v17391_v7 = vcombine.low %v4751_v55, %v4755_v40  ;;  %v4444_v13 = vld [vmem:[#allocation11 + $0x2f0] sm:$0xff] }
 0x43f   :  { %v17384_v10 = vcombine.high %v4743_v1, %v4747_v5  ;;  %v17082_v20 = vcombine.high %v4440_v61, %v4444_v13  ;;  %v4432_v44 = vld [vmem:[#allocation11 + $0x290] sm:$0xff] }
 0x440   :  { %7702 = vmatmul.mubr.bf16.vlgmr.msra.gmra.mxu1 %v19395_v41  ;;  %7799 = vmatpush1.bf16.msra.mxu0 %v17025_v15  ;;  %v4735_v15 = vld [vmem:[#allocation11 + $0xc08] sm:$0xff]  ;;  %v4436_v50 = vld [vmem:[#allocation11 + $0x2b0] sm:$0xff] }
 0x441   :  { %7752 = vmatpush1.bf16.msra.mxu1 %v17431_v25  ;;  %7783 = vmatprep.mubr.bf16.mxu1 %v19438_v17  ;;  %v4739_v25 = vld [vmem:[#allocation11 + $0xc28] sm:$0xff]  ;;  %v17074_v35 = vcombine.high %v4432_v44, %v4436_v50  ;;  %v4424_v55 = vld [vmem:[#allocation11 + $0x250] sm:$0xff] }
 0x442   :  { %7753 = vmatprep.subr.bf16.mxu1 %v17424_v27  ;;  %7800 = vmatprep.subr.bf16.mxu0 %v17018_v22  ;;  %v17105_v27 = vcombine.low %v4464_v63, %v4468_v3  ;;  %v17383_v22 = vcombine.low %v4743_v1, %v4747_v5  ;;  %v17376_v39 = vcombine.high %v4735_v15, %v4739_v25  ;;  %v4428_v40 = vld [vmem:[#allocation11 + $0x270] sm:$0xff] }
 0x443   :  { %v17066_v63 = vcombine.high %v4424_v55, %v4428_v40  ;;  %v4416_v1 = vld [vmem:[#allocation11 + $0x210] sm:$0xff] }
 0x444   :  { %7801 = vmatpush1.bf16.msra.mxu0 %v17017_v31  ;;  %v4855_v31 = vld [vmem:[#allocation11 + $0xfc8] sm:$0xff]  ;;  %v4420_v5 = vld [vmem:[#allocation11 + $0x230] sm:$0xff] }
 0x445   :  { %7754 = vmatpush1.bf16.msra.mxu1 %v17423_v16  ;;  %7802 = vmatprep.subr.bf16.mxu0 %v17010_v32  ;;  %v4859_v16 = vld [vmem:[#allocation11 + $0xfe8] sm:$0xff]  ;;  %v17097_v32 = vcombine.low %v4456_v11, %v4460_v12  ;;  %v17058_v11 = vcombine.high %v4416_v1, %v4420_v5 }
 0x446   :  { %7755 = vmatprep.subr.bf16.mxu1 %v17416_v60  ;;  %v17375_v60 = vcombine.low %v4735_v15, %v4739_v25  ;;  %v17496_v51 = vcombine.high %v4855_v31, %v4859_v16  ;;  %v4664_v15 = vld [vmem:[#allocation11 + $0x9d0] sm:$0xff] }
 0x447   :  { %v4668_v25 = vld [vmem:[#allocation11 + $0x9f0] sm:$0xff] }
 0x448   :  { %7803 = vmatpush1.bf16.msra.mxu0 %v17009_v6  ;;  %v4847_v6 = vld [vmem:[#allocation11 + $0xf88] sm:$0xff] }
 0x449   :  { %7756 = vmatpush1.bf16.msra.mxu1 %v17415_v21  ;;  %7804 = vmatprep.subr.bf16.mxu0 %v17002_v42  ;;  %v4851_v21 = vld [vmem:[#allocation11 + $0xfa8] sm:$0xff]  ;;  %v17089_v42 = vcombine.low %v4448_v28, %v4452_v30  ;;  %v17306_v28 = vcombine.high %v4664_v15, %v4668_v25 }
 0x44a   :  { %7757 = vmatprep.subr.bf16.mxu1 %v17408_v43  ;;  %v17495_v43 = vcombine.low %v4855_v31, %v4859_v16  ;;  %v17488_v53 = vcombine.high %v4847_v6, %v4851_v21  ;;  %v4656_v31 = vld [vmem:[#allocation11 + $0x990] sm:$0xff] }
 0x44b   :  { %v4660_v16 = vld [vmem:[#allocation11 + $0x9b0] sm:$0xff] }
 0x44c   :  { %7805 = vmatpush1.bf16.msra.mxu0 %v17001_v19  ;;  %v4839_v19 = vld [vmem:[#allocation11 + $0xf48] sm:$0xff] }
 0x44d   :  { %7758 = vmatpush1.bf16.msra.mxu1 %v17407_v52  ;;  %7806 = vmatprep.subr.bf16.mxu0 %v16994_v54  ;;  %v4843_v52 = vld [vmem:[#allocation11 + $0xf68] sm:$0xff]  ;;  %v17081_v54 = vcombine.low %v4440_v61, %v4444_v13  ;;  %v17298_v61 = vcombine.high %v4656_v31, %v4660_v16 }
 0x44e   :  { %7759 = vmatprep.subr.bf16.mxu1 %v17400_v0  ;;  %v17487_v0 = vcombine.low %v4847_v6, %v4851_v21  ;;  %v17480_v36 = vcombine.high %v4839_v19, %v4843_v52  ;;  %v4648_v6 = vld [vmem:[#allocation11 + $0x950] sm:$0xff] }
 0x44f   :  { %v4652_v21 = vld [vmem:[#allocation11 + $0x970] sm:$0xff] }
 0x450   :  { %7807 = vmatpush1.bf16.msra.mxu0 %v16993_v8  ;;  %v4831_v8 = vld [vmem:[#allocation11 + $0xf08] sm:$0xff] }
 0x451   :  { %7760 = vmatpush1.bf16.msra.mxu1 %v17399_v57  ;;  %7808 = vmatprep.subr.bf16.mxu0 %v17114_v23  ;;  %v4835_v57 = vld [vmem:[#allocation11 + $0xf28] sm:$0xff]  ;;  %v17073_v23 = vcombine.low %v4432_v44, %v4436_v50  ;;  %v17297_v44 = vcombine.low %v4656_v31, %v4660_v16  ;;  %v4512_v31 = vld [vmem:[#allocation11 + $0x510] sm:$0xff] }
 0x452   :  { %7761 = vmatprep.subr.bf16.mxu1 %v17392_v59  ;;  %v17479_v59 = vcombine.low %v4839_v19, %v4843_v52  ;;  %v17472_v3 = vcombine.high %v4831_v8, %v4835_v57  ;;  %v17290_v52 = vcombine.high %v4648_v6, %v4652_v21  ;;  %v4516_v16 = vld [vmem:[#allocation11 + $0x530] sm:$0xff] }
 0x454   :  { %7809 = vmatpush2.bf16.msra.mxu0 %v17113_v18  ;;  %v4823_v18 = vld [vmem:[#allocation11 + $0xec8] sm:$0xff] }
 0x455   :  { %7762 = vmatpush1.bf16.msra.mxu1 %v17391_v7  ;;  %7810 = vmatprep.subr.bf16.mxu0 %v17106_v9  ;;  %v4827_v7 = vld [vmem:[#allocation11 + $0xee8] sm:$0xff]  ;;  %v17065_v9 = vcombine.low %v4424_v55, %v4428_v40  ;;  %v4536_v40 = vld [vmem:[#allocation11 + $0x5d0] sm:$0xff] }
 0x456   :  { %7763 = vmatprep.subr.bf16.mxu1 %v17384_v10  ;;  %v17471_v10 = vcombine.low %v4831_v8, %v4835_v57  ;;  %v17464_v12 = vcombine.high %v4823_v18, %v4827_v7  ;;  %v17289_v8 = vcombine.low %v4648_v6, %v4652_v21  ;;  %v4504_v6 = vld [vmem:[#allocation11 + $0x4d0] sm:$0xff] }
 0x457   :  { %v4508_v21 = vld [vmem:[#allocation11 + $0x4f0] sm:$0xff] }
 0x458   :  { %7811 = vmatpush2.bf16.msra.mxu0 %v17105_v27  ;;  %v4815_v27 = vld [vmem:[#allocation11 + $0xe88] sm:$0xff] }
 0x459   :  { %7764 = vmatpush1.bf16.msra.mxu1 %v17383_v22  ;;  %7812 = vmatprep.subr.bf16.mxu0 %v17098_v26  ;;  %v4819_v22 = vld [vmem:[#allocation11 + $0xea8] sm:$0xff]  ;;  %v17057_v26 = vcombine.low %v4416_v1, %v4420_v5  ;;  %v4532_v1 = vld [vmem:[#allocation11 + $0x5b0] sm:$0xff] }
 0x45a   :  { %7765 = vmatprep.subr.bf16.mxu1 %v17376_v39  ;;  %v17463_v39 = vcombine.low %v4823_v18, %v4827_v7  ;;  %v17456_v30 = vcombine.high %v4815_v27, %v4819_v22  ;;  %v4636_v5 = vld [vmem:[#allocation11 + $0x8f0] sm:$0xff] }
 0x45c   :  { %7813 = vmatpush2.bf16.msra.mxu0 %v17097_v32  ;;  %v4807_v32 = vld [vmem:[#allocation11 + $0xe48] sm:$0xff] }
 0x45d   :  { %7766 = vmatpush1.bf16.msra.mxu1 %v17375_v60  ;;  %7814 = vmatprep.subr.bf16.mxu0 %v17090_v34  ;;  %v4811_v60 = vld [vmem:[#allocation11 + $0xe68] sm:$0xff]  ;;  %v17305_v34 = vcombine.low %v4664_v15, %v4668_v25  ;;  %v4520_v15 = vld [vmem:[#allocation11 + $0x550] sm:$0xff] }
 0x45e   :  { %7767 = vmatprep.subr.bf16.mxu1 %v17496_v51  ;;  %v17455_v51 = vcombine.low %v4815_v27, %v4819_v22  ;;  %v17448_v13 = vcombine.high %v4807_v32, %v4811_v60  ;;  %v17447_v19 = vcombine.low %v4807_v32, %v4811_v60  ;;  %v4524_v25 = vld [vmem:[#allocation11 + $0x570] sm:$0xff] }
 0x45f   :  { %v17161_v60 = vcombine.low %v4520_v15, %v4524_v25 }
 0x460   :  { %7815 = vmatpush2.bf16.msra.mxu0 %v17089_v42 }
 0x461   :  { %7768 = vmatpush2.bf16.msra.mxu1 %v17495_v43  ;;  %7816 = vmatprep.subr.bf16.mxu0 %v17082_v20  ;;  %v4799_v43 = vld [vmem:[#allocation11 + $0xe08] sm:$0xff] }
 0x462   :  { %7769 = vmatprep.subr.bf16.mxu1 %v17488_v53  ;;  %v4803_v20 = vld [vmem:[#allocation11 + $0xe28] sm:$0xff] }
 0x464   :  { %7817 = vmatpush2.bf16.msra.mxu0 %v17081_v54 }
 0x465   :  { %7770 = vmatpush2.bf16.msra.mxu1 %v17487_v0  ;;  %7818 = vmatprep.subr.bf16.mxu0 %v17074_v35  ;;  %v17440_v0 = vcombine.high %v4799_v43, %v4803_v20  ;;  %v4640_v35 = vld [vmem:[#allocation11 + $0x910] sm:$0xff] }
 0x466   :  { %7771 = vmatprep.subr.bf16.mxu1 %v17480_v36  ;;  %v4644_v36 = vld [vmem:[#allocation11 + $0x930] sm:$0xff] }
 0x467   :  { %v17281_v18 = vcombine.low %v4640_v35, %v4644_v36 }
 0x468   :  { %7819 = vmatpush2.bf16.msra.mxu0 %v17073_v23  ;;  %v17439_v23 = vcombine.low %v4799_v43, %v4803_v20  ;;  %v17153_v43 = vcombine.low %v4512_v31, %v4516_v16 }
 0x469   :  { %7772 = vmatpush2.bf16.msra.mxu1 %v17479_v59  ;;  %7820 = vmatprep.subr.bf16.mxu0 %v17066_v63  ;;  %v17282_v59 = vcombine.high %v4640_v35, %v4644_v36  ;;  %v17145_v36 = vcombine.low %v4504_v6, %v4508_v21 }
 0x46a   :  { %7773 = vmatprep.subr.bf16.mxu1 %v17472_v3  ;;  %v4528_v3 = vld [vmem:[#allocation11 + $0x590] sm:$0xff] }
 0x46b   :  { %v17169_v22 = vcombine.low %v4528_v3, %v4532_v1 }
 0x46c   :  { %7821 = vmatpush2.bf16.msra.mxu0 %v17065_v9  ;;  %v17170_v9 = vcombine.high %v4528_v3, %v4532_v1 }
 0x46d   :  { %7774 = vmatpush2.bf16.msra.mxu1 %v17471_v10  ;;  %7822 = vmatprep.subr.bf16.mxu0 %v17058_v11  ;;  %v4624_v11 = vld [vmem:[#allocation11 + $0x890] sm:$0xff] }
 0x46e   :  { %7775 = vmatprep.subr.bf16.mxu1 %v17464_v12  ;;  %v4628_v12 = vld [vmem:[#allocation11 + $0x8b0] sm:$0xff] }
 0x46f   :  { %v17265_v32 = vcombine.low %v4624_v11, %v4628_v12 }
 0x470   :  { %7823 = vmatpush2.bf16.msra.mxu0 %v17057_v26  ;;  %v17266_v26 = vcombine.high %v4624_v11, %v4628_v12 }
 0x471   :  { %7776 = vmatpush2.bf16.msra.mxu1 %v17463_v39  ;;  %7874 = vmatprep.subr.bf16.mxu0 %v17306_v28  ;;  %v17162_v39 = vcombine.high %v4520_v15, %v4524_v25  ;;  %v4616_v28 = vld [vmem:[#allocation11 + $0x850] sm:$0xff] }
 0x472   :  { %7777 = vmatprep.subr.bf16.mxu1 %v17456_v30  ;;  %v4620_v30 = vld [vmem:[#allocation11 + $0x870] sm:$0xff] }
 0x473   :  { %v7580_v42 = vpop.f32.mrf.mxu0  ;;  %7825 = vmatmul.mubr.bf16.vlgmr.msra.gmra.mxu0 %v19393_v56  ;;  %v4704_v15 = vld [vmem:[#allocation11 + $0xb10] sm:$0xff] }
 0x474   :  { %v19460_v53 = vadd.f32 %v7580_v42, %v19452_v14  ;;  %7875 = vmatpush1.bf16.msra.mxu0 %v17305_v34  ;;  %7906 = vmatprep.mubr.bf16.mxu0 %v19404_v38  ;;  %v4540_v14 = vld [vmem:[#allocation11 + $0x5f0] sm:$0xff]  ;;  %v17258_v34 = vcombine.high %v4616_v28, %v4620_v30  ;;  %v17257_v42 = vcombine.low %v4616_v28, %v4620_v30 }
 0x475   :  { %7778 = vmatpush2.bf16.msra.mxu1 %v17455_v51  ;;  %v7582_v50 = vpop.f32.mrf.mxu0  ;;  %7876 = vmatprep.subr.bf16.mxu0 %v17298_v61  ;;  %v17178_v63 = vcombine.high %v4536_v40, %v4540_v14  ;;  %v17177_v7 = vcombine.low %v4536_v40, %v4540_v14  ;;  %v17154_v51 = vcombine.high %v4512_v31, %v4516_v16  ;;  %v4608_v61 = vld [vmem:[#allocation11 + $0x810] sm:$0xff] }
 0x476   :  { %v19464_v54 = vadd.f32 %v7582_v50, %v19454_v58  ;;  %7779 = vmatprep.subr.bf16.mxu1 %v17448_v13  ;;  %v4632_v58 = vld [vmem:[#allocation11 + $0x8d0] sm:$0xff] }
 0x477   :  { %v7584_v55 = vpop.f32.mrf.mxu0  ;;  %v17274_v10 = vcombine.high %v4632_v58, %v4636_v5  ;;  %v17273_v27 = vcombine.low %v4632_v58, %v4636_v5  ;;  %v4612_v13 = vld [vmem:[#allocation11 + $0x830] sm:$0xff] }
 0x478   :  { %7877 = vmatpush1.bf16.msra.mxu0 %v17297_v44  ;;  %v17250_v20 = vcombine.high %v4608_v61, %v4612_v13  ;;  %v17146_v44 = vcombine.high %v4504_v6, %v4508_v21  ;;  %v4728_v50 = vld [vmem:[#allocation11 + $0xbd0] sm:$0xff]  ;;  %v17249_v35 = vcombine.low %v4608_v61, %v4612_v13 }
 0x479   :  { %7780 = vmatpush2.bf16.msra.mxu1 %v17447_v19  ;;  %v7585_v57 = vpop.f32.mrf.mxu0  ;;  %7878 = vmatprep.subr.bf16.mxu0 %v17290_v52  ;;  %v4732_v19 = vld [vmem:[#allocation11 + $0xbf0] sm:$0xff] }
 0x47a   :  { %7781 = vmatprep.subr.bf16.mxu1 %v17440_v0  ;;  %v4496_v52 = vld [vmem:[#allocation11 + $0x490] sm:$0xff]  ;;  %v17370_v55 = vcombine.high %v4728_v50, %v4732_v19 }
 0x47b   :  { %v4500_v0 = vld [vmem:[#allocation11 + $0x4b0] sm:$0xff] }
 0x47c   :  { %7879 = vmatpush1.bf16.msra.mxu0 %v17289_v8  ;;  %v17138_v40 = vcombine.high %v4496_v52, %v4500_v0  ;;  %v4720_v14 = vld [vmem:[#allocation11 + $0xb90] sm:$0xff] }
 0x47d   :  { %7782 = vmatpush2.bf16.msra.mxu1 %v17439_v23  ;;  %7880 = vmatprep.subr.bf16.mxu0 %v17282_v59  ;;  %v4724_v8 = vld [vmem:[#allocation11 + $0xbb0] sm:$0xff]  ;;  %v17369_v59 = vcombine.low %v4728_v50, %v4732_v19 }
 0x47e   :  { %7833 = vmatprep.subr.bf16.mxu1 %v17178_v63  ;;  %v4488_v57 = vld [vmem:[#allocation11 + $0x450] sm:$0xff]  ;;  %v17137_v63 = vcombine.low %v4496_v52, %v4500_v0  ;;  %v17362_v3 = vcombine.high %v4720_v14, %v4724_v8 }
 0x47f   :  { %v4492_v23 = vld [vmem:[#allocation11 + $0x470] sm:$0xff] }
 0x480   :  { %7784 = vmatmul.mubr.bf16.vlgmr.msra.gmra.mxu1 %v19440_v24  ;;  %7881 = vmatpush1.bf16.msra.mxu0 %v17281_v18  ;;  %v17130_v1 = vcombine.high %v4488_v57, %v4492_v23  ;;  %v4712_v58 = vld [vmem:[#allocation11 + $0xb50] sm:$0xff] }
 0x481   :  { %7834 = vmatpush1.bf16.msra.mxu1 %v17177_v7  ;;  %7865 = vmatprep.mubr.bf16.mxu1 %v19373_v4  ;;  %v4716_v5 = vld [vmem:[#allocation11 + $0xb70] sm:$0xff] }
 0x482   :  { %7835 = vmatprep.subr.bf16.mxu1 %v17170_v9  ;;  %7882 = vmatprep.subr.bf16.mxu0 %v17274_v10  ;;  %v4480_v18 = vld [vmem:[#allocation11 + $0x410] sm:$0xff]  ;;  %v17361_v9 = vcombine.low %v4720_v14, %v4724_v8  ;;  %v17129_v10 = vcombine.low %v4488_v57, %v4492_v23  ;;  %v17354_v11 = vcombine.high %v4712_v58, %v4716_v5 }
 0x483   :  { %v4484_v7 = vld [vmem:[#allocation11 + $0x430] sm:$0xff] }
 0x484   :  { %7883 = vmatpush1.bf16.msra.mxu0 %v17273_v27  ;;  %v17122_v12 = vcombine.high %v4480_v18, %v4484_v7  ;;  %v4708_v25 = vld [vmem:[#allocation11 + $0xb30] sm:$0xff] }
 0x485   :  { %7836 = vmatpush1.bf16.msra.mxu1 %v17169_v22  ;;  %7884 = vmatprep.subr.bf16.mxu0 %v17266_v26  ;;  %v4600_v27 = vld [vmem:[#allocation11 + $0x7d0] sm:$0xff]  ;;  %v17353_v26 = vcombine.low %v4712_v58, %v4716_v5  ;;  %v17346_v28 = vcombine.high %v4704_v15, %v4708_v25 }
 0x486   :  { %7837 = vmatprep.subr.bf16.mxu1 %v17162_v39  ;;  %v4604_v22 = vld [vmem:[#allocation11 + $0x7f0] sm:$0xff]  ;;  %v17121_v39 = vcombine.low %v4480_v18, %v4484_v7  ;;  %v4409_v18 = vld [vmem:[#allocation11 + $0x1d8] sm:$0xff] }
 0x487   :  { %v17242_v30 = vcombine.high %v4600_v27, %v4604_v22  ;;  %v4696_v31 = vld [vmem:[#allocation11 + $0xad0] sm:$0xff]  ;;  %v4413_v7 = vld [vmem:[#allocation11 + $0x1f8] sm:$0xff] }
 0x488   :  { %7885 = vmatpush1.bf16.msra.mxu0 %v17265_v32  ;;  %v4700_v16 = vld [vmem:[#allocation11 + $0xaf0] sm:$0xff] }
 0x489   :  { %7838 = vmatpush1.bf16.msra.mxu1 %v17161_v60  ;;  %7886 = vmatprep.subr.bf16.mxu0 %v17258_v34  ;;  %v4592_v32 = vld [vmem:[#allocation11 + $0x790] sm:$0xff]  ;;  %v17345_v34 = vcombine.low %v4704_v15, %v4708_v25  ;;  %v17338_v61 = vcombine.high %v4696_v31, %v4700_v16  ;;  %v17052_v15 = vcombine.high %v4409_v18, %v4413_v7 }
 0x48a   :  { %7839 = vmatprep.subr.bf16.mxu1 %v17154_v51  ;;  %v4596_v60 = vld [vmem:[#allocation11 + $0x7b0] sm:$0xff]  ;;  %v17241_v51 = vcombine.low %v4600_v27, %v4604_v22  ;;  %v4401_v27 = vld [vmem:[#allocation11 + $0x198] sm:$0xff] }
 0x48b   :  { %v17234_v13 = vcombine.high %v4592_v32, %v4596_v60  ;;  %v4688_v6 = vld [vmem:[#allocation11 + $0xa90] sm:$0xff]  ;;  %v4405_v22 = vld [vmem:[#allocation11 + $0x1b8] sm:$0xff] }
 0x48c   :  { %7887 = vmatpush1.bf16.msra.mxu0 %v17257_v42  ;;  %v4692_v21 = vld [vmem:[#allocation11 + $0xab0] sm:$0xff] }
 0x48d   :  { %7840 = vmatpush1.bf16.msra.mxu1 %v17153_v43  ;;  %7888 = vmatprep.subr.bf16.mxu0 %v17250_v20  ;;  %v4584_v42 = vld [vmem:[#allocation11 + $0x750] sm:$0xff]  ;;  %v17337_v20 = vcombine.low %v4696_v31, %v4700_v16  ;;  %v17330_v50 = vcombine.high %v4688_v6, %v4692_v21  ;;  %v17044_v31 = vcombine.high %v4401_v27, %v4405_v22 }
 0x48e   :  { %7841 = vmatprep.subr.bf16.mxu1 %v17146_v44  ;;  %v4588_v43 = vld [vmem:[#allocation11 + $0x770] sm:$0xff]  ;;  %v17233_v44 = vcombine.low %v4592_v32, %v4596_v60  ;;  %v4393_v32 = vld [vmem:[#allocation11 + $0x158] sm:$0xff] }
 0x48f   :  { %v17226_v19 = vcombine.high %v4584_v42, %v4588_v43  ;;  %v4680_v52 = vld [vmem:[#allocation11 + $0xa50] sm:$0xff]  ;;  %v4397_v60 = vld [vmem:[#allocation11 + $0x178] sm:$0xff] }
 0x490   :  { %7889 = vmatpush1.bf16.msra.mxu0 %v17249_v35  ;;  %v4684_v0 = vld [vmem:[#allocation11 + $0xa70] sm:$0xff] }
 0x491   :  { %7842 = vmatpush1.bf16.msra.mxu1 %v17145_v36  ;;  %7890 = vmatprep.subr.bf16.mxu0 %v17370_v55  ;;  %v4576_v35 = vld [vmem:[#allocation11 + $0x710] sm:$0xff]  ;;  %v17329_v55 = vcombine.low %v4688_v6, %v4692_v21  ;;  %v17322_v14 = vcombine.high %v4680_v52, %v4684_v0 }
 0x492   :  { %7843 = vmatprep.subr.bf16.mxu1 %v17138_v40  ;;  %v4580_v36 = vld [vmem:[#allocation11 + $0x730] sm:$0xff]  ;;  %v17225_v40 = vcombine.low %v4584_v42, %v4588_v43  ;;  %v17036_v42 = vcombine.high %v4393_v32, %v4397_v60 }
 0x493   :  { %v17218_v8 = vcombine.high %v4576_v35, %v4580_v36  ;;  %v4672_v57 = vld [vmem:[#allocation11 + $0xa10] sm:$0xff] }
 0x494   :  { %7891 = vmatpush2.bf16.msra.mxu0 %v17369_v59  ;;  %v4676_v23 = vld [vmem:[#allocation11 + $0xa30] sm:$0xff] }
 0x495   :  { %7844 = vmatpush1.bf16.msra.mxu1 %v17137_v63  ;;  %7892 = vmatprep.subr.bf16.mxu0 %v17362_v3  ;;  %v4568_v59 = vld [vmem:[#allocation11 + $0x6d0] sm:$0xff]  ;;  %v17321_v3 = vcombine.low %v4680_v52, %v4684_v0  ;;  %v17314_v58 = vcombine.high %v4672_v57, %v4676_v23  ;;  %v17035_v0 = vcombine.low %v4393_v32, %v4397_v60 }
 0x496   :  { %7845 = vmatprep.subr.bf16.mxu1 %v17130_v1  ;;  %v4572_v63 = vld [vmem:[#allocation11 + $0x6f0] sm:$0xff]  ;;  %v17217_v1 = vcombine.low %v4576_v35, %v4580_v36 }
 0x497   :  { %v17210_v5 = vcombine.high %v4568_v59, %v4572_v63  ;;  %v4796_v52 = vld [vmem:[#allocation11 + $0xdf0] sm:$0xff] }
 0x498   :  { %7893 = vmatpush2.bf16.msra.mxu0 %v17361_v9  ;;  %v4560_v9 = vld [vmem:[#allocation11 + $0x690] sm:$0xff] }
 0x499   :  { %7846 = vmatpush1.bf16.msra.mxu1 %v17129_v10  ;;  %7894 = vmatprep.subr.bf16.mxu0 %v17354_v11  ;;  %v4564_v10 = vld [vmem:[#allocation11 + $0x6b0] sm:$0xff]  ;;  %v17313_v11 = vcombine.low %v4672_v57, %v4676_v23  ;;  %v4381_v57 = vld [vmem:[#allocation11 + $0xf8] sm:$0xff] }
 0x49a   :  { %7847 = vmatprep.subr.bf16.mxu1 %v17122_v12  ;;  %v17209_v12 = vcombine.low %v4568_v59, %v4572_v63  ;;  %v17202_v25 = vcombine.high %v4560_v9, %v4564_v10 }
 0x49c   :  { %7895 = vmatpush2.bf16.msra.mxu0 %v17353_v26  ;;  %v4552_v26 = vld [vmem:[#allocation11 + $0x650] sm:$0xff] }
 0x49d   :  { %7848 = vmatpush1.bf16.msra.mxu1 %v17121_v39  ;;  %7896 = vmatprep.subr.bf16.mxu0 %v17346_v28  ;;  %v4556_v39 = vld [vmem:[#allocation11 + $0x670] sm:$0xff]  ;;  %v17051_v28 = vcombine.low %v4409_v18, %v4413_v7 }
 0x49e   :  { %7849 = vmatprep.subr.bf16.mxu1 %v17242_v30  ;;  %v17201_v30 = vcombine.low %v4560_v9, %v4564_v10  ;;  %v17194_v16 = vcombine.high %v4552_v26, %v4556_v39  ;;  %v17193_v21 = vcombine.low %v4552_v26, %v4556_v39  ;;  %v4780_v18 = vld [vmem:[#allocation11 + $0xd70] sm:$0xff] }
 0x49f   :  { %v4768_v39 = vld [vmem:[#allocation11 + $0xd10] sm:$0xff] }
 0x4a0   :  { %7897 = vmatpush2.bf16.msra.mxu0 %v17345_v34 }
 0x4a1   :  { %7850 = vmatpush2.bf16.msra.mxu1 %v17241_v51  ;;  %7898 = vmatprep.subr.bf16.mxu0 %v17338_v61  ;;  %v4544_v51 = vld [vmem:[#allocation11 + $0x610] sm:$0xff] }
 0x4a2   :  { %7851 = vmatprep.subr.bf16.mxu1 %v17234_v13  ;;  %v4548_v61 = vld [vmem:[#allocation11 + $0x630] sm:$0xff]  ;;  %v17043_v13 = vcombine.low %v4401_v27, %v4405_v22  ;;  %v4361_v27 = vld [vmem:[#allocation11 + $0x58] sm:$0xff] }
 0x4a3   :  { %v17186_v43 = vcombine.high %v4544_v51, %v4548_v61  ;;  %v17185_v36 = vcombine.low %v4544_v51, %v4548_v61  ;;  %v4365_v22 = vld [vmem:[#allocation11 + $0x78] sm:$0xff] }
 0x4a4   :  { %7899 = vmatpush2.bf16.msra.mxu0 %v17337_v20  ;;  %v4385_v20 = vld [vmem:[#allocation11 + $0x118] sm:$0xff] }
 0x4a5   :  { %7852 = vmatpush2.bf16.msra.mxu1 %v17233_v44  ;;  %7900 = vmatprep.subr.bf16.mxu0 %v17330_v50  ;;  %v4389_v44 = vld [vmem:[#allocation11 + $0x138] sm:$0xff] }
 0x4a6   :  { %7853 = vmatprep.subr.bf16.mxu1 %v17226_v19  ;;  %v4792_v19 = vld [vmem:[#allocation11 + $0xdd0] sm:$0xff]  ;;  %v17027_v23 = vcombine.low %v4385_v20, %v4389_v44  ;;  %v4353_v51 = vld [vmem:[#allocation11 + $0x18] sm:$0xff] }
 0x4a7   :  { %v17433_v59 = vcombine.low %v4792_v19, %v4796_v52  ;;  %v4357_v61 = vld [vmem:[#allocation11 + $0x38] sm:$0xff] }
 0x4a8   :  { %7901 = vmatpush2.bf16.msra.mxu0 %v17329_v55  ;;  %v17434_v55 = vcombine.high %v4792_v19, %v4796_v52  ;;  %v4752_v19 = vld [vmem:[#allocation11 + $0xc90] sm:$0xff] }
 0x4a9   :  { %7854 = vmatpush2.bf16.msra.mxu1 %v17225_v40  ;;  %7902 = vmatprep.subr.bf16.mxu0 %v17322_v14  ;;  %v4784_v40 = vld [vmem:[#allocation11 + $0xd90] sm:$0xff] }
 0x4aa   :  { %7855 = vmatprep.subr.bf16.mxu1 %v17218_v8  ;;  %v4788_v14 = vld [vmem:[#allocation11 + $0xdb0] sm:$0xff]  ;;  %v4377_v8 = vld [vmem:[#allocation11 + $0xd8] sm:$0xff] }
 0x4ab   :  { %v17426_v63 = vcombine.high %v4784_v40, %v4788_v14  ;;  %v17019_v9 = vcombine.low %v4377_v8, %v4381_v57  ;;  %v4756_v52 = vld [vmem:[#allocation11 + $0xcb0] sm:$0xff] }
 0x4ac   :  { %7903 = vmatpush2.bf16.msra.mxu0 %v17321_v3  ;;  %v17020_v3 = vcombine.high %v4377_v8, %v4381_v57  ;;  %v4748_v8 = vld [vmem:[#allocation11 + $0xc70] sm:$0xff] }
 0x4ad   :  { %7856 = vmatpush2.bf16.msra.mxu1 %v17217_v1  ;;  %7904 = vmatprep.subr.bf16.mxu0 %v17314_v58  ;;  %v4369_v1 = vld [vmem:[#allocation11 + $0x98] sm:$0xff] }
 0x4ae   :  { %7857 = vmatprep.subr.bf16.mxu1 %v17210_v5  ;;  %v4373_v58 = vld [vmem:[#allocation11 + $0xb8] sm:$0xff]  ;;  %v4776_v5 = vld [vmem:[#allocation11 + $0xd50] sm:$0xff] }
 0x4b0   :  { %7905 = vmatpush2.bf16.msra.mxu0 %v17313_v11  ;;  %v17425_v11 = vcombine.low %v4784_v40, %v4788_v14  ;;  %v4469_v40 = vld [vmem:[#allocation11 + $0x3b8] sm:$0xff]  ;;  %v4744_v14 = vld [vmem:[#allocation11 + $0xc50] sm:$0xff] }
 0x4b1   :  { %7858 = vmatpush2.bf16.msra.mxu1 %v17209_v12  ;;  %7956 = vmatprep.subr.bf16.mxu0 %v17052_v15  ;;  %v17012_v12 = vcombine.high %v4369_v1, %v4373_v58 }
 0x4b2   :  { %7859 = vmatprep.subr.bf16.mxu1 %v17202_v25  ;;  %v17418_v25 = vcombine.high %v4776_v5, %v4780_v18 }
 0x4b3   :  { %v19468_v34 = vpop.f32.mrf.mxu0  ;;  %7907 = vmatmul.mubr.bf16.vlgmr.msra.gmra.mxu0 %v19418_v37 }
 0x4b4   :  { %7957 = vmatpush1.bf16.msra.mxu0 %v17051_v28  ;;  %7988 = vmatprep.mubr.bf16.mxu0 %v19370_v46  ;;  %v17028_v46 = vcombine.high %v4385_v20, %v4389_v44  ;;  %v4772_v28 = vld [vmem:[#allocation11 + $0xd30] sm:$0xff]  ;;  %v4473_v44 = vld [vmem:[#allocation11 + $0x3d8] sm:$0xff] }
 0x4b5   :  { %7860 = vmatpush2.bf16.msra.mxu1 %v17201_v30  ;;  %v19472_v6 = vpop.f32.mrf.mxu0  ;;  %7958 = vmatprep.subr.bf16.mxu0 %v17044_v31  ;;  %v17417_v31 = vcombine.low %v4776_v5, %v4780_v18  ;;  %v17410_v60 = vcombine.high %v4768_v39, %v4772_v28  ;;  %v4740_v5 = vld [vmem:[#allocation11 + $0xc30] sm:$0xff] }
 0x4b6   :  { %7861 = vmatprep.subr.bf16.mxu1 %v17194_v16  ;;  %v17004_v16 = vcombine.high %v4361_v27, %v4365_v22 }
 0x4b7   :  { %v7666_v50 = vpop.f32.mrf.mxu0 }
 0x4b8   :  { %7959 = vmatpush1.bf16.msra.mxu0 %v17043_v13  ;;  %v4760_v13 = vld [vmem:[#allocation11 + $0xcd0] sm:$0xff]  ;;  %v4477_v50 = vld [vmem:[#allocation11 + $0x3f8] sm:$0xff] }
 0x4b9   :  { %7862 = vmatpush2.bf16.msra.mxu1 %v17193_v21  ;;  %v7667_v35 = vpop.f32.mrf.mxu0  ;;  %7960 = vmatprep.subr.bf16.mxu0 %v17036_v42  ;;  %v4764_v21 = vld [vmem:[#allocation11 + $0xcf0] sm:$0xff]  ;;  %v17003_v42 = vcombine.low %v4361_v27, %v4365_v22  ;;  %v17115_v57 = vcombine.low %v4473_v44, %v4477_v50 }
 0x4ba   :  { %7863 = vmatprep.subr.bf16.mxu1 %v17186_v43  ;;  %v16996_v43 = vcombine.high %v4353_v51, %v4357_v61  ;;  %v17402_v20 = vcombine.high %v4760_v13, %v4764_v21  ;;  %v17401_v35 = vcombine.low %v4760_v13, %v4764_v21  ;;  %v4860_v27 = vld [vmem:[#allocation11 + $0xff0] sm:$0xff]  ;;  %v4433_v21 = vld [vmem:[#allocation11 + $0x298] sm:$0xff] }
 0x4bc   :  { %7961 = vmatpush1.bf16.msra.mxu0 %v17035_v0  ;;  %v16995_v0 = vcombine.low %v4353_v51, %v4357_v61 }
 0x4bd   :  { %7864 = vmatpush2.bf16.msra.mxu1 %v17185_v36  ;;  %7962 = vmatprep.subr.bf16.mxu0 %v17028_v46  ;;  %v17116_v36 = vcombine.high %v4473_v44, %v4477_v50  ;;  %v17394_v46 = vcombine.high %v4752_v19, %v4756_v52 }
 0x4be   :  { %7915 = vmatprep.subr.bf16.mxu1 %v17434_v55  ;;  %v4465_v55 = vld [vmem:[#allocation11 + $0x398] sm:$0xff] }
 0x4bf   :  { %v17107_v18 = vcombine.low %v4465_v55, %v4469_v40 }
 0x4c0   :  { %7866 = vmatmul.mubr.bf16.vlgmr.msra.gmra.mxu1 %v19395_v41  ;;  %v7621_v7 = vpop.f32.mrf.mxu1  ;;  %7963 = vmatpush1.bf16.msra.mxu0 %v17027_v23  ;;  %v17393_v23 = vcombine.low %v4752_v19, %v4756_v52  ;;  %v4425_v52 = vld [vmem:[#allocation11 + $0x258] sm:$0xff] }
 0x4c1   :  { %v19476_v10 = vadd.f32 %v7621_v7, %v19460_v53  ;;  %7916 = vmatpush1.bf16.msra.mxu1 %v17433_v59  ;;  %7947 = vmatprep.mubr.bf16.mxu1 %v19438_v17  ;;  %v17011_v53 = vcombine.low %v4369_v1, %v4373_v58  ;;  %v17108_v59 = vcombine.high %v4465_v55, %v4469_v40  ;;  %v4461_v1 = vld [vmem:[#allocation11 + $0x378] sm:$0xff]  ;;  %v4736_v58 = vld [vmem:[#allocation11 + $0xc10] sm:$0xff] }
 0x4c2   :  { %v7623_v15 = vpop.f32.mrf.mxu1  ;;  %7917 = vmatprep.subr.bf16.mxu1 %v17426_v63  ;;  %7964 = vmatprep.subr.bf16.mxu0 %v17020_v3  ;;  %v17386_v63 = vcombine.high %v4744_v14, %v4748_v8  ;;  %v4457_v3 = vld [vmem:[#allocation11 + $0x358] sm:$0xff]  ;;  %v17385_v7 = vcombine.low %v4744_v14, %v4748_v8 }
 0x4c3   :  { %v19480_v26 = vadd.f32 %v7623_v15, %v19464_v54  ;;  %v17409_v54 = vcombine.low %v4768_v39, %v4772_v28  ;;  %v4453_v15 = vld [vmem:[#allocation11 + $0x338] sm:$0xff]  ;;  %v17099_v22 = vcombine.low %v4457_v3, %v4461_v1  ;;  %v17377_v39 = vcombine.low %v4736_v58, %v4740_v5 }
 0x4c4   :  { %v7625_v30 = vpop.f32.mrf.mxu1  ;;  %7965 = vmatpush1.bf16.msra.mxu0 %v17019_v9  ;;  %v17100_v9 = vcombine.high %v4457_v3, %v4461_v1  ;;  %v4417_v8 = vld [vmem:[#allocation11 + $0x218] sm:$0xff]  ;;  %vm8120_vm2 = vcmp.gt.f32.partialorder %v19476_v10, 0.0 }
 0x4c5   :  { %7918 = vmatpush1.bf16.msra.mxu1 %v17425_v11  ;;  %7966 = vmatprep.subr.bf16.mxu0 %v17012_v12  ;;  %v17378_v11 = vcombine.high %v4736_v58, %v4740_v5  ;;  %v4449_v12 = vld [vmem:[#allocation11 + $0x318] sm:$0xff]  ;;  %vm8121_vm1 = vcmp.gt.f32.partialorder %v19480_v26, 0.0 }
 0x4c6   :  { %v7626_v32 = vpop.f32.mrf.mxu1  ;;  %7919 = vmatprep.subr.bf16.mxu1 %v17418_v25  ;;  %v4856_v25 = vld [vmem:[#allocation11 + $0xfd0] sm:$0xff]  ;;  %v17092_v28 = vcombine.high %v4449_v12, %v4453_v15  ;;  %v4665_v5 = vld [vmem:[#allocation11 + $0x9d8] sm:$0xff] }
 0x4c7   :  { %v17498_v30 = vcombine.high %v4856_v25, %v4860_v27  ;;  %v4852_v32 = vld [vmem:[#allocation11 + $0xfb0] sm:$0xff]  ;;  %v17497_v51 = vcombine.low %v4856_v25, %v4860_v27  ;;  %v4657_v27 = vld [vmem:[#allocation11 + $0x998] sm:$0xff] }
 0x4c8   :  { %7967 = vmatpush1.bf16.msra.mxu0 %v17011_v53  ;;  %v4441_v53 = vld [vmem:[#allocation11 + $0x2d8] sm:$0xff] }
 0x4c9   :  { %7920 = vmatpush1.bf16.msra.mxu1 %v17417_v31  ;;  %7968 = vmatprep.subr.bf16.mxu0 %v17004_v16  ;;  %v4445_v31 = vld [vmem:[#allocation11 + $0x2f8] sm:$0xff]  ;;  %v4848_v16 = vld [vmem:[#allocation11 + $0xf90] sm:$0xff] }
 0x4ca   :  { %7921 = vmatprep.subr.bf16.mxu1 %v17410_v60  ;;  %v17091_v60 = vcombine.low %v4449_v12, %v4453_v15  ;;  %v17084_v61 = vcombine.high %v4441_v53, %v4445_v31  ;;  %v17490_v13 = vcombine.high %v4848_v16, %v4852_v32  ;;  %v17489_v44 = vcombine.low %v4848_v16, %v4852_v32  ;;  %v4649_v32 = vld [vmem:[#allocation11 + $0x958] sm:$0xff] }
 0x4cc   :  { %7969 = vmatpush1.bf16.msra.mxu0 %v17003_v42  ;;  %v4437_v42 = vld [vmem:[#allocation11 + $0x2b8] sm:$0xff] }
 0x4cd   :  { %7922 = vmatpush1.bf16.msra.mxu1 %v17409_v54  ;;  %7970 = vmatprep.subr.bf16.mxu0 %v16996_v43  ;;  %v4840_v54 = vld [vmem:[#allocation11 + $0xf50] sm:$0xff]  ;;  %v17076_v50 = vcombine.high %v4433_v21, %v4437_v42 }
 0x4ce   :  { %7923 = vmatprep.subr.bf16.mxu1 %v17402_v20  ;;  %v4844_v43 = vld [vmem:[#allocation11 + $0xf70] sm:$0xff]  ;;  %v17083_v20 = vcombine.low %v4441_v53, %v4445_v31 }
 0x4cf   :  { %v17482_v19 = vcombine.high %v4840_v54, %v4844_v43  ;;  %v17481_v55 = vcombine.low %v4840_v54, %v4844_v43 }
 0x4d0   :  { %7971 = vmatpush1.bf16.msra.mxu0 %v16995_v0  ;;  %v4429_v0 = vld [vmem:[#allocation11 + $0x278] sm:$0xff] }
 0x4d1   :  { %7924 = vmatpush1.bf16.msra.mxu1 %v17401_v35  ;;  %7972 = vmatprep.subr.bf16.mxu0 %v17116_v36  ;;  %v4832_v35 = vld [vmem:[#allocation11 + $0xf10] sm:$0xff]  ;;  %v17068_v40 = vcombine.high %v4425_v52, %v4429_v0 }
 0x4d2   :  { %7925 = vmatprep.subr.bf16.mxu1 %v17394_v46  ;;  %v4836_v36 = vld [vmem:[#allocation11 + $0xf30] sm:$0xff]  ;;  %v17075_v46 = vcombine.low %v4433_v21, %v4437_v42 }
 0x4d3   :  { %v17474_v14 = vcombine.high %v4832_v35, %v4836_v36  ;;  %v17473_v3 = vcombine.low %v4832_v35, %v4836_v36 }
 0x4d4   :  { %7973 = vmatpush2.bf16.msra.mxu0 %v17115_v57  ;;  %v4421_v57 = vld [vmem:[#allocation11 + $0x238] sm:$0xff] }
 0x4d5   :  { %7926 = vmatpush1.bf16.msra.mxu1 %v17393_v23  ;;  %7974 = vmatprep.subr.bf16.mxu0 %v17108_v59  ;;  %v4824_v23 = vld [vmem:[#allocation11 + $0xed0] sm:$0xff]  ;;  %v17060_v1 = vcombine.high %v4417_v8, %v4421_v57 }
 0x4d6   :  { %7927 = vmatprep.subr.bf16.mxu1 %v17386_v63  ;;  %v4828_v59 = vld [vmem:[#allocation11 + $0xef0] sm:$0xff]  ;;  %v17067_v63 = vcombine.low %v4425_v52, %v4429_v0  ;;  %v4537_v52 = vld [vmem:[#allocation11 + $0x5d8] sm:$0xff] }
 0x4d7   :  { %v17466_v58 = vcombine.high %v4824_v23, %v4828_v59  ;;  %v17465_v12 = vcombine.low %v4824_v23, %v4828_v59  ;;  %v4541_v0 = vld [vmem:[#allocation11 + $0x5f8] sm:$0xff] }
 0x4d8   :  { %7975 = vmatpush2.bf16.msra.mxu0 %v17107_v18  ;;  %v4669_v18 = vld [vmem:[#allocation11 + $0x9f8] sm:$0xff] }
 0x4d9   :  { %7928 = vmatpush1.bf16.msra.mxu1 %v17385_v7  ;;  %7976 = vmatprep.subr.bf16.mxu0 %v17100_v9  ;;  %v4816_v7 = vld [vmem:[#allocation11 + $0xe90] sm:$0xff]  ;;  %v17308_v15 = vcombine.high %v4665_v5, %v4669_v18  ;;  %v4637_v23 = vld [vmem:[#allocation11 + $0x8f8] sm:$0xff] }
 0x4da   :  { %7929 = vmatprep.subr.bf16.mxu1 %v17378_v11  ;;  %v4820_v9 = vld [vmem:[#allocation11 + $0xeb0] sm:$0xff]  ;;  %v17059_v11 = vcombine.low %v4417_v8, %v4421_v57  ;;  %v4533_v8 = vld [vmem:[#allocation11 + $0x5b8] sm:$0xff] }
 0x4db   :  { %v17458_v25 = vcombine.high %v4816_v7, %v4820_v9  ;;  %v17457_v53 = vcombine.low %v4816_v7, %v4820_v9  ;;  %v4633_v57 = vld [vmem:[#allocation11 + $0x8d8] sm:$0xff] }
 0x4dc   :  { %7977 = vmatpush2.bf16.msra.mxu0 %v17099_v22  ;;  %v4661_v22 = vld [vmem:[#allocation11 + $0x9b8] sm:$0xff] }
 0x4dd   :  { %7930 = vmatpush1.bf16.msra.mxu1 %v17377_v39  ;;  %7978 = vmatprep.subr.bf16.mxu0 %v17092_v28  ;;  %v4808_v39 = vld [vmem:[#allocation11 + $0xe50] sm:$0xff]  ;;  %v17300_v31 = vcombine.high %v4657_v27, %v4661_v22  ;;  %v17299_v21 = vcombine.low %v4657_v27, %v4661_v22  ;;  %v4521_v9 = vld [vmem:[#allocation11 + $0x558] sm:$0xff] }
 0x4de   :  { %7931 = vmatprep.subr.bf16.mxu1 %v17498_v30  ;;  %v4812_v28 = vld [vmem:[#allocation11 + $0xe70] sm:$0xff]  ;;  %v17307_v30 = vcombine.low %v4665_v5, %v4669_v18  ;;  %v4625_v5 = vld [vmem:[#allocation11 + $0x898] sm:$0xff] }
 0x4df   :  { %v17450_v16 = vcombine.high %v4808_v39, %v4812_v28  ;;  %v17449_v54 = vcombine.low %v4808_v39, %v4812_v28  ;;  %v4629_v18 = vld [vmem:[#allocation11 + $0x8b8] sm:$0xff] }
 0x4e0   :  { %7979 = vmatpush2.bf16.msra.mxu0 %v17091_v60  ;;  %v4653_v60 = vld [vmem:[#allocation11 + $0x978] sm:$0xff]  ;;  %v17268_v39 = vcombine.high %v4625_v5, %v4629_v18 }
 0x4e1   :  { %7932 = vmatpush2.bf16.msra.mxu1 %v17497_v51  ;;  %7980 = vmatprep.subr.bf16.mxu0 %v17084_v61  ;;  %v4800_v61 = vld [vmem:[#allocation11 + $0xe10] sm:$0xff]  ;;  %v17292_v43 = vcombine.high %v4649_v32, %v4653_v60 }
 0x4e2   :  { %7933 = vmatprep.subr.bf16.mxu1 %v17490_v13  ;;  %v4804_v13 = vld [vmem:[#allocation11 + $0xe30] sm:$0xff] }
 0x4e3   :  { %v17441_v36 = vcombine.low %v4800_v61, %v4804_v13 }
 0x4e4   :  { %7981 = vmatpush2.bf16.msra.mxu0 %v17083_v20  ;;  %v17442_v20 = vcombine.high %v4800_v61, %v4804_v13 }
 0x4e5   :  { %7934 = vmatpush2.bf16.msra.mxu1 %v17489_v44  ;;  %7982 = vmatprep.subr.bf16.mxu0 %v17076_v50  ;;  %v4641_v44 = vld [vmem:[#allocation11 + $0x918] sm:$0xff] }
 0x4e6   :  { %7935 = vmatprep.subr.bf16.mxu1 %v17482_v19  ;;  %v4645_v50 = vld [vmem:[#allocation11 + $0x938] sm:$0xff] }
 0x4e7   :  { %v17283_v59 = vcombine.low %v4641_v44, %v4645_v50 }
 0x4e8   :  { %7983 = vmatpush2.bf16.msra.mxu0 %v17075_v46  ;;  %v17180_v46 = vcombine.high %v4537_v52, %v4541_v0 }
 0x4e9   :  { %7936 = vmatpush2.bf16.msra.mxu1 %v17481_v55  ;;  %7984 = vmatprep.subr.bf16.mxu0 %v17068_v40  ;;  %v4529_v55 = vld [vmem:[#allocation11 + $0x598] sm:$0xff]  ;;  %v19488_v40 = vld [vmem:[#allocation13] sm:$0xff] }
 0x4ea   :  { %7937 = vmatprep.subr.bf16.mxu1 %v17474_v14  ;;  %v4875_v14 = vrot.slane %v19488_v40, %v19235_v47 }
 0x4ec   :  { %7985 = vmatpush2.bf16.msra.mxu0 %v17067_v63  ;;  %v4879_v63 = vrot.slane %v19488_v40, %v19241_v49  ;;  %v7663_v7 = vadd.f32 %v19468_v34, %v4875_v14  ;;  %v4617_v34 = vld [vmem:[#allocation11 + $0x858] sm:$0xff] }
 0x4ed   :  { %7938 = vmatpush2.bf16.msra.mxu1 %v17473_v3  ;;  %7986 = vmatprep.subr.bf16.mxu0 %v17060_v1  ;;  %v17179_v3 = vcombine.low %v4537_v52, %v4541_v0  ;;  %v17172_v1 = vcombine.high %v4529_v55, %v4533_v8 }
 0x4ee   :  { %7939 = vmatprep.subr.bf16.mxu1 %v17466_v58  ;;  %v17276_v58 = vcombine.high %v4633_v57, %v4637_v23  ;;  %v7665_v27 = vadd.f32 %v19472_v6, %v4879_v63  ;;  %v17267_v6 = vcombine.low %v4625_v5, %v4629_v18  ;;  %v4493_v63 = vld [vmem:[#allocation11 + $0x478] sm:$0xff] }
 0x4ef   :  { %v4713_v18 = vld [vmem:[#allocation11 + $0xb58] sm:$0xff] }
 0x4f0   :  { %7987 = vmatpush2.bf16.msra.mxu0 %v17059_v11  ;;  %v4525_v11 = vld [vmem:[#allocation11 + $0x578] sm:$0xff] }
 0x4f1   :  { %7940 = vmatpush2.bf16.msra.mxu1 %v17465_v12  ;;  %8038 = vmatprep.subr.bf16.mxu0 %v17308_v15  ;;  %v17171_v15 = vcombine.low %v4529_v55, %v4533_v8  ;;  %v17163_v13 = vcombine.low %v4521_v9, %v4525_v11 }
 0x4f2   :  { %7941 = vmatprep.subr.bf16.mxu1 %v17458_v25  ;;  %v17275_v25 = vcombine.low %v4633_v57, %v4637_v23  ;;  %v4721_v57 = vld [vmem:[#allocation11 + $0xb98] sm:$0xff] }
 0x4f3   :  { %v19482_v51 = vpop.f32.mrf.mxu0  ;;  %7989 = vmatmul.mubr.bf16.vlgmr.msra.gmra.mxu0 %v19393_v56  ;;  %v17291_v56 = vcombine.low %v4649_v32, %v4653_v60  ;;  %v4517_v32 = vld [vmem:[#allocation11 + $0x538] sm:$0xff] }
 0x4f4   :  { %8039 = vmatpush1.bf16.msra.mxu0 %v17307_v30  ;;  %8070 = vmatprep.mubr.bf16.mxu0 %v19404_v38  ;;  %v17284_v38 = vcombine.high %v4641_v44, %v4645_v50  ;;  %v17164_v30 = vcombine.high %v4521_v9, %v4525_v11  ;;  %v4613_v44 = vld [vmem:[#allocation11 + $0x838] sm:$0xff] }
 0x4f5   :  { %7942 = vmatpush2.bf16.msra.mxu1 %v17457_v53  ;;  %v19486_v42 = vpop.f32.mrf.mxu0  ;;  %8040 = vmatprep.subr.bf16.mxu0 %v17300_v31  ;;  %v4621_v53 = vld [vmem:[#allocation11 + $0x878] sm:$0xff] }
 0x4f6   :  { %7943 = vmatprep.subr.bf16.mxu1 %v17450_v16  ;;  %v4513_v16 = vld [vmem:[#allocation11 + $0x518] sm:$0xff] }
 0x4f7   :  { %v7748_v19 = vpop.f32.mrf.mxu0  ;;  %v4505_v50 = vld [vmem:[#allocation11 + $0x4d8] sm:$0xff]  ;;  %v17155_v52 = vcombine.low %v4513_v16, %v4517_v32 }
 0x4f8   :  { %8041 = vmatpush1.bf16.msra.mxu0 %v17299_v21  ;;  %v4509_v19 = vld [vmem:[#allocation11 + $0x4f8] sm:$0xff] }
 0x4f9   :  { %7944 = vmatpush2.bf16.msra.mxu1 %v17449_v54  ;;  %v7749_v35 = vpop.f32.mrf.mxu0  ;;  %8042 = vmatprep.subr.bf16.mxu0 %v17292_v43  ;;  %v17156_v43 = vcombine.high %v4513_v16, %v4517_v32  ;;  %v17147_v55 = vcombine.low %v4505_v50, %v4509_v19  ;;  %v4725_v23 = vld [vmem:[#allocation11 + $0xbb8] sm:$0xff] }
 0x4fa   :  { %7945 = vmatprep.subr.bf16.mxu1 %v17442_v20  ;;  %v4609_v20 = vld [vmem:[#allocation11 + $0x818] sm:$0xff] }
 0x4fb   :  { %v17252_v0 = vcombine.high %v4609_v20, %v4613_v44  ;;  %v4729_v35 = vld [vmem:[#allocation11 + $0xbd8] sm:$0xff] }
 0x4fc   :  { %8043 = vmatpush1.bf16.msra.mxu0 %v17291_v56  ;;  %v17148_v56 = vcombine.high %v4505_v50, %v4509_v19  ;;  %v4481_v9 = vld [vmem:[#allocation11 + $0x418] sm:$0xff] }
 0x4fd   :  { %7946 = vmatpush2.bf16.msra.mxu1 %v17441_v36  ;;  %8044 = vmatprep.subr.bf16.mxu0 %v17284_v38  ;;  %v4733_v36 = vld [vmem:[#allocation11 + $0xbf8] sm:$0xff] }
 0x4fe   :  { %7997 = vmatprep.subr.bf16.mxu1 %v17180_v46  ;;  %v4497_v38 = vld [vmem:[#allocation11 + $0x498] sm:$0xff]  ;;  %v17251_v46 = vcombine.low %v4609_v20, %v4613_v44  ;;  %v17372_v14 = vcombine.high %v4729_v35, %v4733_v36 }
 0x4ff   :  { %v4485_v11 = vld [vmem:[#allocation11 + $0x438] sm:$0xff] }
 0x500   :  { %v7703_v12 = vpop.f32.mrf.mxu1  ;;  %7948 = vmatmul.mubr.bf16.vlgmr.msra.gmra.mxu1 %v19440_v24  ;;  %8045 = vmatpush1.bf16.msra.mxu0 %v17283_v59  ;;  %v4489_v59 = vld [vmem:[#allocation11 + $0x458] sm:$0xff] }
 0x501   :  { %v7704_v22 = vadd.f32 %v7703_v12, %v7663_v7  ;;  %7998 = vmatpush1.bf16.msra.mxu1 %v17179_v3  ;;  %8029 = vmatprep.mubr.bf16.mxu1 %v19373_v4  ;;  %v17260_v4 = vcombine.high %v4617_v34, %v4621_v53  ;;  %v17371_v3 = vcombine.low %v4729_v35, %v4733_v36  ;;  %v4717_v7 = vld [vmem:[#allocation11 + $0xb78] sm:$0xff] }
 0x502   :  { %v7705_v28 = vpop.f32.mrf.mxu1  ;;  %7999 = vmatprep.subr.bf16.mxu1 %v17172_v1  ;;  %8046 = vmatprep.subr.bf16.mxu0 %v17276_v58  ;;  %v17364_v58 = vcombine.high %v4721_v57, %v4725_v23  ;;  %v17132_v5 = vcombine.high %v4489_v59, %v4493_v63  ;;  %v17363_v12 = vcombine.low %v4721_v57, %v4725_v23  ;;  %v4697_v32 = vld [vmem:[#allocation11 + $0xad8] sm:$0xff] }
 0x503   :  { %v7706_v31 = vadd.f32 %v7705_v28, %v7665_v27  ;;  %v19499_v60 = vadd.f32 %v19482_v51, %v7704_v22  ;;  %v17259_v51 = vcombine.low %v4617_v34, %v4621_v53  ;;  %v17124_v27 = vcombine.high %v4481_v9, %v4485_v11  ;;  %v4705_v22 = vld [vmem:[#allocation11 + $0xb18] sm:$0xff] }
 0x504   :  { %v7707_v61 = vpop.f32.mrf.mxu1  ;;  %8047 = vmatpush1.bf16.msra.mxu0 %v17275_v25  ;;  %v17356_v25 = vcombine.high %v4713_v18, %v4717_v7  ;;  %v4601_v28 = vld [vmem:[#allocation11 + $0x7d8] sm:$0xff]  ;;  %v17355_v34 = vcombine.low %v4713_v18, %v4717_v7  ;;  %v17123_v53 = vcombine.low %v4481_v9, %v4485_v11  ;;  %v8208_v7 = vld [vmem:[#allocation14 + $0x1c0] sm:$0xff]  ;;  %v8129_v11 = vmul.f32 0.2, %v19480_v26 }
 0x505   :  { %8000 = vmatpush1.bf16.msra.mxu1 %v17171_v15  ;;  %8048 = vmatprep.subr.bf16.mxu0 %v17268_v39  ;;  %v19502_v21 = vadd.f32 %v19486_v42, %v7706_v31  ;;  %v4501_v42 = vld [vmem:[#allocation11 + $0x4b8] sm:$0xff]  ;;  %v17131_v15 = vcombine.low %v4489_v59, %v4493_v63  ;;  %v8212_v9 = vld [vmem:[#allocation14 + $0x1e0] sm:$0xff] }
 0x506   :  { %v7708_v54 = vpop.f32.mrf.mxu1  ;;  %8001 = vmatprep.subr.bf16.mxu1 %v17164_v30  ;;  %v17140_v8 = vcombine.high %v4497_v38, %v4501_v42  ;;  %v17139_v1 = vcombine.low %v4497_v38, %v4501_v42  ;;  %v4709_v39 = vld [vmem:[#allocation11 + $0xb38] sm:$0xff] }
 0x507   :  { %v4605_v30 = vld [vmem:[#allocation11 + $0x7f8] sm:$0xff]  ;;  %v17348_v31 = vcombine.high %v4705_v22, %v4709_v39 }
 0x508   :  { %8049 = vmatpush1.bf16.msra.mxu0 %v17267_v6  ;;  %v17244_v16 = vcombine.high %v4601_v28, %v4605_v30  ;;  %v4701_v61 = vld [vmem:[#allocation11 + $0xaf8] sm:$0xff]  ;;  %v17243_v54 = vcombine.low %v4601_v28, %v4605_v30  ;;  %v8200_v28 = vld [vmem:[#allocation14 + $0x180] sm:$0xff] }
 0x509   :  { %8002 = vmatpush1.bf16.msra.mxu1 %v17163_v13  ;;  %8050 = vmatprep.subr.bf16.mxu0 %v17260_v4  ;;  %v4593_v6 = vld [vmem:[#allocation11 + $0x798] sm:$0xff]  ;;  %v17347_v4 = vcombine.low %v4705_v22, %v4709_v39  ;;  %v17558_v22 = vcombine.high %v8208_v7, %v8212_v9  ;;  %v8204_v30 = vld [vmem:[#allocation14 + $0x1a0] sm:$0xff] }
 0x50a   :  { %8003 = vmatprep.subr.bf16.mxu1 %v17156_v43  ;;  %v4597_v13 = vld [vmem:[#allocation11 + $0x7b8] sm:$0xff]  ;;  %v17340_v43 = vcombine.high %v4697_v32, %v4701_v61 }
 0x50b   :  { %v17236_v20 = vcombine.high %v4593_v6, %v4597_v13  ;;  %v4689_v44 = vld [vmem:[#allocation11 + $0xa98] sm:$0xff] }
 0x50c   :  { %8051 = vmatpush1.bf16.msra.mxu0 %v17259_v51  ;;  %v4693_v50 = vld [vmem:[#allocation11 + $0xab8] sm:$0xff] }
 0x50d   :  { %8004 = vmatpush1.bf16.msra.mxu1 %v17155_v52  ;;  %8052 = vmatprep.subr.bf16.mxu0 %v17252_v0  ;;  %v4585_v19 = vld [vmem:[#allocation11 + $0x758] sm:$0xff]  ;;  %v17339_v52 = vcombine.low %v4697_v32, %v4701_v61  ;;  %v17235_v0 = vcombine.low %v4593_v6, %v4597_v13  ;;  %v17550_v61 = vcombine.high %v8200_v28, %v8204_v30 }
 0x50e   :  { %8005 = vmatprep.subr.bf16.mxu1 %v17148_v56  ;;  %v4589_v51 = vld [vmem:[#allocation11 + $0x778] sm:$0xff]  ;;  %v17332_v56 = vcombine.high %v4689_v44, %v4693_v50 }
 0x50f   :  { %v17228_v35 = vcombine.high %v4585_v19, %v4589_v51  ;;  %v4681_v36 = vld [vmem:[#allocation11 + $0xa58] sm:$0xff] }
 0x510   :  { %8053 = vmatpush1.bf16.msra.mxu0 %v17251_v46  ;;  %v4685_v38 = vld [vmem:[#allocation11 + $0xa78] sm:$0xff] }
 0x511   :  { %8006 = vmatpush1.bf16.msra.mxu1 %v17147_v55  ;;  %8054 = vmatprep.subr.bf16.mxu0 %v17372_v14  ;;  %v4577_v42 = vld [vmem:[#allocation11 + $0x718] sm:$0xff]  ;;  %v17331_v55 = vcombine.low %v4689_v44, %v4693_v50  ;;  %v17227_v14 = vcombine.low %v4585_v19, %v4589_v51  ;;  %v17549_v44 = vcombine.low %v8200_v28, %v8204_v30  ;;  %v8160_v28 = vld [vmem:[#allocation14 + $0x40] sm:$0xff] }
 0x512   :  { %8007 = vmatprep.subr.bf16.mxu1 %v17140_v8  ;;  %v4581_v46 = vld [vmem:[#allocation11 + $0x738] sm:$0xff]  ;;  %v17324_v8 = vcombine.high %v4681_v36, %v4685_v38  ;;  %v8164_v30 = vld [vmem:[#allocation14 + $0x60] sm:$0xff] }
 0x513   :  { %v17220_v57 = vcombine.high %v4577_v42, %v4581_v46  ;;  %v4673_v23 = vld [vmem:[#allocation11 + $0xa18] sm:$0xff] }
 0x514   :  { %8055 = vmatpush2.bf16.msra.mxu0 %v17371_v3  ;;  %v4677_v59 = vld [vmem:[#allocation11 + $0xa38] sm:$0xff] }
 0x515   :  { %8008 = vmatpush1.bf16.msra.mxu1 %v17139_v1  ;;  %8056 = vmatprep.subr.bf16.mxu0 %v17364_v58  ;;  %v4569_v63 = vld [vmem:[#allocation11 + $0x6d8] sm:$0xff]  ;;  %v17323_v1 = vcombine.low %v4681_v36, %v4685_v38  ;;  %v17219_v58 = vcombine.low %v4577_v42, %v4581_v46 }
 0x516   :  { %8009 = vmatprep.subr.bf16.mxu1 %v17132_v5  ;;  %v4573_v3 = vld [vmem:[#allocation11 + $0x6f8] sm:$0xff]  ;;  %v17316_v5 = vcombine.high %v4673_v23, %v4677_v59 }
 0x517   :  { %v17212_v18 = vcombine.high %v4569_v63, %v4573_v3  ;;  %v4793_v36 = vld [vmem:[#allocation11 + $0xdd8] sm:$0xff] }
 0x518   :  { %8057 = vmatpush2.bf16.msra.mxu0 %v17363_v12  ;;  %v4561_v12 = vld [vmem:[#allocation11 + $0x698] sm:$0xff] }
 0x519   :  { %8010 = vmatpush1.bf16.msra.mxu1 %v17131_v15  ;;  %8058 = vmatprep.subr.bf16.mxu0 %v17356_v25  ;;  %v4565_v15 = vld [vmem:[#allocation11 + $0x6b8] sm:$0xff]  ;;  %v17315_v25 = vcombine.low %v4673_v23, %v4677_v59  ;;  %v8176_v23 = vld [vmem:[#allocation14 + $0xc0] sm:$0xff] }
 0x51a   :  { %8011 = vmatprep.subr.bf16.mxu1 %v17124_v27  ;;  %v17211_v27 = vcombine.low %v4569_v63, %v4573_v3  ;;  %v17204_v39 = vcombine.high %v4561_v12, %v4565_v15  ;;  %v17203_v32 = vcombine.low %v4561_v12, %v4565_v15  ;;  %v4797_v38 = vld [vmem:[#allocation11 + $0xdf8] sm:$0xff]  ;;  %v8180_v59 = vld [vmem:[#allocation14 + $0xe0] sm:$0xff] }
 0x51b   :  { %v17435_v3 = vcombine.low %v4793_v36, %v4797_v38  ;;  %v17525_v12 = vcombine.low %v8176_v23, %v8180_v59 }
 0x51c   :  { %8059 = vmatpush2.bf16.msra.mxu0 %v17355_v34  ;;  %v8137_v34 = vsel %vm8121_vm1, %v19480_v26, %v8129_v11  ;;  %v4549_v26 = vld [vmem:[#allocation11 + $0x638] sm:$0xff] }
 0x51d   :  { %8012 = vmatpush1.bf16.msra.mxu1 %v17123_v53  ;;  %8060 = vmatprep.subr.bf16.mxu0 %v17348_v31  ;;  %v4553_v53 = vld [vmem:[#allocation11 + $0x658] sm:$0xff]  ;;  %v19507_v6 = vpack.c.bf16 %v8137_v34, %v8137_v34 }
 0x51e   :  { %8013 = vmatprep.subr.bf16.mxu1 %v17244_v16  ;;  %v4557_v31 = vld [vmem:[#allocation11 + $0x678] sm:$0xff]  ;;  %v17557_v16 = vcombine.low %v8208_v7, %v8212_v9 }
 0x51f   :  { %v17196_v13 = vcombine.high %v4553_v53, %v4557_v31  ;;  %v17195_v19 = vcombine.low %v4553_v53, %v4557_v31  ;;  %v4777_v7 = vld [vmem:[#allocation11 + $0xd58] sm:$0xff] }
 0x520   :  { %8061 = vmatpush2.bf16.msra.mxu0 %v17347_v4  ;;  %v8192_v4 = vld [vmem:[#allocation14 + $0x140] sm:$0xff]  ;;  %v4781_v9 = vld [vmem:[#allocation11 + $0xd78] sm:$0xff] }
 0x521   :  { %8014 = vmatpush2.bf16.msra.mxu1 %v17243_v54  ;;  %8062 = vmatprep.subr.bf16.mxu0 %v17340_v43  ;;  %v8196_v54 = vld [vmem:[#allocation14 + $0x160] sm:$0xff]  ;;  %v4769_v34 = vld [vmem:[#allocation11 + $0xd18] sm:$0xff] }
 0x522   :  { %8015 = vmatprep.subr.bf16.mxu1 %v17236_v20  ;;  %v4545_v20 = vld [vmem:[#allocation11 + $0x618] sm:$0xff]  ;;  %v17542_v51 = vcombine.high %v8192_v4, %v8196_v54 }
 0x523   :  { %v17187_v46 = vcombine.low %v4545_v20, %v4549_v26  ;;  %v4773_v53 = vld [vmem:[#allocation11 + $0xd38] sm:$0xff] }
 0x524   :  { %8063 = vmatpush2.bf16.msra.mxu0 %v17339_v52  ;;  %v17188_v52 = vcombine.high %v4545_v20, %v4549_v26  ;;  %v17509_v20 = vcombine.low %v8160_v28, %v8164_v30  ;;  %v17411_v26 = vcombine.low %v4769_v34, %v4773_v53 }
 0x525   :  { %8016 = vmatpush2.bf16.msra.mxu1 %v17235_v0  ;;  %8064 = vmatprep.subr.bf16.mxu0 %v17332_v56  ;;  %v8184_v0 = vld [vmem:[#allocation14 + $0x100] sm:$0xff] }
 0x526   :  { %8017 = vmatprep.subr.bf16.mxu1 %v17228_v35  ;;  %v8188_v56 = vld [vmem:[#allocation14 + $0x120] sm:$0xff] }
 0x527   :  { %v17533_v63 = vcombine.low %v8184_v0, %v8188_v56 }
 0x528   :  { %8065 = vmatpush2.bf16.msra.mxu0 %v17331_v55  ;;  %v17534_v55 = vcombine.high %v8184_v0, %v8188_v56  ;;  %v4753_v0 = vld [vmem:[#allocation11 + $0xc98] sm:$0xff] }
 0x529   :  { %8018 = vmatpush2.bf16.msra.mxu1 %v17227_v14  ;;  %8066 = vmatprep.subr.bf16.mxu0 %v17324_v8  ;;  %v17436_v14 = vcombine.high %v4793_v36, %v4797_v38  ;;  %v4785_v8 = vld [vmem:[#allocation11 + $0xd98] sm:$0xff] }
 0x52a   :  { %8019 = vmatprep.subr.bf16.mxu1 %v17220_v57  ;;  %v4789_v57 = vld [vmem:[#allocation11 + $0xdb8] sm:$0xff] }
 0x52b   :  { %v4757_v56 = vld [vmem:[#allocation11 + $0xcb8] sm:$0xff] }
 0x52c   :  { %8067 = vmatpush2.bf16.msra.mxu0 %v17323_v1  ;;  %v17428_v1 = vcombine.high %v4785_v8, %v4789_v57 }
 0x52d   :  { %8020 = vmatpush2.bf16.msra.mxu1 %v17219_v58  ;;  %8068 = vmatprep.subr.bf16.mxu0 %v17316_v5  ;;  %v17526_v58 = vcombine.high %v8176_v23, %v8180_v59  ;;  %v8168_v5 = vld [vmem:[#allocation14 + $0x80] sm:$0xff] }
 0x52e   :  { %8021 = vmatprep.subr.bf16.mxu1 %v17212_v18  ;;  %v8172_v18 = vld [vmem:[#allocation14 + $0xa0] sm:$0xff] }
 0x52f   :  { %v17517_v31 = vcombine.low %v8168_v5, %v8172_v18 }
 0x530   :  { %8069 = vmatpush2.bf16.msra.mxu0 %v17315_v25  ;;  %v17427_v25 = vcombine.low %v4785_v8, %v4789_v57  ;;  %v17395_v57 = vcombine.low %v4753_v0, %v4757_v56 }
 0x531   :  { %8022 = vmatpush2.bf16.msra.mxu1 %v17211_v27  ;;  %11266 = vmatprep.subr.bf16.mxu0 %v17558_v22  ;;  %v17518_v27 = vcombine.high %v8168_v5, %v8172_v18 }
 0x532   :  { %8023 = vmatprep.subr.bf16.mxu1 %v17204_v39  ;;  %v17420_v39 = vcombine.high %v4777_v7, %v4781_v9 }
 0x533   :  { %v19509_v43 = vpop.f32.mrf.mxu0  ;;  %8071 = vmatmul.mubr.bf16.vlgmr.msra.gmra.mxu0 %v19418_v37  ;;  %v17541_v37 = vcombine.low %v8192_v4, %v8196_v54  ;;  %v4761_v4 = vld [vmem:[#allocation11 + $0xcd8] sm:$0xff] }
 0x534   :  { %11267 = vmatpush1.bf16.msra.mxu0 %v17557_v16  ;;  %11298 = vmatprep.mubr.bf16.mxu0 %v19507_v6  ;;  %v17510_v16 = vcombine.high %v8160_v28, %v8164_v30  ;;  %v4765_v54 = vld [vmem:[#allocation11 + $0xcf8] sm:$0xff] }
 0x535   :  { %8024 = vmatpush2.bf16.msra.mxu1 %v17203_v32  ;;  %v19513_v50 = vpop.f32.mrf.mxu0  ;;  %11268 = vmatprep.subr.bf16.mxu0 %v17550_v61  ;;  %v8152_v61 = vld [vmem:[#allocation14] sm:$0xff]  ;;  %v17403_v36 = vcombine.low %v4761_v4, %v4765_v54 }
 0x536   :  { %8025 = vmatprep.subr.bf16.mxu1 %v17196_v13  ;;  %v8156_v13 = vld [vmem:[#allocation14 + $0x20] sm:$0xff] }
 0x537   :  { %v7830_v35 = vpop.f32.mrf.mxu0 }
 0x538   :  { %11269 = vmatpush1.bf16.msra.mxu0 %v17549_v44  ;;  %v17502_v44 = vcombine.high %v8152_v61, %v8156_v13  ;;  %v17501_v35 = vcombine.low %v8152_v61, %v8156_v13  ;;  %v8232_v13 = vld [vmem:[#allocation14 + $0x280] sm:$0xff] }
 0x539   :  { %8026 = vmatpush2.bf16.msra.mxu1 %v17195_v19  ;;  %v7831_v42 = vpop.f32.mrf.mxu0  ;;  %11270 = vmatprep.subr.bf16.mxu0 %v17542_v51  ;;  %v17404_v19 = vcombine.high %v4761_v4, %v4765_v54  ;;  %v8272_v51 = vld [vmem:[#allocation14 + $0x3c0] sm:$0xff]  ;;  %v4841_v54 = vld [vmem:[#allocation11 + $0xf58] sm:$0xff] }
 0x53a   :  { %8027 = vmatprep.subr.bf16.mxu1 %v17188_v52  ;;  %v8276_v52 = vld [vmem:[#allocation14 + $0x3e0] sm:$0xff] }
 0x53b   :  { %v17622_v38 = vcombine.high %v8272_v51, %v8276_v52  ;;  %v8264_v42 = vld [vmem:[#allocation14 + $0x380] sm:$0xff]  ;;  %v17621_v8 = vcombine.low %v8272_v51, %v8276_v52 }
 0x53c   :  { %11271 = vmatpush1.bf16.msra.mxu0 %v17541_v37  ;;  %v17396_v37 = vcombine.high %v4753_v0, %v4757_v56  ;;  %v8236_v4 = vld [vmem:[#allocation14 + $0x2a0] sm:$0xff]  ;;  %v4833_v56 = vld [vmem:[#allocation11 + $0xf18] sm:$0xff] }
 0x53d   :  { %8028 = vmatpush2.bf16.msra.mxu1 %v17187_v46  ;;  %11272 = vmatprep.subr.bf16.mxu0 %v17534_v55  ;;  %v8268_v46 = vld [vmem:[#allocation14 + $0x3a0] sm:$0xff]  ;;  %v4745_v55 = vld [vmem:[#allocation11 + $0xc58] sm:$0xff] }
 0x53e   :  { %8079 = vmatprep.subr.bf16.mxu1 %v17436_v14  ;;  %v4749_v14 = vld [vmem:[#allocation11 + $0xc78] sm:$0xff]  ;;  %v17614_v23 = vcombine.high %v8264_v42, %v8268_v46  ;;  %v17613_v5 = vcombine.low %v8264_v42, %v8268_v46  ;;  %v8224_v52 = vld [vmem:[#allocation14 + $0x240] sm:$0xff] }
 0x53f   :  { %v17388_v59 = vcombine.high %v4745_v55, %v4749_v14  ;;  %v17387_v18 = vcombine.low %v4745_v55, %v4749_v14  ;;  %v8228_v0 = vld [vmem:[#allocation14 + $0x260] sm:$0xff]  ;;  %v4825_v14 = vld [vmem:[#allocation11 + $0xed8] sm:$0xff] }
 0x540   :  { %v7785_v11 = vpop.f32.mrf.mxu1  ;;  %8030 = vmatmul.mubr.bf16.vlgmr.msra.gmra.mxu1 %v19395_v41  ;;  %11273 = vmatpush1.bf16.msra.mxu0 %v17533_v63  ;;  %v8256_v63 = vld [vmem:[#allocation14 + $0x340] sm:$0xff] }
 0x541   :  { %v19517_v15 = vadd.f32 %v7785_v11, %v19499_v60  ;;  %8080 = vmatpush1.bf16.msra.mxu1 %v17435_v3  ;;  %8111 = vmatprep.mubr.bf16.mxu1 %v19438_v17  ;;  %v17419_v60 = vcombine.low %v4777_v7, %v4781_v9  ;;  %v17412_v17 = vcombine.high %v4769_v34, %v4773_v53  ;;  %v8260_v3 = vld [vmem:[#allocation14 + $0x360] sm:$0xff] }
 0x542   :  { %v19520_v22 = vpop.f32.mrf.mxu1  ;;  %8081 = vmatprep.subr.bf16.mxu1 %v17428_v1  ;;  %11274 = vmatprep.subr.bf16.mxu0 %v17526_v58  ;;  %v4737_v1 = vld [vmem:[#allocation11 + $0xc18] sm:$0xff]  ;;  %v17606_v7 = vcombine.high %v8256_v63, %v8260_v3  ;;  %v8248_v11 = vld [vmem:[#allocation14 + $0x300] sm:$0xff] }
 0x543   :  { %v4741_v58 = vld [vmem:[#allocation11 + $0xc38] sm:$0xff]  ;;  %v8240_v53 = vld [vmem:[#allocation14 + $0x2c0] sm:$0xff]  ;;  %vm8122_vm4 = vcmp.gt.f32.partialorder %v19517_v15, 0.0 }
 0x544   :  { %v7789_v41 = vpop.f32.mrf.mxu1  ;;  %11275 = vmatpush1.bf16.msra.mxu0 %v17525_v12  ;;  %v17380_v9 = vcombine.high %v4737_v1, %v4741_v58  ;;  %v8252_v12 = vld [vmem:[#allocation14 + $0x320] sm:$0xff]  ;;  %v17379_v28 = vcombine.low %v4737_v1, %v4741_v58 }
 0x545   :  { %8082 = vmatpush1.bf16.msra.mxu1 %v17427_v25  ;;  %11276 = vmatprep.subr.bf16.mxu0 %v17518_v27  ;;  %v4857_v25 = vld [vmem:[#allocation11 + $0xfd8] sm:$0xff]  ;;  %v17598_v30 = vcombine.high %v8248_v11, %v8252_v12  ;;  %v8244_v41 = vld [vmem:[#allocation14 + $0x2e0] sm:$0xff] }
 0x546   :  { %v7790_v32 = vpop.f32.mrf.mxu1  ;;  %8083 = vmatprep.subr.bf16.mxu1 %v17420_v39  ;;  %v4861_v27 = vld [vmem:[#allocation11 + $0xff8] sm:$0xff]  ;;  %v17605_v39 = vcombine.low %v8256_v63, %v8260_v3  ;;  %v8216_v46 = vld [vmem:[#allocation14 + $0x200] sm:$0xff]  ;;  %v8128_v63 = vmul.f32 0.2, %v19476_v10 }
 0x547   :  { %v17500_v34 = vcombine.high %v4857_v25, %v4861_v27  ;;  %v17499_v32 = vcombine.low %v4857_v25, %v4861_v27  ;;  %v8220_v55 = vld [vmem:[#allocation14 + $0x220] sm:$0xff] }
 0x548   :  { %11277 = vmatpush1.bf16.msra.mxu0 %v17517_v31  ;;  %v4849_v31 = vld [vmem:[#allocation11 + $0xf98] sm:$0xff]  ;;  %v8464_v1 = vld [vmem:[#allocation14 + $0x9c0] sm:$0xff] }
 0x549   :  { %8084 = vmatpush1.bf16.msra.mxu1 %v17419_v60  ;;  %11278 = vmatprep.subr.bf16.mxu0 %v17510_v16  ;;  %v4853_v60 = vld [vmem:[#allocation11 + $0xfb8] sm:$0xff]  ;;  %v17597_v16 = vcombine.low %v8248_v11, %v8252_v12  ;;  %v8468_v58 = vld [vmem:[#allocation14 + $0x9e0] sm:$0xff]  ;;  %v8136_v12 = vsel %vm8120_vm2, %v19476_v10, %v8128_v63 }
 0x54a   :  { %8085 = vmatprep.subr.bf16.mxu1 %v17412_v17  ;;  %v17590_v17 = vcombine.high %v8240_v53, %v8244_v41  ;;  %v17492_v61 = vcombine.high %v4849_v31, %v4853_v60  ;;  %v17814_v11 = vcombine.high %v8464_v1, %v8468_v58  ;;  %v8456_v27 = vld [vmem:[#allocation14 + $0x980] sm:$0xff]  ;;  %v4801_v10 = vld [vmem:[#allocation11 + $0xe18] sm:$0xff] }
 0x54c   :  { %11279 = vmatpush1.bf16.msra.mxu0 %v17509_v20  ;;  %v4845_v20 = vld [vmem:[#allocation11 + $0xf78] sm:$0xff] }
 0x54d   :  { %8086 = vmatpush1.bf16.msra.mxu1 %v17411_v26  ;;  %11280 = vmatprep.subr.bf16.mxu0 %v17502_v44  ;;  %v17589_v26 = vcombine.low %v8240_v53, %v8244_v41  ;;  %v17491_v44 = vcombine.low %v4849_v31, %v4853_v60  ;;  %v17484_v51 = vcombine.high %v4841_v54, %v4845_v20 }
 0x54e   :  { %8087 = vmatprep.subr.bf16.mxu1 %v17404_v19  ;;  %v17582_v19 = vcombine.high %v8232_v13, %v8236_v4  ;;  %v19525_v53 = vpack.c.bf16 %v8136_v12, %v8136_v12 }
 0x550   :  { %11281 = vmatpush1.bf16.msra.mxu0 %v17501_v35  ;;  %v4837_v35 = vld [vmem:[#allocation11 + $0xf38] sm:$0xff] }
 0x551   :  { %8088 = vmatpush1.bf16.msra.mxu1 %v17403_v36  ;;  %11282 = vmatprep.subr.bf16.mxu0 %v17622_v38  ;;  %v17581_v36 = vcombine.low %v8232_v13, %v8236_v4  ;;  %v17483_v38 = vcombine.low %v4841_v54, %v4845_v20  ;;  %v17476_v42 = vcombine.high %v4833_v56, %v4837_v35 }
 0x552   :  { %8089 = vmatprep.subr.bf16.mxu1 %v17396_v37  ;;  %v17574_v37 = vcombine.high %v8224_v52, %v8228_v0  ;;  %v7788_v13 = vadd.f32 %v19520_v22, %v19502_v21 }
 0x554   :  { %11283 = vmatpush2.bf16.msra.mxu0 %v17621_v8  ;;  %v4829_v8 = vld [vmem:[#allocation11 + $0xef8] sm:$0xff]  ;;  %vm8123_vm3 = vcmp.gt.f32.partialorder %v7788_v13, 0.0 }
 0x555   :  { %8090 = vmatpush1.bf16.msra.mxu1 %v17395_v57  ;;  %11284 = vmatprep.subr.bf16.mxu0 %v17614_v23  ;;  %v17573_v57 = vcombine.low %v8224_v52, %v8228_v0  ;;  %v17475_v23 = vcombine.low %v4833_v56, %v4837_v35  ;;  %v17468_v3 = vcombine.high %v4825_v14, %v4829_v8  ;;  %v8336_v0 = vld [vmem:[#allocation14 + $0x5c0] sm:$0xff]  ;;  %v8131_v35 = vmul.f32 0.2, %v7788_v13 }
 0x556   :  { %8091 = vmatprep.subr.bf16.mxu1 %v17388_v59  ;;  %v17566_v59 = vcombine.high %v8216_v46, %v8220_v55  ;;  %v8340_v56 = vld [vmem:[#allocation14 + $0x5e0] sm:$0xff] }
 0x557   :  { %v17685_v63 = vcombine.low %v8336_v0, %v8340_v56 }
 0x558   :  { %11285 = vmatpush2.bf16.msra.mxu0 %v17613_v5  ;;  %v4817_v5 = vld [vmem:[#allocation11 + $0xe98] sm:$0xff] }
 0x559   :  { %8092 = vmatpush1.bf16.msra.mxu1 %v17387_v18  ;;  %11286 = vmatprep.subr.bf16.mxu0 %v17606_v7  ;;  %v4821_v18 = vld [vmem:[#allocation11 + $0xeb8] sm:$0xff]  ;;  %v17565_v7 = vcombine.low %v8216_v46, %v8220_v55  ;;  %v4883_v46 = vrot.slane %v19488_v40, %v19290_v29  ;;  %v8332_v55 = vld [vmem:[#allocation14 + $0x5a0] sm:$0xff] }
 0x55a   :  { %8093 = vmatprep.subr.bf16.mxu1 %v17380_v9  ;;  %v17467_v9 = vcombine.low %v4825_v14, %v4829_v8  ;;  %v17460_v25 = vcombine.high %v4817_v5, %v4821_v18  ;;  %v17459_v41 = vcombine.low %v4817_v5, %v4821_v18  ;;  %v8432_v14 = vld [vmem:[#allocation14 + $0x8c0] sm:$0xff] }
 0x55b   :  { %v8436_v8 = vld [vmem:[#allocation14 + $0x8e0] sm:$0xff]  ;;  %v7827_v18 = vadd.f32 %v19509_v43, %v4883_v46 }
 0x55c   :  { %11287 = vmatpush2.bf16.msra.mxu0 %v17605_v39  ;;  %v8460_v39 = vld [vmem:[#allocation14 + $0x9a0] sm:$0xff] }
 0x55d   :  { %8094 = vmatpush1.bf16.msra.mxu1 %v17379_v28  ;;  %11288 = vmatprep.subr.bf16.mxu0 %v17598_v30  ;;  %v4809_v28 = vld [vmem:[#allocation11 + $0xe58] sm:$0xff]  ;;  %v17806_v31 = vcombine.high %v8456_v27, %v8460_v39  ;;  %v17805_v4 = vcombine.low %v8456_v27, %v8460_v39  ;;  %v8428_v5 = vld [vmem:[#allocation14 + $0x8a0] sm:$0xff] }
 0x55e   :  { %8095 = vmatprep.subr.bf16.mxu1 %v17500_v34  ;;  %v4813_v30 = vld [vmem:[#allocation11 + $0xe78] sm:$0xff]  ;;  %v17813_v34 = vcombine.low %v8464_v1, %v8468_v58  ;;  %v17782_v1 = vcombine.high %v8432_v14, %v8436_v8  ;;  %v8424_v58 = vld [vmem:[#allocation14 + $0x880] sm:$0xff] }
 0x55f   :  { %v17452_v60 = vcombine.high %v4809_v28, %v4813_v30  ;;  %v17451_v20 = vcombine.low %v4809_v28, %v4813_v30  ;;  %v17774_v28 = vcombine.high %v8424_v58, %v8428_v5  ;;  %v8520_v46 = vld [vmem:[#allocation14 + $0xb80] sm:$0xff] }
 0x560   :  { %11289 = vmatpush2.bf16.msra.mxu0 %v17597_v16  ;;  %v8448_v16 = vld [vmem:[#allocation14 + $0x940] sm:$0xff] }
 0x561   :  { %8096 = vmatpush2.bf16.msra.mxu1 %v17499_v32  ;;  %11290 = vmatprep.subr.bf16.mxu0 %v17590_v17  ;;  %v8452_v32 = vld [vmem:[#allocation14 + $0x960] sm:$0xff] }
 0x562   :  { %8097 = vmatprep.subr.bf16.mxu1 %v17492_v61  ;;  %v4805_v61 = vld [vmem:[#allocation11 + $0xe38] sm:$0xff] }
 0x563   :  { %v17443_v22 = vcombine.low %v4801_v10, %v4805_v61 }
 0x564   :  { %11291 = vmatpush2.bf16.msra.mxu0 %v17589_v26  ;;  %v17798_v26 = vcombine.high %v8448_v16, %v8452_v32 }
 0x565   :  { %8098 = vmatpush2.bf16.msra.mxu1 %v17491_v44  ;;  %11292 = vmatprep.subr.bf16.mxu0 %v17582_v19  ;;  %v17444_v44 = vcombine.high %v4801_v10, %v4805_v61  ;;  %v8440_v19 = vld [vmem:[#allocation14 + $0x900] sm:$0xff] }
 0x566   :  { %8099 = vmatprep.subr.bf16.mxu1 %v17484_v51  ;;  %v8444_v51 = vld [vmem:[#allocation14 + $0x920] sm:$0xff] }
 0x568   :  { %11293 = vmatpush2.bf16.msra.mxu0 %v17581_v36  ;;  %v17797_v36 = vcombine.low %v8448_v16, %v8452_v32  ;;  %v8316_v16 = vld [vmem:[#allocation14 + $0x520] sm:$0xff] }
 0x569   :  { %8100 = vmatpush2.bf16.msra.mxu1 %v17483_v38  ;;  %11294 = vmatprep.subr.bf16.mxu0 %v17574_v37  ;;  %v17790_v38 = vcombine.high %v8440_v19, %v8444_v51  ;;  %v17686_v37 = vcombine.high %v8336_v0, %v8340_v56 }
 0x56a   :  { %8101 = vmatprep.subr.bf16.mxu1 %v17476_v42  ;;  %v8328_v42 = vld [vmem:[#allocation14 + $0x580] sm:$0xff] }
 0x56c   :  { %11295 = vmatpush2.bf16.msra.mxu0 %v17573_v57  ;;  %v8139_v57 = vsel %vm8123_vm3, %v7788_v13, %v8131_v35  ;;  %v8528_v35 = vld [vmem:[#allocation14 + $0xbc0] sm:$0xff] }
 0x56d   :  { %8102 = vmatpush2.bf16.msra.mxu1 %v17475_v23  ;;  %11296 = vmatprep.subr.bf16.mxu0 %v17566_v59  ;;  %v17789_v23 = vcombine.low %v8440_v19, %v8444_v51  ;;  %v4887_v59 = vrot.slane %v19488_v40, %v19252_v62  ;;  %v17781_v40 = vcombine.low %v8432_v14, %v8436_v8  ;;  %v8304_v19 = vld [vmem:[#allocation14 + $0x4c0] sm:$0xff] }
 0x56e   :  { %8103 = vmatprep.subr.bf16.mxu1 %v17468_v3  ;;  %v17678_v3 = vcombine.high %v8328_v42, %v8332_v55  ;;  %v8308_v51 = vld [vmem:[#allocation14 + $0x4e0] sm:$0xff] }
 0x56f   :  { %v7829_v27 = vadd.f32 %v19513_v50, %v4887_v59  ;;  %v17773_v50 = vcombine.low %v8424_v58, %v8428_v5  ;;  %v17654_v56 = vcombine.high %v8304_v19, %v8308_v51  ;;  %v8288_v14 = vld [vmem:[#allocation14 + $0x440] sm:$0xff] }
 0x570   :  { %11297 = vmatpush2.bf16.msra.mxu0 %v17565_v7  ;;  %v19539_v7 = vpack.c.bf16 %v8139_v57, %v8139_v57  ;;  %v8292_v8 = vld [vmem:[#allocation14 + $0x460] sm:$0xff] }
 0x571   :  { %8104 = vmatpush2.bf16.msra.mxu1 %v17467_v9  ;;  %11348 = vmatprep.subr.bf16.mxu0 %v17814_v11  ;;  %v8320_v9 = vld [vmem:[#allocation14 + $0x540] sm:$0xff] }
 0x572   :  { %8105 = vmatprep.subr.bf16.mxu1 %v17460_v25  ;;  %v8324_v11 = vld [vmem:[#allocation14 + $0x560] sm:$0xff]  ;;  %v17677_v25 = vcombine.low %v8328_v42, %v8332_v55 }
 0x573   :  { %v19527_v17 = vpop.f32.mrf.mxu0  ;;  %11299 = vmatmul.mubr.bf16.vlgmr.msra.gmra.mxu0 %v19525_v53  ;;  %v17670_v43 = vcombine.high %v8320_v9, %v8324_v11  ;;  %v17669_v10 = vcombine.low %v8320_v9, %v8324_v11  ;;  %v8524_v55 = vld [vmem:[#allocation14 + $0xba0] sm:$0xff]  ;;  %v17637_v9 = vcombine.low %v8288_v14, %v8292_v8 }
 0x574   :  { %11349 = vmatpush1.bf16.msra.mxu0 %v17813_v34  ;;  %v8416_v34 = vld [vmem:[#allocation14 + $0x840] sm:$0xff]  ;;  %v17870_v59 = vcombine.high %v8520_v46, %v8524_v55 }
 0x575   :  { %8106 = vmatpush2.bf16.msra.mxu1 %v17459_v41  ;;  %v19532_v54 = vpop.f32.mrf.mxu0  ;;  %11350 = vmatprep.subr.bf16.mxu0 %v17806_v31  ;;  %v8420_v41 = vld [vmem:[#allocation14 + $0x860] sm:$0xff] }
 0x576   :  { %8107 = vmatprep.subr.bf16.mxu1 %v17452_v60  ;;  %v8312_v60 = vld [vmem:[#allocation14 + $0x500] sm:$0xff]  ;;  %v17766_v61 = vcombine.high %v8416_v34, %v8420_v41 }
 0x577   :  { %v7912_v52 = vpop.f32.mrf.mxu0  ;;  %v8280_v58 = vld [vmem:[#allocation14 + $0x400] sm:$0xff] }
 0x578   :  { %11351 = vmatpush1.bf16.msra.mxu0 %v17805_v4  ;;  %v17661_v52 = vcombine.low %v8312_v60, %v8316_v16  ;;  %v8284_v5 = vld [vmem:[#allocation14 + $0x420] sm:$0xff] }
 0x579   :  { %8108 = vmatpush2.bf16.msra.mxu1 %v17451_v20  ;;  %v7913_v21 = vpop.f32.mrf.mxu0  ;;  %11352 = vmatprep.subr.bf16.mxu0 %v17798_v26  ;;  %v17662_v20 = vcombine.high %v8312_v60, %v8316_v16  ;;  %v8408_v26 = vld [vmem:[#allocation14 + $0x800] sm:$0xff] }
 0x57a   :  { %8109 = vmatprep.subr.bf16.mxu1 %v17444_v44  ;;  %v8412_v44 = vld [vmem:[#allocation14 + $0x820] sm:$0xff] }
 0x57b   :  { %v17758_v0 = vcombine.high %v8408_v26, %v8412_v44  ;;  %v8296_v21 = vld [vmem:[#allocation14 + $0x480] sm:$0xff] }
 0x57c   :  { %11353 = vmatpush1.bf16.msra.mxu0 %v17797_v36  ;;  %v8532_v36 = vld [vmem:[#allocation14 + $0xbe0] sm:$0xff] }
 0x57d   :  { %8110 = vmatpush2.bf16.msra.mxu1 %v17443_v22  ;;  %11354 = vmatprep.subr.bf16.mxu0 %v17790_v38  ;;  %v17757_v22 = vcombine.low %v8408_v26, %v8412_v44  ;;  %v17653_v38 = vcombine.low %v8304_v19, %v8308_v51  ;;  %v17877_v57 = vcombine.low %v8528_v35, %v8532_v36  ;;  %v8392_v60 = vld [vmem:[#allocation14 + $0x780] sm:$0xff] }
 0x57e   :  { %11307 = vmatprep.subr.bf16.mxu1 %v17686_v37  ;;  %v17878_v37 = vcombine.high %v8528_v35, %v8532_v36  ;;  %v8396_v16 = vld [vmem:[#allocation14 + $0x7a0] sm:$0xff] }
 0x57f   :  { %v8384_v26 = vld [vmem:[#allocation14 + $0x740] sm:$0xff]  ;;  %v17741_v51 = vcombine.low %v8392_v60, %v8396_v16 }
 0x580   :  { %v7867_v12 = vpop.f32.mrf.mxu1  ;;  %8112 = vmatmul.mubr.bf16.vlgmr.msra.gmra.mxu1 %v19440_v24  ;;  %11355 = vmatpush1.bf16.msra.mxu0 %v17789_v23  ;;  %v8388_v44 = vld [vmem:[#allocation14 + $0x760] sm:$0xff] }
 0x581   :  { %v7868_v39 = vadd.f32 %v7867_v12, %v7827_v18  ;;  %11308 = vmatpush1.bf16.msra.mxu1 %v17685_v63  ;;  %11339 = vmatprep.mubr.bf16.mxu1 %v19539_v7  ;;  %v17638_v63 = vcombine.high %v8288_v14, %v8292_v8  ;;  %v17869_v18 = vcombine.low %v8520_v46, %v8524_v55  ;;  %v8376_v35 = vld [vmem:[#allocation14 + $0x700] sm:$0xff] }
 0x582   :  { %v7869_v30 = vpop.f32.mrf.mxu1  ;;  %11309 = vmatprep.subr.bf16.mxu1 %v17678_v3  ;;  %11356 = vmatprep.subr.bf16.mxu0 %v17782_v1  ;;  %v8512_v3 = vld [vmem:[#allocation14 + $0xb40] sm:$0xff]  ;;  %v17630_v12 = vcombine.high %v8280_v58, %v8284_v5 }
 0x583   :  { %v7870_v31 = vadd.f32 %v7869_v30, %v7829_v27  ;;  %v19545_v24 = vadd.f32 %v19527_v17, %v7868_v39  ;;  %v17765_v17 = vcombine.low %v8416_v34, %v8420_v41  ;;  %v8516_v1 = vld [vmem:[#allocation14 + $0xb60] sm:$0xff]  ;;  %v17629_v30 = vcombine.low %v8280_v58, %v8284_v5 }
 0x584   :  { %v7871_v32 = vpop.f32.mrf.mxu1  ;;  %11357 = vmatpush1.bf16.msra.mxu0 %v17781_v40  ;;  %v17862_v11 = vcombine.high %v8512_v3, %v8516_v1  ;;  %v8508_v40 = vld [vmem:[#allocation14 + $0xb20] sm:$0xff] }
 0x585   :  { %11310 = vmatpush1.bf16.msra.mxu1 %v17677_v25  ;;  %11358 = vmatprep.subr.bf16.mxu0 %v17774_v28  ;;  %v19548_v13 = vadd.f32 %v19532_v54, %v7870_v31  ;;  %v8300_v54 = vld [vmem:[#allocation14 + $0x4a0] sm:$0xff]  ;;  %v17861_v28 = vcombine.low %v8512_v3, %v8516_v1 }
 0x586   :  { %v7872_v4 = vpop.f32.mrf.mxu1  ;;  %11311 = vmatprep.subr.bf16.mxu1 %v17670_v43  ;;  %v17646_v42 = vcombine.high %v8296_v21, %v8300_v54  ;;  %v17645_v23 = vcombine.low %v8296_v21, %v8300_v54  ;;  %v8504_v25 = vld [vmem:[#allocation14 + $0xb00] sm:$0xff]  ;;  %v17733_v54 = vcombine.low %v8384_v26, %v8388_v44 }
 0x587   :  { %v8400_v27 = vld [vmem:[#allocation14 + $0x7c0] sm:$0xff]  ;;  %v17854_v43 = vcombine.high %v8504_v25, %v8508_v40  ;;  %v17853_v32 = vcombine.low %v8504_v25, %v8508_v40 }
 0x588   :  { %11359 = vmatpush1.bf16.msra.mxu0 %v17773_v50  ;;  %v8404_v39 = vld [vmem:[#allocation14 + $0x7e0] sm:$0xff] }
 0x589   :  { %11312 = vmatpush1.bf16.msra.mxu1 %v17669_v10  ;;  %11360 = vmatprep.subr.bf16.mxu0 %v17766_v61  ;;  %v17750_v34 = vcombine.high %v8400_v27, %v8404_v39  ;;  %v8496_v41 = vld [vmem:[#allocation14 + $0xac0] sm:$0xff]  ;;  %v17749_v50 = vcombine.low %v8400_v27, %v8404_v39  ;;  %v17742_v61 = vcombine.high %v8392_v60, %v8396_v16 }
 0x58a   :  { %11313 = vmatprep.subr.bf16.mxu1 %v17662_v20  ;;  %v8500_v31 = vld [vmem:[#allocation14 + $0xae0] sm:$0xff] }
 0x58b   :  { %v17846_v10 = vcombine.high %v8496_v41, %v8500_v31  ;;  %v8488_v4 = vld [vmem:[#allocation14 + $0xa80] sm:$0xff]  ;;  %v17845_v19 = vcombine.low %v8496_v41, %v8500_v31  ;;  %v8130_v41 = vmul.f32 0.2, %v19517_v15 }
 0x58c   :  { %11361 = vmatpush1.bf16.msra.mxu0 %v17765_v17  ;;  %v8492_v20 = vld [vmem:[#allocation14 + $0xaa0] sm:$0xff] }
 0x58d   :  { %11314 = vmatpush1.bf16.msra.mxu1 %v17661_v52  ;;  %11362 = vmatprep.subr.bf16.mxu0 %v17758_v0  ;;  %v17838_v17 = vcombine.high %v8488_v4, %v8492_v20  ;;  %v17734_v52 = vcombine.high %v8384_v26, %v8388_v44  ;;  %v8480_v0 = vld [vmem:[#allocation14 + $0xa40] sm:$0xff]  ;;  %v17837_v21 = vcombine.low %v8488_v4, %v8492_v20 }
 0x58e   :  { %11315 = vmatprep.subr.bf16.mxu1 %v17654_v56  ;;  %v8484_v56 = vld [vmem:[#allocation14 + $0xa60] sm:$0xff] }
 0x58f   :  { %v8380_v36 = vld [vmem:[#allocation14 + $0x720] sm:$0xff]  ;;  %v17829_v14 = vcombine.low %v8480_v0, %v8484_v56 }
 0x590   :  { %11363 = vmatpush1.bf16.msra.mxu0 %v17757_v22  ;;  %v17830_v22 = vcombine.high %v8480_v0, %v8484_v56  ;;  %v8368_v46 = vld [vmem:[#allocation14 + $0x6c0] sm:$0xff]  ;;  %v17725_v8 = vcombine.low %v8376_v35, %v8380_v36 }
 0x591   :  { %11316 = vmatpush1.bf16.msra.mxu1 %v17653_v38  ;;  %11364 = vmatprep.subr.bf16.mxu0 %v17878_v37  ;;  %v17726_v38 = vcombine.high %v8376_v35, %v8380_v36  ;;  %v8472_v37 = vld [vmem:[#allocation14 + $0xa00] sm:$0xff] }
 0x592   :  { %11317 = vmatprep.subr.bf16.mxu1 %v17646_v42  ;;  %v8476_v42 = vld [vmem:[#allocation14 + $0xa20] sm:$0xff] }
 0x593   :  { %v8372_v55 = vld [vmem:[#allocation14 + $0x6e0] sm:$0xff]  ;;  %v17821_v58 = vcombine.low %v8472_v37, %v8476_v42 }
 0x594   :  { %11365 = vmatpush2.bf16.msra.mxu0 %v17877_v57  ;;  %v17822_v57 = vcombine.high %v8472_v37, %v8476_v42  ;;  %v8360_v3 = vld [vmem:[#allocation14 + $0x680] sm:$0xff]  ;;  %v17717_v5 = vcombine.low %v8368_v46, %v8372_v55 }
 0x595   :  { %11318 = vmatpush1.bf16.msra.mxu1 %v17645_v23  ;;  %11366 = vmatprep.subr.bf16.mxu0 %v17870_v59  ;;  %v17718_v23 = vcombine.high %v8368_v46, %v8372_v55  ;;  %v19550_v59 = vld [vmem:[#allocation14 + $0x1c8] sm:$0xff]  ;;  %v8364_v1 = vld [vmem:[#allocation14 + $0x6a0] sm:$0xff] }
 0x596   :  { %11319 = vmatprep.subr.bf16.mxu1 %v17638_v63  ;;  %v19552_v63 = vld [vmem:[#allocation14 + $0x1e8] sm:$0xff]  ;;  %v17709_v25 = vcombine.low %v8360_v3, %v8364_v1  ;;  %v8344_v39 = vld [vmem:[#allocation14 + $0x600] sm:$0xff] }
 0x597   :  { %v8592_v60 = vld [vmem:[#allocation14 + $0xdc0] sm:$0xff] }
 0x598   :  { %11367 = vmatpush2.bf16.msra.mxu0 %v17869_v18  ;;  %v17560_v18 = vcombine.high %v19550_v59, %v19552_v63  ;;  %v8596_v16 = vld [vmem:[#allocation14 + $0xde0] sm:$0xff] }
 0x599   :  { %11320 = vmatpush1.bf16.msra.mxu1 %v17637_v9  ;;  %11368 = vmatprep.subr.bf16.mxu0 %v17862_v11  ;;  %v17710_v9 = vcombine.high %v8360_v3, %v8364_v1  ;;  %v8352_v11 = vld [vmem:[#allocation14 + $0x640] sm:$0xff]  ;;  %v17941_v26 = vcombine.low %v8592_v60, %v8596_v16 }
 0x59a   :  { %11321 = vmatprep.subr.bf16.mxu1 %v17630_v12  ;;  %v8356_v12 = vld [vmem:[#allocation14 + $0x660] sm:$0xff] }
 0x59b   :  { %v17702_v40 = vcombine.high %v8352_v11, %v8356_v12  ;;  %v8584_v4 = vld [vmem:[#allocation14 + $0xd80] sm:$0xff] }
 0x59c   :  { %11369 = vmatpush2.bf16.msra.mxu0 %v17861_v28  ;;  %v8348_v28 = vld [vmem:[#allocation14 + $0x620] sm:$0xff] }
 0x59d   :  { %11322 = vmatpush1.bf16.msra.mxu1 %v17629_v30  ;;  %11370 = vmatprep.subr.bf16.mxu0 %v17854_v43  ;;  %v17701_v43 = vcombine.low %v8352_v11, %v8356_v12  ;;  %v8588_v20 = vld [vmem:[#allocation14 + $0xda0] sm:$0xff]  ;;  %v8193_v12 = vld [vmem:[#allocation14 + $0x148] sm:$0xff] }
 0x59e   :  { %11323 = vmatprep.subr.bf16.mxu1 %v17750_v34  ;;  %v17694_v34 = vcombine.high %v8344_v39, %v8348_v28  ;;  %v17933_v56 = vcombine.low %v8584_v4, %v8588_v20  ;;  %v8564_v3 = vld [vmem:[#allocation14 + $0xce0] sm:$0xff] }
 0x5a0   :  { %11371 = vmatpush2.bf16.msra.mxu0 %v17853_v32 }
 0x5a1   :  { %11324 = vmatpush2.bf16.msra.mxu1 %v17749_v50  ;;  %11372 = vmatprep.subr.bf16.mxu0 %v17846_v10  ;;  %v17693_v50 = vcombine.low %v8344_v39, %v8348_v28  ;;  %v17942_v10 = vcombine.high %v8592_v60, %v8596_v16  ;;  %v8544_v16 = vld [vmem:[#allocation14 + $0xc40] sm:$0xff] }
 0x5a2   :  { %11325 = vmatprep.subr.bf16.mxu1 %v17742_v61  ;;  %v8138_v61 = vsel %vm8122_vm4, %v19517_v15, %v8130_v41  ;;  %v8185_v41 = vld [vmem:[#allocation14 + $0x108] sm:$0xff] }
 0x5a3   :  { %v19563_v44 = vpack.c.bf16 %v8138_v61, %v8138_v61 }
 0x5a4   :  { %11373 = vmatpush2.bf16.msra.mxu0 %v17845_v19  ;;  %v17934_v19 = vcombine.high %v8584_v4, %v8588_v20  ;;  %v8177_v4 = vld [vmem:[#allocation14 + $0xc8] sm:$0xff] }
 0x5a5   :  { %11326 = vmatpush2.bf16.msra.mxu1 %v17741_v51  ;;  %11374 = vmatprep.subr.bf16.mxu0 %v17838_v17  ;;  %v8576_v51 = vld [vmem:[#allocation14 + $0xd40] sm:$0xff]  ;;  %v8181_v20 = vld [vmem:[#allocation14 + $0xe8] sm:$0xff] }
 0x5a6   :  { %11327 = vmatprep.subr.bf16.mxu1 %v17734_v52  ;;  %v8580_v17 = vld [vmem:[#allocation14 + $0xd60] sm:$0xff] }
 0x5a7   :  { %v17926_v15 = vcombine.high %v8576_v51, %v8580_v17  ;;  %v17925_v42 = vcombine.low %v8576_v51, %v8580_v17  ;;  %v8540_v51 = vld [vmem:[#allocation14 + $0xc20] sm:$0xff] }
 0x5a8   :  { %11375 = vmatpush2.bf16.msra.mxu0 %v17837_v21 }
 0x5a9   :  { %11328 = vmatpush2.bf16.msra.mxu1 %v17733_v54  ;;  %11376 = vmatprep.subr.bf16.mxu0 %v17830_v22  ;;  %v8568_v54 = vld [vmem:[#allocation14 + $0xd00] sm:$0xff] }
 0x5aa   :  { %11329 = vmatprep.subr.bf16.mxu1 %v17726_v38  ;;  %v8572_v22 = vld [vmem:[#allocation14 + $0xd20] sm:$0xff] }
 0x5ab   :  { %v17917_v11 = vcombine.low %v8568_v54, %v8572_v22 }
 0x5ac   :  { %11377 = vmatpush2.bf16.msra.mxu0 %v17829_v14  ;;  %v8201_v14 = vld [vmem:[#allocation14 + $0x188] sm:$0xff] }
 0x5ad   :  { %11330 = vmatpush2.bf16.msra.mxu1 %v17725_v8  ;;  %11378 = vmatprep.subr.bf16.mxu0 %v17822_v57  ;;  %v17918_v8 = vcombine.high %v8568_v54, %v8572_v22  ;;  %v17527_v54 = vcombine.low %v8177_v4, %v8181_v20 }
 0x5ae   :  { %11331 = vmatprep.subr.bf16.mxu1 %v17718_v23  ;;  %v8560_v23 = vld [vmem:[#allocation14 + $0xcc0] sm:$0xff] }
 0x5b0   :  { %11379 = vmatpush2.bf16.msra.mxu0 %v17821_v58  ;;  %v19572_v58 = vld [vmem:[#allocation14 + $0x5c8] sm:$0xff] }
 0x5b1   :  { %11332 = vmatpush2.bf16.msra.mxu1 %v17717_v5  ;;  %11430 = vmatprep.subr.bf16.mxu0 %v17560_v18  ;;  %v19574_v5 = vld [vmem:[#allocation14 + $0x5e8] sm:$0xff] }
 0x5b2   :  { %11333 = vmatprep.subr.bf16.mxu1 %v17710_v9  ;;  %v17687_v39 = vcombine.low %v19572_v58, %v19574_v5 }
 0x5b3   :  { %v19556_v27 = vpop.f32.mrf.mxu0 }
 0x5b5   :  { %11334 = vmatpush2.bf16.msra.mxu1 %v17709_v25  ;;  %v19558_v30 = vpop.f32.mrf.mxu0  ;;  %v8197_v25 = vld [vmem:[#allocation14 + $0x168] sm:$0xff] }
 0x5b6   :  { %11335 = vmatprep.subr.bf16.mxu1 %v17702_v40  ;;  %v17910_v40 = vcombine.high %v8560_v23, %v8564_v3 }
 0x5b7   :  { %v7994_v31 = vpop.f32.mrf.mxu0 }
 0x5b8   :  { %v8189_v31 = vld [vmem:[#allocation14 + $0x128] sm:$0xff] }
 0x5b9   :  { %11336 = vmatpush2.bf16.msra.mxu1 %v17701_v43  ;;  %v7995_v32 = vpop.f32.mrf.mxu0  ;;  %v17544_v43 = vcombine.high %v8193_v12, %v8197_v25  ;;  %v17535_v17 = vcombine.low %v8185_v41, %v8189_v31 }
 0x5ba   :  { %11337 = vmatprep.subr.bf16.mxu1 %v17694_v34  ;;  %v17909_v34 = vcombine.low %v8560_v23, %v8564_v3  ;;  %v8548_v32 = vld [vmem:[#allocation14 + $0xc60] sm:$0xff]  ;;  %v8153_v23 = vld [vmem:[#allocation14 + $0x8] sm:$0xff] }
 0x5bb   :  { %v8157_v3 = vld [vmem:[#allocation14 + $0x28] sm:$0xff] }
 0x5bd   :  { %11338 = vmatpush2.bf16.msra.mxu1 %v17693_v50  ;;  %v17543_v50 = vcombine.low %v8193_v12, %v8197_v25  ;;  %v17504_v25 = vcombine.high %v8153_v23, %v8157_v3 }
 0x5be   :  { %11389 = vmatprep.subr.bf16.mxu1 %v17942_v10  ;;  %v17536_v10 = vcombine.high %v8185_v41, %v8189_v31  ;;  %v17503_v41 = vcombine.low %v8153_v23, %v8157_v3  ;;  %v8604_v23 = vld [vmem:[#allocation14 + $0xe20] sm:$0xff] }
 0x5c0   :  { %v7949_v52 = vpop.f32.mrf.mxu1  ;;  %11340 = vmatmul.mubr.bf16.vlgmr.msra.gmra.mxu1 %v19563_v44 }
 0x5c1   :  { %v7950_v0 = vadd.f32 %v7949_v52, %v19545_v24  ;;  %11390 = vmatpush1.bf16.msra.mxu1 %v17941_v26  ;;  %v8205_v24 = vld [vmem:[#allocation14 + $0x1a8] sm:$0xff]  ;;  %v17894_v26 = vcombine.high %v8544_v16, %v8548_v32  ;;  %v17528_v52 = vcombine.high %v8177_v4, %v8181_v20 }
 0x5c2   :  { %v7951_v35 = vpop.f32.mrf.mxu1  ;;  %11391 = vmatprep.subr.bf16.mxu1 %v17934_v19  ;;  %v17552_v9 = vcombine.high %v8201_v14, %v8205_v24  ;;  %v17551_v28 = vcombine.low %v8201_v14, %v8205_v24  ;;  %v8536_v19 = vld [vmem:[#allocation14 + $0xc00] sm:$0xff] }
 0x5c3   :  { %vm8124_vm5 = vcmp.gt.f32.partialorder %v7950_v0, 0.0  ;;  %v8132_v36 = vmul.f32 0.2, %v7950_v0  ;;  %v7952_v21 = vadd.f32 %v7951_v35, %v19548_v13  ;;  %v17559_v13 = vcombine.low %v19550_v59, %v19552_v63  ;;  %v8552_v59 = vld [vmem:[#allocation14 + $0xc80] sm:$0xff]  ;;  %v8173_v35 = vld [vmem:[#allocation14 + $0xa8] sm:$0xff] }
 0x5c4   :  { %v7953_v38 = vpop.f32.mrf.mxu1  ;;  %v8556_v63 = vld [vmem:[#allocation14 + $0xca0] sm:$0xff] }
 0x5c5   :  { %vm8125_vm6 = vcmp.gt.f32.partialorder %v7952_v21, 0.0  ;;  %v8133_v37 = vmul.f32 0.2, %v7952_v21  ;;  %11392 = vmatpush1.bf16.msra.mxu1 %v17933_v56  ;;  %v8140_v46 = vsel %vm8124_vm5, %v7950_v0, %v8132_v36  ;;  %v17902_v60 = vcombine.high %v8552_v59, %v8556_v63  ;;  %v8169_v56 = vld [vmem:[#allocation14 + $0x88] sm:$0xff]  ;;  %v8656_v36 = vld [vmem:[#allocation14 + $0xfc0] sm:$0xff] }
 0x5c6   :  { %v7954_v55 = vpop.f32.mrf.mxu1  ;;  %11393 = vmatprep.subr.bf16.mxu1 %v17926_v15  ;;  %v19576_v18 = vpack.c.bf16 %v8140_v46, %v8140_v46  ;;  %v17901_v61 = vcombine.low %v8552_v59, %v8556_v63  ;;  %v17893_v0 = vcombine.low %v8544_v16, %v8548_v32  ;;  %v17886_v15 = vcombine.high %v8536_v19, %v8540_v51  ;;  %v8652_v14 = vld [vmem:[#allocation14 + $0xfa0] sm:$0xff]  ;;  %v8273_v59 = vld [vmem:[#allocation14 + $0x3c8] sm:$0xff] }
 0x5c7   :  { %v8141_v57 = vsel %vm8125_vm6, %v7952_v21, %v8133_v37  ;;  %v8660_v21 = vld [vmem:[#allocation14 + $0xfe0] sm:$0xff]  ;;  %v17520_v22 = vcombine.high %v8169_v56, %v8173_v35  ;;  %v17885_v38 = vcombine.low %v8536_v19, %v8540_v51  ;;  %v8161_v37 = vld [vmem:[#allocation14 + $0x48] sm:$0xff]  ;;  %v17519_v24 = vcombine.low %v8169_v56, %v8173_v35 }
 0x5c8   :  { %v19568_v1 = vpack.c.bf16 %v8141_v57, %v8141_v57  ;;  %v18006_v46 = vcombine.high %v8656_v36, %v8660_v21  ;;  %v8648_v55 = vld [vmem:[#allocation14 + $0xf80] sm:$0xff]  ;;  %v18005_v57 = vcombine.low %v8656_v36, %v8660_v21  ;;  %v8277_v63 = vld [vmem:[#allocation14 + $0x3e8] sm:$0xff] }
 0x5c9   :  { %11394 = vmatpush1.bf16.msra.mxu1 %v17925_v42  ;;  %v8165_v42 = vld [vmem:[#allocation14 + $0x68] sm:$0xff]  ;;  %v17624_v31 = vcombine.high %v8273_v59, %v8277_v63  ;;  %v17623_v4 = vcombine.low %v8273_v59, %v8277_v63 }
 0x5ca   :  { %11380 = vmatprep.mubr.bf16.mxu0 %v19568_v1  ;;  %11395 = vmatprep.subr.bf16.mxu1 %v17918_v8  ;;  %v17512_v8 = vcombine.high %v8161_v37, %v8165_v42  ;;  %v17511_v12 = vcombine.low %v8161_v37, %v8165_v42  ;;  %v8265_v16 = vld [vmem:[#allocation14 + $0x388] sm:$0xff] }
 0x5cb   :  { %11381 = vmatmul.mubr.bf16.vlgmr.msra.gmra.mxu0 %v19576_v18  ;;  %v8269_v32 = vld [vmem:[#allocation14 + $0x3a8] sm:$0xff] }
 0x5cc   :  { %11431 = vmatpush1.bf16.msra.mxu0 %v17559_v13  ;;  %11462 = vmatprep.mubr.bf16.mxu0 %v19507_v6  ;;  %v17998_v13 = vcombine.high %v8648_v55, %v8652_v14  ;;  %v17616_v20 = vcombine.high %v8265_v16, %v8269_v32  ;;  %v8257_v19 = vld [vmem:[#allocation14 + $0x348] sm:$0xff]  ;;  %v17615_v56 = vcombine.low %v8265_v16, %v8269_v32  ;;  %v18764_v16 = vld [vmem:[#allocation13] sm:$0xff] }
 0x5cd   :  { %11432 = vmatprep.subr.bf16.mxu0 %v17552_v9  ;;  %11396 = vmatpush1.bf16.msra.mxu1 %v17917_v11  ;;  %v8640_v9 = vld [vmem:[#allocation14 + $0xf40] sm:$0xff]  ;;  %v8261_v51 = vld [vmem:[#allocation14 + $0x368] sm:$0xff]  ;;  %v4891_v32 = vrot.slane %v18764_v16, %v19293_v33 }
 0x5ce   :  { %11397 = vmatprep.subr.bf16.mxu1 %v17910_v40  ;;  %v8644_v11 = vld [vmem:[#allocation14 + $0xf60] sm:$0xff]  ;;  %v17997_v40 = vcombine.low %v8648_v55, %v8652_v14  ;;  %v17608_v35 = vcombine.high %v8257_v19, %v8261_v51  ;;  %v8249_v36 = vld [vmem:[#allocation14 + $0x308] sm:$0xff]  ;;  %v17607_v37 = vcombine.low %v8257_v19, %v8261_v51 }
 0x5cf   :  { %v8253_v21 = vld [vmem:[#allocation14 + $0x328] sm:$0xff] }
 0x5d0   :  { %11433 = vmatpush1.bf16.msra.mxu0 %v17551_v28  ;;  %v17990_v28 = vcombine.high %v8640_v9, %v8644_v11  ;;  %v17600_v42 = vcombine.high %v8249_v36, %v8253_v21  ;;  %v8241_v55 = vld [vmem:[#allocation14 + $0x2c8] sm:$0xff]  ;;  %v17599_v3 = vcombine.low %v8249_v36, %v8253_v21 }
 0x5d1   :  { %11434 = vmatprep.subr.bf16.mxu0 %v17544_v43  ;;  %11398 = vmatpush1.bf16.msra.mxu1 %v17909_v34  ;;  %v8632_v43 = vld [vmem:[#allocation14 + $0xf00] sm:$0xff]  ;;  %v8245_v14 = vld [vmem:[#allocation14 + $0x2e8] sm:$0xff] }
 0x5d2   :  { %11399 = vmatprep.subr.bf16.mxu1 %v17902_v60  ;;  %v8636_v34 = vld [vmem:[#allocation14 + $0xf20] sm:$0xff]  ;;  %v17989_v60 = vcombine.low %v8640_v9, %v8644_v11  ;;  %v17592_v9 = vcombine.high %v8241_v55, %v8245_v14  ;;  %v17591_v63 = vcombine.low %v8241_v55, %v8245_v14  ;;  %v8449_v14 = vld [vmem:[#allocation14 + $0x948] sm:$0xff] }
 0x5d4   :  { %11435 = vmatpush1.bf16.msra.mxu0 %v17543_v50  ;;  %v17982_v50 = vcombine.high %v8632_v43, %v8636_v34 }
 0x5d5   :  { %11436 = vmatprep.subr.bf16.mxu0 %v17536_v10  ;;  %11400 = vmatpush1.bf16.msra.mxu1 %v17901_v61  ;;  %v8624_v10 = vld [vmem:[#allocation14 + $0xec0] sm:$0xff] }
 0x5d6   :  { %11401 = vmatprep.subr.bf16.mxu1 %v17894_v26  ;;  %v8628_v61 = vld [vmem:[#allocation14 + $0xee0] sm:$0xff]  ;;  %v17981_v26 = vcombine.low %v8632_v43, %v8636_v34 }
 0x5d8   :  { %11437 = vmatpush1.bf16.msra.mxu0 %v17535_v17  ;;  %v17974_v17 = vcombine.high %v8624_v10, %v8628_v61 }
 0x5d9   :  { %11438 = vmatprep.subr.bf16.mxu0 %v17528_v52  ;;  %11402 = vmatpush1.bf16.msra.mxu1 %v17893_v0  ;;  %v8616_v52 = vld [vmem:[#allocation14 + $0xe80] sm:$0xff] }
 0x5da   :  { %11403 = vmatprep.subr.bf16.mxu1 %v17886_v15  ;;  %v8620_v0 = vld [vmem:[#allocation14 + $0xea0] sm:$0xff]  ;;  %v17973_v15 = vcombine.low %v8624_v10, %v8628_v61  ;;  %v4895_v10 = vrot.slane %v18764_v16, %v19255_v2  ;;  %v8409_v16 = vld [vmem:[#allocation14 + $0x808] sm:$0xff] }
 0x5dc   :  { %11439 = vmatpush1.bf16.msra.mxu0 %v17527_v54  ;;  %v17966_v54 = vcombine.high %v8616_v52, %v8620_v0 }
 0x5dd   :  { %11440 = vmatprep.subr.bf16.mxu0 %v17520_v22  ;;  %11404 = vmatpush1.bf16.msra.mxu1 %v17885_v38  ;;  %v8608_v22 = vld [vmem:[#allocation14 + $0xe40] sm:$0xff] }
 0x5de   :  { %11405 = vmatprep.subr.bf16.mxu1 %v18006_v46  ;;  %v8612_v38 = vld [vmem:[#allocation14 + $0xe60] sm:$0xff]  ;;  %v17965_v46 = vcombine.low %v8616_v52, %v8620_v0 }
 0x5df   :  { %v17957_v11 = vcombine.low %v8608_v22, %v8612_v38 }
 0x5e0   :  { %11441 = vmatpush1.bf16.msra.mxu0 %v17519_v24  ;;  %v17958_v24 = vcombine.high %v8608_v22, %v8612_v38 }
 0x5e1   :  { %11442 = vmatprep.subr.bf16.mxu0 %v17512_v8  ;;  %11406 = vmatpush2.bf16.msra.mxu1 %v18005_v57  ;;  %v8600_v57 = vld [vmem:[#allocation14 + $0xe00] sm:$0xff] }
 0x5e2   :  { %11407 = vmatprep.subr.bf16.mxu1 %v17998_v13  ;;  %v17949_v34 = vcombine.low %v8600_v57, %v8604_v23 }
 0x5e4   :  { %11443 = vmatpush1.bf16.msra.mxu0 %v17511_v12  ;;  %v8233_v12 = vld [vmem:[#allocation14 + $0x288] sm:$0xff] }
 0x5e5   :  { %11444 = vmatprep.subr.bf16.mxu0 %v17504_v25  ;;  %11408 = vmatpush2.bf16.msra.mxu1 %v17997_v40  ;;  %v8237_v25 = vld [vmem:[#allocation14 + $0x2a8] sm:$0xff]  ;;  %v17950_v40 = vcombine.high %v8600_v57, %v8604_v23 }
 0x5e6   :  { %11409 = vmatprep.subr.bf16.mxu1 %v17990_v28  ;;  %v17584_v43 = vcombine.high %v8233_v12, %v8237_v25  ;;  %v8441_v23 = vld [vmem:[#allocation14 + $0x908] sm:$0xff] }
 0x5e8   :  { %11445 = vmatpush1.bf16.msra.mxu0 %v17503_v41  ;;  %v8225_v41 = vld [vmem:[#allocation14 + $0x248] sm:$0xff] }
 0x5e9   :  { %11446 = vmatprep.subr.bf16.mxu0 %v17624_v31  ;;  %11410 = vmatpush2.bf16.msra.mxu1 %v17989_v60  ;;  %v8229_v31 = vld [vmem:[#allocation14 + $0x268] sm:$0xff]  ;;  %v17688_v60 = vcombine.high %v19572_v58, %v19574_v5 }
 0x5ea   :  { %11411 = vmatprep.subr.bf16.mxu1 %v17982_v50  ;;  %v17583_v50 = vcombine.low %v8233_v12, %v8237_v25  ;;  %v17576_v61 = vcombine.high %v8225_v41, %v8229_v31  ;;  %v17575_v51 = vcombine.low %v8225_v41, %v8229_v31  ;;  %v8437_v12 = vld [vmem:[#allocation14 + $0x8e8] sm:$0xff] }
 0x5eb   :  { %v8421_v41 = vld [vmem:[#allocation14 + $0x868] sm:$0xff] }
 0x5ec   :  { %11447 = vmatpush2.bf16.msra.mxu0 %v17623_v4  ;;  %v8217_v4 = vld [vmem:[#allocation14 + $0x208] sm:$0xff] }
 0x5ed   :  { %11448 = vmatprep.subr.bf16.mxu0 %v17616_v20  ;;  %11412 = vmatpush2.bf16.msra.mxu1 %v17981_v26  ;;  %v8221_v20 = vld [vmem:[#allocation14 + $0x228] sm:$0xff]  ;;  %v7991_v26 = vadd.f32 %v19556_v27, %v4891_v32 }
 0x5ee   :  { %11413 = vmatprep.subr.bf16.mxu1 %v17974_v17  ;;  %v7993_v17 = vadd.f32 %v19558_v30, %v4895_v10  ;;  %v17568_v0 = vcombine.high %v8217_v4, %v8221_v20  ;;  %v17567_v22 = vcombine.low %v8217_v4, %v8221_v20  ;;  %v8413_v32 = vld [vmem:[#allocation14 + $0x828] sm:$0xff] }
 0x5ef   :  { %v17760_v10 = vcombine.high %v8409_v16, %v8413_v32  ;;  %v8533_v4 = vld [vmem:[#allocation14 + $0xbe8] sm:$0xff]  ;;  %v17759_v20 = vcombine.low %v8409_v16, %v8413_v32 }
 0x5f0   :  { %11449 = vmatpush2.bf16.msra.mxu0 %v17615_v56 }
 0x5f1   :  { %11450 = vmatprep.subr.bf16.mxu0 %v17608_v35  ;;  %11414 = vmatpush2.bf16.msra.mxu1 %v17973_v15  ;;  %v8465_v35 = vld [vmem:[#allocation14 + $0x9c8] sm:$0xff] }
 0x5f2   :  { %11415 = vmatprep.subr.bf16.mxu1 %v17966_v54  ;;  %v8469_v15 = vld [vmem:[#allocation14 + $0x9e8] sm:$0xff] }
 0x5f3   :  { %v8072_v8 = vpop.f32.mrf.mxu0  ;;  %v17816_v38 = vcombine.high %v8465_v35, %v8469_v15  ;;  %v17815_v30 = vcombine.low %v8465_v35, %v8469_v15 }
 0x5f4   :  { %11451 = vmatpush2.bf16.msra.mxu0 %v17607_v37 }
 0x5f5   :  { %v8074_v13 = vpop.f32.mrf.mxu0  ;;  %11452 = vmatprep.subr.bf16.mxu0 %v17600_v42  ;;  %11416 = vmatpush2.bf16.msra.mxu1 %v17965_v46  ;;  %v8457_v42 = vld [vmem:[#allocation14 + $0x988] sm:$0xff] }
 0x5f6   :  { %11417 = vmatprep.subr.bf16.mxu1 %v17958_v24  ;;  %v8461_v46 = vld [vmem:[#allocation14 + $0x9a8] sm:$0xff] }
 0x5f7   :  { %v8076_v59 = vpop.f32.mrf.mxu0  ;;  %v17808_v55 = vcombine.high %v8457_v42, %v8461_v46  ;;  %v8453_v24 = vld [vmem:[#allocation14 + $0x968] sm:$0xff] }
 0x5f8   :  { %11453 = vmatpush2.bf16.msra.mxu0 %v17599_v3  ;;  %v17800_v57 = vcombine.high %v8449_v14, %v8453_v24  ;;  %v8445_v3 = vld [vmem:[#allocation14 + $0x928] sm:$0xff] }
 0x5f9   :  { %v8077_v28 = vpop.f32.mrf.mxu0  ;;  %11454 = vmatprep.subr.bf16.mxu0 %v17592_v9  ;;  %11418 = vmatpush2.bf16.msra.mxu1 %v17957_v11  ;;  %v17792_v9 = vcombine.high %v8441_v23, %v8445_v3  ;;  %v8433_v11 = vld [vmem:[#allocation14 + $0x8c8] sm:$0xff]  ;;  %v17791_v25 = vcombine.low %v8441_v23, %v8445_v3 }
 0x5fa   :  { %11419 = vmatprep.subr.bf16.mxu1 %v17950_v40  ;;  %v17784_v40 = vcombine.high %v8433_v11, %v8437_v12  ;;  %v8425_v59 = vld [vmem:[#allocation14 + $0x888] sm:$0xff]  ;;  %v17783_v28 = vcombine.low %v8433_v11, %v8437_v12 }
 0x5fb   :  { %v8485_v11 = vld [vmem:[#allocation14 + $0xa68] sm:$0xff] }
 0x5fc   :  { %11455 = vmatpush2.bf16.msra.mxu0 %v17591_v63  ;;  %v8429_v63 = vld [vmem:[#allocation14 + $0x8a8] sm:$0xff] }
 0x5fd   :  { %11456 = vmatprep.subr.bf16.mxu0 %v17584_v43  ;;  %11420 = vmatpush2.bf16.msra.mxu1 %v17949_v34  ;;  %v17776_v43 = vcombine.high %v8425_v59, %v8429_v63  ;;  %v8417_v34 = vld [vmem:[#allocation14 + $0x848] sm:$0xff]  ;;  %v17775_v31 = vcombine.low %v8425_v59, %v8429_v63 }
 0x5fe   :  { %11471 = vmatprep.subr.bf16.mxu1 %v17688_v60  ;;  %v17768_v60 = vcombine.high %v8417_v34, %v8421_v41  ;;  %v8477_v59 = vld [vmem:[#allocation14 + $0xa28] sm:$0xff] }
 0x600   :  { %11457 = vmatpush2.bf16.msra.mxu0 %v17583_v50  ;;  %v8031_v19 = vpop.f32.mrf.mxu1  ;;  %v17767_v50 = vcombine.low %v8417_v34, %v8421_v41 }
 0x601   :  { %v8032_v52 = vadd.f32 %v8031_v19, %v7991_v26  ;;  %11458 = vmatprep.subr.bf16.mxu0 %v17576_v61  ;;  %v8529_v61 = vld [vmem:[#allocation14 + $0xbc8] sm:$0xff] }
 0x602   :  { %v8033_v56 = vpop.f32.mrf.mxu1  ;;  %v17880_v26 = vcombine.high %v8529_v61, %v8533_v4  ;;  %v8521_v19 = vld [vmem:[#allocation14 + $0xb88] sm:$0xff] }
 0x603   :  { %v8034_v36 = vadd.f32 %v8033_v56, %v7993_v17  ;;  %v19589_v21 = vadd.f32 %v8072_v8, %v8032_v52  ;;  %v17807_v8 = vcombine.low %v8457_v42, %v8461_v46  ;;  %v17879_v17 = vcombine.low %v8529_v61, %v8533_v4  ;;  %v8517_v56 = vld [vmem:[#allocation14 + $0xb68] sm:$0xff] }
 0x604   :  { %11459 = vmatpush2.bf16.msra.mxu0 %v17575_v51  ;;  %v8035_v54 = vpop.f32.mrf.mxu1  ;;  %v8525_v51 = vld [vmem:[#allocation14 + $0xba8] sm:$0xff] }
 0x605   :  { %11460 = vmatprep.subr.bf16.mxu0 %v17568_v0  ;;  %v19591_v27 = vadd.f32 %v8074_v13, %v8034_v36  ;;  %v17799_v13 = vcombine.low %v8449_v14, %v8453_v24  ;;  %v17872_v52 = vcombine.high %v8521_v19, %v8525_v51  ;;  %v8513_v0 = vld [vmem:[#allocation14 + $0xb48] sm:$0xff]  ;;  %v17871_v35 = vcombine.low %v8521_v19, %v8525_v51 }
 0x606   :  { %v8036_v37 = vpop.f32.mrf.mxu1  ;;  %v17864_v15 = vcombine.high %v8513_v0, %v8517_v56  ;;  %v8505_v36 = vld [vmem:[#allocation14 + $0xb08] sm:$0xff] }
 0x607   :  { %v8509_v54 = vld [vmem:[#allocation14 + $0xb28] sm:$0xff] }
 0x608   :  { %11461 = vmatpush2.bf16.msra.mxu0 %v17567_v22  ;;  %v17863_v22 = vcombine.low %v8513_v0, %v8517_v56  ;;  %v8497_v37 = vld [vmem:[#allocation14 + $0xac8] sm:$0xff] }
 0x609   :  { %11512 = vmatprep.subr.bf16.mxu0 %v17816_v38  ;;  %v17856_v38 = vcombine.high %v8505_v36, %v8509_v54  ;;  %v8501_v42 = vld [vmem:[#allocation14 + $0xae8] sm:$0xff] }
 0x60a   :  { %v17848_v14 = vcombine.high %v8497_v37, %v8501_v42  ;;  %v8489_v24 = vld [vmem:[#allocation14 + $0xa88] sm:$0xff]  ;;  %v17847_v23 = vcombine.low %v8497_v37, %v8501_v42 }
 0x60b   :  { %11463 = vmatmul.mubr.bf16.vlgmr.msra.gmra.mxu0 %v19525_v53  ;;  %v8329_v19 = vld [vmem:[#allocation14 + $0x588] sm:$0xff] }
 0x60c   :  { %11513 = vmatpush1.bf16.msra.mxu0 %v17815_v30  ;;  %11544 = vmatprep.mubr.bf16.mxu0 %v19568_v1  ;;  %v17855_v30 = vcombine.low %v8505_v36, %v8509_v54  ;;  %v8333_v51 = vld [vmem:[#allocation14 + $0x5a8] sm:$0xff] }
 0x60d   :  { %11514 = vmatprep.subr.bf16.mxu0 %v17808_v55  ;;  %v8325_v54 = vld [vmem:[#allocation14 + $0x568] sm:$0xff]  ;;  %v17679_v37 = vcombine.low %v8329_v19, %v8333_v51 }
 0x610   :  { %11515 = vmatpush1.bf16.msra.mxu0 %v17807_v8  ;;  %v8493_v8 = vld [vmem:[#allocation14 + $0xaa8] sm:$0xff] }
 0x611   :  { %11516 = vmatprep.subr.bf16.mxu0 %v17800_v57  ;;  %v17839_v12 = vcombine.low %v8489_v24, %v8493_v8 }
 0x614   :  { %11517 = vmatpush1.bf16.msra.mxu0 %v17799_v13  ;;  %v17840_v13 = vcombine.high %v8489_v24, %v8493_v8  ;;  %v8313_v24 = vld [vmem:[#allocation14 + $0x508] sm:$0xff] }
 0x615   :  { %11518 = vmatprep.subr.bf16.mxu0 %v17792_v9  ;;  %v8481_v9 = vld [vmem:[#allocation14 + $0xa48] sm:$0xff] }
 0x616   :  { %v8317_v8 = vld [vmem:[#allocation14 + $0x528] sm:$0xff] }
 0x617   :  { %v17664_v5 = vcombine.high %v8313_v24, %v8317_v8 }
 0x618   :  { %11519 = vmatpush1.bf16.msra.mxu0 %v17791_v25  ;;  %v17832_v25 = vcombine.high %v8481_v9, %v8485_v11 }
 0x619   :  { %11520 = vmatprep.subr.bf16.mxu0 %v17784_v40  ;;  %v8473_v40 = vld [vmem:[#allocation14 + $0xa08] sm:$0xff] }
 0x61a   :  { %v17824_v34 = vcombine.high %v8473_v40, %v8477_v59 }
 0x61c   :  { %11521 = vmatpush1.bf16.msra.mxu0 %v17783_v28  ;;  %v17831_v28 = vcombine.low %v8481_v9, %v8485_v11  ;;  %v8309_v9 = vld [vmem:[#allocation14 + $0x4e8] sm:$0xff]  ;;  %v8178_v11 = vld [vmem:[#allocation14 + $0xd0] sm:$0xff] }
 0x61d   :  { %11522 = vmatprep.subr.bf16.mxu0 %v17776_v43 }
 0x620   :  { %11523 = vmatpush1.bf16.msra.mxu0 %v17775_v31  ;;  %v8210_v31 = vld [vmem:[#allocation14 + $0x1d0] sm:$0xff] }
 0x621   :  { %11524 = vmatprep.subr.bf16.mxu0 %v17768_v60  ;;  %v8214_v60 = vld [vmem:[#allocation14 + $0x1f0] sm:$0xff] }
 0x622   :  { %v17562_v4 = vcombine.high %v8210_v31, %v8214_v60  ;;  %v17561_v56 = vcombine.low %v8210_v31, %v8214_v60 }
 0x624   :  { %11525 = vmatpush1.bf16.msra.mxu0 %v17767_v50 }
 0x625   :  { %11526 = vmatprep.subr.bf16.mxu0 %v17760_v10  ;;  %v17823_v10 = vcombine.low %v8473_v40, %v8477_v59 }
 0x628   :  { %11527 = vmatpush1.bf16.msra.mxu0 %v17759_v20 }
 0x629   :  { %11528 = vmatprep.subr.bf16.mxu0 %v17880_v26 }
 0x62c   :  { %11529 = vmatpush2.bf16.msra.mxu0 %v17879_v17  ;;  %v8202_v17 = vld [vmem:[#allocation14 + $0x190] sm:$0xff] }
 0x62d   :  { %11530 = vmatprep.subr.bf16.mxu0 %v17872_v52  ;;  %v8206_v52 = vld [vmem:[#allocation14 + $0x1b0] sm:$0xff] }
 0x62e   :  { %v17554_v36 = vcombine.high %v8202_v17, %v8206_v52  ;;  %v17553_v42 = vcombine.low %v8202_v17, %v8206_v52  ;;  %v8285_v17 = vld [vmem:[#allocation14 + $0x428] sm:$0xff]  ;;  %v8154_v52 = vld [vmem:[#allocation14 + $0x10] sm:$0xff] }
 0x630   :  { %11531 = vmatpush2.bf16.msra.mxu0 %v17871_v35 }
 0x631   :  { %11532 = vmatprep.subr.bf16.mxu0 %v17864_v15  ;;  %v17680_v15 = vcombine.high %v8329_v19, %v8333_v51  ;;  %v8281_v51 = vld [vmem:[#allocation14 + $0x408] sm:$0xff] }
 0x633   :  { %v19595_v46 = vpop.f32.mrf.mxu0 }
 0x634   :  { %11533 = vmatpush2.bf16.msra.mxu0 %v17863_v22  ;;  %v8194_v22 = vld [vmem:[#allocation14 + $0x150] sm:$0xff] }
 0x635   :  { %v19597_v55 = vpop.f32.mrf.mxu0  ;;  %11534 = vmatprep.subr.bf16.mxu0 %v17856_v38  ;;  %v8198_v38 = vld [vmem:[#allocation14 + $0x170] sm:$0xff] }
 0x636   :  { %v17545_v58 = vcombine.low %v8194_v22, %v8198_v38 }
 0x637   :  { %v11304_v57 = vpop.f32.mrf.mxu0 }
 0x638   :  { %11535 = vmatpush2.bf16.msra.mxu0 %v17855_v30  ;;  %v8186_v57 = vld [vmem:[#allocation14 + $0x110] sm:$0xff] }
 0x639   :  { %v11305_v3 = vpop.f32.mrf.mxu0  ;;  %11536 = vmatprep.subr.bf16.mxu0 %v17848_v14  ;;  %v17546_v14 = vcombine.high %v8194_v22, %v8198_v38  ;;  %v8401_v22 = vld [vmem:[#allocation14 + $0x7c8] sm:$0xff] }
 0x63a   :  { %v8405_v38 = vld [vmem:[#allocation14 + $0x7e8] sm:$0xff] }
 0x63c   :  { %11537 = vmatpush2.bf16.msra.mxu0 %v17847_v23  ;;  %v8190_v23 = vld [vmem:[#allocation14 + $0x130] sm:$0xff] }
 0x63d   :  { %11538 = vmatprep.subr.bf16.mxu0 %v17840_v13  ;;  %v8305_v13 = vld [vmem:[#allocation14 + $0x4c8] sm:$0xff]  ;;  %v17537_v40 = vcombine.low %v8186_v57, %v8190_v23 }
 0x63e   :  { %v17656_v59 = vcombine.high %v8305_v13, %v8309_v9  ;;  %v17655_v31 = vcombine.low %v8305_v13, %v8309_v9 }
 0x640   :  { %11539 = vmatpush2.bf16.msra.mxu0 %v17839_v12  ;;  %v8113_v63 = vpop.f32.mrf.mxu1  ;;  %v8182_v12 = vld [vmem:[#allocation14 + $0xf0] sm:$0xff] }
 0x641   :  { %v8114_v43 = vadd.f32 %v8113_v63, %v19589_v21  ;;  %11540 = vmatprep.subr.bf16.mxu0 %v17832_v25  ;;  %v17663_v25 = vcombine.low %v8313_v24, %v8317_v8  ;;  %v17530_v63 = vcombine.high %v8178_v11, %v8182_v12  ;;  %v17529_v60 = vcombine.low %v8178_v11, %v8182_v12  ;;  %v8385_v11 = vld [vmem:[#allocation14 + $0x748] sm:$0xff] }
 0x642   :  { %v8115_v41 = vpop.f32.mrf.mxu1  ;;  %v17752_v24 = vcombine.high %v8401_v22, %v8405_v38  ;;  %v8389_v12 = vld [vmem:[#allocation14 + $0x768] sm:$0xff] }
 0x643   :  { %vm8126_vm7 = vcmp.gt.f32.partialorder %v8114_v43, 0.0  ;;  %v8134_v16 = vmul.f32 0.2, %v8114_v43  ;;  %v8116_v32 = vadd.f32 %v8115_v41, %v19591_v27  ;;  %v8321_v27 = vld [vmem:[#allocation14 + $0x548] sm:$0xff]  ;;  %v8174_v41 = vld [vmem:[#allocation14 + $0xb0] sm:$0xff] }
 0x644   :  { %11541 = vmatpush2.bf16.msra.mxu0 %v17831_v28  ;;  %v8117_v50 = vpop.f32.mrf.mxu1  ;;  %v17672_v30 = vcombine.high %v8321_v27, %v8325_v54  ;;  %v17671_v3 = vcombine.low %v8321_v27, %v8325_v54  ;;  %v8297_v28 = vld [vmem:[#allocation14 + $0x488] sm:$0xff] }
 0x645   :  { %vm8127_vm8 = vcmp.gt.f32.partialorder %v8116_v32, 0.0  ;;  %v8135_v61 = vmul.f32 0.2, %v8116_v32  ;;  %11542 = vmatprep.subr.bf16.mxu0 %v17824_v34  ;;  %v8142_v20 = vsel %vm8126_vm7, %v8114_v43, %v8134_v16  ;;  %v8301_v43 = vld [vmem:[#allocation14 + $0x4a8] sm:$0xff]  ;;  %v8170_v34 = vld [vmem:[#allocation14 + $0x90] sm:$0xff] }
 0x646   :  { %v8118_v26 = vpop.f32.mrf.mxu1  ;;  %v19603_v35 = vpack.c.bf16 %v8142_v20, %v8142_v20  ;;  %v17648_v16 = vcombine.high %v8297_v28, %v8301_v43  ;;  %v8289_v50 = vld [vmem:[#allocation14 + $0x448] sm:$0xff]  ;;  %v17647_v20 = vcombine.low %v8297_v28, %v8301_v43  ;;  %v17736_v28 = vcombine.high %v8385_v11, %v8389_v12 }
 0x647   :  { %v8143_v21 = vsel %vm8127_vm8, %v8116_v32, %v8135_v61  ;;  %v17522_v32 = vcombine.high %v8170_v34, %v8174_v41  ;;  %v8162_v61 = vld [vmem:[#allocation14 + $0x50] sm:$0xff]  ;;  %v17521_v26 = vcombine.low %v8170_v34, %v8174_v41  ;;  %v8377_v34 = vld [vmem:[#allocation14 + $0x708] sm:$0xff] }
 0x648   :  { %v19601_v0 = vpack.c.bf16 %v8143_v21, %v8143_v21  ;;  %11543 = vmatpush2.bf16.msra.mxu0 %v17823_v10  ;;  %v8293_v10 = vld [vmem:[#allocation14 + $0x468] sm:$0xff] }
 0x649   :  { %11594 = vmatprep.subr.bf16.mxu0 %v17562_v4  ;;  %v8166_v4 = vld [vmem:[#allocation14 + $0x70] sm:$0xff]  ;;  %v17640_v19 = vcombine.high %v8289_v50, %v8293_v10  ;;  %v17639_v27 = vcombine.low %v8289_v50, %v8293_v10  ;;  %v8381_v41 = vld [vmem:[#allocation14 + $0x728] sm:$0xff] }
 0x64a   :  { %11421 = vmatprep.mubr.bf16.mxu1 %v19601_v0  ;;  %v17514_v21 = vcombine.high %v8162_v61, %v8166_v4  ;;  %v17728_v50 = vcombine.high %v8377_v34, %v8381_v41 }
 0x64b   :  { %11545 = vmatmul.mubr.bf16.vlgmr.msra.gmra.mxu0 %v19576_v18  ;;  %11422 = vmatmul.mubr.bf16.vlgmr.msra.gmra.mxu1 %v19603_v35 }
 0x64c   :  { %11472 = vmatpush1.bf16.msra.mxu1 %v17687_v39  ;;  %11595 = vmatpush1.bf16.msra.mxu0 %v17561_v56  ;;  %v17538_v39 = vcombine.high %v8186_v57, %v8190_v23  ;;  %v8158_v56 = vld [vmem:[#allocation14 + $0x30] sm:$0xff]  ;;  %v8393_v57 = vld [vmem:[#allocation14 + $0x788] sm:$0xff] }
 0x64d   :  { %11626 = vmatprep.mubr.bf16.mxu0 %v19507_v6  ;;  %11503 = vmatprep.mubr.bf16.mxu1 %v19539_v7  ;;  %v17506_v54 = vcombine.high %v8154_v52, %v8158_v56  ;;  %v8397_v23 = vld [vmem:[#allocation14 + $0x7a8] sm:$0xff] }
 0x64e   :  { %11473 = vmatprep.subr.bf16.mxu1 %v17680_v15  ;;  %11596 = vmatprep.subr.bf16.mxu0 %v17554_v36  ;;  %v17513_v15 = vcombine.low %v8162_v61, %v8166_v4  ;;  %v17632_v36 = vcombine.high %v8281_v51, %v8285_v17  ;;  %v17744_v13 = vcombine.high %v8393_v57, %v8397_v23  ;;  %v8369_v61 = vld [vmem:[#allocation14 + $0x6c8] sm:$0xff] }
 0x64f   :  { %v8373_v4 = vld [vmem:[#allocation14 + $0x6e8] sm:$0xff] }
 0x650   :  { %11474 = vmatpush1.bf16.msra.mxu1 %v17679_v37  ;;  %11597 = vmatpush1.bf16.msra.mxu0 %v17553_v42  ;;  %v8274_v37 = vld [vmem:[#allocation14 + $0x3d0] sm:$0xff] }
 0x651   :  { %11475 = vmatprep.subr.bf16.mxu1 %v17672_v30  ;;  %11598 = vmatprep.subr.bf16.mxu0 %v17546_v14  ;;  %v8278_v42 = vld [vmem:[#allocation14 + $0x3f0] sm:$0xff]  ;;  %v17631_v30 = vcombine.low %v8281_v51, %v8285_v17  ;;  %v17505_v14 = vcombine.low %v8154_v52, %v8158_v56  ;;  %v17720_v51 = vcombine.high %v8369_v61, %v8373_v4  ;;  %v8361_v52 = vld [vmem:[#allocation14 + $0x688] sm:$0xff] }
 0x652   :  { %v17626_v8 = vcombine.high %v8274_v37, %v8278_v42  ;;  %v8365_v56 = vld [vmem:[#allocation14 + $0x6a8] sm:$0xff] }
 0x654   :  { %11476 = vmatpush1.bf16.msra.mxu1 %v17671_v3  ;;  %11599 = vmatpush1.bf16.msra.mxu0 %v17545_v58  ;;  %v8266_v3 = vld [vmem:[#allocation14 + $0x390] sm:$0xff] }
 0x655   :  { %11477 = vmatprep.subr.bf16.mxu1 %v17664_v5  ;;  %11600 = vmatprep.subr.bf16.mxu0 %v17538_v39  ;;  %v8270_v58 = vld [vmem:[#allocation14 + $0x3b0] sm:$0xff]  ;;  %v17751_v5 = vcombine.low %v8401_v22, %v8405_v38  ;;  %v17625_v39 = vcombine.low %v8274_v37, %v8278_v42  ;;  %v17712_v38 = vcombine.high %v8361_v52, %v8365_v56  ;;  %v8353_v42 = vld [vmem:[#allocation14 + $0x648] sm:$0xff] }
 0x656   :  { %v17618_v9 = vcombine.high %v8266_v3, %v8270_v58 }
 0x658   :  { %11478 = vmatpush1.bf16.msra.mxu1 %v17663_v25  ;;  %11601 = vmatpush1.bf16.msra.mxu0 %v17537_v40  ;;  %v8258_v25 = vld [vmem:[#allocation14 + $0x350] sm:$0xff] }
 0x659   :  { %11479 = vmatprep.subr.bf16.mxu1 %v17656_v59  ;;  %11602 = vmatprep.subr.bf16.mxu0 %v17530_v63  ;;  %v8262_v40 = vld [vmem:[#allocation14 + $0x370] sm:$0xff]  ;;  %v17743_v59 = vcombine.low %v8393_v57, %v8397_v23  ;;  %v17617_v63 = vcombine.low %v8266_v3, %v8270_v58  ;;  %v17711_v57 = vcombine.low %v8361_v52, %v8365_v56 }
 0x65a   :  { %v17610_v43 = vcombine.high %v8258_v25, %v8262_v40 }
 0x65c   :  { %11480 = vmatpush1.bf16.msra.mxu1 %v17655_v31  ;;  %11603 = vmatpush1.bf16.msra.mxu0 %v17529_v60  ;;  %v8250_v31 = vld [vmem:[#allocation14 + $0x310] sm:$0xff] }
 0x65d   :  { %11481 = vmatprep.subr.bf16.mxu1 %v17648_v16  ;;  %11604 = vmatprep.subr.bf16.mxu0 %v17522_v32  ;;  %v8254_v60 = vld [vmem:[#allocation14 + $0x330] sm:$0xff]  ;;  %v17735_v16 = vcombine.low %v8385_v11, %v8389_v12  ;;  %v17609_v32 = vcombine.low %v8258_v25, %v8262_v40 }
 0x65e   :  { %v17602_v10 = vcombine.high %v8250_v31, %v8254_v60  ;;  %v8222_v11 = vld [vmem:[#allocation14 + $0x230] sm:$0xff] }
 0x660   :  { %11482 = vmatpush1.bf16.msra.mxu1 %v17647_v20  ;;  %11605 = vmatpush1.bf16.msra.mxu0 %v17521_v26  ;;  %v8242_v20 = vld [vmem:[#allocation14 + $0x2d0] sm:$0xff] }
 0x661   :  { %11483 = vmatprep.subr.bf16.mxu1 %v17640_v19  ;;  %11606 = vmatprep.subr.bf16.mxu0 %v17514_v21  ;;  %v8246_v26 = vld [vmem:[#allocation14 + $0x2f0] sm:$0xff]  ;;  %v17727_v19 = vcombine.low %v8377_v34, %v8381_v41  ;;  %v17601_v21 = vcombine.low %v8250_v31, %v8254_v60  ;;  %v8593_v41 = vld [vmem:[#allocation14 + $0xdc8] sm:$0xff] }
 0x662   :  { %v17594_v17 = vcombine.high %v8242_v20, %v8246_v26  ;;  %v17593_v22 = vcombine.low %v8242_v20, %v8246_v26  ;;  %v8597_v60 = vld [vmem:[#allocation14 + $0xde8] sm:$0xff] }
 0x663   :  { %v8585_v26 = vld [vmem:[#allocation14 + $0xd88] sm:$0xff] }
 0x664   :  { %11484 = vmatpush1.bf16.msra.mxu1 %v17639_v27  ;;  %11607 = vmatpush1.bf16.msra.mxu0 %v17513_v15  ;;  %v8234_v27 = vld [vmem:[#allocation14 + $0x290] sm:$0xff] }
 0x665   :  { %11485 = vmatprep.subr.bf16.mxu1 %v17632_v36  ;;  %11608 = vmatprep.subr.bf16.mxu0 %v17506_v54  ;;  %v8238_v15 = vld [vmem:[#allocation14 + $0x2b0] sm:$0xff]  ;;  %v8664_v36 = vld [vmem:[#allocation16] sm:$0xff]  ;;  %v17719_v54 = vcombine.low %v8369_v61, %v8373_v4  ;;  %v17944_v4 = vcombine.high %v8593_v41, %v8597_v60 }
 0x666   :  { %v17586_v37 = vcombine.high %v8234_v27, %v8238_v15  ;;  %v17585_v23 = vcombine.low %v8234_v27, %v8238_v15  ;;  %v8673_v3 = vrot.slane %v8664_v36, %v19238_v48  ;;  %v8577_v15 = vld [vmem:[#allocation14 + $0xd48] sm:$0xff] }
 0x668   :  { %11486 = vmatpush1.bf16.msra.mxu1 %v17631_v30  ;;  %11609 = vmatpush1.bf16.msra.mxu0 %v17505_v14  ;;  %v8357_v30 = vld [vmem:[#allocation14 + $0x668] sm:$0xff]  ;;  %v8226_v14 = vld [vmem:[#allocation14 + $0x250] sm:$0xff] }
 0x669   :  { %11487 = vmatprep.subr.bf16.mxu1 %v17752_v24  ;;  %11610 = vmatprep.subr.bf16.mxu0 %v17626_v8  ;;  %v8230_v24 = vld [vmem:[#allocation14 + $0x270] sm:$0xff]  ;;  %v8669_v8 = vrot.slane %v8664_v36, %v19230_v45  ;;  %v17704_v58 = vcombine.high %v8353_v42, %v8357_v30  ;;  %v17703_v40 = vcombine.low %v8353_v42, %v8357_v30  ;;  %v8581_v36 = vld [vmem:[#allocation14 + $0xd68] sm:$0xff] }
 0x66b   :  { %v11301_v12 = vadd.f32 %v19595_v46, %v8669_v8 }
 0x66c   :  { %11488 = vmatpush2.bf16.msra.mxu1 %v17751_v5  ;;  %11611 = vmatpush2.bf16.msra.mxu0 %v17625_v39  ;;  %v17578_v5 = vcombine.high %v8226_v14, %v8230_v24  ;;  %v8345_v39 = vld [vmem:[#allocation14 + $0x608] sm:$0xff] }
 0x66d   :  { %11489 = vmatprep.subr.bf16.mxu1 %v17744_v13  ;;  %11612 = vmatprep.subr.bf16.mxu0 %v17618_v9  ;;  %v8349_v13 = vld [vmem:[#allocation14 + $0x628] sm:$0xff]  ;;  %v8218_v9 = vld [vmem:[#allocation14 + $0x210] sm:$0xff] }
 0x66e   :  { %v17570_v34 = vcombine.high %v8218_v9, %v8222_v11  ;;  %v17569_v61 = vcombine.low %v8218_v9, %v8222_v11 }
 0x670   :  { %11490 = vmatpush2.bf16.msra.mxu1 %v17743_v59  ;;  %11613 = vmatpush2.bf16.msra.mxu0 %v17617_v63  ;;  %v17577_v59 = vcombine.low %v8226_v14, %v8230_v24  ;;  %v17696_v63 = vcombine.high %v8345_v39, %v8349_v13  ;;  %v17928_v24 = vcombine.high %v8577_v15, %v8581_v36 }
 0x671   :  { %11491 = vmatprep.subr.bf16.mxu1 %v17736_v28  ;;  %11614 = vmatprep.subr.bf16.mxu0 %v17610_v43  ;;  %v11303_v28 = vadd.f32 %v19597_v55, %v8673_v3  ;;  %v8573_v3 = vld [vmem:[#allocation14 + $0xd28] sm:$0xff] }
 0x674   :  { %11492 = vmatpush2.bf16.msra.mxu1 %v17735_v16  ;;  %11615 = vmatpush2.bf16.msra.mxu0 %v17609_v32  ;;  %v8466_v16 = vld [vmem:[#allocation14 + $0x9d0] sm:$0xff] }
 0x675   :  { %11493 = vmatprep.subr.bf16.mxu1 %v17728_v50  ;;  %11616 = vmatprep.subr.bf16.mxu0 %v17602_v10  ;;  %v8470_v32 = vld [vmem:[#allocation14 + $0x9f0] sm:$0xff]  ;;  %v17695_v10 = vcombine.low %v8345_v39, %v8349_v13  ;;  %v17927_v13 = vcombine.low %v8577_v15, %v8581_v36 }
 0x676   :  { %v17818_v20 = vcombine.high %v8466_v16, %v8470_v32  ;;  %v17817_v52 = vcombine.low %v8466_v16, %v8470_v32  ;;  %v8446_v39 = vld [vmem:[#allocation14 + $0x930] sm:$0xff]  ;;  %v8557_v16 = vld [vmem:[#allocation14 + $0xca8] sm:$0xff] }
 0x677   :  { %v8426_v32 = vld [vmem:[#allocation14 + $0x890] sm:$0xff] }
 0x678   :  { %11494 = vmatpush2.bf16.msra.mxu1 %v17727_v19  ;;  %11617 = vmatpush2.bf16.msra.mxu0 %v17601_v21  ;;  %v8589_v19 = vld [vmem:[#allocation14 + $0xda8] sm:$0xff]  ;;  %v8458_v21 = vld [vmem:[#allocation14 + $0x990] sm:$0xff] }
 0x679   :  { %11495 = vmatprep.subr.bf16.mxu1 %v17720_v51  ;;  %11618 = vmatprep.subr.bf16.mxu0 %v17594_v17  ;;  %v8462_v51 = vld [vmem:[#allocation14 + $0x9b0] sm:$0xff]  ;;  %v17943_v17 = vcombine.low %v8593_v41, %v8597_v60  ;;  %v17936_v56 = vcombine.high %v8585_v26, %v8589_v19  ;;  %v17935_v42 = vcombine.low %v8585_v26, %v8589_v19  ;;  %v8553_v60 = vld [vmem:[#allocation14 + $0xc88] sm:$0xff] }
 0x67a   :  { %v17810_v27 = vcombine.high %v8458_v21, %v8462_v51  ;;  %v17809_v14 = vcombine.low %v8458_v21, %v8462_v51  ;;  %v8418_v26 = vld [vmem:[#allocation14 + $0x850] sm:$0xff]  ;;  %v17903_v21 = vcombine.low %v8553_v60, %v8557_v16 }
 0x67b   :  { %v8422_v19 = vld [vmem:[#allocation14 + $0x870] sm:$0xff] }
 0x67c   :  { %11496 = vmatpush2.bf16.msra.mxu1 %v17719_v54  ;;  %11619 = vmatpush2.bf16.msra.mxu0 %v17593_v22  ;;  %v8450_v22 = vld [vmem:[#allocation14 + $0x950] sm:$0xff] }
 0x67d   :  { %11497 = vmatprep.subr.bf16.mxu1 %v17712_v38  ;;  %11620 = vmatprep.subr.bf16.mxu0 %v17586_v37  ;;  %v8454_v38 = vld [vmem:[#allocation14 + $0x970] sm:$0xff] }
 0x67e   :  { %v17801_v11 = vcombine.low %v8450_v22, %v8454_v38  ;;  %v8410_v15 = vld [vmem:[#allocation14 + $0x810] sm:$0xff] }
 0x67f   :  { %v8414_v36 = vld [vmem:[#allocation14 + $0x830] sm:$0xff] }
 0x680   :  { %11498 = vmatpush2.bf16.msra.mxu1 %v17711_v57  ;;  %11621 = vmatpush2.bf16.msra.mxu0 %v17585_v23  ;;  %v11341_v25 = vpop.f32.mrf.mxu1  ;;  %v17802_v57 = vcombine.high %v8450_v22, %v8454_v38  ;;  %v8569_v23 = vld [vmem:[#allocation14 + $0xd08] sm:$0xff]  ;;  %v17769_v22 = vcombine.low %v8418_v26, %v8422_v19 }
 0x681   :  { %v11342_v43 = vadd.f32 %v11341_v25, %v11301_v12  ;;  %11499 = vmatprep.subr.bf16.mxu1 %v17704_v58  ;;  %11622 = vmatprep.subr.bf16.mxu0 %v17578_v5  ;;  %v8442_v5 = vld [vmem:[#allocation14 + $0x910] sm:$0xff]  ;;  %v17920_v12 = vcombine.high %v8569_v23, %v8573_v3 }
 0x682   :  { %v11343_v31 = vpop.f32.mrf.mxu1  ;;  %v17794_v25 = vcombine.high %v8442_v5, %v8446_v39 }
 0x683   :  { %v11344_v50 = vadd.f32 %v11343_v31, %v11303_v28  ;;  %v8438_v28 = vld [vmem:[#allocation14 + $0x8f0] sm:$0xff] }
 0x684   :  { %11500 = vmatpush2.bf16.msra.mxu1 %v17703_v40  ;;  %11623 = vmatpush2.bf16.msra.mxu0 %v17577_v59  ;;  %v11345_v46 = vpop.f32.mrf.mxu1  ;;  %v8561_v40 = vld [vmem:[#allocation14 + $0xcc8] sm:$0xff] }
 0x685   :  { %11501 = vmatprep.subr.bf16.mxu1 %v17696_v63  ;;  %11624 = vmatprep.subr.bf16.mxu0 %v17570_v34  ;;  %v8565_v59 = vld [vmem:[#allocation14 + $0xce8] sm:$0xff]  ;;  %v8434_v63 = vld [vmem:[#allocation14 + $0x8d0] sm:$0xff]  ;;  %v17793_v34 = vcombine.low %v8442_v5, %v8446_v39 }
 0x686   :  { %v11346_v55 = vpop.f32.mrf.mxu1  ;;  %v17912_v41 = vcombine.high %v8561_v40, %v8565_v59  ;;  %v17786_v31 = vcombine.high %v8434_v63, %v8438_v28  ;;  %v17911_v46 = vcombine.low %v8561_v40, %v8565_v59  ;;  %v8649_v39 = vld [vmem:[#allocation14 + $0xf88] sm:$0xff] }
 0x687   :  { %v8549_v55 = vld [vmem:[#allocation14 + $0xc68] sm:$0xff] }
 0x688   :  { %11502 = vmatpush2.bf16.msra.mxu1 %v17695_v10  ;;  %11625 = vmatpush2.bf16.msra.mxu0 %v17569_v61  ;;  %v17785_v10 = vcombine.low %v8434_v63, %v8438_v28  ;;  %v17904_v61 = vcombine.high %v8553_v60, %v8557_v16  ;;  %v8641_v63 = vld [vmem:[#allocation14 + $0xf48] sm:$0xff] }
 0x689   :  { %11553 = vmatprep.subr.bf16.mxu1 %v17944_v4  ;;  %11676 = vmatprep.subr.bf16.mxu0 %v17818_v20  ;;  %v8545_v20 = vld [vmem:[#allocation14 + $0xc48] sm:$0xff] }
 0x68a   :  { %v8645_v28 = vld [vmem:[#allocation14 + $0xf68] sm:$0xff] }
 0x68b   :  { %11504 = vmatmul.mubr.bf16.vlgmr.msra.gmra.mxu1 %v19563_v44  ;;  %11627 = vmatmul.mubr.bf16.vlgmr.msra.gmra.mxu0 %v19525_v53  ;;  %v11382_v54 = vpop.f32.mrf.mxu0  ;;  %v17992_v60 = vcombine.high %v8641_v63, %v8645_v28 }
 0x68c   :  { %v19619_v37 = vadd.f32 %v11382_v54, %v11342_v43  ;;  %11554 = vmatpush1.bf16.msra.mxu1 %v17943_v17  ;;  %11585 = vmatprep.mubr.bf16.mxu1 %v19601_v0  ;;  %v17919_v43 = vcombine.low %v8569_v23, %v8573_v3  ;;  %v17896_v17 = vcombine.high %v8545_v20, %v8549_v55 }
 0x68d   :  { %11677 = vmatpush1.bf16.msra.mxu0 %v17817_v52  ;;  %11708 = vmatprep.mubr.bf16.mxu0 %v19568_v1  ;;  %v11384_v30 = vpop.f32.mrf.mxu0  ;;  %v17770_v52 = vcombine.high %v8418_v26, %v8422_v19  ;;  %v17895_v54 = vcombine.low %v8545_v20, %v8549_v55  ;;  %v17761_v3 = vcombine.low %v8410_v15, %v8414_v36  ;;  %v8625_v26 = vld [vmem:[#allocation14 + $0xec8] sm:$0xff] }
 0x68e   :  { %v19623_v8 = vadd.f32 %v11384_v30, %v11344_v50  ;;  %11555 = vmatprep.subr.bf16.mxu1 %v17936_v56  ;;  %11678 = vmatprep.subr.bf16.mxu0 %v17810_v27  ;;  %v8430_v50 = vld [vmem:[#allocation14 + $0x8b0] sm:$0xff]  ;;  %v8537_v56 = vld [vmem:[#allocation14 + $0xc08] sm:$0xff] }
 0x68f   :  { %v11386_v58 = vpop.f32.mrf.mxu0  ;;  %v17778_v4 = vcombine.high %v8426_v32, %v8430_v50  ;;  %v17777_v51 = vcombine.low %v8426_v32, %v8430_v50  ;;  %v8541_v27 = vld [vmem:[#allocation14 + $0xc28] sm:$0xff] }
 0x690   :  { %11556 = vmatpush1.bf16.msra.mxu1 %v17935_v42  ;;  %v17888_v38 = vcombine.high %v8537_v56, %v8541_v27  ;;  %v17762_v42 = vcombine.high %v8410_v15, %v8414_v36  ;;  %v8657_v30 = vld [vmem:[#allocation14 + $0xfc8] sm:$0xff]  ;;  %v17887_v23 = vcombine.low %v8537_v56, %v8541_v27 }
 0x691   :  { %11679 = vmatpush1.bf16.msra.mxu0 %v17809_v14  ;;  %v11387_v9 = vpop.f32.mrf.mxu0  ;;  %11557 = vmatprep.subr.bf16.mxu1 %v17928_v24  ;;  %v8661_v14 = vld [vmem:[#allocation14 + $0xfe8] sm:$0xff]  ;;  %v8530_v24 = vld [vmem:[#allocation14 + $0xbd0] sm:$0xff] }
 0x692   :  { %11680 = vmatprep.subr.bf16.mxu0 %v17802_v57  ;;  %v8534_v57 = vld [vmem:[#allocation14 + $0xbf0] sm:$0xff]  ;;  %v18008_v58 = vcombine.high %v8657_v30, %v8661_v14  ;;  %v8633_v32 = vld [vmem:[#allocation14 + $0xf08] sm:$0xff] }
 0x693   :  { %v17882_v5 = vcombine.high %v8530_v24, %v8534_v57  ;;  %v8522_v9 = vld [vmem:[#allocation14 + $0xb90] sm:$0xff]  ;;  %v8637_v50 = vld [vmem:[#allocation14 + $0xf28] sm:$0xff] }
 0x694   :  { %11558 = vmatpush1.bf16.msra.mxu1 %v17927_v13  ;;  %v8653_v13 = vld [vmem:[#allocation14 + $0xfa8] sm:$0xff]  ;;  %v17984_v20 = vcombine.high %v8633_v32, %v8637_v50 }
 0x695   :  { %11681 = vmatpush1.bf16.msra.mxu0 %v17801_v11  ;;  %11559 = vmatprep.subr.bf16.mxu1 %v17920_v12  ;;  %v8526_v11 = vld [vmem:[#allocation14 + $0xbb0] sm:$0xff]  ;;  %v18007_v12 = vcombine.low %v8657_v30, %v8661_v14  ;;  %v18000_v40 = vcombine.high %v8649_v39, %v8653_v13  ;;  %v8629_v19 = vld [vmem:[#allocation14 + $0xee8] sm:$0xff] }
 0x696   :  { %11682 = vmatprep.subr.bf16.mxu0 %v17794_v25  ;;  %v17881_v25 = vcombine.low %v8530_v24, %v8534_v57  ;;  %v17874_v59 = vcombine.high %v8522_v9, %v8526_v11  ;;  %v17976_v56 = vcombine.high %v8625_v26, %v8629_v19  ;;  %v8617_v15 = vld [vmem:[#allocation14 + $0xe88] sm:$0xff] }
 0x697   :  { %v8621_v36 = vld [vmem:[#allocation14 + $0xea8] sm:$0xff] }
 0x698   :  { %11560 = vmatpush1.bf16.msra.mxu1 %v17919_v43  ;;  %v8514_v43 = vld [vmem:[#allocation14 + $0xb50] sm:$0xff]  ;;  %v17968_v30 = vcombine.high %v8617_v15, %v8621_v36  ;;  %v8609_v24 = vld [vmem:[#allocation14 + $0xe48] sm:$0xff] }
 0x699   :  { %11683 = vmatpush1.bf16.msra.mxu0 %v17793_v34  ;;  %11561 = vmatprep.subr.bf16.mxu1 %v17912_v41  ;;  %v8518_v34 = vld [vmem:[#allocation14 + $0xb70] sm:$0xff]  ;;  %v17999_v41 = vcombine.low %v8649_v39, %v8653_v13  ;;  %v8613_v57 = vld [vmem:[#allocation14 + $0xe68] sm:$0xff] }
 0x69a   :  { %11684 = vmatprep.subr.bf16.mxu0 %v17786_v31  ;;  %v17873_v31 = vcombine.low %v8522_v9, %v8526_v11  ;;  %v17866_v16 = vcombine.high %v8514_v43, %v8518_v34  ;;  %v17960_v39 = vcombine.high %v8609_v24, %v8613_v57  ;;  %v8601_v9 = vld [vmem:[#allocation14 + $0xe08] sm:$0xff] }
 0x69b   :  { %v8605_v11 = vld [vmem:[#allocation14 + $0xe28] sm:$0xff] }
 0x69c   :  { %11562 = vmatpush1.bf16.msra.mxu1 %v17911_v46  ;;  %v8506_v46 = vld [vmem:[#allocation14 + $0xb10] sm:$0xff] }
 0x69d   :  { %11685 = vmatpush1.bf16.msra.mxu0 %v17785_v10  ;;  %11563 = vmatprep.subr.bf16.mxu1 %v17904_v61  ;;  %v8510_v10 = vld [vmem:[#allocation14 + $0xb30] sm:$0xff]  ;;  %v17991_v61 = vcombine.low %v8641_v63, %v8645_v28  ;;  %v17952_v63 = vcombine.high %v8601_v9, %v8605_v11 }
 0x69e   :  { %11686 = vmatprep.subr.bf16.mxu0 %v17778_v4  ;;  %v17865_v4 = vcombine.low %v8514_v43, %v8518_v34  ;;  %v17858_v55 = vcombine.high %v8506_v46, %v8510_v10  ;;  %v8338_v43 = vld [vmem:[#allocation14 + $0x5d0] sm:$0xff] }
 0x69f   :  { %v8342_v34 = vld [vmem:[#allocation14 + $0x5f0] sm:$0xff] }
 0x6a0   :  { %11564 = vmatpush1.bf16.msra.mxu1 %v17903_v21  ;;  %v8498_v21 = vld [vmem:[#allocation14 + $0xad0] sm:$0xff] }
 0x6a1   :  { %11687 = vmatpush1.bf16.msra.mxu0 %v17777_v51  ;;  %11565 = vmatprep.subr.bf16.mxu1 %v17896_v17  ;;  %v8502_v51 = vld [vmem:[#allocation14 + $0xaf0] sm:$0xff]  ;;  %v17983_v17 = vcombine.low %v8633_v32, %v8637_v50  ;;  %v17690_v32 = vcombine.high %v8338_v43, %v8342_v34 }
 0x6a2   :  { %11688 = vmatprep.subr.bf16.mxu0 %v17770_v52  ;;  %v17857_v52 = vcombine.low %v8506_v46, %v8510_v10  ;;  %v17850_v27 = vcombine.high %v8498_v21, %v8502_v51  ;;  %v8330_v46 = vld [vmem:[#allocation14 + $0x590] sm:$0xff] }
 0x6a3   :  { %v8334_v10 = vld [vmem:[#allocation14 + $0x5b0] sm:$0xff] }
 0x6a4   :  { %11566 = vmatpush1.bf16.msra.mxu1 %v17895_v54  ;;  %v8490_v54 = vld [vmem:[#allocation14 + $0xa90] sm:$0xff] }
 0x6a5   :  { %11689 = vmatpush1.bf16.msra.mxu0 %v17769_v22  ;;  %11567 = vmatprep.subr.bf16.mxu1 %v17888_v38  ;;  %v8494_v22 = vld [vmem:[#allocation14 + $0xab0] sm:$0xff]  ;;  %v17975_v38 = vcombine.low %v8625_v26, %v8629_v19  ;;  %v17682_v26 = vcombine.high %v8330_v46, %v8334_v10 }
 0x6a6   :  { %11690 = vmatprep.subr.bf16.mxu0 %v17762_v42  ;;  %v17849_v42 = vcombine.low %v8498_v21, %v8502_v51  ;;  %v17842_v14 = vcombine.high %v8490_v54, %v8494_v22  ;;  %v8322_v19 = vld [vmem:[#allocation14 + $0x550] sm:$0xff] }
 0x6a7   :  { %v8326_v21 = vld [vmem:[#allocation14 + $0x570] sm:$0xff] }
 0x6a8   :  { %11568 = vmatpush1.bf16.msra.mxu1 %v17887_v23  ;;  %v8482_v23 = vld [vmem:[#allocation14 + $0xa50] sm:$0xff] }
 0x6a9   :  { %11691 = vmatpush1.bf16.msra.mxu0 %v17761_v3  ;;  %11569 = vmatprep.subr.bf16.mxu1 %v18008_v58  ;;  %v8486_v3 = vld [vmem:[#allocation14 + $0xa70] sm:$0xff]  ;;  %v17967_v58 = vcombine.low %v8617_v15, %v8621_v36 }
 0x6aa   :  { %11692 = vmatprep.subr.bf16.mxu0 %v17882_v5  ;;  %v17841_v5 = vcombine.low %v8490_v54, %v8494_v22  ;;  %v17834_v13 = vcombine.high %v8482_v23, %v8486_v3  ;;  %v17674_v54 = vcombine.high %v8322_v19, %v8326_v21 }
 0x6ac   :  { %11570 = vmatpush2.bf16.msra.mxu1 %v18007_v12  ;;  %v8474_v12 = vld [vmem:[#allocation14 + $0xa10] sm:$0xff] }
 0x6ad   :  { %11693 = vmatpush2.bf16.msra.mxu0 %v17881_v25  ;;  %11571 = vmatprep.subr.bf16.mxu1 %v18000_v40  ;;  %v8478_v25 = vld [vmem:[#allocation14 + $0xa30] sm:$0xff]  ;;  %v17959_v40 = vcombine.low %v8609_v24, %v8613_v57  ;;  %v8191_v24 = vld [vmem:[#allocation14 + $0x138] sm:$0xff]  ;;  %v17673_v57 = vcombine.low %v8322_v19, %v8326_v21 }
 0x6ae   :  { %11694 = vmatprep.subr.bf16.mxu0 %v17874_v59  ;;  %v17833_v59 = vcombine.low %v8482_v23, %v8486_v3  ;;  %v17826_v28 = vcombine.high %v8474_v12, %v8478_v25  ;;  %v8155_v19 = vld [vmem:[#allocation14 + $0x18] sm:$0xff] }
 0x6af   :  { %v8159_v21 = vld [vmem:[#allocation14 + $0x38] sm:$0xff] }
 0x6b0   :  { %11572 = vmatpush2.bf16.msra.mxu1 %v17999_v41  ;;  %v8211_v41 = vld [vmem:[#allocation14 + $0x1d8] sm:$0xff] }
 0x6b1   :  { %11695 = vmatpush2.bf16.msra.mxu0 %v17873_v31  ;;  %11573 = vmatprep.subr.bf16.mxu1 %v17992_v60  ;;  %v8215_v31 = vld [vmem:[#allocation14 + $0x1f8] sm:$0xff]  ;;  %v17951_v60 = vcombine.low %v8601_v9, %v8605_v11 }
 0x6b2   :  { %11696 = vmatprep.subr.bf16.mxu0 %v17866_v16  ;;  %v17825_v16 = vcombine.low %v8474_v12, %v8478_v25  ;;  %v17564_v50 = vcombine.high %v8211_v41, %v8215_v31  ;;  %v8183_v9 = vld [vmem:[#allocation14 + $0xf8] sm:$0xff] }
 0x6b4   :  { %11574 = vmatpush2.bf16.msra.mxu1 %v17991_v61  ;;  %v17689_v61 = vcombine.low %v8338_v43, %v8342_v34  ;;  %v8175_v43 = vld [vmem:[#allocation14 + $0xb8] sm:$0xff] }
 0x6b5   :  { %11697 = vmatpush2.bf16.msra.mxu0 %v17865_v4  ;;  %11575 = vmatprep.subr.bf16.mxu1 %v17984_v20  ;;  %v8203_v4 = vld [vmem:[#allocation14 + $0x198] sm:$0xff] }
 0x6b6   :  { %11698 = vmatprep.subr.bf16.mxu0 %v17858_v55  ;;  %v8207_v20 = vld [vmem:[#allocation14 + $0x1b8] sm:$0xff]  ;;  %v17563_v55 = vcombine.low %v8211_v41, %v8215_v31 }
 0x6b7   :  { %v17555_v36 = vcombine.low %v8203_v4, %v8207_v20 }
 0x6b8   :  { %11576 = vmatpush2.bf16.msra.mxu1 %v17983_v17  ;;  %v17556_v17 = vcombine.high %v8203_v4, %v8207_v20 }
 0x6b9   :  { %11699 = vmatpush2.bf16.msra.mxu0 %v17857_v52  ;;  %11577 = vmatprep.subr.bf16.mxu1 %v17976_v56  ;;  %v8195_v52 = vld [vmem:[#allocation14 + $0x158] sm:$0xff] }
 0x6ba   :  { %11700 = vmatprep.subr.bf16.mxu0 %v17850_v27  ;;  %v8199_v56 = vld [vmem:[#allocation14 + $0x178] sm:$0xff]  ;;  %v17681_v27 = vcombine.low %v8330_v46, %v8334_v10 }
 0x6bb   :  { %v17548_v22 = vcombine.high %v8195_v52, %v8199_v56  ;;  %v17547_v3 = vcombine.low %v8195_v52, %v8199_v56  ;;  %v8167_v46 = vld [vmem:[#allocation14 + $0x78] sm:$0xff] }
 0x6bc   :  { %11578 = vmatpush2.bf16.msra.mxu1 %v17975_v38  ;;  %v8314_v38 = vld [vmem:[#allocation14 + $0x510] sm:$0xff] }
 0x6bd   :  { %11701 = vmatpush2.bf16.msra.mxu0 %v17849_v42  ;;  %11579 = vmatprep.subr.bf16.mxu1 %v17968_v30  ;;  %v8318_v42 = vld [vmem:[#allocation14 + $0x530] sm:$0xff] }
 0x6be   :  { %11702 = vmatprep.subr.bf16.mxu0 %v17842_v14  ;;  %v8187_v14 = vld [vmem:[#allocation14 + $0x118] sm:$0xff]  ;;  %v17665_v11 = vcombine.low %v8314_v38, %v8318_v42 }
 0x6bf   :  { %v17539_v12 = vcombine.low %v8187_v14, %v8191_v24 }
 0x6c0   :  { %11580 = vmatpush2.bf16.msra.mxu1 %v17967_v58  ;;  %v17666_v58 = vcombine.high %v8314_v38, %v8318_v42  ;;  %v8279_v38 = vld [vmem:[#allocation14 + $0x3f8] sm:$0xff] }
 0x6c1   :  { %11703 = vmatpush2.bf16.msra.mxu0 %v17841_v5  ;;  %11581 = vmatprep.subr.bf16.mxu1 %v17960_v39  ;;  %v17540_v5 = vcombine.high %v8187_v14, %v8191_v24  ;;  %v8306_v39 = vld [vmem:[#allocation14 + $0x4d0] sm:$0xff] }
 0x6c2   :  { %11704 = vmatprep.subr.bf16.mxu0 %v17834_v13  ;;  %v8310_v13 = vld [vmem:[#allocation14 + $0x4f0] sm:$0xff] }
 0x6c3   :  { %v17658_v25 = vcombine.high %v8306_v39, %v8310_v13  ;;  %v17657_v34 = vcombine.low %v8306_v39, %v8310_v13 }
 0x6c4   :  { %11582 = vmatpush2.bf16.msra.mxu1 %v17959_v40 }
 0x6c5   :  { %11705 = vmatpush2.bf16.msra.mxu0 %v17833_v59  ;;  %11583 = vmatprep.subr.bf16.mxu1 %v17952_v63  ;;  %v8298_v59 = vld [vmem:[#allocation14 + $0x490] sm:$0xff] }
 0x6c6   :  { %11706 = vmatprep.subr.bf16.mxu0 %v17826_v28  ;;  %v8302_v63 = vld [vmem:[#allocation14 + $0x4b0] sm:$0xff]  ;;  %v8171_v28 = vld [vmem:[#allocation14 + $0x98] sm:$0xff] }
 0x6c7   :  { %v17650_v31 = vcombine.high %v8298_v59, %v8302_v63  ;;  %v17649_v10 = vcombine.low %v8298_v59, %v8302_v63 }
 0x6c8   :  { %11584 = vmatpush2.bf16.msra.mxu1 %v17951_v60  ;;  %v17524_v60 = vcombine.high %v8171_v28, %v8175_v43 }
 0x6c9   :  { %11707 = vmatpush2.bf16.msra.mxu0 %v17825_v16  ;;  %11635 = vmatprep.subr.bf16.mxu1 %v17690_v32  ;;  %v8290_v16 = vld [vmem:[#allocation14 + $0x450] sm:$0xff] }
 0x6ca   :  { %11758 = vmatprep.subr.bf16.mxu0 %v17564_v50  ;;  %v8294_v32 = vld [vmem:[#allocation14 + $0x470] sm:$0xff]  ;;  %v8163_v50 = vld [vmem:[#allocation14 + $0x58] sm:$0xff] }
 0x6cb   :  { %v19625_v51 = vpop.f32.mrf.mxu0  ;;  %11586 = vmatmul.mubr.bf16.vlgmr.msra.gmra.mxu1 %v19603_v35  ;;  %v17642_v4 = vcombine.high %v8290_v16, %v8294_v32  ;;  %v17516_v20 = vcombine.high %v8163_v50, %v8167_v46  ;;  %v17515_v52 = vcombine.low %v8163_v50, %v8167_v46  ;;  %v8370_v46 = vld [vmem:[#allocation14 + $0x6d0] sm:$0xff] }
 0x6cc   :  { %11709 = vmatmul.mubr.bf16.vlgmr.msra.gmra.mxu0 %v19576_v18  ;;  %11636 = vmatpush1.bf16.msra.mxu1 %v17689_v61  ;;  %v17523_v61 = vcombine.low %v8171_v28, %v8175_v43  ;;  %v8378_v43 = vld [vmem:[#allocation14 + $0x710] sm:$0xff] }
 0x6cd   :  { %11667 = vmatprep.mubr.bf16.mxu1 %v19539_v7  ;;  %11759 = vmatpush1.bf16.msra.mxu0 %v17563_v55  ;;  %v19630_v15 = vpop.f32.mrf.mxu0  ;;  %v8282_v55 = vld [vmem:[#allocation14 + $0x410] sm:$0xff] }
 0x6ce   :  { %11790 = vmatprep.mubr.bf16.mxu0 %v19507_v6  ;;  %11637 = vmatprep.subr.bf16.mxu1 %v17682_v26  ;;  %v8179_v6 = vld [vmem:[#allocation14 + $0xd8] sm:$0xff]  ;;  %v8286_v26 = vld [vmem:[#allocation14 + $0x430] sm:$0xff] }
 0x6cf   :  { %v11468_v30 = vpop.f32.mrf.mxu0  ;;  %11760 = vmatprep.subr.bf16.mxu0 %v17556_v17  ;;  %v17532_v40 = vcombine.high %v8179_v6, %v8183_v9  ;;  %v17531_v41 = vcombine.low %v8179_v6, %v8183_v9  ;;  %v17641_v17 = vcombine.low %v8290_v16, %v8294_v32  ;;  %v17634_v56 = vcombine.high %v8282_v55, %v8286_v26  ;;  %v8386_v9 = vld [vmem:[#allocation14 + $0x750] sm:$0xff] }
 0x6d0   :  { %11638 = vmatpush1.bf16.msra.mxu1 %v17681_v27  ;;  %v17508_v27 = vcombine.high %v8155_v19, %v8159_v21  ;;  %v17633_v42 = vcombine.low %v8282_v55, %v8286_v26  ;;  %v17507_v30 = vcombine.low %v8155_v19, %v8159_v21  ;;  %v8362_v21 = vld [vmem:[#allocation14 + $0x690] sm:$0xff] }
 0x6d1   :  { %11761 = vmatpush1.bf16.msra.mxu0 %v17555_v36  ;;  %v11469_v23 = vpop.f32.mrf.mxu0  ;;  %11639 = vmatprep.subr.bf16.mxu1 %v17674_v54  ;;  %v8402_v36 = vld [vmem:[#allocation14 + $0x7d0] sm:$0xff] }
 0x6d2   :  { %11762 = vmatprep.subr.bf16.mxu0 %v17548_v22  ;;  %v8406_v54 = vld [vmem:[#allocation14 + $0x7f0] sm:$0xff]  ;;  %v8275_v22 = vld [vmem:[#allocation14 + $0x3d8] sm:$0xff] }
 0x6d3   :  { %v17754_v14 = vcombine.high %v8402_v36, %v8406_v54  ;;  %v17628_v24 = vcombine.high %v8275_v22, %v8279_v38  ;;  %v8398_v23 = vld [vmem:[#allocation14 + $0x7b0] sm:$0xff]  ;;  %v17627_v39 = vcombine.low %v8275_v22, %v8279_v38 }
 0x6d4   :  { %11640 = vmatpush1.bf16.msra.mxu1 %v17673_v57  ;;  %v8394_v57 = vld [vmem:[#allocation14 + $0x790] sm:$0xff] }
 0x6d5   :  { %11763 = vmatpush1.bf16.msra.mxu0 %v17547_v3  ;;  %11641 = vmatprep.subr.bf16.mxu1 %v17666_v58  ;;  %v8267_v3 = vld [vmem:[#allocation14 + $0x398] sm:$0xff]  ;;  %v17746_v13 = vcombine.high %v8394_v57, %v8398_v23  ;;  %v8354_v38 = vld [vmem:[#allocation14 + $0x650] sm:$0xff] }
 0x6d6   :  { %11764 = vmatprep.subr.bf16.mxu0 %v17540_v5  ;;  %v8271_v58 = vld [vmem:[#allocation14 + $0x3b8] sm:$0xff]  ;;  %v17753_v5 = vcombine.low %v8402_v36, %v8406_v54 }
 0x6d7   :  { %v17620_v6 = vcombine.high %v8267_v3, %v8271_v58  ;;  %v17619_v59 = vcombine.low %v8267_v3, %v8271_v58  ;;  %v8346_v58 = vld [vmem:[#allocation14 + $0x610] sm:$0xff] }
 0x6d8   :  { %11642 = vmatpush1.bf16.msra.mxu1 %v17665_v11  ;;  %v8390_v11 = vld [vmem:[#allocation14 + $0x770] sm:$0xff] }
 0x6d9   :  { %11765 = vmatpush1.bf16.msra.mxu0 %v17539_v12  ;;  %11643 = vmatprep.subr.bf16.mxu1 %v17658_v25  ;;  %v8259_v12 = vld [vmem:[#allocation14 + $0x358] sm:$0xff]  ;;  %v17738_v63 = vcombine.high %v8386_v9, %v8390_v11 }
 0x6da   :  { %11766 = vmatprep.subr.bf16.mxu0 %v17532_v40  ;;  %v8263_v25 = vld [vmem:[#allocation14 + $0x378] sm:$0xff]  ;;  %v17745_v40 = vcombine.low %v8394_v57, %v8398_v23 }
 0x6db   :  { %v17612_v28 = vcombine.high %v8259_v12, %v8263_v25  ;;  %v17611_v16 = vcombine.low %v8259_v12, %v8263_v25  ;;  %v8594_v25 = vld [vmem:[#allocation14 + $0xdd0] sm:$0xff] }
 0x6dc   :  { %11644 = vmatpush1.bf16.msra.mxu1 %v17657_v34  ;;  %v8382_v34 = vld [vmem:[#allocation14 + $0x730] sm:$0xff] }
 0x6dd   :  { %11767 = vmatpush1.bf16.msra.mxu0 %v17531_v41  ;;  %11645 = vmatprep.subr.bf16.mxu1 %v17650_v31  ;;  %v8251_v41 = vld [vmem:[#allocation14 + $0x318] sm:$0xff]  ;;  %v17730_v32 = vcombine.high %v8378_v43, %v8382_v34 }
 0x6de   :  { %11768 = vmatprep.subr.bf16.mxu0 %v17524_v60  ;;  %v8255_v31 = vld [vmem:[#allocation14 + $0x338] sm:$0xff]  ;;  %v17737_v60 = vcombine.low %v8386_v9, %v8390_v11 }
 0x6df   :  { %v17604_v50 = vcombine.high %v8251_v41, %v8255_v31  ;;  %v17603_v55 = vcombine.low %v8251_v41, %v8255_v31  ;;  %v8586_v31 = vld [vmem:[#allocation14 + $0xd90] sm:$0xff] }
 0x6e0   :  { %11646 = vmatpush1.bf16.msra.mxu1 %v17649_v10  ;;  %v8374_v10 = vld [vmem:[#allocation14 + $0x6f0] sm:$0xff] }
 0x6e1   :  { %11769 = vmatpush1.bf16.msra.mxu0 %v17523_v61  ;;  %11647 = vmatprep.subr.bf16.mxu1 %v17642_v4  ;;  %v8243_v61 = vld [vmem:[#allocation14 + $0x2d8] sm:$0xff]  ;;  %v17722_v26 = vcombine.high %v8370_v46, %v8374_v10 }
 0x6e2   :  { %11770 = vmatprep.subr.bf16.mxu0 %v17516_v20  ;;  %v8247_v4 = vld [vmem:[#allocation14 + $0x2f8] sm:$0xff]  ;;  %v17729_v20 = vcombine.low %v8378_v43, %v8382_v34 }
 0x6e3   :  { %v17596_v19 = vcombine.high %v8243_v61, %v8247_v4  ;;  %v17595_v36 = vcombine.low %v8243_v61, %v8247_v4  ;;  %v8578_v61 = vld [vmem:[#allocation14 + $0xd50] sm:$0xff] }
 0x6e4   :  { %11648 = vmatpush1.bf16.msra.mxu1 %v17641_v17  ;;  %v8366_v17 = vld [vmem:[#allocation14 + $0x6b0] sm:$0xff] }
 0x6e5   :  { %11771 = vmatpush1.bf16.msra.mxu0 %v17515_v52  ;;  %11649 = vmatprep.subr.bf16.mxu1 %v17634_v56  ;;  %v8235_v52 = vld [vmem:[#allocation14 + $0x298] sm:$0xff]  ;;  %v17714_v54 = vcombine.high %v8362_v21, %v8366_v17  ;;  %v8582_v4 = vld [vmem:[#allocation14 + $0xd70] sm:$0xff] }
 0x6e6   :  { %11772 = vmatprep.subr.bf16.mxu0 %v17508_v27  ;;  %v8239_v56 = vld [vmem:[#allocation14 + $0x2b8] sm:$0xff]  ;;  %v17721_v27 = vcombine.low %v8370_v46, %v8374_v10 }
 0x6e7   :  { %v17588_v22 = vcombine.high %v8235_v52, %v8239_v56  ;;  %v17587_v57 = vcombine.low %v8235_v52, %v8239_v56 }
 0x6e8   :  { %11650 = vmatpush1.bf16.msra.mxu1 %v17633_v42  ;;  %v8358_v42 = vld [vmem:[#allocation14 + $0x670] sm:$0xff] }
 0x6e9   :  { %11773 = vmatpush1.bf16.msra.mxu0 %v17507_v30  ;;  %11651 = vmatprep.subr.bf16.mxu1 %v17754_v14  ;;  %v8227_v30 = vld [vmem:[#allocation14 + $0x258] sm:$0xff]  ;;  %v17706_v23 = vcombine.high %v8354_v38, %v8358_v42 }
 0x6ea   :  { %11774 = vmatprep.subr.bf16.mxu0 %v17628_v24  ;;  %v8231_v14 = vld [vmem:[#allocation14 + $0x278] sm:$0xff]  ;;  %v17713_v24 = vcombine.low %v8362_v21, %v8366_v17 }
 0x6eb   :  { %v17580_v3 = vcombine.high %v8227_v30, %v8231_v14  ;;  %v17579_v9 = vcombine.low %v8227_v30, %v8231_v14  ;;  %v8455_v21 = vld [vmem:[#allocation14 + $0x978] sm:$0xff] }
 0x6ec   :  { %11652 = vmatpush2.bf16.msra.mxu1 %v17753_v5  ;;  %v8350_v5 = vld [vmem:[#allocation14 + $0x630] sm:$0xff]  ;;  %v8443_v30 = vld [vmem:[#allocation14 + $0x918] sm:$0xff] }
 0x6ed   :  { %11775 = vmatpush2.bf16.msra.mxu0 %v17627_v39  ;;  %11653 = vmatprep.subr.bf16.mxu1 %v17746_v13  ;;  %v8219_v39 = vld [vmem:[#allocation14 + $0x218] sm:$0xff]  ;;  %v17698_v11 = vcombine.high %v8346_v58, %v8350_v5 }
 0x6ee   :  { %11776 = vmatprep.subr.bf16.mxu0 %v17620_v6  ;;  %v8223_v13 = vld [vmem:[#allocation14 + $0x238] sm:$0xff]  ;;  %v17705_v6 = vcombine.low %v8354_v38, %v8358_v42  ;;  %v8570_v38 = vld [vmem:[#allocation14 + $0xd10] sm:$0xff] }
 0x6ef   :  { %v17572_v12 = vcombine.high %v8219_v39, %v8223_v13  ;;  %v17571_v43 = vcombine.low %v8219_v39, %v8223_v13  ;;  %v8447_v14 = vld [vmem:[#allocation14 + $0x938] sm:$0xff]  ;;  %v8566_v39 = vld [vmem:[#allocation14 + $0xcf0] sm:$0xff] }
 0x6f0   :  { %11654 = vmatpush2.bf16.msra.mxu1 %v17745_v40  ;;  %v8598_v40 = vld [vmem:[#allocation14 + $0xdf0] sm:$0xff]  ;;  %v8435_v13 = vld [vmem:[#allocation14 + $0x8d8] sm:$0xff] }
 0x6f1   :  { %11777 = vmatpush2.bf16.msra.mxu0 %v17619_v59  ;;  %11655 = vmatprep.subr.bf16.mxu1 %v17738_v63  ;;  %v8467_v59 = vld [vmem:[#allocation14 + $0x9d8] sm:$0xff]  ;;  %v17946_v34 = vcombine.high %v8594_v25, %v8598_v40 }
 0x6f2   :  { %11778 = vmatprep.subr.bf16.mxu0 %v17612_v28  ;;  %v8471_v63 = vld [vmem:[#allocation14 + $0x9f8] sm:$0xff]  ;;  %v17697_v28 = vcombine.low %v8346_v58, %v8350_v5  ;;  %v17796_v5 = vcombine.high %v8443_v30, %v8447_v14 }
 0x6f3   :  { %v17820_v41 = vcombine.high %v8467_v59, %v8471_v63  ;;  %v17819_v46 = vcombine.low %v8467_v59, %v8471_v63  ;;  %v8558_v59 = vld [vmem:[#allocation14 + $0xcb0] sm:$0xff]  ;;  %v8427_v63 = vld [vmem:[#allocation14 + $0x898] sm:$0xff] }
 0x6f4   :  { %11656 = vmatpush2.bf16.msra.mxu1 %v17737_v60  ;;  %v8590_v60 = vld [vmem:[#allocation14 + $0xdb0] sm:$0xff] }
 0x6f5   :  { %11779 = vmatpush2.bf16.msra.mxu0 %v17611_v16  ;;  %11657 = vmatprep.subr.bf16.mxu1 %v17730_v32  ;;  %v17945_v16 = vcombine.low %v8594_v25, %v8598_v40  ;;  %v8459_v32 = vld [vmem:[#allocation14 + $0x998] sm:$0xff]  ;;  %v17938_v10 = vcombine.high %v8586_v31, %v8590_v60  ;;  %v17937_v52 = vcombine.low %v8586_v31, %v8590_v60  ;;  %v8554_v40 = vld [vmem:[#allocation14 + $0xc90] sm:$0xff] }
 0x6f6   :  { %11780 = vmatprep.subr.bf16.mxu0 %v17604_v50  ;;  %v8463_v50 = vld [vmem:[#allocation14 + $0x9b8] sm:$0xff]  ;;  %v8546_v60 = vld [vmem:[#allocation14 + $0xc50] sm:$0xff] }
 0x6f8   :  { %11658 = vmatpush2.bf16.msra.mxu1 %v17729_v20 }
 0x6f9   :  { %11781 = vmatpush2.bf16.msra.mxu0 %v17603_v55  ;;  %11659 = vmatprep.subr.bf16.mxu1 %v17722_v26  ;;  %v17812_v26 = vcombine.high %v8459_v32, %v8463_v50 }
 0x6fa   :  { %11782 = vmatprep.subr.bf16.mxu0 %v17596_v19  ;;  %v8451_v19 = vld [vmem:[#allocation14 + $0x958] sm:$0xff] }
 0x6fc   :  { %11660 = vmatpush2.bf16.msra.mxu1 %v17721_v27 }
 0x6fd   :  { %11783 = vmatpush2.bf16.msra.mxu0 %v17595_v36  ;;  %11661 = vmatprep.subr.bf16.mxu1 %v17714_v54  ;;  %v17811_v36 = vcombine.low %v8459_v32, %v8463_v50  ;;  %v17930_v54 = vcombine.high %v8578_v61, %v8582_v4  ;;  %v8419_v32 = vld [vmem:[#allocation14 + $0x858] sm:$0xff] }
 0x6fe   :  { %11784 = vmatprep.subr.bf16.mxu0 %v17588_v22  ;;  %v17804_v22 = vcombine.high %v8451_v19, %v8455_v21  ;;  %v8423_v50 = vld [vmem:[#allocation14 + $0x878] sm:$0xff] }
 0x700   :  { %11662 = vmatpush2.bf16.msra.mxu1 %v17713_v24  ;;  %v17929_v24 = vcombine.low %v8578_v61, %v8582_v4  ;;  %v17772_v4 = vcombine.high %v8419_v32, %v8423_v50 }
 0x701   :  { %11785 = vmatpush2.bf16.msra.mxu0 %v17587_v57  ;;  %11663 = vmatprep.subr.bf16.mxu1 %v17706_v23 }
 0x702   :  { %11786 = vmatprep.subr.bf16.mxu0 %v17580_v3  ;;  %v17803_v3 = vcombine.low %v8451_v19, %v8455_v21  ;;  %v8411_v19 = vld [vmem:[#allocation14 + $0x818] sm:$0xff] }
 0x703   :  { %v8415_v21 = vld [vmem:[#allocation14 + $0x838] sm:$0xff] }
 0x704   :  { %11664 = vmatpush2.bf16.msra.mxu1 %v17705_v6  ;;  %v8439_v6 = vld [vmem:[#allocation14 + $0x8f8] sm:$0xff] }
 0x705   :  { %11787 = vmatpush2.bf16.msra.mxu0 %v17579_v9  ;;  %11665 = vmatprep.subr.bf16.mxu1 %v17698_v11  ;;  %v17795_v11 = vcombine.low %v8443_v30, %v8447_v14  ;;  %v17788_v25 = vcombine.high %v8435_v13, %v8439_v6  ;;  %v17763_v14 = vcombine.low %v8411_v19, %v8415_v21 }
 0x706   :  { %11788 = vmatprep.subr.bf16.mxu0 %v17572_v12 }
 0x708   :  { %11666 = vmatpush2.bf16.msra.mxu1 %v17697_v28  ;;  %v8431_v28 = vld [vmem:[#allocation14 + $0x8b8] sm:$0xff] }
 0x709   :  { %11789 = vmatpush2.bf16.msra.mxu0 %v17571_v43  ;;  %11717 = vmatprep.subr.bf16.mxu1 %v17946_v34  ;;  %v17787_v34 = vcombine.low %v8435_v13, %v8439_v6  ;;  %v17780_v31 = vcombine.high %v8427_v63, %v8431_v28 }
 0x70a   :  { %11840 = vmatprep.subr.bf16.mxu0 %v17820_v41  ;;  %v17906_v41 = vcombine.high %v8554_v40, %v8558_v59 }
 0x70b   :  { %v19633_v20 = vpop.f32.mrf.mxu0  ;;  %11668 = vmatmul.mubr.bf16.vlgmr.msra.gmra.mxu1 %v19563_v44  ;;  %v11423_v55 = vpop.f32.mrf.mxu1 }
 0x70c   :  { %11791 = vmatmul.mubr.bf16.vlgmr.msra.gmra.mxu0 %v19525_v53  ;;  %v19638_v17 = vadd.f32 %v11423_v55, %v19619_v37  ;;  %11718 = vmatpush1.bf16.msra.mxu1 %v17945_v16  ;;  %v8574_v53 = vld [vmem:[#allocation14 + $0xd30] sm:$0xff] }
 0x70d   :  { %11749 = vmatprep.mubr.bf16.mxu1 %v19601_v0  ;;  %11841 = vmatpush1.bf16.msra.mxu0 %v17819_v46  ;;  %v19641_v56 = vpop.f32.mrf.mxu0  ;;  %v19643_v27 = vpop.f32.mrf.mxu1  ;;  %v17922_v58 = vcombine.high %v8570_v38, %v8574_v53  ;;  %v17921_v9 = vcombine.low %v8570_v38, %v8574_v53  ;;  %v8550_v16 = vld [vmem:[#allocation14 + $0xc70] sm:$0xff]  ;;  %v17905_v46 = vcombine.low %v8554_v40, %v8558_v59 }
 0x70e   :  { %11872 = vmatprep.mubr.bf16.mxu0 %v19568_v1  ;;  %11719 = vmatprep.subr.bf16.mxu1 %v17938_v10  ;;  %v8562_v1 = vld [vmem:[#allocation14 + $0xcd0] sm:$0xff]  ;;  %v17779_v10 = vcombine.low %v8427_v63, %v8431_v28  ;;  %v17898_v61 = vcombine.high %v8546_v60, %v8550_v16  ;;  %vm11922_vm10 = vcmp.gt.f32.partialorder %v19638_v17, 0.0 }
 0x70f   :  { %v11550_v42 = vpop.f32.mrf.mxu0  ;;  %11842 = vmatprep.subr.bf16.mxu0 %v17812_v26  ;;  %v11427_v37 = vpop.f32.mrf.mxu1  ;;  %v17914_v12 = vcombine.high %v8562_v1, %v8566_v39  ;;  %v17913_v43 = vcombine.low %v8562_v1, %v8566_v39  ;;  %v8538_v55 = vld [vmem:[#allocation14 + $0xc10] sm:$0xff] }
 0x710   :  { %11720 = vmatpush1.bf16.msra.mxu1 %v17937_v52  ;;  %v8542_v26 = vld [vmem:[#allocation14 + $0xc30] sm:$0xff]  ;;  %v17897_v52 = vcombine.low %v8546_v60, %v8550_v16  ;;  %v8531_v42 = vld [vmem:[#allocation14 + $0xbd8] sm:$0xff] }
 0x711   :  { %11843 = vmatpush1.bf16.msra.mxu0 %v17811_v36  ;;  %v11551_v57 = vpop.f32.mrf.mxu0  ;;  %v11428_v23 = vpop.f32.mrf.mxu1  ;;  %11721 = vmatprep.subr.bf16.mxu1 %v17930_v54  ;;  %v17771_v36 = vcombine.low %v8419_v32, %v8423_v50  ;;  %v17890_v54 = vcombine.high %v8538_v55, %v8542_v26  ;;  %v8658_v38 = vld [vmem:[#allocation14 + $0xfd0] sm:$0xff]  ;;  %v8535_v37 = vld [vmem:[#allocation14 + $0xbf8] sm:$0xff]  ;;  %v17889_v30 = vcombine.low %v8538_v55, %v8542_v26 }
 0x712   :  { %11844 = vmatprep.subr.bf16.mxu0 %v17804_v22  ;;  %v17764_v22 = vcombine.high %v8411_v19, %v8415_v21  ;;  %v8662_v53 = vld [vmem:[#allocation14 + $0xff0] sm:$0xff]  ;;  %v17884_v57 = vcombine.high %v8531_v42, %v8535_v37  ;;  %v17883_v39 = vcombine.low %v8531_v42, %v8535_v37 }
 0x713   :  { %v8650_v23 = vld [vmem:[#allocation14 + $0xf90] sm:$0xff]  ;;  %v18009_v1 = vcombine.low %v8658_v38, %v8662_v53 }
 0x714   :  { %11722 = vmatpush1.bf16.msra.mxu1 %v17929_v24  ;;  %v18010_v24 = vcombine.high %v8658_v38, %v8662_v53 }
 0x715   :  { %11845 = vmatpush1.bf16.msra.mxu0 %v17803_v3  ;;  %11723 = vmatprep.subr.bf16.mxu1 %v17922_v58  ;;  %v8654_v3 = vld [vmem:[#allocation14 + $0xfb0] sm:$0xff]  ;;  %v8523_v58 = vld [vmem:[#allocation14 + $0xb98] sm:$0xff] }
 0x716   :  { %11846 = vmatprep.subr.bf16.mxu0 %v17796_v5  ;;  %v8527_v5 = vld [vmem:[#allocation14 + $0xbb8] sm:$0xff]  ;;  %v18002_v13 = vcombine.high %v8650_v23, %v8654_v3  ;;  %v18001_v40 = vcombine.low %v8650_v23, %v8654_v3 }
 0x717   :  { %v17876_v6 = vcombine.high %v8523_v58, %v8527_v5  ;;  %v17875_v59 = vcombine.low %v8523_v58, %v8527_v5 }
 0x718   :  { %11724 = vmatpush1.bf16.msra.mxu1 %v17921_v9  ;;  %v8642_v9 = vld [vmem:[#allocation14 + $0xf50] sm:$0xff] }
 0x719   :  { %11847 = vmatpush1.bf16.msra.mxu0 %v17795_v11  ;;  %11725 = vmatprep.subr.bf16.mxu1 %v17914_v12  ;;  %v8646_v11 = vld [vmem:[#allocation14 + $0xf70] sm:$0xff]  ;;  %v8515_v12 = vld [vmem:[#allocation14 + $0xb58] sm:$0xff] }
 0x71a   :  { %11848 = vmatprep.subr.bf16.mxu0 %v17788_v25  ;;  %v8519_v25 = vld [vmem:[#allocation14 + $0xb78] sm:$0xff]  ;;  %v17994_v63 = vcombine.high %v8642_v9, %v8646_v11  ;;  %v17993_v60 = vcombine.low %v8642_v9, %v8646_v11  ;;  %v11426_v11 = vadd.f32 %v19643_v27, %v19623_v8 }
 0x71b   :  { %v17868_v28 = vcombine.high %v8515_v12, %v8519_v25  ;;  %v17867_v16 = vcombine.low %v8515_v12, %v8519_v25 }
 0x71c   :  { %11726 = vmatpush1.bf16.msra.mxu1 %v17913_v43  ;;  %v8634_v43 = vld [vmem:[#allocation14 + $0xf10] sm:$0xff]  ;;  %vm11923_vm9 = vcmp.gt.f32.partialorder %v11426_v11, 0.0 }
 0x71d   :  { %11849 = vmatpush1.bf16.msra.mxu0 %v17787_v34  ;;  %11727 = vmatprep.subr.bf16.mxu1 %v17906_v41  ;;  %v8638_v34 = vld [vmem:[#allocation14 + $0xf30] sm:$0xff]  ;;  %v8507_v41 = vld [vmem:[#allocation14 + $0xb18] sm:$0xff] }
 0x71e   :  { %11850 = vmatprep.subr.bf16.mxu0 %v17780_v31  ;;  %v8511_v31 = vld [vmem:[#allocation14 + $0xb38] sm:$0xff]  ;;  %v17986_v32 = vcombine.high %v8634_v43, %v8638_v34  ;;  %v17985_v55 = vcombine.low %v8634_v43, %v8638_v34  ;;  %v12014_v43 = vld [vmem:[#allocation17 + $0x1e0] sm:$0xff] }
 0x71f   :  { %v17860_v50 = vcombine.high %v8507_v41, %v8511_v31  ;;  %v17859_v26 = vcombine.low %v8507_v41, %v8511_v31  ;;  %v11931_v41 = vmul.f32 0.2, %v11426_v11 }
 0x720   :  { %11728 = vmatpush1.bf16.msra.mxu1 %v17905_v46  ;;  %v8626_v46 = vld [vmem:[#allocation14 + $0xed0] sm:$0xff] }
 0x721   :  { %11851 = vmatpush1.bf16.msra.mxu0 %v17779_v10  ;;  %11729 = vmatprep.subr.bf16.mxu1 %v17898_v61  ;;  %v8630_v10 = vld [vmem:[#allocation14 + $0xef0] sm:$0xff]  ;;  %v8499_v61 = vld [vmem:[#allocation14 + $0xad8] sm:$0xff] }
 0x722   :  { %11852 = vmatprep.subr.bf16.mxu0 %v17772_v4  ;;  %v8503_v4 = vld [vmem:[#allocation14 + $0xaf8] sm:$0xff]  ;;  %v17978_v19 = vcombine.high %v8626_v46, %v8630_v10  ;;  %v17977_v38 = vcombine.low %v8626_v46, %v8630_v10 }
 0x723   :  { %v17852_v21 = vcombine.high %v8499_v61, %v8503_v4  ;;  %v17851_v53 = vcombine.low %v8499_v61, %v8503_v4  ;;  %v8335_v46 = vld [vmem:[#allocation14 + $0x5b8] sm:$0xff]  ;;  %v12002_v61 = vld [vmem:[#allocation17 + $0x180] sm:$0xff] }
 0x724   :  { %11730 = vmatpush1.bf16.msra.mxu1 %v17897_v52  ;;  %v8618_v52 = vld [vmem:[#allocation14 + $0xe90] sm:$0xff]  ;;  %v12006_v4 = vld [vmem:[#allocation17 + $0x1a0] sm:$0xff] }
 0x725   :  { %11853 = vmatpush1.bf16.msra.mxu0 %v17771_v36  ;;  %11731 = vmatprep.subr.bf16.mxu1 %v17890_v54  ;;  %v8622_v36 = vld [vmem:[#allocation14 + $0xeb0] sm:$0xff]  ;;  %v8491_v54 = vld [vmem:[#allocation14 + $0xa98] sm:$0xff] }
 0x726   :  { %11854 = vmatprep.subr.bf16.mxu0 %v17764_v22  ;;  %v8495_v22 = vld [vmem:[#allocation14 + $0xab8] sm:$0xff]  ;;  %v17970_v42 = vcombine.high %v8618_v52, %v8622_v36  ;;  %v17969_v23 = vcombine.low %v8618_v52, %v8622_v36 }
 0x727   :  { %v17844_v37 = vcombine.high %v8491_v54, %v8495_v22  ;;  %v17843_v3 = vcombine.low %v8491_v54, %v8495_v22  ;;  %v8323_v52 = vld [vmem:[#allocation14 + $0x558] sm:$0xff] }
 0x728   :  { %11732 = vmatpush1.bf16.msra.mxu1 %v17889_v30  ;;  %v8610_v30 = vld [vmem:[#allocation14 + $0xe50] sm:$0xff]  ;;  %v8327_v36 = vld [vmem:[#allocation14 + $0x578] sm:$0xff] }
 0x729   :  { %11855 = vmatpush1.bf16.msra.mxu0 %v17763_v14  ;;  %11733 = vmatprep.subr.bf16.mxu1 %v18010_v24  ;;  %v8614_v14 = vld [vmem:[#allocation14 + $0xe70] sm:$0xff]  ;;  %v8483_v24 = vld [vmem:[#allocation14 + $0xa58] sm:$0xff] }
 0x72a   :  { %11856 = vmatprep.subr.bf16.mxu0 %v17884_v57  ;;  %v8487_v57 = vld [vmem:[#allocation14 + $0xa78] sm:$0xff]  ;;  %v17962_v58 = vcombine.high %v8610_v30, %v8614_v14  ;;  %v17961_v9 = vcombine.low %v8610_v30, %v8614_v14 }
 0x72b   :  { %v17836_v5 = vcombine.high %v8483_v24, %v8487_v57  ;;  %v17835_v12 = vcombine.low %v8483_v24, %v8487_v57  ;;  %v18061_v57 = vcombine.low %v12002_v61, %v12006_v4 }
 0x72c   :  { %11734 = vmatpush2.bf16.msra.mxu1 %v18009_v1  ;;  %v8602_v1 = vld [vmem:[#allocation14 + $0xe10] sm:$0xff] }
 0x72d   :  { %11857 = vmatpush2.bf16.msra.mxu0 %v17883_v39  ;;  %11735 = vmatprep.subr.bf16.mxu1 %v18002_v13  ;;  %v8606_v39 = vld [vmem:[#allocation14 + $0xe30] sm:$0xff]  ;;  %v8475_v13 = vld [vmem:[#allocation14 + $0xa18] sm:$0xff] }
 0x72e   :  { %11858 = vmatprep.subr.bf16.mxu0 %v17876_v6  ;;  %v8479_v6 = vld [vmem:[#allocation14 + $0xa38] sm:$0xff]  ;;  %v17954_v25 = vcombine.high %v8602_v1, %v8606_v39  ;;  %v17953_v34 = vcombine.low %v8602_v1, %v8606_v39 }
 0x72f   :  { %v17827_v31 = vcombine.low %v8475_v13, %v8479_v6  ;;  %v8319_v1 = vld [vmem:[#allocation14 + $0x538] sm:$0xff] }
 0x730   :  { %11736 = vmatpush2.bf16.msra.mxu1 %v18001_v40  ;;  %v17828_v40 = vcombine.high %v8475_v13, %v8479_v6  ;;  %v11986_v13 = vld [vmem:[#allocation17 + $0x100] sm:$0xff] }
 0x731   :  { %11859 = vmatpush2.bf16.msra.mxu0 %v17875_v59  ;;  %11737 = vmatprep.subr.bf16.mxu1 %v17994_v63  ;;  %v8339_v59 = vld [vmem:[#allocation14 + $0x5d8] sm:$0xff]  ;;  %v11990_v6 = vld [vmem:[#allocation17 + $0x120] sm:$0xff] }
 0x732   :  { %11860 = vmatprep.subr.bf16.mxu0 %v17868_v28  ;;  %v8343_v63 = vld [vmem:[#allocation14 + $0x5f8] sm:$0xff]  ;;  %v12010_v28 = vld [vmem:[#allocation17 + $0x1c0] sm:$0xff] }
 0x733   :  { %v18070_v27 = vcombine.high %v12010_v28, %v12014_v43  ;;  %v17691_v10 = vcombine.low %v8339_v59, %v8343_v63 }
 0x734   :  { %11738 = vmatpush2.bf16.msra.mxu1 %v17993_v60  ;;  %v17692_v60 = vcombine.high %v8339_v59, %v8343_v63  ;;  %v8307_v59 = vld [vmem:[#allocation14 + $0x4d8] sm:$0xff] }
 0x735   :  { %11861 = vmatpush2.bf16.msra.mxu0 %v17867_v16  ;;  %11739 = vmatprep.subr.bf16.mxu1 %v17986_v32  ;;  %v19648_v16 = vld [vmem:[#allocation16] sm:$0xff]  ;;  %v8311_v63 = vld [vmem:[#allocation14 + $0x4f8] sm:$0xff] }
 0x736   :  { %11862 = vmatprep.subr.bf16.mxu0 %v17860_v50  ;;  %v8677_v8 = vrot.slane %v19648_v16, %v19235_v47  ;;  %v8681_v32 = vrot.slane %v19648_v16, %v19241_v49  ;;  %v8331_v50 = vld [vmem:[#allocation14 + $0x598] sm:$0xff] }
 0x738   :  { %11740 = vmatpush2.bf16.msra.mxu1 %v17985_v55  ;;  %v11939_v55 = vsel %vm11923_vm9, %v11426_v11, %v11931_v41  ;;  %v11467_v54 = vadd.f32 %v19630_v15, %v8681_v32  ;;  %v18045_v41 = vcombine.low %v11986_v13, %v11990_v6  ;;  %v11970_v32 = vld [vmem:[#allocation17 + $0x80] sm:$0xff] }
 0x739   :  { %11863 = vmatpush2.bf16.msra.mxu0 %v17859_v26  ;;  %11741 = vmatprep.subr.bf16.mxu1 %v17978_v19  ;;  %v18069_v26 = vcombine.low %v12010_v28, %v12014_v43  ;;  %v11465_v19 = vadd.f32 %v19625_v51, %v8677_v8  ;;  %v19659_v30 = vpack.c.bf16 %v11939_v55, %v11939_v55  ;;  %v11978_v28 = vld [vmem:[#allocation17 + $0xc0] sm:$0xff]  ;;  %v8299_v8 = vld [vmem:[#allocation14 + $0x498] sm:$0xff] }
 0x73a   :  { %11864 = vmatprep.subr.bf16.mxu0 %v17852_v21  ;;  %v17684_v21 = vcombine.high %v8331_v50, %v8335_v46  ;;  %v17683_v51 = vcombine.low %v8331_v50, %v8335_v46  ;;  %v11982_v43 = vld [vmem:[#allocation17 + $0xe0] sm:$0xff]  ;;  %v17659_v46 = vcombine.low %v8307_v59, %v8311_v63  ;;  %v8291_v55 = vld [vmem:[#allocation14 + $0x458] sm:$0xff] }
 0x73b   :  { %v11974_v50 = vld [vmem:[#allocation17 + $0xa0] sm:$0xff] }
 0x73c   :  { %11742 = vmatpush2.bf16.msra.mxu1 %v17977_v38 }
 0x73d   :  { %11865 = vmatpush2.bf16.msra.mxu0 %v17851_v53  ;;  %11743 = vmatprep.subr.bf16.mxu1 %v17970_v42  ;;  %v18062_v53 = vcombine.high %v12002_v61, %v12006_v4  ;;  %v11994_v42 = vld [vmem:[#allocation17 + $0x140] sm:$0xff]  ;;  %v18030_v4 = vcombine.high %v11970_v32, %v11974_v50 }
 0x73e   :  { %11866 = vmatprep.subr.bf16.mxu0 %v17844_v37  ;;  %v11998_v37 = vld [vmem:[#allocation17 + $0x160] sm:$0xff] }
 0x740   :  { %11744 = vmatpush2.bf16.msra.mxu1 %v17969_v23  ;;  %v17676_v23 = vcombine.high %v8323_v52, %v8327_v36 }
 0x741   :  { %11867 = vmatpush2.bf16.msra.mxu0 %v17843_v3  ;;  %11745 = vmatprep.subr.bf16.mxu1 %v17962_v58  ;;  %v18054_v58 = vcombine.high %v11994_v42, %v11998_v37 }
 0x742   :  { %11868 = vmatprep.subr.bf16.mxu0 %v17836_v5  ;;  %v8315_v5 = vld [vmem:[#allocation14 + $0x518] sm:$0xff] }
 0x744   :  { %11746 = vmatpush2.bf16.msra.mxu1 %v17961_v9 }
 0x745   :  { %11869 = vmatpush2.bf16.msra.mxu0 %v17835_v12  ;;  %11747 = vmatprep.subr.bf16.mxu1 %v17954_v25  ;;  %v18053_v12 = vcombine.low %v11994_v42, %v11998_v37  ;;  %v17668_v25 = vcombine.high %v8315_v5, %v8319_v1  ;;  %v8287_v42 = vld [vmem:[#allocation14 + $0x438] sm:$0xff]  ;;  %v11954_v37 = vld [vmem:[#allocation17] sm:$0xff] }
 0x746   :  { %11870 = vmatprep.subr.bf16.mxu0 %v17828_v40  ;;  %v18046_v40 = vcombine.high %v11986_v13, %v11990_v6 }
 0x748   :  { %11748 = vmatpush2.bf16.msra.mxu1 %v17953_v34  ;;  %v17667_v34 = vcombine.low %v8315_v5, %v8319_v1  ;;  %v8403_v5 = vld [vmem:[#allocation14 + $0x7d8] sm:$0xff] }
 0x749   :  { %11871 = vmatpush2.bf16.msra.mxu0 %v17827_v31  ;;  %11799 = vmatprep.subr.bf16.mxu1 %v17692_v60  ;;  %v17660_v31 = vcombine.high %v8307_v59, %v8311_v63  ;;  %v18038_v60 = vcombine.high %v11978_v28, %v11982_v43  ;;  %v8407_v1 = vld [vmem:[#allocation14 + $0x7f8] sm:$0xff] }
 0x74a   :  { %15068 = vmatprep.subr.bf16.mxu0 %v18070_v27  ;;  %v8303_v27 = vld [vmem:[#allocation14 + $0x4b8] sm:$0xff]  ;;  %v17755_v59 = vcombine.low %v8403_v5, %v8407_v1 }
 0x74b   :  { %v11505_v22 = vpop.f32.mrf.mxu1  ;;  %v19656_v38 = vpop.f32.mrf.mxu0  ;;  %11750 = vmatmul.mubr.bf16.vlgmr.msra.gmra.mxu1 %v19603_v35  ;;  %v17652_v61 = vcombine.high %v8299_v8, %v8303_v27 }
 0x74c   :  { %v19661_v14 = vadd.f32 %v11505_v22, %v11465_v19  ;;  %11873 = vmatmul.mubr.bf16.vlgmr.msra.gmra.mxu0 %v19576_v18  ;;  %11800 = vmatpush1.bf16.msra.mxu1 %v17691_v10  ;;  %v18037_v10 = vcombine.low %v11978_v28, %v11982_v43  ;;  %v11962_v19 = vld [vmem:[#allocation17 + $0x40] sm:$0xff] }
 0x74d   :  { %11831 = vmatprep.mubr.bf16.mxu1 %v19539_v7  ;;  %15069 = vmatpush1.bf16.msra.mxu0 %v18069_v26  ;;  %v11507_v15 = vpop.f32.mrf.mxu1  ;;  %v19665_v24 = vpop.f32.mrf.mxu0  ;;  %v17675_v7 = vcombine.low %v8323_v52, %v8327_v36  ;;  %v8295_v26 = vld [vmem:[#allocation14 + $0x478] sm:$0xff]  ;;  %v17651_v52 = vcombine.low %v8299_v8, %v8303_v27  ;;  %v18029_v36 = vcombine.low %v11970_v32, %v11974_v50 }
 0x74e   :  { %15100 = vmatprep.mubr.bf16.mxu0 %v19659_v30  ;;  %v19668_v3 = vadd.f32 %v11507_v15, %v11467_v54  ;;  %11801 = vmatprep.subr.bf16.mxu1 %v17684_v21  ;;  %v11966_v21 = vld [vmem:[#allocation17 + $0x60] sm:$0xff]  ;;  %v17644_v54 = vcombine.high %v8291_v55, %v8295_v26  ;;  %v17643_v15 = vcombine.low %v8291_v55, %v8295_v26 }
 0x74f   :  { %v11509_v39 = vpop.f32.mrf.mxu1  ;;  %v11632_v18 = vpop.f32.mrf.mxu0  ;;  %15070 = vmatprep.subr.bf16.mxu0 %v18062_v53  ;;  %v18022_v22 = vcombine.high %v11962_v19, %v11966_v21  ;;  %v8283_v53 = vld [vmem:[#allocation14 + $0x418] sm:$0xff] }
 0x750   :  { %11802 = vmatpush1.bf16.msra.mxu1 %v17683_v51  ;;  %v11958_v51 = vld [vmem:[#allocation17 + $0x20] sm:$0xff]  ;;  %v17635_v13 = vcombine.low %v8283_v53, %v8287_v42 }
 0x751   :  { %15071 = vmatpush1.bf16.msra.mxu0 %v18061_v57  ;;  %v11510_v9 = vpop.f32.mrf.mxu1  ;;  %v11633_v11 = vpop.f32.mrf.mxu0  ;;  %11803 = vmatprep.subr.bf16.mxu1 %v17676_v23  ;;  %v18021_v57 = vcombine.low %v11962_v19, %v11966_v21  ;;  %v17636_v23 = vcombine.high %v8283_v53, %v8287_v42  ;;  %v12074_v39 = vld [vmem:[#allocation17 + $0x3c0] sm:$0xff]  ;;  %v18013_v6 = vcombine.low %v11954_v37, %v11958_v51 }
 0x752   :  { %15072 = vmatprep.subr.bf16.mxu0 %v18054_v58  ;;  %v18014_v58 = vcombine.high %v11954_v37, %v11958_v51  ;;  %v12078_v18 = vld [vmem:[#allocation17 + $0x3e0] sm:$0xff]  ;;  %v8395_v11 = vld [vmem:[#allocation14 + $0x798] sm:$0xff] }
 0x753   :  { %v18134_v9 = vcombine.high %v12074_v39, %v12078_v18  ;;  %v18133_v63 = vcombine.low %v12074_v39, %v12078_v18 }
 0x754   :  { %11804 = vmatpush1.bf16.msra.mxu1 %v17675_v7  ;;  %v17756_v7 = vcombine.high %v8403_v5, %v8407_v1 }
 0x755   :  { %15073 = vmatpush1.bf16.msra.mxu0 %v18053_v12  ;;  %11805 = vmatprep.subr.bf16.mxu1 %v17668_v25  ;;  %v8399_v12 = vld [vmem:[#allocation14 + $0x7b8] sm:$0xff]  ;;  %v12066_v25 = vld [vmem:[#allocation17 + $0x380] sm:$0xff] }
 0x756   :  { %15074 = vmatprep.subr.bf16.mxu0 %v18046_v40  ;;  %v12070_v40 = vld [vmem:[#allocation17 + $0x3a0] sm:$0xff]  ;;  %v17748_v28 = vcombine.high %v8395_v11, %v8399_v12  ;;  %v17747_v8 = vcombine.low %v8395_v11, %v8399_v12 }
 0x757   :  { %v18126_v43 = vcombine.high %v12066_v25, %v12070_v40  ;;  %v18125_v27 = vcombine.low %v12066_v25, %v12070_v40 }
 0x758   :  { %11806 = vmatpush1.bf16.msra.mxu1 %v17667_v34  ;;  %v8387_v34 = vld [vmem:[#allocation14 + $0x758] sm:$0xff] }
 0x759   :  { %15075 = vmatpush1.bf16.msra.mxu0 %v18045_v41  ;;  %11807 = vmatprep.subr.bf16.mxu1 %v17660_v31  ;;  %v8391_v41 = vld [vmem:[#allocation14 + $0x778] sm:$0xff]  ;;  %v12058_v31 = vld [vmem:[#allocation17 + $0x340] sm:$0xff] }
 0x75a   :  { %15076 = vmatprep.subr.bf16.mxu0 %v18038_v60  ;;  %v12062_v60 = vld [vmem:[#allocation17 + $0x360] sm:$0xff]  ;;  %v17740_v32 = vcombine.high %v8387_v34, %v8391_v41  ;;  %v17739_v55 = vcombine.low %v8387_v34, %v8391_v41 }
 0x75b   :  { %v18118_v50 = vcombine.high %v12058_v31, %v12062_v60  ;;  %v18117_v26 = vcombine.low %v12058_v31, %v12062_v60 }
 0x75c   :  { %11808 = vmatpush1.bf16.msra.mxu1 %v17659_v46  ;;  %v8379_v46 = vld [vmem:[#allocation14 + $0x718] sm:$0xff] }
 0x75d   :  { %15077 = vmatpush1.bf16.msra.mxu0 %v18037_v10  ;;  %11809 = vmatprep.subr.bf16.mxu1 %v17652_v61  ;;  %v8383_v10 = vld [vmem:[#allocation14 + $0x738] sm:$0xff]  ;;  %v12050_v61 = vld [vmem:[#allocation17 + $0x300] sm:$0xff] }
 0x75e   :  { %15078 = vmatprep.subr.bf16.mxu0 %v18030_v4  ;;  %v12054_v4 = vld [vmem:[#allocation17 + $0x320] sm:$0xff]  ;;  %v17732_v19 = vcombine.high %v8379_v46, %v8383_v10  ;;  %v17731_v53 = vcombine.low %v8379_v46, %v8383_v10 }
 0x75f   :  { %v18110_v21 = vcombine.high %v12050_v61, %v12054_v4  ;;  %v18109_v42 = vcombine.low %v12050_v61, %v12054_v4  ;;  %v12270_v46 = vld [vmem:[#allocation17 + $0x9e0] sm:$0xff] }
 0x760   :  { %11810 = vmatpush1.bf16.msra.mxu1 %v17651_v52  ;;  %v8371_v52 = vld [vmem:[#allocation14 + $0x6d8] sm:$0xff] }
 0x761   :  { %15079 = vmatpush1.bf16.msra.mxu0 %v18029_v36  ;;  %11811 = vmatprep.subr.bf16.mxu1 %v17644_v54  ;;  %v8375_v36 = vld [vmem:[#allocation14 + $0x6f8] sm:$0xff]  ;;  %v12042_v54 = vld [vmem:[#allocation17 + $0x2c0] sm:$0xff] }
 0x762   :  { %15080 = vmatprep.subr.bf16.mxu0 %v18022_v22  ;;  %v12046_v22 = vld [vmem:[#allocation17 + $0x2e0] sm:$0xff]  ;;  %v17724_v37 = vcombine.high %v8371_v52, %v8375_v36  ;;  %v17723_v5 = vcombine.low %v8371_v52, %v8375_v36 }
 0x763   :  { %v18102_v51 = vcombine.high %v12042_v54, %v12046_v22  ;;  %v18101_v1 = vcombine.low %v12042_v54, %v12046_v22  ;;  %v12258_v36 = vld [vmem:[#allocation17 + $0x980] sm:$0xff] }
 0x764   :  { %11812 = vmatpush1.bf16.msra.mxu1 %v17643_v15  ;;  %v8363_v15 = vld [vmem:[#allocation14 + $0x698] sm:$0xff]  ;;  %v12262_v54 = vld [vmem:[#allocation17 + $0x9a0] sm:$0xff] }
 0x765   :  { %15081 = vmatpush1.bf16.msra.mxu0 %v18021_v57  ;;  %11813 = vmatprep.subr.bf16.mxu1 %v17636_v23  ;;  %v8367_v57 = vld [vmem:[#allocation14 + $0x6b8] sm:$0xff]  ;;  %v12034_v23 = vld [vmem:[#allocation17 + $0x280] sm:$0xff] }
 0x766   :  { %15082 = vmatprep.subr.bf16.mxu0 %v18014_v58  ;;  %v12038_v58 = vld [vmem:[#allocation17 + $0x2a0] sm:$0xff]  ;;  %v17716_v39 = vcombine.high %v8363_v15, %v8367_v57  ;;  %v17715_v11 = vcombine.low %v8363_v15, %v8367_v57 }
 0x767   :  { %v18094_v18 = vcombine.high %v12034_v23, %v12038_v58  ;;  %v18093_v12 = vcombine.low %v12034_v23, %v12038_v58 }
 0x768   :  { %11814 = vmatpush1.bf16.msra.mxu1 %v17635_v13  ;;  %v8355_v13 = vld [vmem:[#allocation14 + $0x658] sm:$0xff] }
 0x769   :  { %15083 = vmatpush1.bf16.msra.mxu0 %v18013_v6  ;;  %11815 = vmatprep.subr.bf16.mxu1 %v17756_v7  ;;  %v8359_v6 = vld [vmem:[#allocation14 + $0x678] sm:$0xff]  ;;  %v12026_v7 = vld [vmem:[#allocation17 + $0x240] sm:$0xff] }
 0x76a   :  { %15084 = vmatprep.subr.bf16.mxu0 %v18134_v9  ;;  %v12030_v9 = vld [vmem:[#allocation17 + $0x260] sm:$0xff]  ;;  %v17708_v25 = vcombine.high %v8355_v13, %v8359_v6  ;;  %v17707_v34 = vcombine.low %v8355_v13, %v8359_v6  ;;  %v8575_v13 = vld [vmem:[#allocation14 + $0xd38] sm:$0xff]  ;;  %v18317_v6 = vcombine.low %v12258_v36, %v12262_v54 }
 0x76b   :  { %v18086_v40 = vcombine.high %v12026_v7, %v12030_v9  ;;  %v18085_v41 = vcombine.low %v12026_v7, %v12030_v9 }
 0x76c   :  { %11816 = vmatpush2.bf16.msra.mxu1 %v17755_v59  ;;  %v8347_v59 = vld [vmem:[#allocation14 + $0x618] sm:$0xff] }
 0x76d   :  { %15085 = vmatpush2.bf16.msra.mxu0 %v18133_v63  ;;  %11817 = vmatprep.subr.bf16.mxu1 %v17748_v28  ;;  %v8351_v63 = vld [vmem:[#allocation14 + $0x638] sm:$0xff]  ;;  %v12018_v28 = vld [vmem:[#allocation17 + $0x200] sm:$0xff] }
 0x76e   :  { %15086 = vmatprep.subr.bf16.mxu0 %v18126_v43  ;;  %v12022_v43 = vld [vmem:[#allocation17 + $0x220] sm:$0xff]  ;;  %v17700_v31 = vcombine.high %v8347_v59, %v8351_v63  ;;  %v17699_v10 = vcombine.low %v8347_v59, %v8351_v63 }
 0x76f   :  { %v18078_v60 = vcombine.high %v12018_v28, %v12022_v43  ;;  %v18077_v61 = vcombine.low %v12018_v28, %v12022_v43  ;;  %v8563_v28 = vld [vmem:[#allocation14 + $0xcd8] sm:$0xff] }
 0x770   :  { %11818 = vmatpush2.bf16.msra.mxu1 %v17747_v8  ;;  %v8595_v8 = vld [vmem:[#allocation14 + $0xdd8] sm:$0xff] }
 0x771   :  { %15087 = vmatpush2.bf16.msra.mxu0 %v18125_v27  ;;  %11819 = vmatprep.subr.bf16.mxu1 %v17740_v32  ;;  %v8599_v27 = vld [vmem:[#allocation14 + $0xdf8] sm:$0xff]  ;;  %v11930_v32 = vmul.f32 0.2, %v19638_v17 }
 0x772   :  { %15088 = vmatprep.subr.bf16.mxu0 %v18118_v50  ;;  %v12266_v50 = vld [vmem:[#allocation17 + $0x9c0] sm:$0xff]  ;;  %v17948_v4 = vcombine.high %v8595_v8, %v8599_v27  ;;  %v17947_v52 = vcombine.low %v8595_v8, %v8599_v27  ;;  %v8567_v43 = vld [vmem:[#allocation14 + $0xcf8] sm:$0xff]  ;;  %v19688_v27 = vld [vmem:[#allocation17 + $0x1c8] sm:$0xff] }
 0x773   :  { %v18325_v15 = vcombine.low %v12266_v50, %v12270_v46  ;;  %v12238_v8 = vld [vmem:[#allocation17 + $0x8e0] sm:$0xff] }
 0x774   :  { %11820 = vmatpush2.bf16.msra.mxu1 %v17739_v55  ;;  %v8587_v55 = vld [vmem:[#allocation14 + $0xd98] sm:$0xff] }
 0x775   :  { %15089 = vmatpush2.bf16.msra.mxu0 %v18117_v26  ;;  %11821 = vmatprep.subr.bf16.mxu1 %v17732_v19  ;;  %v8591_v26 = vld [vmem:[#allocation14 + $0xdb8] sm:$0xff]  ;;  %v18326_v19 = vcombine.high %v12266_v50, %v12270_v46  ;;  %v17916_v50 = vcombine.high %v8563_v28, %v8567_v43 }
 0x776   :  { %15090 = vmatprep.subr.bf16.mxu0 %v18110_v21  ;;  %v11938_v21 = vsel %vm11922_vm10, %v19638_v17, %v11930_v32  ;;  %v17940_v22 = vcombine.high %v8587_v55, %v8591_v26  ;;  %v18318_v17 = vcombine.high %v12258_v36, %v12262_v54  ;;  %v19690_v32 = vld [vmem:[#allocation17 + $0x1e8] sm:$0xff]  ;;  %v8547_v36 = vld [vmem:[#allocation14 + $0xc58] sm:$0xff] }
 0x777   :  { %v18071_v46 = vcombine.low %v19688_v27, %v19690_v32  ;;  %v8551_v54 = vld [vmem:[#allocation14 + $0xc78] sm:$0xff] }
 0x778   :  { %11822 = vmatpush2.bf16.msra.mxu1 %v17731_v53  ;;  %v19673_v53 = vpack.c.bf16 %v11938_v21, %v11938_v21  ;;  %v12230_v21 = vld [vmem:[#allocation17 + $0x8a0] sm:$0xff] }
 0x779   :  { %15091 = vmatpush2.bf16.msra.mxu0 %v18109_v42  ;;  %11823 = vmatprep.subr.bf16.mxu1 %v17724_v37  ;;  %v11547_v42 = vadd.f32 %v19633_v20, %v19661_v14  ;;  %v8579_v37 = vld [vmem:[#allocation14 + $0xd58] sm:$0xff] }
 0x77a   :  { %15092 = vmatprep.subr.bf16.mxu0 %v18102_v51  ;;  %v8583_v51 = vld [vmem:[#allocation14 + $0xd78] sm:$0xff] }
 0x77b   :  { %v17932_v14 = vcombine.high %v8579_v37, %v8583_v51 }
 0x77c   :  { %11824 = vmatpush2.bf16.msra.mxu1 %v17723_v5  ;;  %v17939_v5 = vcombine.low %v8587_v55, %v8591_v26  ;;  %v17915_v26 = vcombine.low %v8563_v28, %v8567_v43  ;;  %v8655_v28 = vld [vmem:[#allocation14 + $0xfb8] sm:$0xff] }
 0x77d   :  { %15093 = vmatpush2.bf16.msra.mxu0 %v18101_v1  ;;  %11825 = vmatprep.subr.bf16.mxu1 %v17716_v39  ;;  %v12250_v1 = vld [vmem:[#allocation17 + $0x940] sm:$0xff] }
 0x77e   :  { %15094 = vmatprep.subr.bf16.mxu0 %v18094_v18  ;;  %v12254_v39 = vld [vmem:[#allocation17 + $0x960] sm:$0xff] }
 0x77f   :  { %v18310_v9 = vcombine.high %v12250_v1, %v12254_v39 }
 0x780   :  { %11826 = vmatpush2.bf16.msra.mxu1 %v17715_v11 }
 0x781   :  { %15095 = vmatpush2.bf16.msra.mxu0 %v18093_v12  ;;  %11827 = vmatprep.subr.bf16.mxu1 %v17708_v25  ;;  %v17931_v12 = vcombine.low %v8579_v37, %v8583_v51  ;;  %v12242_v25 = vld [vmem:[#allocation17 + $0x900] sm:$0xff] }
 0x782   :  { %15096 = vmatprep.subr.bf16.mxu0 %v18086_v40  ;;  %v12246_v40 = vld [vmem:[#allocation17 + $0x920] sm:$0xff] }
 0x783   :  { %v12218_v51 = vld [vmem:[#allocation17 + $0x840] sm:$0xff] }
 0x784   :  { %11828 = vmatpush2.bf16.msra.mxu1 %v17707_v34  ;;  %v18309_v34 = vcombine.low %v12250_v1, %v12254_v39 }
 0x785   :  { %15097 = vmatpush2.bf16.msra.mxu0 %v18085_v41  ;;  %11829 = vmatprep.subr.bf16.mxu1 %v17700_v31  ;;  %v18302_v41 = vcombine.high %v12242_v25, %v12246_v40  ;;  %v12234_v31 = vld [vmem:[#allocation17 + $0x8c0] sm:$0xff] }
 0x786   :  { %15098 = vmatprep.subr.bf16.mxu0 %v18078_v60  ;;  %v18294_v55 = vcombine.high %v12234_v31, %v12238_v8 }
 0x788   :  { %11830 = vmatpush2.bf16.msra.mxu1 %v17699_v10  ;;  %v8555_v10 = vld [vmem:[#allocation14 + $0xc98] sm:$0xff] }
 0x789   :  { %15099 = vmatpush2.bf16.msra.mxu0 %v18077_v61  ;;  %11881 = vmatprep.subr.bf16.mxu1 %v17948_v4  ;;  %v8559_v61 = vld [vmem:[#allocation14 + $0xcb8] sm:$0xff]  ;;  %v18301_v4 = vcombine.low %v12242_v25, %v12246_v40  ;;  %v12330_v40 = vld [vmem:[#allocation17 + $0xbc0] sm:$0xff] }
 0x78a   :  { %15150 = vmatprep.subr.bf16.mxu0 %v18326_v19  ;;  %v12226_v19 = vld [vmem:[#allocation17 + $0x880] sm:$0xff]  ;;  %v17907_v37 = vcombine.low %v8555_v10, %v8559_v61 }
 0x78b   :  { %v11587_v57 = vpop.f32.mrf.mxu1  ;;  %11832 = vmatmul.mubr.bf16.vlgmr.msra.gmra.mxu1 %v19563_v44  ;;  %v8571_v44 = vld [vmem:[#allocation14 + $0xd18] sm:$0xff]  ;;  %v18285_v1 = vcombine.low %v12226_v19, %v12230_v21 }
 0x78c   :  { %v19678_v23 = vadd.f32 %v11587_v57, %v11547_v42  ;;  %v19680_v58 = vpop.f32.mrf.mxu0  ;;  %15101 = vmatmul.mubr.bf16.vlgmr.msra.gmra.mxu0 %v19673_v53  ;;  %11882 = vmatpush1.bf16.msra.mxu1 %v17947_v52  ;;  %v17923_v60 = vcombine.low %v8571_v44, %v8575_v13  ;;  %v17908_v52 = vcombine.high %v8555_v10, %v8559_v61  ;;  %v8647_v10 = vld [vmem:[#allocation14 + $0xf78] sm:$0xff] }
 0x78d   :  { %11913 = vmatprep.mubr.bf16.mxu1 %v19601_v0  ;;  %v19684_v20 = vpop.f32.mrf.mxu1  ;;  %11883 = vmatprep.subr.bf16.mxu1 %v17940_v22  ;;  %v17924_v0 = vcombine.high %v8571_v44, %v8575_v13  ;;  %v18293_v22 = vcombine.low %v12234_v31, %v12238_v8  ;;  %v18286_v42 = vcombine.high %v12226_v19, %v12230_v21  ;;  %v12210_v44 = vld [vmem:[#allocation17 + $0x800] sm:$0xff] }
 0x78e   :  { %v19686_v18 = vpop.f32.mrf.mxu0  ;;  %15151 = vmatpush1.bf16.msra.mxu0 %v18325_v15  ;;  %v12222_v15 = vld [vmem:[#allocation17 + $0x860] sm:$0xff]  ;;  %v17900_v57 = vcombine.high %v8547_v36, %v8551_v54  ;;  %vm11924_vm12 = vcmp.gt.f32.partialorder %v19678_v23, 0.0 }
 0x78f   :  { %v11591_v7 = vpop.f32.mrf.mxu1  ;;  %15152 = vmatprep.subr.bf16.mxu0 %v18318_v17  ;;  %v8539_v17 = vld [vmem:[#allocation14 + $0xc18] sm:$0xff]  ;;  %v18278_v39 = vcombine.high %v12218_v51, %v12222_v15  ;;  %v12214_v13 = vld [vmem:[#allocation17 + $0x820] sm:$0xff] }
 0x790   :  { %v11714_v11 = vpop.f32.mrf.mxu0  ;;  %11884 = vmatpush1.bf16.msra.mxu1 %v17939_v5  ;;  %v8543_v5 = vld [vmem:[#allocation14 + $0xc38] sm:$0xff]  ;;  %v18269_v43 = vcombine.low %v12210_v44, %v12214_v13  ;;  %v12322_v31 = vld [vmem:[#allocation17 + $0xb80] sm:$0xff] }
 0x791   :  { %v11592_v59 = vpop.f32.mrf.mxu1  ;;  %11885 = vmatprep.subr.bf16.mxu1 %v17932_v14  ;;  %v17899_v14 = vcombine.low %v8547_v36, %v8551_v54  ;;  %v8659_v7 = vld [vmem:[#allocation14 + $0xfd8] sm:$0xff]  ;;  %v18277_v11 = vcombine.low %v12218_v51, %v12222_v15  ;;  %v17891_v25 = vcombine.low %v8539_v17, %v8543_v5  ;;  %v12318_v19 = vld [vmem:[#allocation17 + $0xb60] sm:$0xff] }
 0x792   :  { %v11715_v63 = vpop.f32.mrf.mxu0  ;;  %15153 = vmatpush1.bf16.msra.mxu0 %v18317_v6  ;;  %v17892_v6 = vcombine.high %v8539_v17, %v8543_v5  ;;  %v12334_v59 = vld [vmem:[#allocation17 + $0xbe0] sm:$0xff]  ;;  %v8639_v36 = vld [vmem:[#allocation14 + $0xf38] sm:$0xff] }
 0x793   :  { %15154 = vmatprep.subr.bf16.mxu0 %v18310_v9  ;;  %v8663_v9 = vld [vmem:[#allocation14 + $0xff8] sm:$0xff]  ;;  %v18389_v61 = vcombine.low %v12330_v40, %v12334_v59  ;;  %v12310_v51 = vld [vmem:[#allocation17 + $0xb20] sm:$0xff] }
 0x794   :  { %11886 = vmatpush1.bf16.msra.mxu1 %v17931_v12  ;;  %v18270_v12 = vcombine.high %v12210_v44, %v12214_v13  ;;  %v8651_v63 = vld [vmem:[#allocation14 + $0xf98] sm:$0xff]  ;;  %v12302_v44 = vld [vmem:[#allocation17 + $0xae0] sm:$0xff] }
 0x795   :  { %11887 = vmatprep.subr.bf16.mxu1 %v17924_v0  ;;  %v18012_v0 = vcombine.high %v8659_v7, %v8663_v9  ;;  %v18004_v8 = vcombine.high %v8651_v63, %v8655_v28  ;;  %v8631_v17 = vld [vmem:[#allocation14 + $0xef8] sm:$0xff] }
 0x796   :  { %15155 = vmatpush1.bf16.msra.mxu0 %v18309_v34  ;;  %v18390_v34 = vcombine.high %v12330_v40, %v12334_v59  ;;  %v12294_v40 = vld [vmem:[#allocation17 + $0xaa0] sm:$0xff] }
 0x797   :  { %15156 = vmatprep.subr.bf16.mxu0 %v18302_v41  ;;  %v18011_v41 = vcombine.low %v8659_v7, %v8663_v9  ;;  %v8623_v7 = vld [vmem:[#allocation14 + $0xeb8] sm:$0xff] }
 0x798   :  { %11888 = vmatpush1.bf16.msra.mxu1 %v17923_v60  ;;  %v12326_v60 = vld [vmem:[#allocation17 + $0xba0] sm:$0xff] }
 0x799   :  { %11889 = vmatprep.subr.bf16.mxu1 %v17916_v50  ;;  %v8643_v50 = vld [vmem:[#allocation14 + $0xf58] sm:$0xff]  ;;  %v18381_v54 = vcombine.low %v12322_v31, %v12326_v60 }
 0x79a   :  { %15157 = vmatpush1.bf16.msra.mxu0 %v18301_v4  ;;  %v18382_v4 = vcombine.high %v12322_v31, %v12326_v60  ;;  %v17996_v21 = vcombine.high %v8643_v50, %v8647_v10  ;;  %v12286_v31 = vld [vmem:[#allocation17 + $0xa60] sm:$0xff]  ;;  %v11549_v60 = vadd.f32 %v19641_v56, %v19668_v3 }
 0x79b   :  { %15158 = vmatprep.subr.bf16.mxu0 %v18294_v55  ;;  %v18003_v55 = vcombine.low %v8651_v63, %v8655_v28  ;;  %v8615_v63 = vld [vmem:[#allocation14 + $0xe78] sm:$0xff] }
 0x79c   :  { %11890 = vmatpush1.bf16.msra.mxu1 %v17915_v26  ;;  %v12314_v26 = vld [vmem:[#allocation17 + $0xb40] sm:$0xff] }
 0x79d   :  { %11891 = vmatprep.subr.bf16.mxu1 %v17908_v52  ;;  %v8635_v52 = vld [vmem:[#allocation14 + $0xf18] sm:$0xff]  ;;  %v18373_v5 = vcombine.low %v12314_v26, %v12318_v19 }
 0x79e   :  { %15159 = vmatpush1.bf16.msra.mxu0 %v18293_v22  ;;  %v18374_v22 = vcombine.high %v12314_v26, %v12318_v19  ;;  %v17988_v15 = vcombine.high %v8635_v52, %v8639_v36  ;;  %v12274_v19 = vld [vmem:[#allocation17 + $0xa00] sm:$0xff] }
 0x79f   :  { %15160 = vmatprep.subr.bf16.mxu0 %v18286_v42  ;;  %v17995_v42 = vcombine.low %v8643_v50, %v8647_v10  ;;  %v8603_v50 = vld [vmem:[#allocation14 + $0xe18] sm:$0xff] }
 0x7a0   :  { %11892 = vmatpush1.bf16.msra.mxu1 %v17907_v37  ;;  %v12306_v37 = vld [vmem:[#allocation17 + $0xb00] sm:$0xff]  ;;  %v8607_v10 = vld [vmem:[#allocation14 + $0xe38] sm:$0xff] }
 0x7a1   :  { %11893 = vmatprep.subr.bf16.mxu1 %v17900_v57  ;;  %v8627_v57 = vld [vmem:[#allocation14 + $0xed8] sm:$0xff]  ;;  %v18365_v9 = vcombine.low %v12306_v37, %v12310_v51 }
 0x7a2   :  { %15161 = vmatpush1.bf16.msra.mxu0 %v18285_v1  ;;  %v18366_v1 = vcombine.high %v12306_v37, %v12310_v51  ;;  %v17980_v13 = vcombine.high %v8627_v57, %v8631_v17  ;;  %v8685_v37 = vrot.slane %v19648_v16, %v19290_v29  ;;  %v12130_v51 = vld [vmem:[#allocation17 + $0x580] sm:$0xff] }
 0x7a3   :  { %15162 = vmatprep.subr.bf16.mxu0 %v18278_v39  ;;  %v17987_v39 = vcombine.low %v8635_v52, %v8639_v36  ;;  %v17956_v52 = vcombine.high %v8603_v50, %v8607_v10  ;;  %v12138_v36 = vld [vmem:[#allocation17 + $0x5c0] sm:$0xff] }
 0x7a4   :  { %11894 = vmatpush1.bf16.msra.mxu1 %v17899_v14  ;;  %v12298_v14 = vld [vmem:[#allocation17 + $0xac0] sm:$0xff] }
 0x7a5   :  { %11895 = vmatprep.subr.bf16.mxu1 %v17892_v6  ;;  %v8619_v6 = vld [vmem:[#allocation14 + $0xe98] sm:$0xff]  ;;  %v18357_v28 = vcombine.low %v12298_v14, %v12302_v44 }
 0x7a6   :  { %15163 = vmatpush1.bf16.msra.mxu0 %v18277_v11  ;;  %v18358_v11 = vcombine.high %v12298_v14, %v12302_v44  ;;  %v17972_v59 = vcombine.high %v8619_v6, %v8623_v7  ;;  %v11629_v44 = vadd.f32 %v19656_v38, %v8685_v37 }
 0x7a7   :  { %15164 = vmatprep.subr.bf16.mxu0 %v18270_v12  ;;  %v17979_v12 = vcombine.low %v8627_v57, %v8631_v17 }
 0x7a8   :  { %11896 = vmatpush1.bf16.msra.mxu1 %v17891_v25  ;;  %v12290_v25 = vld [vmem:[#allocation17 + $0xa80] sm:$0xff] }
 0x7a9   :  { %11897 = vmatprep.subr.bf16.mxu1 %v18012_v0  ;;  %v8611_v0 = vld [vmem:[#allocation14 + $0xe58] sm:$0xff] }
 0x7aa   :  { %15165 = vmatpush1.bf16.msra.mxu0 %v18269_v43  ;;  %v18350_v43 = vcombine.high %v12290_v25, %v12294_v40  ;;  %v17963_v26 = vcombine.low %v8611_v0, %v8615_v63 }
 0x7ab   :  { %15166 = vmatprep.subr.bf16.mxu0 %v18390_v34  ;;  %v17971_v34 = vcombine.low %v8619_v6, %v8623_v7  ;;  %v12122_v6 = vld [vmem:[#allocation17 + $0x540] sm:$0xff] }
 0x7ac   :  { %11898 = vmatpush2.bf16.msra.mxu1 %v18011_v41  ;;  %v12282_v41 = vld [vmem:[#allocation17 + $0xa40] sm:$0xff] }
 0x7ad   :  { %11899 = vmatprep.subr.bf16.mxu1 %v18004_v8  ;;  %v17964_v8 = vcombine.high %v8611_v0, %v8615_v63  ;;  %v18341_v56 = vcombine.low %v12282_v41, %v12286_v31  ;;  %v12126_v7 = vld [vmem:[#allocation17 + $0x560] sm:$0xff] }
 0x7ae   :  { %15167 = vmatpush2.bf16.msra.mxu0 %v18389_v61  ;;  %v18349_v61 = vcombine.low %v12290_v25, %v12294_v40  ;;  %v18182_v38 = vcombine.high %v12122_v6, %v12126_v7  ;;  %v12114_v63 = vld [vmem:[#allocation17 + $0x500] sm:$0xff] }
 0x7af   :  { %15168 = vmatprep.subr.bf16.mxu0 %v18382_v4  ;;  %v11590_v4 = vadd.f32 %v19684_v20, %v11549_v60 }
 0x7b0   :  { %11900 = vmatpush2.bf16.msra.mxu1 %v18003_v55  ;;  %v18342_v55 = vcombine.high %v12282_v41, %v12286_v31 }
 0x7b1   :  { %11901 = vmatprep.subr.bf16.mxu1 %v17996_v21  ;;  %v12278_v21 = vld [vmem:[#allocation17 + $0xa20] sm:$0xff]  ;;  %v11933_v3 = vmul.f32 0.2, %v11590_v4  ;;  %vm11925_vm11 = vcmp.gt.f32.partialorder %v11590_v4, 0.0 }
 0x7b2   :  { %15169 = vmatpush2.bf16.msra.mxu0 %v18381_v54  ;;  %v12142_v54 = vld [vmem:[#allocation17 + $0x5e0] sm:$0xff]  ;;  %v18333_v57 = vcombine.low %v12274_v19, %v12278_v21 }
 0x7b3   :  { %15170 = vmatprep.subr.bf16.mxu0 %v18374_v22  ;;  %v18334_v22 = vcombine.high %v12274_v19, %v12278_v21  ;;  %v18198_v20 = vcombine.high %v12138_v36, %v12142_v54  ;;  %v11941_v17 = vsel %vm11925_vm11, %v11590_v4, %v11933_v3  ;;  %v12090_v21 = vld [vmem:[#allocation17 + $0x440] sm:$0xff] }
 0x7b4   :  { %11902 = vmatpush2.bf16.msra.mxu1 %v17995_v42  ;;  %v17955_v42 = vcombine.low %v8603_v50, %v8607_v10  ;;  %v12106_v50 = vld [vmem:[#allocation17 + $0x4c0] sm:$0xff] }
 0x7b5   :  { %11903 = vmatprep.subr.bf16.mxu1 %v17988_v15  ;;  %v12134_v15 = vld [vmem:[#allocation17 + $0x5a0] sm:$0xff] }
 0x7b6   :  { %15171 = vmatpush2.bf16.msra.mxu0 %v18373_v5  ;;  %v18072_v5 = vcombine.high %v19688_v27, %v19690_v32  ;;  %v18190_v14 = vcombine.high %v12130_v51, %v12134_v15  ;;  %v12110_v10 = vld [vmem:[#allocation17 + $0x4e0] sm:$0xff]  ;;  %v11979_v32 = vld [vmem:[#allocation17 + $0xc8] sm:$0xff] }
 0x7b7   :  { %15172 = vmatprep.subr.bf16.mxu0 %v18366_v1  ;;  %v8689_v1 = vrot.slane %v19648_v16, %v19252_v62  ;;  %v18189_v16 = vcombine.low %v12130_v51, %v12134_v15  ;;  %v18166_v4 = vcombine.high %v12106_v50, %v12110_v10  ;;  %v12194_v15 = vld [vmem:[#allocation17 + $0x780] sm:$0xff] }
 0x7b8   :  { %11904 = vmatpush2.bf16.msra.mxu1 %v17987_v39  ;;  %v18197_v39 = vcombine.low %v12138_v36, %v12142_v54  ;;  %v12082_v54 = vld [vmem:[#allocation17 + $0x400] sm:$0xff] }
 0x7b9   :  { %11905 = vmatprep.subr.bf16.mxu1 %v17980_v13  ;;  %v19704_v13 = vpack.c.bf16 %v11941_v17, %v11941_v17 }
 0x7ba   :  { %15173 = vmatpush2.bf16.msra.mxu0 %v18365_v9 }
 0x7bb   :  { %15174 = vmatprep.subr.bf16.mxu0 %v18358_v11  ;;  %v11631_v11 = vadd.f32 %v19665_v24, %v8689_v1  ;;  %v12186_v1 = vld [vmem:[#allocation17 + $0x740] sm:$0xff] }
 0x7bc   :  { %11906 = vmatpush2.bf16.msra.mxu1 %v17979_v12 }
 0x7bd   :  { %11907 = vmatprep.subr.bf16.mxu1 %v17972_v59 }
 0x7be   :  { %15175 = vmatpush2.bf16.msra.mxu0 %v18357_v28  ;;  %v12118_v28 = vld [vmem:[#allocation17 + $0x520] sm:$0xff] }
 0x7bf   :  { %15176 = vmatprep.subr.bf16.mxu0 %v18350_v43  ;;  %v18174_v60 = vcombine.high %v12114_v63, %v12118_v28 }
 0x7c0   :  { %11908 = vmatpush2.bf16.msra.mxu1 %v17971_v34  ;;  %v18181_v34 = vcombine.low %v12122_v6, %v12126_v7  ;;  %v12178_v6 = vld [vmem:[#allocation17 + $0x700] sm:$0xff] }
 0x7c1   :  { %11909 = vmatprep.subr.bf16.mxu1 %v17964_v8  ;;  %v12182_v7 = vld [vmem:[#allocation17 + $0x720] sm:$0xff] }
 0x7c2   :  { %15177 = vmatpush2.bf16.msra.mxu0 %v18349_v61  ;;  %v18173_v61 = vcombine.low %v12114_v63, %v12118_v28  ;;  %v12166_v63 = vld [vmem:[#allocation17 + $0x6a0] sm:$0xff] }
 0x7c3   :  { %15178 = vmatprep.subr.bf16.mxu0 %v18342_v55  ;;  %v12098_v55 = vld [vmem:[#allocation17 + $0x480] sm:$0xff] }
 0x7c4   :  { %11910 = vmatpush2.bf16.msra.mxu1 %v17963_v26  ;;  %v18165_v26 = vcombine.low %v12106_v50, %v12110_v10  ;;  %v12150_v50 = vld [vmem:[#allocation17 + $0x620] sm:$0xff] }
 0x7c5   :  { %11911 = vmatprep.subr.bf16.mxu1 %v17956_v52  ;;  %v12094_v52 = vld [vmem:[#allocation17 + $0x460] sm:$0xff] }
 0x7c6   :  { %15179 = vmatpush2.bf16.msra.mxu0 %v18341_v56  ;;  %v18150_v36 = vcombine.high %v12090_v21, %v12094_v52  ;;  %v12086_v56 = vld [vmem:[#allocation17 + $0x420] sm:$0xff]  ;;  %v18149_v3 = vcombine.low %v12090_v21, %v12094_v52 }
 0x7c7   :  { %15180 = vmatprep.subr.bf16.mxu0 %v18334_v22  ;;  %v18142_v22 = vcombine.high %v12082_v54, %v12086_v56  ;;  %v18141_v37 = vcombine.low %v12082_v54, %v12086_v56  ;;  %v12386_v52 = vld [vmem:[#allocation17 + $0xd80] sm:$0xff] }
 0x7c8   :  { %11912 = vmatpush2.bf16.msra.mxu1 %v17955_v42  ;;  %v12202_v42 = vld [vmem:[#allocation17 + $0x7c0] sm:$0xff] }
 0x7c9   :  { %15109 = vmatprep.subr.bf16.mxu1 %v18198_v20  ;;  %v12206_v20 = vld [vmem:[#allocation17 + $0x7e0] sm:$0xff] }
 0x7ca   :  { %15181 = vmatpush2.bf16.msra.mxu0 %v18333_v57  ;;  %v18262_v51 = vcombine.high %v12202_v42, %v12206_v20  ;;  %v12198_v57 = vld [vmem:[#allocation17 + $0x7a0] sm:$0xff]  ;;  %v18261_v17 = vcombine.low %v12202_v42, %v12206_v20 }
 0x7cb   :  { %v11669_v9 = vpop.f32.mrf.mxu1  ;;  %11914 = vmatmul.mubr.bf16.vlgmr.msra.gmra.mxu1 %v19603_v35  ;;  %15232 = vmatprep.subr.bf16.mxu0 %v18072_v5  ;;  %v18254_v5 = vcombine.high %v12194_v15, %v12198_v57 }
 0x7cc   :  { %v11670_v12 = vadd.f32 %v11669_v9, %v11629_v44  ;;  %v19708_v25 = vpop.f32.mrf.mxu0  ;;  %15110 = vmatpush1.bf16.msra.mxu1 %v18197_v39  ;;  %15141 = vmatprep.mubr.bf16.mxu1 %v19704_v13  ;;  %v12190_v39 = vld [vmem:[#allocation17 + $0x760] sm:$0xff] }
 0x7cd   :  { %v11671_v40 = vpop.f32.mrf.mxu1  ;;  %15111 = vmatprep.subr.bf16.mxu1 %v18190_v14  ;;  %v18253_v14 = vcombine.low %v12194_v15, %v12198_v57  ;;  %v18246_v44 = vcombine.high %v12186_v1, %v12190_v39  ;;  %v18245_v9 = vcombine.low %v12186_v1, %v12190_v39  ;;  %v12370_v1 = vld [vmem:[#allocation17 + $0xd00] sm:$0xff] }
 0x7ce   :  { %v11672_v59 = vadd.f32 %v11671_v40, %v11631_v11  ;;  %v19711_v0 = vpop.f32.mrf.mxu0  ;;  %v19714_v35 = vadd.f32 %v19680_v58, %v11670_v12  ;;  %v12102_v58 = vld [vmem:[#allocation17 + $0x4a0] sm:$0xff]  ;;  %v18238_v11 = vcombine.high %v12178_v6, %v12182_v7  ;;  %v18237_v40 = vcombine.low %v12178_v6, %v12182_v7 }
 0x7cf   :  { %v11673_v43 = vpop.f32.mrf.mxu1  ;;  %v18158_v19 = vcombine.high %v12098_v55, %v12102_v58  ;;  %v12170_v12 = vld [vmem:[#allocation17 + $0x6c0] sm:$0xff] }
 0x7d0   :  { %v11796_v24 = vpop.f32.mrf.mxu0  ;;  %15112 = vmatpush1.bf16.msra.mxu1 %v18189_v16  ;;  %v19717_v41 = vadd.f32 %v19686_v18, %v11672_v59  ;;  %v18157_v18 = vcombine.low %v12098_v55, %v12102_v58  ;;  %v12174_v16 = vld [vmem:[#allocation17 + $0x6e0] sm:$0xff] }
 0x7d1   :  { %v11674_v31 = vpop.f32.mrf.mxu1  ;;  %15113 = vmatprep.subr.bf16.mxu1 %v18182_v38  ;;  %v18230_v38 = vcombine.high %v12170_v12, %v12174_v16  ;;  %v12162_v59 = vld [vmem:[#allocation17 + $0x680] sm:$0xff]  ;;  %v18229_v28 = vcombine.low %v12170_v12, %v12174_v16  ;;  %v12007_v12 = vld [vmem:[#allocation17 + $0x1a8] sm:$0xff] }
 0x7d2   :  { %v11797_v8 = vpop.f32.mrf.mxu0  ;;  %v18222_v43 = vcombine.high %v12162_v59, %v12166_v63  ;;  %v12154_v24 = vld [vmem:[#allocation17 + $0x640] sm:$0xff]  ;;  %v18221_v31 = vcombine.low %v12162_v59, %v12166_v63 }
 0x7d3   :  { %v12146_v8 = vld [vmem:[#allocation17 + $0x600] sm:$0xff] }
 0x7d4   :  { %15114 = vmatpush1.bf16.msra.mxu1 %v18181_v34  ;;  %v12158_v34 = vld [vmem:[#allocation17 + $0x660] sm:$0xff] }
 0x7d5   :  { %15115 = vmatprep.subr.bf16.mxu1 %v18174_v60  ;;  %v18214_v60 = vcombine.high %v12154_v24, %v12158_v34  ;;  %v18213_v10 = vcombine.low %v12154_v24, %v12158_v34  ;;  %v12394_v55 = vld [vmem:[#allocation17 + $0xdc0] sm:$0xff]  ;;  %v19735_v34 = vld [vmem:[#allocation17 + $0x5c8] sm:$0xff] }
 0x7d6   :  { %v12398_v58 = vld [vmem:[#allocation17 + $0xde0] sm:$0xff] }
 0x7d7   :  { %v12374_v39 = vld [vmem:[#allocation17 + $0xd20] sm:$0xff] }
 0x7d8   :  { %15116 = vmatpush1.bf16.msra.mxu1 %v18173_v61  ;;  %v18206_v61 = vcombine.high %v12146_v8, %v12150_v50  ;;  %v18430_v16 = vcombine.high %v12370_v1, %v12374_v39  ;;  %v12362_v59 = vld [vmem:[#allocation17 + $0xcc0] sm:$0xff]  ;;  %v18429_v24 = vcombine.low %v12370_v1, %v12374_v39 }
 0x7d9   :  { %15117 = vmatprep.subr.bf16.mxu1 %v18166_v4  ;;  %v11932_v4 = vmul.f32 0.2, %v19678_v23  ;;  %v12458_v39 = vld [vmem:[#allocation17 + $0xfc0] sm:$0xff] }
 0x7db   :  { %v11940_v21 = vsel %vm11924_vm12, %v19678_v23, %v11932_v4  ;;  %v12358_v4 = vld [vmem:[#allocation17 + $0xca0] sm:$0xff] }
 0x7dc   :  { %15118 = vmatpush1.bf16.msra.mxu1 %v18165_v26  ;;  %v18205_v26 = vcombine.low %v12146_v8, %v12150_v50  ;;  %v19722_v54 = vpack.c.bf16 %v11940_v21, %v11940_v21  ;;  %v11999_v8 = vld [vmem:[#allocation17 + $0x168] sm:$0xff] }
 0x7dd   :  { %15119 = vmatprep.subr.bf16.mxu1 %v18158_v19  ;;  %v18454_v19 = vcombine.high %v12394_v55, %v12398_v58  ;;  %v11991_v21 = vld [vmem:[#allocation17 + $0x128] sm:$0xff] }
 0x7e0   :  { %15120 = vmatpush1.bf16.msra.mxu1 %v18157_v18  ;;  %v12390_v18 = vld [vmem:[#allocation17 + $0xda0] sm:$0xff] }
 0x7e1   :  { %15121 = vmatprep.subr.bf16.mxu1 %v18150_v36  ;;  %v18453_v36 = vcombine.low %v12394_v55, %v12398_v58  ;;  %v18446_v56 = vcombine.high %v12386_v52, %v12390_v18 }
 0x7e4   :  { %15122 = vmatpush1.bf16.msra.mxu1 %v18149_v3  ;;  %v12378_v3 = vld [vmem:[#allocation17 + $0xd40] sm:$0xff] }
 0x7e5   :  { %15123 = vmatprep.subr.bf16.mxu1 %v18142_v22  ;;  %v12382_v22 = vld [vmem:[#allocation17 + $0xd60] sm:$0xff] }
 0x7e6   :  { %v18438_v15 = vcombine.high %v12378_v3, %v12382_v22 }
 0x7e8   :  { %15124 = vmatpush1.bf16.msra.mxu1 %v18141_v37 }
 0x7e9   :  { %15125 = vmatprep.subr.bf16.mxu1 %v18262_v51  ;;  %v18445_v51 = vcombine.low %v12386_v52, %v12390_v18  ;;  %v12346_v18 = vld [vmem:[#allocation17 + $0xc40] sm:$0xff] }
 0x7ec   :  { %15126 = vmatpush2.bf16.msra.mxu1 %v18261_v17 }
 0x7ed   :  { %15127 = vmatprep.subr.bf16.mxu1 %v18254_v5 }
 0x7f0   :  { %15128 = vmatpush2.bf16.msra.mxu1 %v18253_v14 }
 0x7f1   :  { %15129 = vmatprep.subr.bf16.mxu1 %v18246_v44 }
 0x7f4   :  { %15130 = vmatpush2.bf16.msra.mxu1 %v18245_v9 }
 0x7f5   :  { %15131 = vmatprep.subr.bf16.mxu1 %v18238_v11  ;;  %v12003_v11 = vld [vmem:[#allocation17 + $0x188] sm:$0xff] }
 0x7f6   :  { %v18063_v55 = vcombine.low %v12003_v11, %v12007_v12 }
 0x7f8   :  { %15132 = vmatpush2.bf16.msra.mxu1 %v18237_v40 }
 0x7f9   :  { %15133 = vmatprep.subr.bf16.mxu1 %v18230_v38 }
 0x7fc   :  { %15134 = vmatpush2.bf16.msra.mxu1 %v18229_v28 }
 0x7fd   :  { %15135 = vmatprep.subr.bf16.mxu1 %v18222_v43  ;;  %v18064_v43 = vcombine.high %v12003_v11, %v12007_v12  ;;  %v12450_v12 = vld [vmem:[#allocation17 + $0xf80] sm:$0xff] }
 0x800   :  { %15136 = vmatpush2.bf16.msra.mxu1 %v18221_v31  ;;  %v19737_v31 = vld [vmem:[#allocation17 + $0x5e8] sm:$0xff] }
 0x801   :  { %15137 = vmatprep.subr.bf16.mxu1 %v18214_v60  ;;  %v11995_v60 = vld [vmem:[#allocation17 + $0x148] sm:$0xff] }
 0x802   :  { %v18056_v58 = vcombine.high %v11995_v60, %v11999_v8 }
 0x804   :  { %15138 = vmatpush2.bf16.msra.mxu1 %v18213_v10  ;;  %v18199_v10 = vcombine.low %v19735_v34, %v19737_v31 }
 0x805   :  { %15139 = vmatprep.subr.bf16.mxu1 %v18206_v61  ;;  %v12354_v61 = vld [vmem:[#allocation17 + $0xc80] sm:$0xff] }
 0x806   :  { %v18414_v52 = vcombine.high %v12354_v61, %v12358_v4  ;;  %v18413_v27 = vcombine.low %v12354_v61, %v12358_v4 }
 0x808   :  { %15140 = vmatpush2.bf16.msra.mxu1 %v18205_v26 }
 0x809   :  { %15191 = vmatprep.subr.bf16.mxu1 %v18454_v19  ;;  %v11987_v19 = vld [vmem:[#allocation17 + $0x108] sm:$0xff] }
 0x80b   :  { %v11751_v42 = vpop.f32.mrf.mxu1  ;;  %15142 = vmatmul.mubr.bf16.vlgmr.msra.gmra.mxu1 %v19722_v54 }
 0x80c   :  { %v11752_v20 = vadd.f32 %v11751_v42, %v19714_v35  ;;  %v19726_v37 = vpop.f32.mrf.mxu0  ;;  %15192 = vmatpush1.bf16.msra.mxu1 %v18453_v36  ;;  %v18437_v35 = vcombine.low %v12378_v3, %v12382_v22  ;;  %v12350_v36 = vld [vmem:[#allocation17 + $0xc60] sm:$0xff]  ;;  %v18048_v3 = vcombine.high %v11987_v19, %v11991_v21 }
 0x80d   :  { %v11753_v23 = vpop.f32.mrf.mxu1  ;;  %15193 = vmatprep.subr.bf16.mxu1 %v18446_v56  ;;  %v18055_v56 = vcombine.low %v11995_v60, %v11999_v8  ;;  %v18406_v22 = vcombine.high %v12346_v18, %v12350_v36  ;;  %v12338_v42 = vld [vmem:[#allocation17 + $0xc00] sm:$0xff] }
 0x80e   :  { %vm11926_vm13 = vcmp.gt.f32.partialorder %v11752_v20, 0.0  ;;  %v11934_v57 = vmul.f32 0.2, %v11752_v20  ;;  %v11754_v17 = vadd.f32 %v11753_v23, %v19717_v41  ;;  %v19729_v5 = vpop.f32.mrf.mxu0  ;;  %v12366_v41 = vld [vmem:[#allocation17 + $0xce0] sm:$0xff] }
 0x80f   :  { %v11755_v14 = vpop.f32.mrf.mxu1  ;;  %v18422_v50 = vcombine.high %v12362_v59, %v12366_v41  ;;  %v18421_v26 = vcombine.low %v12362_v59, %v12366_v41  ;;  %v11955_v41 = vld [vmem:[#allocation17 + $0x8] sm:$0xff]  ;;  %v12442_v60 = vld [vmem:[#allocation17 + $0xf40] sm:$0xff] }
 0x810   :  { %vm11927_vm14 = vcmp.gt.f32.partialorder %v11754_v17, 0.0  ;;  %v11935_v44 = vmul.f32 0.2, %v11754_v17  ;;  %v11878_v6 = vpop.f32.mrf.mxu0  ;;  %15194 = vmatpush1.bf16.msra.mxu1 %v18445_v51  ;;  %v11942_v7 = vsel %vm11926_vm13, %v11752_v20, %v11934_v57  ;;  %v12342_v20 = vld [vmem:[#allocation17 + $0xc20] sm:$0xff]  ;;  %v18047_v51 = vcombine.low %v11987_v19, %v11991_v21  ;;  %v11971_v57 = vld [vmem:[#allocation17 + $0x88] sm:$0xff] }
 0x811   :  { %v11756_v9 = vpop.f32.mrf.mxu1  ;;  %15195 = vmatprep.subr.bf16.mxu1 %v18438_v15  ;;  %v19733_v28 = vpack.c.bf16 %v11942_v7, %v11942_v7  ;;  %v18405_v15 = vcombine.low %v12346_v18, %v12350_v36  ;;  %v18398_v1 = vcombine.high %v12338_v42, %v12342_v20  ;;  %v12462_v14 = vld [vmem:[#allocation17 + $0xfe0] sm:$0xff]  ;;  %v11963_v7 = vld [vmem:[#allocation17 + $0x48] sm:$0xff] }
 0x812   :  { %v11943_v40 = vsel %vm11927_vm14, %v11754_v17, %v11935_v44  ;;  %v11879_v38 = vpop.f32.mrf.mxu0  ;;  %v11975_v17 = vld [vmem:[#allocation17 + $0xa8] sm:$0xff]  ;;  %v18518_v11 = vcombine.high %v12458_v39, %v12462_v14  ;;  %v18517_v59 = vcombine.low %v12458_v39, %v12462_v14  ;;  %v12446_v8 = vld [vmem:[#allocation17 + $0xf60] sm:$0xff] }
 0x813   :  { %v19731_v63 = vpack.c.bf16 %v11943_v40, %v11943_v40  ;;  %v18032_v6 = vcombine.high %v11971_v57, %v11975_v17  ;;  %v11967_v9 = vld [vmem:[#allocation17 + $0x68] sm:$0xff]  ;;  %v18031_v40 = vcombine.low %v11971_v57, %v11975_v17  ;;  %v12434_v19 = vld [vmem:[#allocation17 + $0xf00] sm:$0xff]  ;;  %v18501_v36 = vcombine.low %v12442_v60, %v12446_v8 }
 0x814   :  { %15196 = vmatpush1.bf16.msra.mxu1 %v18437_v35  ;;  %v18397_v35 = vcombine.low %v12338_v42, %v12342_v20  ;;  %v18024_v38 = vcombine.high %v11963_v7, %v11967_v9  ;;  %v12438_v21 = vld [vmem:[#allocation17 + $0xf20] sm:$0xff] }
 0x815   :  { %15182 = vmatprep.mubr.bf16.mxu0 %v19731_v63  ;;  %15197 = vmatprep.subr.bf16.mxu1 %v18430_v16  ;;  %v12454_v16 = vld [vmem:[#allocation17 + $0xfa0] sm:$0xff]  ;;  %v18493_v20 = vcombine.low %v12434_v19, %v12438_v21 }
 0x816   :  { %15183 = vmatmul.mubr.bf16.vlgmr.msra.gmra.mxu0 %v19733_v28  ;;  %v18509_v4 = vcombine.low %v12450_v12, %v12454_v16  ;;  %v12418_v57 = vld [vmem:[#allocation17 + $0xe80] sm:$0xff] }
 0x817   :  { %15233 = vmatpush1.bf16.msra.mxu0 %v18071_v46  ;;  %15264 = vmatprep.mubr.bf16.mxu0 %v19659_v30  ;;  %v11983_v46 = vld [vmem:[#allocation17 + $0xe8] sm:$0xff]  ;;  %v12422_v17 = vld [vmem:[#allocation17 + $0xea0] sm:$0xff] }
 0x818   :  { %15234 = vmatprep.subr.bf16.mxu0 %v18064_v43  ;;  %15198 = vmatpush1.bf16.msra.mxu1 %v18429_v24  ;;  %v18040_v23 = vcombine.high %v11979_v32, %v11983_v46  ;;  %v18039_v44 = vcombine.low %v11979_v32, %v11983_v46  ;;  %v11959_v43 = vld [vmem:[#allocation17 + $0x28] sm:$0xff]  ;;  %v18510_v24 = vcombine.high %v12450_v12, %v12454_v16  ;;  %v12426_v32 = vld [vmem:[#allocation17 + $0xec0] sm:$0xff] }
 0x819   :  { %15199 = vmatprep.subr.bf16.mxu1 %v18422_v50  ;;  %v18023_v50 = vcombine.low %v11963_v7, %v11967_v9  ;;  %v18016_v61 = vcombine.high %v11955_v41, %v11959_v43  ;;  %v12430_v46 = vld [vmem:[#allocation17 + $0xee0] sm:$0xff]  ;;  %v18477_v16 = vcombine.low %v12418_v57, %v12422_v17 }
 0x81a   :  { %v18485_v14 = vcombine.low %v12426_v32, %v12430_v46  ;;  %v12410_v7 = vld [vmem:[#allocation17 + $0xe40] sm:$0xff] }
 0x81b   :  { %15235 = vmatpush1.bf16.msra.mxu0 %v18063_v55  ;;  %v12075_v55 = vld [vmem:[#allocation17 + $0x3c8] sm:$0xff]  ;;  %v12414_v9 = vld [vmem:[#allocation17 + $0xe60] sm:$0xff] }
 0x81c   :  { %15236 = vmatprep.subr.bf16.mxu0 %v18056_v58  ;;  %15200 = vmatpush1.bf16.msra.mxu1 %v18421_v26  ;;  %v12079_v58 = vld [vmem:[#allocation17 + $0x3e8] sm:$0xff]  ;;  %v18502_v26 = vcombine.high %v12442_v60, %v12446_v8  ;;  %v18469_v8 = vcombine.low %v12410_v7, %v12414_v9 }
 0x81d   :  { %15201 = vmatprep.subr.bf16.mxu1 %v18414_v52  ;;  %v18015_v52 = vcombine.low %v11955_v41, %v11959_v43  ;;  %v18136_v18 = vcombine.high %v12075_v55, %v12079_v58  ;;  %v12402_v41 = vld [vmem:[#allocation17 + $0xe00] sm:$0xff] }
 0x81e   :  { %v12406_v43 = vld [vmem:[#allocation17 + $0xe20] sm:$0xff] }
 0x81f   :  { %15237 = vmatpush1.bf16.msra.mxu0 %v18055_v56  ;;  %v12067_v56 = vld [vmem:[#allocation17 + $0x388] sm:$0xff] }
 0x820   :  { %15238 = vmatprep.subr.bf16.mxu0 %v18048_v3  ;;  %15202 = vmatpush1.bf16.msra.mxu1 %v18413_v27  ;;  %v12071_v3 = vld [vmem:[#allocation17 + $0x3a8] sm:$0xff]  ;;  %v18494_v27 = vcombine.high %v12434_v19, %v12438_v21 }
 0x821   :  { %15203 = vmatprep.subr.bf16.mxu1 %v18406_v22  ;;  %v18135_v22 = vcombine.low %v12075_v55, %v12079_v58  ;;  %v18128_v42 = vcombine.high %v12067_v56, %v12071_v3  ;;  %v12027_v19 = vld [vmem:[#allocation17 + $0x248] sm:$0xff] }
 0x822   :  { %v12031_v21 = vld [vmem:[#allocation17 + $0x268] sm:$0xff] }
 0x823   :  { %15239 = vmatpush1.bf16.msra.mxu0 %v18047_v51  ;;  %v12059_v51 = vld [vmem:[#allocation17 + $0x348] sm:$0xff] }
 0x824   :  { %15240 = vmatprep.subr.bf16.mxu0 %v18040_v23  ;;  %15204 = vmatpush1.bf16.msra.mxu1 %v18405_v15  ;;  %v12063_v23 = vld [vmem:[#allocation17 + $0x368] sm:$0xff]  ;;  %v18486_v15 = vcombine.high %v12426_v32, %v12430_v46 }
 0x825   :  { %15205 = vmatprep.subr.bf16.mxu1 %v18398_v1  ;;  %v18127_v1 = vcombine.low %v12067_v56, %v12071_v3  ;;  %v18120_v39 = vcombine.high %v12059_v51, %v12063_v23  ;;  %v12019_v32 = vld [vmem:[#allocation17 + $0x208] sm:$0xff] }
 0x826   :  { %v12023_v46 = vld [vmem:[#allocation17 + $0x228] sm:$0xff] }
 0x827   :  { %15241 = vmatpush1.bf16.msra.mxu0 %v18039_v44  ;;  %v12051_v44 = vld [vmem:[#allocation17 + $0x308] sm:$0xff] }
 0x828   :  { %15242 = vmatprep.subr.bf16.mxu0 %v18032_v6  ;;  %15206 = vmatpush1.bf16.msra.mxu1 %v18397_v35  ;;  %v12055_v6 = vld [vmem:[#allocation17 + $0x328] sm:$0xff]  ;;  %v18478_v35 = vcombine.high %v12418_v57, %v12422_v17  ;;  %v18080_v57 = vcombine.high %v12019_v32, %v12023_v46 }
 0x829   :  { %15207 = vmatprep.subr.bf16.mxu1 %v18518_v11  ;;  %v18119_v11 = vcombine.low %v12059_v51, %v12063_v23  ;;  %v18112_v12 = vcombine.high %v12051_v44, %v12055_v6 }
 0x82b   :  { %15243 = vmatpush1.bf16.msra.mxu0 %v18031_v40  ;;  %v12043_v40 = vld [vmem:[#allocation17 + $0x2c8] sm:$0xff] }
 0x82c   :  { %15244 = vmatprep.subr.bf16.mxu0 %v18024_v38  ;;  %15208 = vmatpush2.bf16.msra.mxu1 %v18517_v59  ;;  %v12047_v38 = vld [vmem:[#allocation17 + $0x2e8] sm:$0xff]  ;;  %v18470_v59 = vcombine.high %v12410_v7, %v12414_v9 }
 0x82d   :  { %15209 = vmatprep.subr.bf16.mxu1 %v18510_v24  ;;  %v18111_v24 = vcombine.low %v12051_v44, %v12055_v6  ;;  %v18104_v60 = vcombine.high %v12043_v40, %v12047_v38  ;;  %v18103_v55 = vcombine.low %v12043_v40, %v12047_v38 }
 0x82f   :  { %15245 = vmatpush1.bf16.msra.mxu0 %v18023_v50  ;;  %v12035_v50 = vld [vmem:[#allocation17 + $0x288] sm:$0xff] }
 0x830   :  { %15246 = vmatprep.subr.bf16.mxu0 %v18016_v61  ;;  %15210 = vmatpush2.bf16.msra.mxu1 %v18509_v4  ;;  %v12039_v61 = vld [vmem:[#allocation17 + $0x2a8] sm:$0xff]  ;;  %v18462_v4 = vcombine.high %v12402_v41, %v12406_v43 }
 0x831   :  { %15211 = vmatprep.subr.bf16.mxu1 %v18502_v26  ;;  %v18096_v58 = vcombine.high %v12035_v50, %v12039_v61  ;;  %v18461_v26 = vcombine.low %v12402_v41, %v12406_v43  ;;  %v18095_v56 = vcombine.low %v12035_v50, %v12039_v61  ;;  %v12251_v41 = vld [vmem:[#allocation17 + $0x948] sm:$0xff] }
 0x832   :  { %v12235_v61 = vld [vmem:[#allocation17 + $0x8c8] sm:$0xff] }
 0x833   :  { %15247 = vmatpush1.bf16.msra.mxu0 %v18015_v52  ;;  %v18200_v52 = vcombine.high %v19735_v34, %v19737_v31 }
 0x834   :  { %15248 = vmatprep.subr.bf16.mxu0 %v18136_v18  ;;  %15212 = vmatpush2.bf16.msra.mxu1 %v18501_v36  ;;  %v18766_v18 = vld [vmem:[#allocation16] sm:$0xff] }
 0x835   :  { %15213 = vmatprep.subr.bf16.mxu1 %v18494_v27  ;;  %v8693_v36 = vrot.slane %v18766_v18, %v19293_v33  ;;  %v8697_v3 = vrot.slane %v18766_v18, %v19255_v2  ;;  %v18088_v27 = vcombine.high %v12027_v19, %v12031_v21  ;;  %v12219_v18 = vld [vmem:[#allocation17 + $0x848] sm:$0xff] }
 0x837   :  { %15249 = vmatpush2.bf16.msra.mxu0 %v18135_v22  ;;  %v11793_v22 = vadd.f32 %v19708_v25, %v8693_v36  ;;  %v11795_v51 = vadd.f32 %v19711_v0, %v8697_v3  ;;  %v12223_v36 = vld [vmem:[#allocation17 + $0x868] sm:$0xff] }
 0x838   :  { %15250 = vmatprep.subr.bf16.mxu0 %v18128_v42  ;;  %15214 = vmatpush2.bf16.msra.mxu1 %v18493_v20  ;;  %v18087_v20 = vcombine.low %v12027_v19, %v12031_v21  ;;  %v12231_v19 = vld [vmem:[#allocation17 + $0x8a8] sm:$0xff]  ;;  %v18280_v3 = vcombine.high %v12219_v18, %v12223_v36 }
 0x839   :  { %15215 = vmatprep.subr.bf16.mxu1 %v18486_v15 }
 0x83b   :  { %15251 = vmatpush2.bf16.msra.mxu0 %v18127_v1  ;;  %v12267_v1 = vld [vmem:[#allocation17 + $0x9c8] sm:$0xff] }
 0x83c   :  { %15252 = vmatprep.subr.bf16.mxu0 %v18120_v39  ;;  %15216 = vmatpush2.bf16.msra.mxu1 %v18485_v14  ;;  %v12271_v39 = vld [vmem:[#allocation17 + $0x9e8] sm:$0xff] }
 0x83d   :  { %15217 = vmatprep.subr.bf16.mxu1 %v18478_v35  ;;  %v18079_v35 = vcombine.low %v12019_v32, %v12023_v46  ;;  %v18328_v0 = vcombine.high %v12267_v1, %v12271_v39  ;;  %v18327_v38 = vcombine.low %v12267_v1, %v12271_v39  ;;  %v12215_v32 = vld [vmem:[#allocation17 + $0x828] sm:$0xff]  ;;  %v18279_v46 = vcombine.low %v12219_v18, %v12223_v36  ;;  %v12012_v18 = vld [vmem:[#allocation17 + $0x1d0] sm:$0xff] }
 0x83e   :  { %v12016_v36 = vld [vmem:[#allocation17 + $0x1f0] sm:$0xff] }
 0x83f   :  { %15253 = vmatpush2.bf16.msra.mxu0 %v18119_v11 }
 0x840   :  { %15254 = vmatprep.subr.bf16.mxu0 %v18112_v12  ;;  %15218 = vmatpush2.bf16.msra.mxu1 %v18477_v16  ;;  %v12259_v12 = vld [vmem:[#allocation17 + $0x988] sm:$0xff] }
 0x841   :  { %15219 = vmatprep.subr.bf16.mxu1 %v18470_v59  ;;  %v12263_v16 = vld [vmem:[#allocation17 + $0x9a8] sm:$0xff] }
 0x842   :  { %v18320_v59 = vcombine.high %v12259_v12, %v12263_v16  ;;  %v18319_v43 = vcombine.low %v12259_v12, %v12263_v16 }
 0x843   :  { %15255 = vmatpush2.bf16.msra.mxu0 %v18111_v24 }
 0x844   :  { %15256 = vmatprep.subr.bf16.mxu0 %v18104_v60  ;;  %15220 = vmatpush2.bf16.msra.mxu1 %v18469_v8  ;;  %v12247_v60 = vld [vmem:[#allocation17 + $0x928] sm:$0xff] }
 0x845   :  { %15221 = vmatprep.subr.bf16.mxu1 %v18462_v4  ;;  %v12239_v4 = vld [vmem:[#allocation17 + $0x8e8] sm:$0xff] }
 0x846   :  { %v18295_v21 = vcombine.low %v12235_v61, %v12239_v4 }
 0x847   :  { %15257 = vmatpush2.bf16.msra.mxu0 %v18103_v55 }
 0x848   :  { %15258 = vmatprep.subr.bf16.mxu0 %v18096_v58  ;;  %15222 = vmatpush2.bf16.msra.mxu1 %v18461_v26  ;;  %v18296_v58 = vcombine.high %v12235_v61, %v12239_v4  ;;  %v12227_v26 = vld [vmem:[#allocation17 + $0x888] sm:$0xff] }
 0x849   :  { %15273 = vmatprep.subr.bf16.mxu1 %v18200_v52  ;;  %v18288_v52 = vcombine.high %v12227_v26, %v12231_v19  ;;  %v12275_v4 = vld [vmem:[#allocation17 + $0xa08] sm:$0xff] }
 0x84b   :  { %15259 = vmatpush2.bf16.msra.mxu0 %v18095_v56  ;;  %v11833_v42 = vpop.f32.mrf.mxu1  ;;  %v18287_v56 = vcombine.low %v12227_v26, %v12231_v19 }
 0x84c   :  { %v11834_v23 = vadd.f32 %v11833_v42, %v11793_v22  ;;  %v19753_v15 = vpop.f32.mrf.mxu0  ;;  %15260 = vmatprep.subr.bf16.mxu0 %v18088_v27  ;;  %v12211_v27 = vld [vmem:[#allocation17 + $0x808] sm:$0xff] }
 0x84d   :  { %v11835_v17 = vpop.f32.mrf.mxu1  ;;  %v18272_v22 = vcombine.high %v12211_v27, %v12215_v32  ;;  %v12331_v42 = vld [vmem:[#allocation17 + $0xbc8] sm:$0xff] }
 0x84e   :  { %v11836_v14 = vadd.f32 %v11835_v17, %v11795_v51  ;;  %v19755_v44 = vpop.f32.mrf.mxu0  ;;  %v19758_v6 = vadd.f32 %v19726_v37, %v11834_v23  ;;  %v12255_v37 = vld [vmem:[#allocation17 + $0x968] sm:$0xff]  ;;  %v18271_v51 = vcombine.low %v12211_v27, %v12215_v32 }
 0x84f   :  { %15261 = vmatpush2.bf16.msra.mxu0 %v18087_v20  ;;  %v11837_v25 = vpop.f32.mrf.mxu1  ;;  %v18312_v24 = vcombine.high %v12251_v41, %v12255_v37  ;;  %v18311_v8 = vcombine.low %v12251_v41, %v12255_v37  ;;  %v12335_v20 = vld [vmem:[#allocation17 + $0xbe8] sm:$0xff] }
 0x850   :  { %v15106_v7 = vpop.f32.mrf.mxu0  ;;  %15262 = vmatprep.subr.bf16.mxu0 %v18080_v57  ;;  %v19761_v9 = vadd.f32 %v19729_v5, %v11836_v14  ;;  %v12243_v5 = vld [vmem:[#allocation17 + $0x908] sm:$0xff]  ;;  %v18392_v23 = vcombine.high %v12331_v42, %v12335_v20  ;;  %v18391_v1 = vcombine.low %v12331_v42, %v12335_v20 }
 0x851   :  { %v11838_v11 = vpop.f32.mrf.mxu1  ;;  %v18304_v50 = vcombine.high %v12243_v5, %v12247_v60  ;;  %v18303_v55 = vcombine.low %v12243_v5, %v12247_v60  ;;  %v12323_v57 = vld [vmem:[#allocation17 + $0xb88] sm:$0xff] }
 0x852   :  { %v15107_v40 = vpop.f32.mrf.mxu0  ;;  %v12327_v17 = vld [vmem:[#allocation17 + $0xba8] sm:$0xff] }
 0x853   :  { %15263 = vmatpush2.bf16.msra.mxu0 %v18079_v35  ;;  %v18384_v39 = vcombine.high %v12323_v57, %v12327_v17  ;;  %v12315_v14 = vld [vmem:[#allocation17 + $0xb48] sm:$0xff]  ;;  %v18383_v35 = vcombine.low %v12323_v57, %v12327_v17  ;;  %v12004_v57 = vld [vmem:[#allocation17 + $0x190] sm:$0xff] }
 0x854   :  { %15314 = vmatprep.subr.bf16.mxu0 %v18328_v0  ;;  %v12319_v25 = vld [vmem:[#allocation17 + $0xb68] sm:$0xff]  ;;  %v12008_v17 = vld [vmem:[#allocation17 + $0x1b0] sm:$0xff] }
 0x855   :  { %v18376_v7 = vcombine.high %v12315_v14, %v12319_v25  ;;  %v12307_v0 = vld [vmem:[#allocation17 + $0xb08] sm:$0xff]  ;;  %v18375_v12 = vcombine.low %v12315_v14, %v12319_v25 }
 0x856   :  { %15265 = vmatmul.mubr.bf16.vlgmr.msra.gmra.mxu0 %v19673_v53  ;;  %v12311_v11 = vld [vmem:[#allocation17 + $0xb28] sm:$0xff] }
 0x857   :  { %15315 = vmatpush1.bf16.msra.mxu0 %v18327_v38  ;;  %15346 = vmatprep.mubr.bf16.mxu0 %v19731_v63  ;;  %v18368_v16 = vcombine.high %v12307_v0, %v12311_v11  ;;  %v12299_v40 = vld [vmem:[#allocation17 + $0xac8] sm:$0xff] }
 0x858   :  { %15316 = vmatprep.subr.bf16.mxu0 %v18320_v59  ;;  %v12303_v38 = vld [vmem:[#allocation17 + $0xae8] sm:$0xff]  ;;  %v18367_v59 = vcombine.low %v12307_v0, %v12311_v11  ;;  %v11996_v0 = vld [vmem:[#allocation17 + $0x150] sm:$0xff] }
 0x859   :  { %v18360_v41 = vcombine.high %v12299_v40, %v12303_v38  ;;  %v12291_v37 = vld [vmem:[#allocation17 + $0xa88] sm:$0xff]  ;;  %v12000_v11 = vld [vmem:[#allocation17 + $0x170] sm:$0xff] }
 0x85a   :  { %v12283_v60 = vld [vmem:[#allocation17 + $0xa48] sm:$0xff]  ;;  %v18057_v34 = vcombine.low %v11996_v0, %v12000_v11 }
 0x85b   :  { %15317 = vmatpush1.bf16.msra.mxu0 %v18319_v43  ;;  %v12295_v43 = vld [vmem:[#allocation17 + $0xaa8] sm:$0xff] }
 0x85c   :  { %15318 = vmatprep.subr.bf16.mxu0 %v18312_v24  ;;  %v18359_v24 = vcombine.low %v12299_v40, %v12303_v38  ;;  %v18352_v5 = vcombine.high %v12291_v37, %v12295_v43  ;;  %v18058_v38 = vcombine.high %v11996_v0, %v12000_v11  ;;  %v12203_v0 = vld [vmem:[#allocation17 + $0x7c8] sm:$0xff] }
 0x85d   :  { %v12207_v11 = vld [vmem:[#allocation17 + $0x7e8] sm:$0xff] }
 0x85f   :  { %15319 = vmatpush1.bf16.msra.mxu0 %v18311_v8  ;;  %v12287_v8 = vld [vmem:[#allocation17 + $0xa68] sm:$0xff] }
 0x860   :  { %15320 = vmatprep.subr.bf16.mxu0 %v18304_v50  ;;  %v18351_v50 = vcombine.low %v12291_v37, %v12295_v43  ;;  %v18344_v61 = vcombine.high %v12283_v60, %v12287_v8  ;;  %v18343_v26 = vcombine.low %v12283_v60, %v12287_v8  ;;  %v11988_v37 = vld [vmem:[#allocation17 + $0x110] sm:$0xff]  ;;  %v12111_v60 = vld [vmem:[#allocation17 + $0x4e8] sm:$0xff] }
 0x861   :  { %v11992_v43 = vld [vmem:[#allocation17 + $0x130] sm:$0xff] }
 0x862   :  { %v11980_v8 = vld [vmem:[#allocation17 + $0xd0] sm:$0xff] }
 0x863   :  { %15321 = vmatpush1.bf16.msra.mxu0 %v18303_v55  ;;  %v12279_v55 = vld [vmem:[#allocation17 + $0xa28] sm:$0xff] }
 0x864   :  { %15322 = vmatprep.subr.bf16.mxu0 %v18296_v58  ;;  %v18335_v32 = vcombine.low %v12275_v4, %v12279_v55 }
 0x867   :  { %15323 = vmatpush1.bf16.msra.mxu0 %v18295_v21  ;;  %v18336_v21 = vcombine.high %v12275_v4, %v12279_v55  ;;  %v18049_v4 = vcombine.low %v11988_v37, %v11992_v43 }
 0x868   :  { %15324 = vmatprep.subr.bf16.mxu0 %v18288_v52 }
 0x86b   :  { %15325 = vmatpush1.bf16.msra.mxu0 %v18287_v56 }
 0x86c   :  { %15326 = vmatprep.subr.bf16.mxu0 %v18280_v3 }
 0x86f   :  { %15327 = vmatpush1.bf16.msra.mxu0 %v18279_v46 }
 0x870   :  { %15328 = vmatprep.subr.bf16.mxu0 %v18272_v22  ;;  %v18074_v22 = vcombine.high %v12012_v18, %v12016_v36 }
 0x873   :  { %15329 = vmatpush1.bf16.msra.mxu0 %v18271_v51  ;;  %v12131_v51 = vld [vmem:[#allocation17 + $0x588] sm:$0xff] }
 0x874   :  { %15330 = vmatprep.subr.bf16.mxu0 %v18392_v23  ;;  %v12135_v23 = vld [vmem:[#allocation17 + $0x5a8] sm:$0xff] }
 0x875   :  { %v18192_v25 = vcombine.high %v12131_v51, %v12135_v23 }
 0x877   :  { %15331 = vmatpush2.bf16.msra.mxu0 %v18391_v1 }
 0x878   :  { %15332 = vmatprep.subr.bf16.mxu0 %v18384_v39  ;;  %v18073_v39 = vcombine.low %v12012_v18, %v12016_v36 }
 0x87b   :  { %15333 = vmatpush2.bf16.msra.mxu0 %v18383_v35  ;;  %v18066_v35 = vcombine.high %v12004_v57, %v12008_v17 }
 0x87c   :  { %15334 = vmatprep.subr.bf16.mxu0 %v18376_v7  ;;  %v12127_v7 = vld [vmem:[#allocation17 + $0x568] sm:$0xff] }
 0x87f   :  { %15335 = vmatpush2.bf16.msra.mxu0 %v18375_v12  ;;  %v18191_v12 = vcombine.low %v12131_v51, %v12135_v23  ;;  %v12083_v23 = vld [vmem:[#allocation17 + $0x408] sm:$0xff] }
 0x880   :  { %15336 = vmatprep.subr.bf16.mxu0 %v18368_v16  ;;  %v18065_v16 = vcombine.low %v12004_v57, %v12008_v17  ;;  %v12087_v57 = vld [vmem:[#allocation17 + $0x428] sm:$0xff]  ;;  %v11956_v17 = vld [vmem:[#allocation17 + $0x10] sm:$0xff] }
 0x883   :  { %15337 = vmatpush2.bf16.msra.mxu0 %v18367_v59  ;;  %v12115_v59 = vld [vmem:[#allocation17 + $0x508] sm:$0xff] }
 0x884   :  { %15338 = vmatprep.subr.bf16.mxu0 %v18360_v41  ;;  %v12119_v41 = vld [vmem:[#allocation17 + $0x528] sm:$0xff] }
 0x885   :  { %v18176_v31 = vcombine.high %v12115_v59, %v12119_v41 }
 0x887   :  { %15339 = vmatpush2.bf16.msra.mxu0 %v18359_v24 }
 0x888   :  { %15340 = vmatprep.subr.bf16.mxu0 %v18352_v5  ;;  %v12107_v5 = vld [vmem:[#allocation17 + $0x4c8] sm:$0xff] }
 0x889   :  { %v18168_v55 = vcombine.high %v12107_v5, %v12111_v60  ;;  %v18167_v18 = vcombine.low %v12107_v5, %v12111_v60 }
 0x88b   :  { %15341 = vmatpush2.bf16.msra.mxu0 %v18351_v50  ;;  %v11915_v58 = vpop.f32.mrf.mxu1  ;;  %v11984_v50 = vld [vmem:[#allocation17 + $0xf0] sm:$0xff] }
 0x88c   :  { %v11916_v19 = vadd.f32 %v11915_v58, %v19758_v6  ;;  %15342 = vmatprep.subr.bf16.mxu0 %v18344_v61  ;;  %v18175_v61 = vcombine.low %v12115_v59, %v12119_v41  ;;  %v18042_v58 = vcombine.high %v11980_v8, %v11984_v50  ;;  %v18041_v36 = vcombine.low %v11980_v8, %v11984_v50  ;;  %v12187_v8 = vld [vmem:[#allocation17 + $0x748] sm:$0xff] }
 0x88d   :  { %v11917_v52 = vpop.f32.mrf.mxu1  ;;  %v18264_v59 = vcombine.high %v12203_v0, %v12207_v11  ;;  %v12191_v50 = vld [vmem:[#allocation17 + $0x768] sm:$0xff] }
 0x88e   :  { %vm11928_vm15 = vcmp.gt.f32.partialorder %v11916_v19, 0.0  ;;  %v11936_v56 = vmul.f32 0.2, %v11916_v19  ;;  %v11918_v3 = vadd.f32 %v11917_v52, %v19761_v9  ;;  %v12123_v9 = vld [vmem:[#allocation17 + $0x548] sm:$0xff]  ;;  %v11976_v52 = vld [vmem:[#allocation17 + $0xb0] sm:$0xff] }
 0x88f   :  { %15343 = vmatpush2.bf16.msra.mxu0 %v18343_v26  ;;  %v11919_v27 = vpop.f32.mrf.mxu1  ;;  %v18184_v40 = vcombine.high %v12123_v9, %v12127_v7  ;;  %v18183_v24 = vcombine.low %v12123_v9, %v12127_v7  ;;  %v12099_v26 = vld [vmem:[#allocation17 + $0x488] sm:$0xff] }
 0x890   :  { %vm11929_vm0 = vcmp.gt.f32.partialorder %v11918_v3, 0.0  ;;  %v11937_v46 = vmul.f32 0.2, %v11918_v3  ;;  %15344 = vmatprep.subr.bf16.mxu0 %v18336_v21  ;;  %v11944_v42 = vsel %vm11928_vm15, %v11916_v19, %v11936_v56  ;;  %v12103_v19 = vld [vmem:[#allocation17 + $0x4a8] sm:$0xff]  ;;  %v11972_v21 = vld [vmem:[#allocation17 + $0x90] sm:$0xff] }
 0x891   :  { %v11920_v20 = vpop.f32.mrf.mxu1  ;;  %v19769_v14 = vpack.c.bf16 %v11944_v42, %v11944_v42  ;;  %v18160_v56 = vcombine.high %v12099_v26, %v12103_v19  ;;  %v12091_v27 = vld [vmem:[#allocation17 + $0x448] sm:$0xff]  ;;  %v18159_v42 = vcombine.low %v12099_v26, %v12103_v19  ;;  %v18248_v26 = vcombine.high %v12187_v8, %v12191_v50 }
 0x892   :  { %v11945_v6 = vsel %vm11929_vm0, %v11918_v3, %v11937_v46  ;;  %v18034_v3 = vcombine.high %v11972_v21, %v11976_v52  ;;  %v11964_v46 = vld [vmem:[#allocation17 + $0x50] sm:$0xff]  ;;  %v18033_v20 = vcombine.low %v11972_v21, %v11976_v52  ;;  %v12179_v21 = vld [vmem:[#allocation17 + $0x708] sm:$0xff] }
 0x893   :  { %v19767_v1 = vpack.c.bf16 %v11945_v6, %v11945_v6  ;;  %15345 = vmatpush2.bf16.msra.mxu0 %v18335_v32  ;;  %v12095_v32 = vld [vmem:[#allocation17 + $0x468] sm:$0xff] }
 0x894   :  { %15396 = vmatprep.subr.bf16.mxu0 %v18074_v22  ;;  %v11968_v22 = vld [vmem:[#allocation17 + $0x70] sm:$0xff]  ;;  %v18152_v51 = vcombine.high %v12091_v27, %v12095_v32  ;;  %v18151_v9 = vcombine.low %v12091_v27, %v12095_v32  ;;  %v12183_v52 = vld [vmem:[#allocation17 + $0x728] sm:$0xff] }
 0x895   :  { %15223 = vmatprep.mubr.bf16.mxu1 %v19767_v1  ;;  %v18026_v6 = vcombine.high %v11964_v46, %v11968_v22  ;;  %v18240_v27 = vcombine.high %v12179_v21, %v12183_v52 }
 0x896   :  { %15347 = vmatmul.mubr.bf16.vlgmr.msra.gmra.mxu0 %v19733_v28  ;;  %15224 = vmatmul.mubr.bf16.vlgmr.msra.gmra.mxu1 %v19769_v14 }
 0x897   :  { %15274 = vmatpush1.bf16.msra.mxu1 %v18199_v10  ;;  %15397 = vmatpush1.bf16.msra.mxu0 %v18073_v39  ;;  %v18050_v10 = vcombine.high %v11988_v37, %v11992_v43  ;;  %v11960_v39 = vld [vmem:[#allocation17 + $0x30] sm:$0xff]  ;;  %v12195_v37 = vld [vmem:[#allocation17 + $0x788] sm:$0xff] }
 0x898   :  { %15428 = vmatprep.mubr.bf16.mxu0 %v19659_v30  ;;  %15305 = vmatprep.mubr.bf16.mxu1 %v19704_v13  ;;  %v18018_v7 = vcombine.high %v11956_v17, %v11960_v39  ;;  %v12199_v43 = vld [vmem:[#allocation17 + $0x7a8] sm:$0xff] }
 0x899   :  { %15275 = vmatprep.subr.bf16.mxu1 %v18192_v25  ;;  %15398 = vmatprep.subr.bf16.mxu0 %v18066_v35  ;;  %v18025_v25 = vcombine.low %v11964_v46, %v11968_v22  ;;  %v18144_v35 = vcombine.high %v12083_v23, %v12087_v57  ;;  %v18256_v5 = vcombine.high %v12195_v37, %v12199_v43  ;;  %v12171_v46 = vld [vmem:[#allocation17 + $0x6c8] sm:$0xff] }
 0x89a   :  { %v12175_v22 = vld [vmem:[#allocation17 + $0x6e8] sm:$0xff] }
 0x89b   :  { %15276 = vmatpush1.bf16.msra.mxu1 %v18191_v12  ;;  %15399 = vmatpush1.bf16.msra.mxu0 %v18065_v16  ;;  %v12076_v12 = vld [vmem:[#allocation17 + $0x3d0] sm:$0xff] }
 0x89c   :  { %15277 = vmatprep.subr.bf16.mxu1 %v18184_v40  ;;  %15400 = vmatprep.subr.bf16.mxu0 %v18058_v38  ;;  %v12080_v16 = vld [vmem:[#allocation17 + $0x3f0] sm:$0xff]  ;;  %v18143_v40 = vcombine.low %v12083_v23, %v12087_v57  ;;  %v18017_v38 = vcombine.low %v11956_v17, %v11960_v39  ;;  %v18232_v23 = vcombine.high %v12171_v46, %v12175_v22  ;;  %v12163_v17 = vld [vmem:[#allocation17 + $0x688] sm:$0xff] }
 0x89d   :  { %v18138_v41 = vcombine.high %v12076_v12, %v12080_v16  ;;  %v12167_v39 = vld [vmem:[#allocation17 + $0x6a8] sm:$0xff] }
 0x89f   :  { %15278 = vmatpush1.bf16.msra.mxu1 %v18183_v24  ;;  %15401 = vmatpush1.bf16.msra.mxu0 %v18057_v34  ;;  %v12068_v24 = vld [vmem:[#allocation17 + $0x390] sm:$0xff] }
 0x8a0   :  { %15279 = vmatprep.subr.bf16.mxu1 %v18176_v31  ;;  %15402 = vmatprep.subr.bf16.mxu0 %v18050_v10  ;;  %v12072_v34 = vld [vmem:[#allocation17 + $0x3b0] sm:$0xff]  ;;  %v18263_v31 = vcombine.low %v12203_v0, %v12207_v11  ;;  %v18137_v10 = vcombine.low %v12076_v12, %v12080_v16  ;;  %v18224_v11 = vcombine.high %v12163_v17, %v12167_v39  ;;  %v12155_v16 = vld [vmem:[#allocation17 + $0x648] sm:$0xff] }
 0x8a1   :  { %v18130_v60 = vcombine.high %v12068_v24, %v12072_v34 }
 0x8a3   :  { %15280 = vmatpush1.bf16.msra.mxu1 %v18175_v61  ;;  %15403 = vmatpush1.bf16.msra.mxu0 %v18049_v4  ;;  %v12060_v61 = vld [vmem:[#allocation17 + $0x350] sm:$0xff] }
 0x8a4   :  { %15281 = vmatprep.subr.bf16.mxu1 %v18168_v55  ;;  %15404 = vmatprep.subr.bf16.mxu0 %v18042_v58  ;;  %v12064_v4 = vld [vmem:[#allocation17 + $0x370] sm:$0xff]  ;;  %v18255_v55 = vcombine.low %v12195_v37, %v12199_v43  ;;  %v18129_v58 = vcombine.low %v12068_v24, %v12072_v34  ;;  %v18223_v43 = vcombine.low %v12163_v17, %v12167_v39  ;;  %v12379_v39 = vld [vmem:[#allocation17 + $0xd48] sm:$0xff] }
 0x8a5   :  { %v18122_v19 = vcombine.high %v12060_v61, %v12064_v4 }
 0x8a7   :  { %15282 = vmatpush1.bf16.msra.mxu1 %v18167_v18  ;;  %15405 = vmatpush1.bf16.msra.mxu0 %v18041_v36  ;;  %v12052_v18 = vld [vmem:[#allocation17 + $0x310] sm:$0xff] }
 0x8a8   :  { %15283 = vmatprep.subr.bf16.mxu1 %v18160_v56  ;;  %15406 = vmatprep.subr.bf16.mxu0 %v18034_v3  ;;  %v12056_v36 = vld [vmem:[#allocation17 + $0x330] sm:$0xff]  ;;  %v18247_v56 = vcombine.low %v12187_v8, %v12191_v50  ;;  %v18121_v3 = vcombine.low %v12060_v61, %v12064_v4 }
 0x8a9   :  { %v18114_v32 = vcombine.high %v12052_v18, %v12056_v36  ;;  %v12024_v8 = vld [vmem:[#allocation17 + $0x230] sm:$0xff] }
 0x8ab   :  { %15284 = vmatpush1.bf16.msra.mxu1 %v18159_v42  ;;  %15407 = vmatpush1.bf16.msra.mxu0 %v18033_v20  ;;  %v12044_v42 = vld [vmem:[#allocation17 + $0x2d0] sm:$0xff] }
 0x8ac   :  { %15285 = vmatprep.subr.bf16.mxu1 %v18152_v51  ;;  %15408 = vmatprep.subr.bf16.mxu0 %v18026_v6  ;;  %v12048_v20 = vld [vmem:[#allocation17 + $0x2f0] sm:$0xff]  ;;  %v18239_v51 = vcombine.low %v12179_v21, %v12183_v52  ;;  %v18113_v6 = vcombine.low %v12052_v18, %v12056_v36  ;;  %v12399_v52 = vld [vmem:[#allocation17 + $0xde8] sm:$0xff] }
 0x8ad   :  { %v18106_v57 = vcombine.high %v12044_v42, %v12048_v20  ;;  %v18105_v0 = vcombine.low %v12044_v42, %v12048_v20  ;;  %v12268_v18 = vld [vmem:[#allocation17 + $0x9d0] sm:$0xff]  ;;  %v12391_v42 = vld [vmem:[#allocation17 + $0xda8] sm:$0xff] }
 0x8ae   :  { %v12272_v36 = vld [vmem:[#allocation17 + $0x9f0] sm:$0xff] }
 0x8af   :  { %15286 = vmatpush1.bf16.msra.mxu1 %v18151_v9  ;;  %15409 = vmatpush1.bf16.msra.mxu0 %v18025_v25  ;;  %v12036_v9 = vld [vmem:[#allocation17 + $0x290] sm:$0xff] }
 0x8b0   :  { %15287 = vmatprep.subr.bf16.mxu1 %v18144_v35  ;;  %15410 = vmatprep.subr.bf16.mxu0 %v18018_v7  ;;  %v12040_v25 = vld [vmem:[#allocation17 + $0x2b0] sm:$0xff]  ;;  %v12466_v35 = vld [vmem:[#allocation19] sm:$0xff]  ;;  %v18231_v7 = vcombine.low %v12171_v46, %v12175_v22  ;;  %v12387_v22 = vld [vmem:[#allocation17 + $0xd88] sm:$0xff] }
 0x8b1   :  { %v18098_v12 = vcombine.high %v12036_v9, %v12040_v25  ;;  %v12475_v37 = vrot.slane %v12466_v35, %v19238_v48  ;;  %v18097_v24 = vcombine.low %v12036_v9, %v12040_v25  ;;  %v12260_v20 = vld [vmem:[#allocation17 + $0x990] sm:$0xff]  ;;  %v12383_v9 = vld [vmem:[#allocation17 + $0xd68] sm:$0xff] }
 0x8b3   :  { %15288 = vmatpush1.bf16.msra.mxu1 %v18143_v40  ;;  %15411 = vmatpush1.bf16.msra.mxu0 %v18017_v38  ;;  %v12159_v40 = vld [vmem:[#allocation17 + $0x668] sm:$0xff]  ;;  %v12028_v38 = vld [vmem:[#allocation17 + $0x250] sm:$0xff]  ;;  %v15105_v61 = vadd.f32 %v19755_v44, %v12475_v37 }
 0x8b4   :  { %15289 = vmatprep.subr.bf16.mxu1 %v18264_v59  ;;  %15412 = vmatprep.subr.bf16.mxu0 %v18138_v41  ;;  %v12032_v59 = vld [vmem:[#allocation17 + $0x270] sm:$0xff]  ;;  %v12471_v41 = vrot.slane %v12466_v35, %v19230_v45  ;;  %v18216_v34 = vcombine.high %v12155_v16, %v12159_v40  ;;  %v18215_v48 = vcombine.low %v12155_v16, %v12159_v40  ;;  %v12375_v37 = vld [vmem:[#allocation17 + $0xd28] sm:$0xff] }
 0x8b5   :  { %v18089_v4 = vcombine.low %v12028_v38, %v12032_v59  ;;  %v12252_v35 = vld [vmem:[#allocation17 + $0x950] sm:$0xff]  ;;  %v18440_v40 = vcombine.high %v12379_v39, %v12383_v9 }
 0x8b6   :  { %v15103_v50 = vadd.f32 %v19753_v15, %v12471_v41  ;;  %v12371_v41 = vld [vmem:[#allocation17 + $0xd08] sm:$0xff] }
 0x8b7   :  { %15290 = vmatpush2.bf16.msra.mxu1 %v18263_v31  ;;  %15413 = vmatpush2.bf16.msra.mxu0 %v18137_v10  ;;  %v18090_v31 = vcombine.high %v12028_v38, %v12032_v59  ;;  %v12147_v10 = vld [vmem:[#allocation17 + $0x608] sm:$0xff] }
 0x8b8   :  { %15291 = vmatprep.subr.bf16.mxu1 %v18256_v5  ;;  %15414 = vmatprep.subr.bf16.mxu0 %v18130_v60  ;;  %v12151_v5 = vld [vmem:[#allocation17 + $0x628] sm:$0xff]  ;;  %v12020_v60 = vld [vmem:[#allocation17 + $0x210] sm:$0xff] }
 0x8b9   :  { %v18207_v44 = vcombine.low %v12147_v10, %v12151_v5 }
 0x8bb   :  { %15292 = vmatpush2.bf16.msra.mxu1 %v18255_v55  ;;  %15415 = vmatpush2.bf16.msra.mxu0 %v18129_v58  ;;  %v18208_v58 = vcombine.high %v12147_v10, %v12151_v5 }
 0x8bc   :  { %15293 = vmatprep.subr.bf16.mxu1 %v18248_v26  ;;  %15416 = vmatprep.subr.bf16.mxu0 %v18122_v19  ;;  %v18082_v26 = vcombine.high %v12020_v60, %v12024_v8  ;;  %v12395_v19 = vld [vmem:[#allocation17 + $0xdc8] sm:$0xff] }
 0x8bf   :  { %15294 = vmatpush2.bf16.msra.mxu1 %v18247_v56  ;;  %15417 = vmatpush2.bf16.msra.mxu0 %v18121_v3  ;;  %v18081_v3 = vcombine.low %v12020_v60, %v12024_v8  ;;  %v18432_v60 = vcombine.high %v12371_v41, %v12375_v37 }
 0x8c0   :  { %15295 = vmatprep.subr.bf16.mxu1 %v18240_v27  ;;  %15418 = vmatprep.subr.bf16.mxu0 %v18114_v32  ;;  %v18456_v27 = vcombine.high %v12395_v19, %v12399_v52  ;;  %v18330_v32 = vcombine.high %v12268_v18, %v12272_v36 }
 0x8c3   :  { %15296 = vmatpush2.bf16.msra.mxu1 %v18239_v51  ;;  %15419 = vmatpush2.bf16.msra.mxu0 %v18113_v6  ;;  %v12264_v51 = vld [vmem:[#allocation17 + $0x9b0] sm:$0xff]  ;;  %v18455_v6 = vcombine.low %v12395_v19, %v12399_v52  ;;  %v12355_v19 = vld [vmem:[#allocation17 + $0xc88] sm:$0xff] }
 0x8c4   :  { %15297 = vmatprep.subr.bf16.mxu1 %v18232_v23  ;;  %15420 = vmatprep.subr.bf16.mxu0 %v18106_v57  ;;  %v18329_v23 = vcombine.low %v12268_v18, %v12272_v36  ;;  %v18448_v57 = vcombine.high %v12387_v22, %v12391_v42  ;;  %v18322_v17 = vcombine.high %v12260_v20, %v12264_v51  ;;  %v12228_v52 = vld [vmem:[#allocation17 + $0x890] sm:$0xff] }
 0x8c5   :  { %v18321_v16 = vcombine.low %v12260_v20, %v12264_v51  ;;  %v12232_v18 = vld [vmem:[#allocation17 + $0x8b0] sm:$0xff] }
 0x8c7   :  { %15298 = vmatpush2.bf16.msra.mxu1 %v18231_v7  ;;  %15421 = vmatpush2.bf16.msra.mxu0 %v18105_v0  ;;  %v12256_v7 = vld [vmem:[#allocation17 + $0x970] sm:$0xff] }
 0x8c8   :  { %15299 = vmatprep.subr.bf16.mxu1 %v18224_v11  ;;  %15422 = vmatprep.subr.bf16.mxu0 %v18098_v12  ;;  %v18447_v11 = vcombine.low %v12387_v22, %v12391_v42  ;;  %v18314_v59 = vcombine.high %v12252_v35, %v12256_v7  ;;  %v18313_v5 = vcombine.low %v12252_v35, %v12256_v7  ;;  %v12459_v7 = vld [vmem:[#allocation17 + $0xfc8] sm:$0xff] }
 0x8c9   :  { %v18289_v42 = vcombine.low %v12228_v52, %v12232_v18 }
 0x8cb   :  { %15300 = vmatpush2.bf16.msra.mxu1 %v18223_v43  ;;  %15423 = vmatpush2.bf16.msra.mxu0 %v18097_v24  ;;  %v15143_v45 = vpop.f32.mrf.mxu1  ;;  %v12244_v24 = vld [vmem:[#allocation17 + $0x910] sm:$0xff] }
 0x8cc   :  { %v15144_v55 = vadd.f32 %v15143_v45, %v15103_v50  ;;  %15301 = vmatprep.subr.bf16.mxu1 %v18216_v34  ;;  %15424 = vmatprep.subr.bf16.mxu0 %v18090_v31  ;;  %v12248_v34 = vld [vmem:[#allocation17 + $0x930] sm:$0xff]  ;;  %v18439_v31 = vcombine.low %v12379_v39, %v12383_v9  ;;  %v12363_v50 = vld [vmem:[#allocation17 + $0xcc8] sm:$0xff] }
 0x8cd   :  { %v15145_v21 = vpop.f32.mrf.mxu1  ;;  %v18306_v8 = vcombine.high %v12244_v24, %v12248_v34  ;;  %v12236_v45 = vld [vmem:[#allocation17 + $0x8d0] sm:$0xff] }
 0x8ce   :  { %v15146_v56 = vadd.f32 %v15145_v21, %v15105_v61  ;;  %v12367_v61 = vld [vmem:[#allocation17 + $0xce8] sm:$0xff] }
 0x8cf   :  { %15302 = vmatpush2.bf16.msra.mxu1 %v18215_v48  ;;  %15425 = vmatpush2.bf16.msra.mxu0 %v18089_v4  ;;  %v15147_v15 = vpop.f32.mrf.mxu1  ;;  %v12240_v48 = vld [vmem:[#allocation17 + $0x8f0] sm:$0xff]  ;;  %v18431_v4 = vcombine.low %v12371_v41, %v12375_v37  ;;  %v12359_v21 = vld [vmem:[#allocation17 + $0xca8] sm:$0xff]  ;;  %v18423_v36 = vcombine.low %v12363_v50, %v12367_v61 }
 0x8d0   :  { %15303 = vmatprep.subr.bf16.mxu1 %v18208_v58  ;;  %15426 = vmatprep.subr.bf16.mxu0 %v18082_v26  ;;  %v18424_v58 = vcombine.high %v12363_v50, %v12367_v61  ;;  %v18298_v26 = vcombine.high %v12236_v45, %v12240_v48  ;;  %v18416_v15 = vcombine.high %v12355_v19, %v12359_v21  ;;  %v12443_v50 = vld [vmem:[#allocation17 + $0xf48] sm:$0xff] }
 0x8d1   :  { %v15148_v46 = vpop.f32.mrf.mxu1  ;;  %v18415_v22 = vcombine.low %v12355_v19, %v12359_v21  ;;  %v12447_v61 = vld [vmem:[#allocation17 + $0xf68] sm:$0xff] }
 0x8d2   :  { %v12224_v46 = vld [vmem:[#allocation17 + $0x870] sm:$0xff]  ;;  %v12435_v19 = vld [vmem:[#allocation17 + $0xf08] sm:$0xff] }
 0x8d3   :  { %15304 = vmatpush2.bf16.msra.mxu1 %v18207_v44  ;;  %15427 = vmatpush2.bf16.msra.mxu0 %v18081_v3  ;;  %v18290_v44 = vcombine.high %v12228_v52, %v12232_v18  ;;  %v12347_v3 = vld [vmem:[#allocation17 + $0xc48] sm:$0xff]  ;;  %v12308_v52 = vld [vmem:[#allocation17 + $0xb10] sm:$0xff] }
 0x8d4   :  { %15355 = vmatprep.subr.bf16.mxu1 %v18456_v27  ;;  %15478 = vmatprep.subr.bf16.mxu0 %v18330_v32  ;;  %v12351_v27 = vld [vmem:[#allocation17 + $0xc68] sm:$0xff]  ;;  %v12220_v32 = vld [vmem:[#allocation17 + $0x850] sm:$0xff] }
 0x8d5   :  { %v18408_v20 = vcombine.high %v12347_v3, %v12351_v27  ;;  %v18282_v51 = vcombine.high %v12220_v32, %v12224_v46  ;;  %v18407_v39 = vcombine.low %v12347_v3, %v12351_v27  ;;  %v18281_v9 = vcombine.low %v12220_v32, %v12224_v46  ;;  %v12439_v21 = vld [vmem:[#allocation17 + $0xf28] sm:$0xff]  ;;  %v12312_v18 = vld [vmem:[#allocation17 + $0xb30] sm:$0xff] }
 0x8d6   :  { %15306 = vmatmul.mubr.bf16.vlgmr.msra.gmra.mxu1 %v19722_v54  ;;  %15429 = vmatmul.mubr.bf16.vlgmr.msra.gmra.mxu0 %v19673_v53  ;;  %v15184_v25 = vpop.f32.mrf.mxu0  ;;  %v12427_v3 = vld [vmem:[#allocation17 + $0xec8] sm:$0xff]  ;;  %v12300_v32 = vld [vmem:[#allocation17 + $0xad0] sm:$0xff] }
 0x8d7   :  { %v19785_v0 = vadd.f32 %v15184_v25, %v15144_v55  ;;  %15356 = vmatpush1.bf16.msra.mxu1 %v18455_v6  ;;  %15387 = vmatprep.mubr.bf16.mxu1 %v19767_v1  ;;  %v18305_v55 = vcombine.low %v12244_v24, %v12248_v34  ;;  %v12339_v6 = vld [vmem:[#allocation17 + $0xc08] sm:$0xff]  ;;  %v12324_v34 = vld [vmem:[#allocation17 + $0xb90] sm:$0xff] }
 0x8d8   :  { %15479 = vmatpush1.bf16.msra.mxu0 %v18329_v23  ;;  %15510 = vmatprep.mubr.bf16.mxu0 %v19731_v63  ;;  %v15186_v12 = vpop.f32.mrf.mxu0  ;;  %v12343_v23 = vld [vmem:[#allocation17 + $0xc28] sm:$0xff]  ;;  %v12304_v46 = vld [vmem:[#allocation17 + $0xaf0] sm:$0xff] }
 0x8d9   :  { %v19789_v38 = vadd.f32 %v15186_v12, %v15146_v56  ;;  %15357 = vmatprep.subr.bf16.mxu1 %v18448_v57  ;;  %15480 = vmatprep.subr.bf16.mxu0 %v18322_v17  ;;  %v18297_v56 = vcombine.low %v12236_v45, %v12240_v48  ;;  %v12212_v57 = vld [vmem:[#allocation17 + $0x810] sm:$0xff]  ;;  %v18400_v25 = vcombine.high %v12339_v6, %v12343_v23  ;;  %v12455_v24 = vld [vmem:[#allocation17 + $0xfa8] sm:$0xff] }
 0x8da   :  { %v15188_v43 = vpop.f32.mrf.mxu0  ;;  %v12216_v17 = vld [vmem:[#allocation17 + $0x830] sm:$0xff]  ;;  %v12431_v27 = vld [vmem:[#allocation17 + $0xee8] sm:$0xff] }
 0x8db   :  { %15358 = vmatpush1.bf16.msra.mxu1 %v18447_v11  ;;  %v18274_v35 = vcombine.high %v12212_v57, %v12216_v17  ;;  %v12463_v11 = vld [vmem:[#allocation17 + $0xfe8] sm:$0xff]  ;;  %v12332_v12 = vld [vmem:[#allocation17 + $0xbd0] sm:$0xff] }
 0x8dc   :  { %15481 = vmatpush1.bf16.msra.mxu0 %v18321_v16  ;;  %v15189_v10 = vpop.f32.mrf.mxu0  ;;  %15359 = vmatprep.subr.bf16.mxu1 %v18440_v40  ;;  %v12336_v16 = vld [vmem:[#allocation17 + $0xbf0] sm:$0xff]  ;;  %v18399_v40 = vcombine.low %v12339_v6, %v12343_v23  ;;  %v18520_v41 = vcombine.high %v12459_v7, %v12463_v11  ;;  %v12451_v43 = vld [vmem:[#allocation17 + $0xf88] sm:$0xff] }
 0x8dd   :  { %15482 = vmatprep.subr.bf16.mxu0 %v18314_v59  ;;  %v18273_v59 = vcombine.low %v12212_v57, %v12216_v17  ;;  %v18394_v37 = vcombine.high %v12332_v12, %v12336_v16  ;;  %v18519_v10 = vcombine.low %v12459_v7, %v12463_v11  ;;  %v12316_v45 = vld [vmem:[#allocation17 + $0xb50] sm:$0xff]  ;;  %v12419_v6 = vld [vmem:[#allocation17 + $0xe88] sm:$0xff] }
 0x8de   :  { %v12320_v48 = vld [vmem:[#allocation17 + $0xb70] sm:$0xff]  ;;  %v12423_v23 = vld [vmem:[#allocation17 + $0xea8] sm:$0xff] }
 0x8df   :  { %15360 = vmatpush1.bf16.msra.mxu1 %v18439_v31  ;;  %v12328_v31 = vld [vmem:[#allocation17 + $0xbb0] sm:$0xff]  ;;  %v12411_v7 = vld [vmem:[#allocation17 + $0xe48] sm:$0xff] }
 0x8e0   :  { %15483 = vmatpush1.bf16.msra.mxu0 %v18313_v5  ;;  %15361 = vmatprep.subr.bf16.mxu1 %v18432_v60  ;;  %v18393_v5 = vcombine.low %v12332_v12, %v12336_v16  ;;  %v18512_v60 = vcombine.high %v12451_v43, %v12455_v24  ;;  %v12292_v57 = vld [vmem:[#allocation17 + $0xa90] sm:$0xff]  ;;  %v12415_v11 = vld [vmem:[#allocation17 + $0xe68] sm:$0xff] }
 0x8e1   :  { %15484 = vmatprep.subr.bf16.mxu0 %v18306_v8  ;;  %v18386_v8 = vcombine.high %v12324_v34, %v12328_v31  ;;  %v12296_v17 = vld [vmem:[#allocation17 + $0xab0] sm:$0xff] }
 0x8e2   :  { %v12284_v12 = vld [vmem:[#allocation17 + $0xa50] sm:$0xff] }
 0x8e3   :  { %15362 = vmatpush1.bf16.msra.mxu1 %v18431_v4  ;;  %v18511_v4 = vcombine.low %v12451_v43, %v12455_v24  ;;  %v12288_v16 = vld [vmem:[#allocation17 + $0xa70] sm:$0xff]  ;;  %v12403_v43 = vld [vmem:[#allocation17 + $0xe08] sm:$0xff] }
 0x8e4   :  { %15485 = vmatpush1.bf16.msra.mxu0 %v18305_v55  ;;  %15363 = vmatprep.subr.bf16.mxu1 %v18424_v58  ;;  %v18385_v55 = vcombine.low %v12324_v34, %v12328_v31  ;;  %v18504_v58 = vcombine.high %v12443_v50, %v12447_v61  ;;  %v12407_v24 = vld [vmem:[#allocation17 + $0xe28] sm:$0xff]  ;;  %v12276_v34 = vld [vmem:[#allocation17 + $0xa10] sm:$0xff] }
 0x8e5   :  { %15486 = vmatprep.subr.bf16.mxu0 %v18298_v26  ;;  %v18378_v26 = vcombine.high %v12316_v45, %v12320_v48  ;;  %v12280_v31 = vld [vmem:[#allocation17 + $0xa30] sm:$0xff] }
 0x8e7   :  { %15364 = vmatpush1.bf16.msra.mxu1 %v18423_v36  ;;  %v18503_v36 = vcombine.low %v12443_v50, %v12447_v61  ;;  %v12140_v50 = vld [vmem:[#allocation17 + $0x5d0] sm:$0xff] }
 0x8e8   :  { %15487 = vmatpush1.bf16.msra.mxu0 %v18297_v56  ;;  %15365 = vmatprep.subr.bf16.mxu1 %v18416_v15  ;;  %v18377_v56 = vcombine.low %v12316_v45, %v12320_v48  ;;  %v18496_v15 = vcombine.high %v12435_v19, %v12439_v21  ;;  %v12144_v61 = vld [vmem:[#allocation17 + $0x5f0] sm:$0xff]  ;;  %v12013_v45 = vld [vmem:[#allocation17 + $0x1d8] sm:$0xff] }
 0x8e9   :  { %15488 = vmatprep.subr.bf16.mxu0 %v18290_v44  ;;  %v18370_v44 = vcombine.high %v12308_v52, %v12312_v18  ;;  %v12017_v48 = vld [vmem:[#allocation17 + $0x1f8] sm:$0xff] }
 0x8eb   :  { %15366 = vmatpush1.bf16.msra.mxu1 %v18415_v22  ;;  %v18495_v22 = vcombine.low %v12435_v19, %v12439_v21  ;;  %v12132_v19 = vld [vmem:[#allocation17 + $0x590] sm:$0xff] }
 0x8ec   :  { %15489 = vmatpush1.bf16.msra.mxu0 %v18289_v42  ;;  %15367 = vmatprep.subr.bf16.mxu1 %v18408_v20  ;;  %v18369_v42 = vcombine.low %v12308_v52, %v12312_v18  ;;  %v18488_v20 = vcombine.high %v12427_v3, %v12431_v27  ;;  %v12136_v21 = vld [vmem:[#allocation17 + $0x5b0] sm:$0xff]  ;;  %v18201_v52 = vcombine.low %v12140_v50, %v12144_v61  ;;  %v12005_v18 = vld [vmem:[#allocation17 + $0x198] sm:$0xff] }
 0x8ed   :  { %15490 = vmatprep.subr.bf16.mxu0 %v18282_v51  ;;  %v18362_v51 = vcombine.high %v12300_v32, %v12304_v46 }
 0x8ef   :  { %15368 = vmatpush1.bf16.msra.mxu1 %v18407_v39  ;;  %v18487_v39 = vcombine.low %v12427_v3, %v12431_v27  ;;  %v12128_v3 = vld [vmem:[#allocation17 + $0x570] sm:$0xff] }
 0x8f0   :  { %15491 = vmatpush1.bf16.msra.mxu0 %v18281_v9  ;;  %15369 = vmatprep.subr.bf16.mxu1 %v18400_v25  ;;  %v18361_v9 = vcombine.low %v12300_v32, %v12304_v46  ;;  %v18480_v25 = vcombine.high %v12419_v6, %v12423_v23  ;;  %v11997_v46 = vld [vmem:[#allocation17 + $0x158] sm:$0xff] }
 0x8f1   :  { %15492 = vmatprep.subr.bf16.mxu0 %v18274_v35  ;;  %v18354_v35 = vcombine.high %v12292_v57, %v12296_v17 }
 0x8f3   :  { %15370 = vmatpush1.bf16.msra.mxu1 %v18399_v40  ;;  %v18479_v40 = vcombine.low %v12419_v6, %v12423_v23 }
 0x8f4   :  { %15493 = vmatpush1.bf16.msra.mxu0 %v18273_v59  ;;  %15371 = vmatprep.subr.bf16.mxu1 %v18520_v41  ;;  %v18353_v59 = vcombine.low %v12292_v57, %v12296_v17  ;;  %v18472_v41 = vcombine.high %v12411_v7, %v12415_v11  ;;  %v12116_v57 = vld [vmem:[#allocation17 + $0x510] sm:$0xff] }
 0x8f5   :  { %15494 = vmatprep.subr.bf16.mxu0 %v18394_v37  ;;  %v18346_v37 = vcombine.high %v12284_v12, %v12288_v16  ;;  %v12120_v17 = vld [vmem:[#allocation17 + $0x530] sm:$0xff] }
 0x8f7   :  { %15372 = vmatpush2.bf16.msra.mxu1 %v18519_v10  ;;  %v18471_v10 = vcombine.low %v12411_v7, %v12415_v11 }
 0x8f8   :  { %15495 = vmatpush2.bf16.msra.mxu0 %v18393_v5  ;;  %15373 = vmatprep.subr.bf16.mxu1 %v18512_v60  ;;  %v18345_v5 = vcombine.low %v12284_v12, %v12288_v16  ;;  %v18464_v60 = vcombine.high %v12403_v43, %v12407_v24  ;;  %v18178_v12 = vcombine.high %v12116_v57, %v12120_v17 }
 0x8f9   :  { %15496 = vmatprep.subr.bf16.mxu0 %v18386_v8  ;;  %v18338_v8 = vcombine.high %v12276_v34, %v12280_v31 }
 0x8fb   :  { %15374 = vmatpush2.bf16.msra.mxu1 %v18511_v4  ;;  %v18463_v4 = vcombine.low %v12403_v43, %v12407_v24 }
 0x8fc   :  { %15497 = vmatpush2.bf16.msra.mxu0 %v18385_v55  ;;  %15375 = vmatprep.subr.bf16.mxu1 %v18504_v58  ;;  %v18337_v55 = vcombine.low %v12276_v34, %v12280_v31  ;;  %v18202_v58 = vcombine.high %v12140_v50, %v12144_v61  ;;  %v12100_v31 = vld [vmem:[#allocation17 + $0x490] sm:$0xff] }
 0x8fd   :  { %15498 = vmatprep.subr.bf16.mxu0 %v18378_v26  ;;  %v18076_v26 = vcombine.high %v12013_v45, %v12017_v48 }
 0x8ff   :  { %15376 = vmatpush2.bf16.msra.mxu1 %v18503_v36  ;;  %v12009_v36 = vld [vmem:[#allocation17 + $0x1b8] sm:$0xff] }
 0x900   :  { %15499 = vmatpush2.bf16.msra.mxu0 %v18377_v56  ;;  %15377 = vmatprep.subr.bf16.mxu1 %v18496_v15  ;;  %v18075_v56 = vcombine.low %v12013_v45, %v12017_v48  ;;  %v18194_v15 = vcombine.high %v12132_v19, %v12136_v21  ;;  %v18068_v32 = vcombine.high %v12005_v18, %v12009_v36  ;;  %v12092_v48 = vld [vmem:[#allocation17 + $0x450] sm:$0xff] }
 0x901   :  { %15500 = vmatprep.subr.bf16.mxu0 %v18370_v44  ;;  %v12124_v44 = vld [vmem:[#allocation17 + $0x550] sm:$0xff] }
 0x902   :  { %v18186_v6 = vcombine.high %v12124_v44, %v12128_v3 }
 0x903   :  { %15378 = vmatpush2.bf16.msra.mxu1 %v18495_v22  ;;  %v12001_v22 = vld [vmem:[#allocation17 + $0x178] sm:$0xff] }
 0x904   :  { %15501 = vmatpush2.bf16.msra.mxu0 %v18369_v42  ;;  %15379 = vmatprep.subr.bf16.mxu1 %v18488_v20  ;;  %v18193_v42 = vcombine.low %v12132_v19, %v12136_v21  ;;  %v18060_v23 = vcombine.high %v11997_v46, %v12001_v22  ;;  %v18059_v11 = vcombine.low %v11997_v46, %v12001_v22  ;;  %v12204_v22 = vld [vmem:[#allocation17 + $0x7d0] sm:$0xff] }
 0x905   :  { %15502 = vmatprep.subr.bf16.mxu0 %v18362_v51  ;;  %v18067_v51 = vcombine.low %v12005_v18, %v12009_v36  ;;  %v12084_v18 = vld [vmem:[#allocation17 + $0x410] sm:$0xff] }
 0x906   :  { %v12088_v36 = vld [vmem:[#allocation17 + $0x430] sm:$0xff] }
 0x907   :  { %15380 = vmatpush2.bf16.msra.mxu1 %v18487_v39 }
 0x908   :  { %15503 = vmatpush2.bf16.msra.mxu0 %v18361_v9  ;;  %15381 = vmatprep.subr.bf16.mxu1 %v18480_v25  ;;  %v11989_v9 = vld [vmem:[#allocation17 + $0x118] sm:$0xff] }
 0x909   :  { %15504 = vmatprep.subr.bf16.mxu0 %v18354_v35  ;;  %v11993_v25 = vld [vmem:[#allocation17 + $0x138] sm:$0xff]  ;;  %v18185_v35 = vcombine.low %v12124_v44, %v12128_v3 }
 0x90a   :  { %v18052_v16 = vcombine.high %v11989_v9, %v11993_v25  ;;  %v18051_v43 = vcombine.low %v11989_v9, %v11993_v25  ;;  %v12196_v9 = vld [vmem:[#allocation17 + $0x790] sm:$0xff] }
 0x90b   :  { %15382 = vmatpush2.bf16.msra.mxu1 %v18479_v40  ;;  %v12108_v40 = vld [vmem:[#allocation17 + $0x4d0] sm:$0xff] }
 0x90c   :  { %15505 = vmatpush2.bf16.msra.mxu0 %v18353_v59  ;;  %15383 = vmatprep.subr.bf16.mxu1 %v18472_v41  ;;  %v12112_v59 = vld [vmem:[#allocation17 + $0x4f0] sm:$0xff]  ;;  %v11985_v41 = vld [vmem:[#allocation17 + $0xf8] sm:$0xff] }
 0x90d   :  { %15506 = vmatprep.subr.bf16.mxu0 %v18346_v37  ;;  %v18177_v37 = vcombine.low %v12116_v57, %v12120_v17  ;;  %v18170_v24 = vcombine.high %v12108_v40, %v12112_v59  ;;  %v12200_v25 = vld [vmem:[#allocation17 + $0x7b0] sm:$0xff] }
 0x90f   :  { %15384 = vmatpush2.bf16.msra.mxu1 %v18471_v10  ;;  %v12104_v10 = vld [vmem:[#allocation17 + $0x4b0] sm:$0xff] }
 0x910   :  { %15507 = vmatpush2.bf16.msra.mxu0 %v18345_v5  ;;  %15385 = vmatprep.subr.bf16.mxu1 %v18464_v60  ;;  %v11973_v5 = vld [vmem:[#allocation17 + $0x98] sm:$0xff]  ;;  %v18162_v61 = vcombine.high %v12100_v31, %v12104_v10 }
 0x911   :  { %15508 = vmatprep.subr.bf16.mxu0 %v18338_v8  ;;  %v11977_v60 = vld [vmem:[#allocation17 + $0xb8] sm:$0xff]  ;;  %v18169_v8 = vcombine.low %v12108_v40, %v12112_v59  ;;  %v12188_v59 = vld [vmem:[#allocation17 + $0x750] sm:$0xff] }
 0x912   :  { %v18036_v45 = vcombine.high %v11973_v5, %v11977_v60  ;;  %v18035_v19 = vcombine.low %v11973_v5, %v11977_v60  ;;  %v12184_v5 = vld [vmem:[#allocation17 + $0x730] sm:$0xff]  ;;  %v12053_v60 = vld [vmem:[#allocation17 + $0x318] sm:$0xff] }
 0x913   :  { %15386 = vmatpush2.bf16.msra.mxu1 %v18463_v4  ;;  %v12096_v4 = vld [vmem:[#allocation17 + $0x470] sm:$0xff] }
 0x914   :  { %15509 = vmatpush2.bf16.msra.mxu0 %v18337_v55  ;;  %15437 = vmatprep.subr.bf16.mxu1 %v18202_v58  ;;  %v11965_v55 = vld [vmem:[#allocation17 + $0x58] sm:$0xff]  ;;  %v18154_v21 = vcombine.high %v12092_v48, %v12096_v4  ;;  %v18153_v44 = vcombine.low %v12092_v48, %v12096_v4  ;;  %v12172_v4 = vld [vmem:[#allocation17 + $0x6d0] sm:$0xff] }
 0x915   :  { %15560 = vmatprep.subr.bf16.mxu0 %v18076_v26  ;;  %v11969_v58 = vld [vmem:[#allocation17 + $0x78] sm:$0xff]  ;;  %v18161_v26 = vcombine.low %v12100_v31, %v12104_v10  ;;  %v12180_v10 = vld [vmem:[#allocation17 + $0x710] sm:$0xff] }
 0x916   :  { %v19791_v27 = vpop.f32.mrf.mxu0  ;;  %15388 = vmatmul.mubr.bf16.vlgmr.msra.gmra.mxu1 %v19769_v14  ;;  %v18027_v3 = vcombine.low %v11965_v55, %v11969_v58 }
 0x917   :  { %15511 = vmatmul.mubr.bf16.vlgmr.msra.gmra.mxu0 %v19733_v28  ;;  %15438 = vmatpush1.bf16.msra.mxu1 %v18201_v52  ;;  %v18028_v52 = vcombine.high %v11965_v55, %v11969_v58  ;;  %v12176_v55 = vld [vmem:[#allocation17 + $0x6f0] sm:$0xff]  ;;  %v12045_v58 = vld [vmem:[#allocation17 + $0x2d8] sm:$0xff] }
 0x918   :  { %15469 = vmatprep.mubr.bf16.mxu1 %v19704_v13  ;;  %15561 = vmatpush1.bf16.msra.mxu0 %v18075_v56  ;;  %v19796_v20 = vpop.f32.mrf.mxu0  ;;  %v11957_v56 = vld [vmem:[#allocation17 + $0x18] sm:$0xff] }
 0x919   :  { %15592 = vmatprep.mubr.bf16.mxu0 %v19659_v30  ;;  %15439 = vmatprep.subr.bf16.mxu1 %v18194_v15  ;;  %v11981_v30 = vld [vmem:[#allocation17 + $0xd8] sm:$0xff] }
 0x91a   :  { %v15270_v39 = vpop.f32.mrf.mxu0  ;;  %15562 = vmatprep.subr.bf16.mxu0 %v18068_v32  ;;  %v18044_v34 = vcombine.high %v11981_v30, %v11985_v41  ;;  %v18043_v50 = vcombine.low %v11981_v30, %v11985_v41  ;;  %v11961_v15 = vld [vmem:[#allocation17 + $0x38] sm:$0xff]  ;;  %v18146_v32 = vcombine.high %v12084_v18, %v12088_v36  ;;  %v12192_v30 = vld [vmem:[#allocation17 + $0x770] sm:$0xff] }
 0x91b   :  { %15440 = vmatpush1.bf16.msra.mxu1 %v18193_v42  ;;  %v18020_v46 = vcombine.high %v11957_v56, %v11961_v15  ;;  %v12208_v42 = vld [vmem:[#allocation17 + $0x7f0] sm:$0xff]  ;;  %v18019_v57 = vcombine.low %v11957_v56, %v11961_v15  ;;  %v12061_v41 = vld [vmem:[#allocation17 + $0x358] sm:$0xff] }
 0x91c   :  { %15563 = vmatpush1.bf16.msra.mxu0 %v18067_v51  ;;  %v15271_v7 = vpop.f32.mrf.mxu0  ;;  %15441 = vmatprep.subr.bf16.mxu1 %v18186_v6  ;;  %v12077_v51 = vld [vmem:[#allocation17 + $0x3d8] sm:$0xff]  ;;  %v18266_v17 = vcombine.high %v12204_v22, %v12208_v42  ;;  %v12168_v56 = vld [vmem:[#allocation17 + $0x6b0] sm:$0xff] }
 0x91d   :  { %15564 = vmatprep.subr.bf16.mxu0 %v18060_v23  ;;  %v12081_v6 = vld [vmem:[#allocation17 + $0x3f8] sm:$0xff]  ;;  %v18145_v23 = vcombine.low %v12084_v18, %v12088_v36  ;;  %v12164_v36 = vld [vmem:[#allocation17 + $0x690] sm:$0xff] }
 0x91e   :  { %v18140_v39 = vcombine.high %v12077_v51, %v12081_v6  ;;  %v12073_v7 = vld [vmem:[#allocation17 + $0x3b8] sm:$0xff] }
 0x91f   :  { %15442 = vmatpush1.bf16.msra.mxu1 %v18185_v35  ;;  %v12069_v35 = vld [vmem:[#allocation17 + $0x398] sm:$0xff] }
 0x920   :  { %15565 = vmatpush1.bf16.msra.mxu0 %v18059_v11  ;;  %15443 = vmatprep.subr.bf16.mxu1 %v18178_v12  ;;  %v18265_v11 = vcombine.low %v12204_v22, %v12208_v42  ;;  %v18139_v12 = vcombine.low %v12077_v51, %v12081_v6  ;;  %v18132_v40 = vcombine.high %v12069_v35, %v12073_v7  ;;  %v12037_v15 = vld [vmem:[#allocation17 + $0x298] sm:$0xff]  ;;  %v12156_v42 = vld [vmem:[#allocation17 + $0x650] sm:$0xff] }
 0x921   :  { %15566 = vmatprep.subr.bf16.mxu0 %v18052_v16  ;;  %v18258_v16 = vcombine.high %v12196_v9, %v12200_v25  ;;  %v12160_v51 = vld [vmem:[#allocation17 + $0x670] sm:$0xff]  ;;  %v12029_v6 = vld [vmem:[#allocation17 + $0x258] sm:$0xff] }
 0x923   :  { %15444 = vmatpush1.bf16.msra.mxu1 %v18177_v37  ;;  %v12065_v37 = vld [vmem:[#allocation17 + $0x378] sm:$0xff] }
 0x924   :  { %15567 = vmatpush1.bf16.msra.mxu0 %v18051_v43  ;;  %15445 = vmatprep.subr.bf16.mxu1 %v18170_v24  ;;  %v18257_v43 = vcombine.low %v12196_v9, %v12200_v25  ;;  %v18131_v24 = vcombine.low %v12069_v35, %v12073_v7  ;;  %v18124_v31 = vcombine.high %v12061_v41, %v12065_v37  ;;  %v12148_v25 = vld [vmem:[#allocation17 + $0x610] sm:$0xff]  ;;  %v12021_v7 = vld [vmem:[#allocation17 + $0x218] sm:$0xff] }
 0x925   :  { %15568 = vmatprep.subr.bf16.mxu0 %v18044_v34  ;;  %v18250_v34 = vcombine.high %v12188_v59, %v12192_v30  ;;  %v12152_v35 = vld [vmem:[#allocation17 + $0x630] sm:$0xff] }
 0x927   :  { %15446 = vmatpush1.bf16.msra.mxu1 %v18169_v8  ;;  %v12057_v8 = vld [vmem:[#allocation17 + $0x338] sm:$0xff] }
 0x928   :  { %15569 = vmatpush1.bf16.msra.mxu0 %v18043_v50  ;;  %15447 = vmatprep.subr.bf16.mxu1 %v18162_v61  ;;  %v18249_v50 = vcombine.low %v12188_v59, %v12192_v30  ;;  %v18123_v61 = vcombine.low %v12061_v41, %v12065_v37  ;;  %v18116_v48 = vcombine.high %v12053_v60, %v12057_v8  ;;  %v12396_v30 = vld [vmem:[#allocation17 + $0xdd0] sm:$0xff]  ;;  %v12269_v37 = vld [vmem:[#allocation17 + $0x9d8] sm:$0xff] }
 0x929   :  { %15570 = vmatprep.subr.bf16.mxu0 %v18036_v45  ;;  %v18242_v45 = vcombine.high %v12180_v10, %v12184_v5  ;;  %v12400_v41 = vld [vmem:[#allocation17 + $0xdf0] sm:$0xff] }
 0x92b   :  { %15448 = vmatpush1.bf16.msra.mxu1 %v18161_v26  ;;  %v12049_v26 = vld [vmem:[#allocation17 + $0x2f8] sm:$0xff] }
 0x92c   :  { %15571 = vmatpush1.bf16.msra.mxu0 %v18035_v19  ;;  %15449 = vmatprep.subr.bf16.mxu1 %v18154_v21  ;;  %v18241_v19 = vcombine.low %v12180_v10, %v12184_v5  ;;  %v18115_v21 = vcombine.low %v12053_v60, %v12057_v8  ;;  %v18108_v18 = vcombine.high %v12045_v58, %v12049_v26  ;;  %v12388_v5 = vld [vmem:[#allocation17 + $0xd90] sm:$0xff] }
 0x92d   :  { %15572 = vmatprep.subr.bf16.mxu0 %v18028_v52  ;;  %v18234_v52 = vcombine.high %v12172_v4, %v12176_v55  ;;  %v12392_v60 = vld [vmem:[#allocation17 + $0xdb0] sm:$0xff]  ;;  %v18457_v8 = vcombine.low %v12396_v30, %v12400_v41 }
 0x92f   :  { %15450 = vmatpush1.bf16.msra.mxu1 %v18153_v44  ;;  %v12041_v44 = vld [vmem:[#allocation17 + $0x2b8] sm:$0xff] }
 0x930   :  { %15573 = vmatpush1.bf16.msra.mxu0 %v18027_v3  ;;  %15451 = vmatprep.subr.bf16.mxu1 %v18146_v32  ;;  %v18233_v3 = vcombine.low %v12172_v4, %v12176_v55  ;;  %v18107_v32 = vcombine.low %v12045_v58, %v12049_v26  ;;  %v18100_v22 = vcombine.high %v12037_v15, %v12041_v44  ;;  %v12380_v4 = vld [vmem:[#allocation17 + $0xd50] sm:$0xff] }
 0x931   :  { %15574 = vmatprep.subr.bf16.mxu0 %v18020_v46  ;;  %v18226_v46 = vcombine.high %v12164_v36, %v12168_v56  ;;  %v12384_v55 = vld [vmem:[#allocation17 + $0xd70] sm:$0xff] }
 0x933   :  { %15452 = vmatpush1.bf16.msra.mxu1 %v18145_v23  ;;  %v12033_v23 = vld [vmem:[#allocation17 + $0x278] sm:$0xff] }
 0x934   :  { %15575 = vmatpush1.bf16.msra.mxu0 %v18019_v57  ;;  %15453 = vmatprep.subr.bf16.mxu1 %v18266_v17  ;;  %v18225_v57 = vcombine.low %v12164_v36, %v12168_v56  ;;  %v18099_v17 = vcombine.low %v12037_v15, %v12041_v44  ;;  %v18092_v9 = vcombine.high %v12029_v6, %v12033_v23 }
 0x935   :  { %15576 = vmatprep.subr.bf16.mxu0 %v18140_v39  ;;  %v18218_v39 = vcombine.high %v12156_v42, %v12160_v51  ;;  %v18449_v36 = vcombine.low %v12388_v5, %v12392_v60 }
 0x937   :  { %15454 = vmatpush2.bf16.msra.mxu1 %v18265_v11  ;;  %v12025_v11 = vld [vmem:[#allocation17 + $0x238] sm:$0xff] }
 0x938   :  { %15577 = vmatpush2.bf16.msra.mxu0 %v18139_v12  ;;  %15455 = vmatprep.subr.bf16.mxu1 %v18258_v16  ;;  %v18217_v12 = vcombine.low %v12156_v42, %v12160_v51  ;;  %v18091_v16 = vcombine.low %v12029_v6, %v12033_v23  ;;  %v18084_v59 = vcombine.high %v12021_v7, %v12025_v11  ;;  %v12245_v42 = vld [vmem:[#allocation17 + $0x918] sm:$0xff] }
 0x939   :  { %15578 = vmatprep.subr.bf16.mxu0 %v18132_v40  ;;  %v18210_v40 = vcombine.high %v12148_v25, %v12152_v35  ;;  %v12249_v51 = vld [vmem:[#allocation17 + $0x938] sm:$0xff]  ;;  %v18441_v6 = vcombine.low %v12380_v4, %v12384_v55 }
 0x93b   :  { %15456 = vmatpush2.bf16.msra.mxu1 %v18257_v43  ;;  %v12273_v43 = vld [vmem:[#allocation17 + $0x9f8] sm:$0xff] }
 0x93c   :  { %15579 = vmatpush2.bf16.msra.mxu0 %v18131_v24  ;;  %15457 = vmatprep.subr.bf16.mxu1 %v18250_v34  ;;  %v18209_v24 = vcombine.low %v12148_v25, %v12152_v35  ;;  %v18083_v34 = vcombine.low %v12021_v7, %v12025_v11  ;;  %v18332_v10 = vcombine.high %v12269_v37, %v12273_v43  ;;  %v12368_v25 = vld [vmem:[#allocation17 + $0xcf0] sm:$0xff]  ;;  %v12237_v35 = vld [vmem:[#allocation17 + $0x8d8] sm:$0xff] }
 0x93d   :  { %15580 = vmatprep.subr.bf16.mxu0 %v18124_v31  ;;  %v18458_v31 = vcombine.high %v12396_v30, %v12400_v41  ;;  %v12241_v7 = vld [vmem:[#allocation17 + $0x8f8] sm:$0xff]  ;;  %v12360_v30 = vld [vmem:[#allocation17 + $0xcb0] sm:$0xff] }
 0x93e   :  { %v12229_v41 = vld [vmem:[#allocation17 + $0x898] sm:$0xff] }
 0x93f   :  { %15458 = vmatpush2.bf16.msra.mxu1 %v18249_v50  ;;  %v12261_v50 = vld [vmem:[#allocation17 + $0x998] sm:$0xff] }
 0x940   :  { %15581 = vmatpush2.bf16.msra.mxu0 %v18123_v61  ;;  %15459 = vmatprep.subr.bf16.mxu1 %v18242_v45  ;;  %v12265_v61 = vld [vmem:[#allocation17 + $0x9b8] sm:$0xff]  ;;  %v18331_v45 = vcombine.low %v12269_v37, %v12273_v43 }
 0x941   :  { %15582 = vmatprep.subr.bf16.mxu0 %v18116_v48  ;;  %v18450_v48 = vcombine.high %v12388_v5, %v12392_v60  ;;  %v18323_v44 = vcombine.low %v12261_v50, %v12265_v61  ;;  %v12233_v37 = vld [vmem:[#allocation17 + $0x8b8] sm:$0xff]  ;;  %v12352_v5 = vld [vmem:[#allocation17 + $0xc70] sm:$0xff] }
 0x942   :  { %v12221_v60 = vld [vmem:[#allocation17 + $0x858] sm:$0xff] }
 0x943   :  { %15460 = vmatpush2.bf16.msra.mxu1 %v18241_v19  ;;  %v18324_v19 = vcombine.high %v12261_v50, %v12265_v61  ;;  %v18291_v61 = vcombine.low %v12229_v41, %v12233_v37 }
 0x944   :  { %15583 = vmatpush2.bf16.msra.mxu0 %v18115_v21  ;;  %15461 = vmatprep.subr.bf16.mxu1 %v18234_v52  ;;  %v12253_v21 = vld [vmem:[#allocation17 + $0x958] sm:$0xff] }
 0x945   :  { %15584 = vmatprep.subr.bf16.mxu0 %v18108_v18  ;;  %v12257_v52 = vld [vmem:[#allocation17 + $0x978] sm:$0xff] }
 0x947   :  { %15462 = vmatpush2.bf16.msra.mxu1 %v18233_v3  ;;  %v18442_v3 = vcombine.high %v12380_v4, %v12384_v55  ;;  %v12340_v4 = vld [vmem:[#allocation17 + $0xc10] sm:$0xff] }
 0x948   :  { %15585 = vmatpush2.bf16.msra.mxu0 %v18107_v32  ;;  %15463 = vmatprep.subr.bf16.mxu1 %v18226_v46  ;;  %v18316_v32 = vcombine.high %v12253_v21, %v12257_v52  ;;  %v12372_v46 = vld [vmem:[#allocation17 + $0xd10] sm:$0xff] }
 0x949   :  { %15586 = vmatprep.subr.bf16.mxu0 %v18100_v22  ;;  %v12344_v55 = vld [vmem:[#allocation17 + $0xc30] sm:$0xff] }
 0x94b   :  { %15464 = vmatpush2.bf16.msra.mxu1 %v18225_v57 }
 0x94c   :  { %15587 = vmatpush2.bf16.msra.mxu0 %v18099_v17  ;;  %15465 = vmatprep.subr.bf16.mxu1 %v18218_v39  ;;  %v18315_v17 = vcombine.low %v12253_v21, %v12257_v52 }
 0x94d   :  { %15588 = vmatprep.subr.bf16.mxu0 %v18092_v9  ;;  %v18308_v9 = vcombine.high %v12245_v42, %v12249_v51 }
 0x94f   :  { %15466 = vmatpush2.bf16.msra.mxu1 %v18217_v12  ;;  %v18307_v12 = vcombine.low %v12245_v42, %v12249_v51 }
 0x950   :  { %15589 = vmatpush2.bf16.msra.mxu0 %v18091_v16  ;;  %15467 = vmatprep.subr.bf16.mxu1 %v18210_v40  ;;  %v18300_v40 = vcombine.high %v12237_v35, %v12241_v7 }
 0x951   :  { %15590 = vmatprep.subr.bf16.mxu0 %v18084_v59  ;;  %v12356_v59 = vld [vmem:[#allocation17 + $0xc90] sm:$0xff] }
 0x952   :  { %v18417_v50 = vcombine.low %v12356_v59, %v12360_v30 }
 0x953   :  { %15468 = vmatpush2.bf16.msra.mxu1 %v18209_v24  ;;  %v18299_v24 = vcombine.low %v12237_v35, %v12241_v7  ;;  %v12444_v35 = vld [vmem:[#allocation17 + $0xf50] sm:$0xff] }
 0x954   :  { %15591 = vmatpush2.bf16.msra.mxu0 %v18083_v34  ;;  %15519 = vmatprep.subr.bf16.mxu1 %v18458_v31  ;;  %v18418_v34 = vcombine.high %v12356_v59, %v12360_v30  ;;  %v18292_v31 = vcombine.high %v12229_v41, %v12233_v37  ;;  %v12448_v7 = vld [vmem:[#allocation17 + $0xf70] sm:$0xff] }
 0x955   :  { %15642 = vmatprep.subr.bf16.mxu0 %v18332_v10  ;;  %v12348_v10 = vld [vmem:[#allocation17 + $0xc50] sm:$0xff]  ;;  %v18506_v59 = vcombine.high %v12444_v35, %v12448_v7 }
 0x956   :  { %v19799_v58 = vpop.f32.mrf.mxu0  ;;  %15470 = vmatmul.mubr.bf16.vlgmr.msra.gmra.mxu1 %v19722_v54  ;;  %v15225_v26 = vpop.f32.mrf.mxu1  ;;  %v18409_v21 = vcombine.low %v12348_v10, %v12352_v5  ;;  %v12436_v41 = vld [vmem:[#allocation17 + $0xf10] sm:$0xff] }
 0x957   :  { %15593 = vmatmul.mubr.bf16.vlgmr.msra.gmra.mxu0 %v19673_v53  ;;  %v19804_v18 = vadd.f32 %v15225_v26, %v19785_v0  ;;  %15520 = vmatpush1.bf16.msra.mxu1 %v18457_v8  ;;  %v12376_v53 = vld [vmem:[#allocation17 + $0xd30] sm:$0xff]  ;;  %v12225_v8 = vld [vmem:[#allocation17 + $0x878] sm:$0xff] }
 0x958   :  { %15551 = vmatprep.mubr.bf16.mxu1 %v19767_v1  ;;  %15643 = vmatpush1.bf16.msra.mxu0 %v18331_v45  ;;  %v19807_v56 = vpop.f32.mrf.mxu0  ;;  %v19809_v15 = vpop.f32.mrf.mxu1  ;;  %v18434_v39 = vcombine.high %v12372_v46, %v12376_v53  ;;  %v18433_v11 = vcombine.low %v12372_v46, %v12376_v53  ;;  %v18410_v45 = vcombine.high %v12348_v10, %v12352_v5  ;;  %v12213_v26 = vld [vmem:[#allocation17 + $0x818] sm:$0xff]  ;;  %v12440_v37 = vld [vmem:[#allocation17 + $0xf30] sm:$0xff] }
 0x959   :  { %15674 = vmatprep.mubr.bf16.mxu0 %v19731_v63  ;;  %15521 = vmatprep.subr.bf16.mxu1 %v18450_v48  ;;  %v12364_v63 = vld [vmem:[#allocation17 + $0xcd0] sm:$0xff]  ;;  %v18284_v48 = vcombine.high %v12221_v60, %v12225_v8  ;;  %v18283_v52 = vcombine.low %v12221_v60, %v12225_v8  ;;  %v12333_v46 = vld [vmem:[#allocation17 + $0xbd8] sm:$0xff]  ;;  %v18498_v10 = vcombine.high %v12436_v41, %v12440_v37  ;;  %vm15724_vm2 = vcmp.gt.f32.partialorder %v19804_v18, 0.0 }
 0x95a   :  { %v15352_v22 = vpop.f32.mrf.mxu0  ;;  %15644 = vmatprep.subr.bf16.mxu0 %v18324_v19  ;;  %v15229_v0 = vpop.f32.mrf.mxu1  ;;  %v18426_v16 = vcombine.high %v12364_v63, %v12368_v25  ;;  %v18425_v43 = vcombine.low %v12364_v63, %v12368_v25  ;;  %v12217_v19 = vld [vmem:[#allocation17 + $0x838] sm:$0xff]  ;;  %v12428_v60 = vld [vmem:[#allocation17 + $0xed0] sm:$0xff] }
 0x95b   :  { %15522 = vmatpush1.bf16.msra.mxu1 %v18449_v36  ;;  %v18402_v36 = vcombine.high %v12340_v4, %v12344_v55  ;;  %v12337_v53 = vld [vmem:[#allocation17 + $0xbf8] sm:$0xff]  ;;  %v18401_v22 = vcombine.low %v12340_v4, %v12344_v55  ;;  %v18275_v0 = vcombine.low %v12213_v26, %v12217_v19  ;;  %v12432_v8 = vld [vmem:[#allocation17 + $0xef0] sm:$0xff] }
 0x95c   :  { %15645 = vmatpush1.bf16.msra.mxu0 %v18323_v44  ;;  %v15353_v23 = vpop.f32.mrf.mxu0  ;;  %v15230_v57 = vpop.f32.mrf.mxu1  ;;  %15523 = vmatprep.subr.bf16.mxu1 %v18442_v3  ;;  %v18276_v44 = vcombine.high %v12213_v26, %v12217_v19  ;;  %v12460_v3 = vld [vmem:[#allocation17 + $0xfd0] sm:$0xff]  ;;  %v18396_v51 = vcombine.high %v12333_v46, %v12337_v53  ;;  %v18490_v4 = vcombine.high %v12428_v60, %v12432_v8 }
 0x95d   :  { %15646 = vmatprep.subr.bf16.mxu0 %v18316_v32  ;;  %v12464_v32 = vld [vmem:[#allocation17 + $0xff0] sm:$0xff]  ;;  %v12325_v57 = vld [vmem:[#allocation17 + $0xb98] sm:$0xff] }
 0x95e   :  { %v18522_v42 = vcombine.high %v12460_v3, %v12464_v32  ;;  %v12456_v23 = vld [vmem:[#allocation17 + $0xfb0] sm:$0xff] }
 0x95f   :  { %15524 = vmatpush1.bf16.msra.mxu1 %v18441_v6  ;;  %v12452_v6 = vld [vmem:[#allocation17 + $0xf90] sm:$0xff] }
 0x960   :  { %15647 = vmatpush1.bf16.msra.mxu0 %v18315_v17  ;;  %15525 = vmatprep.subr.bf16.mxu1 %v18434_v39  ;;  %v12329_v17 = vld [vmem:[#allocation17 + $0xbb8] sm:$0xff]  ;;  %v18521_v39 = vcombine.low %v12460_v3, %v12464_v32  ;;  %v18514_v63 = vcombine.high %v12452_v6, %v12456_v23  ;;  %v12420_v26 = vld [vmem:[#allocation17 + $0xe90] sm:$0xff] }
 0x961   :  { %15648 = vmatprep.subr.bf16.mxu0 %v18308_v9  ;;  %v18395_v9 = vcombine.low %v12333_v46, %v12337_v53  ;;  %v18388_v25 = vcombine.high %v12325_v57, %v12329_v17  ;;  %v12424_v19 = vld [vmem:[#allocation17 + $0xeb0] sm:$0xff] }
 0x962   :  { %v18482_v3 = vcombine.high %v12420_v26, %v12424_v19  ;;  %v12412_v46 = vld [vmem:[#allocation17 + $0xe50] sm:$0xff] }
 0x963   :  { %15526 = vmatpush1.bf16.msra.mxu1 %v18433_v11  ;;  %v12317_v11 = vld [vmem:[#allocation17 + $0xb58] sm:$0xff]  ;;  %v12416_v53 = vld [vmem:[#allocation17 + $0xe70] sm:$0xff] }
 0x964   :  { %15649 = vmatpush1.bf16.msra.mxu0 %v18307_v12  ;;  %15527 = vmatprep.subr.bf16.mxu1 %v18426_v16  ;;  %v12321_v12 = vld [vmem:[#allocation17 + $0xb78] sm:$0xff]  ;;  %v18513_v16 = vcombine.low %v12452_v6, %v12456_v23  ;;  %v18474_v6 = vcombine.high %v12412_v46, %v12416_v53 }
 0x965   :  { %15650 = vmatprep.subr.bf16.mxu0 %v18300_v40  ;;  %v18387_v40 = vcombine.low %v12325_v57, %v12329_v17  ;;  %v18380_v30 = vcombine.high %v12317_v11, %v12321_v12  ;;  %v12404_v57 = vld [vmem:[#allocation17 + $0xe10] sm:$0xff] }
 0x966   :  { %v12408_v17 = vld [vmem:[#allocation17 + $0xe30] sm:$0xff] }
 0x967   :  { %15528 = vmatpush1.bf16.msra.mxu1 %v18425_v43  ;;  %v12309_v43 = vld [vmem:[#allocation17 + $0xb18] sm:$0xff] }
 0x968   :  { %15651 = vmatpush1.bf16.msra.mxu0 %v18299_v24  ;;  %15529 = vmatprep.subr.bf16.mxu1 %v18418_v34  ;;  %v12313_v24 = vld [vmem:[#allocation17 + $0xb38] sm:$0xff]  ;;  %v18505_v34 = vcombine.low %v12444_v35, %v12448_v7  ;;  %v18466_v7 = vcombine.high %v12404_v57, %v12408_v17 }
 0x969   :  { %15652 = vmatprep.subr.bf16.mxu0 %v18292_v31  ;;  %v18379_v31 = vcombine.low %v12317_v11, %v12321_v12  ;;  %v18372_v5 = vcombine.high %v12309_v43, %v12313_v24  ;;  %v12141_v12 = vld [vmem:[#allocation17 + $0x5d8] sm:$0xff] }
 0x96b   :  { %15530 = vmatpush1.bf16.msra.mxu1 %v18417_v50  ;;  %v12301_v50 = vld [vmem:[#allocation17 + $0xad8] sm:$0xff] }
 0x96c   :  { %15653 = vmatpush1.bf16.msra.mxu0 %v18291_v61  ;;  %15531 = vmatprep.subr.bf16.mxu1 %v18410_v45  ;;  %v12305_v61 = vld [vmem:[#allocation17 + $0xaf8] sm:$0xff]  ;;  %v18497_v45 = vcombine.low %v12436_v41, %v12440_v37  ;;  %v19814_v37 = vld [vmem:[#allocation19] sm:$0xff] }
 0x96d   :  { %15654 = vmatprep.subr.bf16.mxu0 %v18284_v48  ;;  %v18371_v48 = vcombine.low %v12309_v43, %v12313_v24  ;;  %v18364_v55 = vcombine.high %v12301_v50, %v12305_v61  ;;  %v12483_v43 = vrot.slane %v19814_v37, %v19241_v49  ;;  %v12133_v24 = vld [vmem:[#allocation17 + $0x598] sm:$0xff] }
 0x96e   :  { %v18699_v49 = vld [vmem:[#allocation20 + $0x70] sm:$0xff]  }
 0x96f   :  { %15532 = vmatpush1.bf16.msra.mxu1 %v18409_v21  ;;  %v12293_v21 = vld [vmem:[#allocation17 + $0xa98] sm:$0xff] }
 0x970   :  { %15655 = vmatpush1.bf16.msra.mxu0 %v18283_v52  ;;  %15533 = vmatprep.subr.bf16.mxu1 %v18402_v36  ;;  %v12297_v52 = vld [vmem:[#allocation17 + $0xab8] sm:$0xff]  ;;  %v18489_v36 = vcombine.low %v12428_v60, %v12432_v8 }
 0x971   :  { %15656 = vmatprep.subr.bf16.mxu0 %v18276_v44  ;;  %v18363_v44 = vcombine.low %v12301_v50, %v12305_v61  ;;  %v18356_v32 = vcombine.high %v12293_v21, %v12297_v52  ;;  %v12125_v50 = vld [vmem:[#allocation17 + $0x558] sm:$0xff]  ;;  %v15269_v61 = vadd.f32 %v19796_v20, %v12483_v43 }
 0x972   :  { %v18700_v20 = vld [vmem:[#allocation20 + $0x30] sm:$0xff]  }
 0x973   :  { %15534 = vmatpush1.bf16.msra.mxu1 %v18401_v22  ;;  %v12285_v22 = vld [vmem:[#allocation17 + $0xa58] sm:$0xff] }
 0x974   :  { %15657 = vmatpush1.bf16.msra.mxu0 %v18275_v0  ;;  %15535 = vmatprep.subr.bf16.mxu1 %v18522_v42  ;;  %v12289_v0 = vld [vmem:[#allocation17 + $0xa78] sm:$0xff]  ;;  %v18481_v42 = vcombine.low %v12420_v26, %v12424_v19 }
 0x975   :  { %15658 = vmatprep.subr.bf16.mxu0 %v18396_v51  ;;  %v18355_v51 = vcombine.low %v12293_v21, %v12297_v52  ;;  %v18348_v23 = vcombine.high %v12285_v22, %v12289_v0  ;;  %v18347_v35 = vcombine.low %v12285_v22, %v12289_v0  ;;  %v18702_v22 = vld [vmem:[#allocation20 + $0x28] sm:$0xff]  }
 0x977   :  { %15536 = vmatpush2.bf16.msra.mxu1 %v18521_v39  ;;  %v12277_v39 = vld [vmem:[#allocation17 + $0xa18] sm:$0xff] }
 0x978   :  { %15659 = vmatpush2.bf16.msra.mxu0 %v18395_v9  ;;  %15537 = vmatprep.subr.bf16.mxu1 %v18514_v63  ;;  %v12281_v9 = vld [vmem:[#allocation17 + $0xa38] sm:$0xff]  ;;  %v18473_v63 = vcombine.low %v12412_v46, %v12416_v53 }
 0x979   :  { %15660 = vmatprep.subr.bf16.mxu0 %v18388_v25  ;;  %v15228_v25 = vadd.f32 %v19809_v15, %v19789_v38  ;;  %v18340_v11 = vcombine.high %v12277_v39, %v12281_v9  ;;  %v12479_v38 = vrot.slane %v19814_v37, %v19235_v47  ;;  %v18697_v15 = vld [vmem:[#allocation20 + $0x78] sm:$0xff]   ;;  %v12129_v47 = vld [vmem:[#allocation17 + $0x578] sm:$0xff] }
 0x97a   :  { %v18188_v21 = vcombine.high %v12125_v50, %v12129_v47  ;;  %v18187_v46 = vcombine.low %v12125_v50, %v12129_v47  ;;  %v18712_v50 = vld [vmem:[#allocation20] sm:$0xff]  }
 0x97b   :  { %15538 = vmatpush2.bf16.msra.mxu1 %v18513_v16  ;;  %v12145_v16 = vld [vmem:[#allocation17 + $0x5f8] sm:$0xff]  ;;  %vm15725_vm1 = vcmp.gt.f32.partialorder %v15228_v25, 0.0  ;;  %v15267_v60 = vadd.f32 %v19791_v27, %v12479_v38 }
 0x97c   :  { %15661 = vmatpush2.bf16.msra.mxu0 %v18387_v40  ;;  %15539 = vmatprep.subr.bf16.mxu1 %v18506_v59  ;;  %v18465_v40 = vcombine.low %v12404_v57, %v12408_v17  ;;  %v15733_v59 = vmul.f32 0.2, %v15228_v25  ;;  %v18204_v41 = vcombine.high %v12141_v12, %v12145_v16  ;;  %v18704_v57 = vld [vmem:[#allocation20 + $0x20] sm:$0xff]   ;;  %v12085_v38 = vld [vmem:[#allocation17 + $0x418] sm:$0xff] }
 0x97d   :  { %15662 = vmatprep.subr.bf16.mxu0 %v18380_v30  ;;  %v18339_v30 = vcombine.low %v12277_v39, %v12281_v9  ;;  %v18705_v39 = vld [vmem:[#allocation20 + $0x58] sm:$0xff]   ;;  %v12101_v9 = vld [vmem:[#allocation17 + $0x498] sm:$0xff] }
 0x97f   :  { %15540 = vmatpush2.bf16.msra.mxu1 %v18505_v34  ;;  %v12137_v34 = vld [vmem:[#allocation17 + $0x5b8] sm:$0xff] }
 0x980   :  { %15663 = vmatpush2.bf16.msra.mxu0 %v18379_v31  ;;  %15541 = vmatprep.subr.bf16.mxu1 %v18498_v10  ;;  %v18203_v31 = vcombine.low %v12141_v12, %v12145_v16  ;;  %v18698_v10 = vld [vmem:[#allocation20 + $0x38] sm:$0xff]   ;;  %v18196_v8 = vcombine.high %v12133_v24, %v12137_v34  ;;  %v18195_v26 = vcombine.low %v12133_v24, %v12137_v34  ;;  %v12093_v12 = vld [vmem:[#allocation17 + $0x458] sm:$0xff]  ;;  %v18710_v24 = vld [vmem:[#allocation20 + $0x8] sm:$0xff]  }
 0x981   :  { %15664 = vmatprep.subr.bf16.mxu0 %v18372_v5  ;;  %v15741_v5 = vsel %vm15725_vm1, %v15228_v25, %v15733_v59  ;;  %v12097_v16 = vld [vmem:[#allocation17 + $0x478] sm:$0xff] }
 0x982   :  { %v18708_v59 = vld [vmem:[#allocation20 + $0x10] sm:$0xff]   ;;  %v18155_v43 = vcombine.low %v12093_v12, %v12097_v16 }
 0x983   :  { %15542 = vmatpush2.bf16.msra.mxu1 %v18497_v45 }
 0x984   :  { %15665 = vmatpush2.bf16.msra.mxu0 %v18371_v48  ;;  %15543 = vmatprep.subr.bf16.mxu1 %v18490_v4 }
 0x985   :  { %15666 = vmatprep.subr.bf16.mxu0 %v18364_v55  ;;  %v15749_v55 = vpack.c.bf16 %v15741_v5, %v15741_v5  ;;  %v12209_v5 = vld [vmem:[#allocation17 + $0x7f8] sm:$0xff] }
 0x987   :  { %15544 = vmatpush2.bf16.msra.mxu1 %v18489_v36  ;;  %v18701_v36 = vld [vmem:[#allocation20 + $0x68] sm:$0xff]  }
 0x988   :  { %15667 = vmatpush2.bf16.msra.mxu0 %v18363_v44  ;;  %15545 = vmatprep.subr.bf16.mxu1 %v18482_v3  ;;  %v12117_v44 = vld [vmem:[#allocation17 + $0x518] sm:$0xff] }
 0x989   :  { %15668 = vmatprep.subr.bf16.mxu0 %v18356_v32  ;;  %v12121_v3 = vld [vmem:[#allocation17 + $0x538] sm:$0xff] }
 0x98a   :  { %v18180_v0 = vcombine.high %v12117_v44, %v12121_v3 }
 0x98b   :  { %15546 = vmatpush2.bf16.msra.mxu1 %v18481_v42  ;;  %v18703_v42 = vld [vmem:[#allocation20 + $0x60] sm:$0xff]  }
 0x98c   :  { %15669 = vmatpush2.bf16.msra.mxu0 %v18355_v51  ;;  %15547 = vmatprep.subr.bf16.mxu1 %v18474_v6  ;;  %v12109_v51 = vld [vmem:[#allocation17 + $0x4d8] sm:$0xff] }
 0x98d   :  { %15670 = vmatprep.subr.bf16.mxu0 %v18348_v23  ;;  %v12113_v6 = vld [vmem:[#allocation17 + $0x4f8] sm:$0xff]  ;;  %v18179_v23 = vcombine.low %v12117_v44, %v12121_v3  ;;  %v18730_v44 = vld [vmem:[#allocation20 + $0x138] sm:$0xff]  }
 0x98e   :  { %v18172_v17 = vcombine.high %v12109_v51, %v12113_v6  ;;  %v18171_v25 = vcombine.low %v12109_v51, %v12113_v6  ;;  %v18731_v3 = vld [vmem:[#allocation20 + $0x170] sm:$0xff]   ;;  %v18734_v6 = vld [vmem:[#allocation20 + $0x128] sm:$0xff]  }
 0x98f   :  { %15548 = vmatpush2.bf16.msra.mxu1 %v18473_v63  ;;  %v12105_v63 = vld [vmem:[#allocation17 + $0x4b8] sm:$0xff] }
 0x990   :  { %15671 = vmatpush2.bf16.msra.mxu0 %v18347_v35  ;;  %15549 = vmatprep.subr.bf16.mxu1 %v18466_v7  ;;  %v18706_v35 = vld [vmem:[#allocation20 + $0x18] sm:$0xff]   ;;  %v18164_v7 = vcombine.high %v12101_v9, %v12105_v63  ;;  %v12177_v51 = vld [vmem:[#allocation17 + $0x6f8] sm:$0xff] }
 0x991   :  { %15672 = vmatprep.subr.bf16.mxu0 %v18340_v11  ;;  %v18707_v11 = vld [vmem:[#allocation20 + $0x50] sm:$0xff]  }
 0x993   :  { %15550 = vmatpush2.bf16.msra.mxu1 %v18465_v40  ;;  %v18163_v40 = vcombine.low %v12101_v9, %v12105_v63  ;;  %v12169_v9 = vld [vmem:[#allocation17 + $0x6b8] sm:$0xff]  ;;  %v18736_v63 = vld [vmem:[#allocation20 + $0x120] sm:$0xff]  }
 0x994   :  { %15673 = vmatpush2.bf16.msra.mxu0 %v18339_v30  ;;  %15601 = vmatprep.subr.bf16.mxu1 %v18204_v41  ;;  %v18156_v30 = vcombine.high %v12093_v12, %v12097_v16  ;;  %v18709_v41 = vld [vmem:[#allocation20 + $0x48] sm:$0xff]   ;;  %v12161_v12 = vld [vmem:[#allocation17 + $0x678] sm:$0xff]  ;;  %v18738_v16 = vld [vmem:[#allocation20 + $0x118] sm:$0xff]  }
 0x995   :  { %18590 = vmatprep.subr.bf16.mxu0 %v18697_v15  ;;  %v12089_v15 = vld [vmem:[#allocation17 + $0x438] sm:$0xff] }
 0x996   :  { %v15307_v45 = vpop.f32.mrf.mxu1  ;;  %v19822_v48 = vpop.f32.mrf.mxu0  ;;  %15552 = vmatmul.mubr.bf16.vlgmr.msra.gmra.mxu1 %v19769_v14  ;;  %v18148_v34 = vcombine.high %v12085_v38, %v12089_v15 }
 0x997   :  { %v19825_v4 = vadd.f32 %v15307_v45, %v15267_v60  ;;  %15675 = vmatmul.mubr.bf16.vlgmr.msra.gmra.mxu0 %v19733_v28  ;;  %15602 = vmatpush1.bf16.msra.mxu1 %v18203_v31  ;;  %v18711_v31 = vld [vmem:[#allocation20 + $0x40] sm:$0xff]   ;;  %v15732_v60 = vmul.f32 0.2, %v19804_v18  ;;  %v12201_v45 = vld [vmem:[#allocation17 + $0x7b8] sm:$0xff] }
 0x998   :  { %15633 = vmatprep.mubr.bf16.mxu1 %v19704_v13  ;;  %18591 = vmatpush3.bf16.msra.mxu0 %v18698_v10  ;;  %v15309_v27 = vpop.f32.mrf.mxu1  ;;  %v19829_v19 = vpop.f32.mrf.mxu0  ;;  %v12205_v10 = vld [vmem:[#allocation17 + $0x7d8] sm:$0xff] }
 0x999   :  { %16307 = vmatprep.mubr.bf16.mxu0 %v15749_v55  ;;  %v19831_v52 = vadd.f32 %v15309_v27, %v15269_v61  ;;  %15603 = vmatprep.subr.bf16.mxu1 %v18196_v8  ;;  %v18147_v8 = vcombine.low %v12085_v38, %v12089_v15  ;;  %v18268_v47 = vcombine.high %v12205_v10, %v12209_v5  ;;  %v12197_v61 = vld [vmem:[#allocation17 + $0x798] sm:$0xff] }
 0x99a   :  { %v15311_v32 = vpop.f32.mrf.mxu1  ;;  %v15434_v28 = vpop.f32.mrf.mxu0  ;;  %18592 = vmatprep.subr.bf16.mxu0 %v18699_v49  ;;  %v15740_v49 = vsel %vm15724_vm2, %v19804_v18, %v15732_v60  ;;  %v18267_v55 = vcombine.low %v12205_v10, %v12209_v5  ;;  %v18732_v18 = vld [vmem:[#allocation20 + $0x130] sm:$0xff]  }
 0x99b   :  { %15604 = vmatpush1.bf16.msra.mxu1 %v18195_v26  ;;  %v18260_v26 = vcombine.high %v12197_v61, %v12201_v45  ;;  %v15748_v27 = vpack.c.bf16 %v15740_v49, %v15740_v49  ;;  %v18259_v32 = vcombine.low %v12197_v61, %v12201_v45  ;;  %v12153_v38 = vld [vmem:[#allocation17 + $0x638] sm:$0xff] }
 0x99c   :  { %18593 = vmatpush3.bf16.msra.mxu0 %v18700_v20  ;;  %v15312_v13 = vpop.f32.mrf.mxu1  ;;  %v15435_v53 = vpop.f32.mrf.mxu0  ;;  %15605 = vmatprep.subr.bf16.mxu1 %v18188_v21  ;;  %v12189_v20 = vld [vmem:[#allocation17 + $0x758] sm:$0xff] }
 0x99d   :  { %18594 = vmatprep.subr.bf16.mxu0 %v18701_v36  ;;  %v12193_v21 = vld [vmem:[#allocation17 + $0x778] sm:$0xff]  ;;  %v18729_v36 = vld [vmem:[#allocation20 + $0x178] sm:$0xff]   ;;  %v18733_v53 = vld [vmem:[#allocation20 + $0x168] sm:$0xff]  }
 0x99e   :  { %v18252_v28 = vcombine.high %v12189_v20, %v12193_v21  ;;  %v12185_v13 = vld [vmem:[#allocation17 + $0x738] sm:$0xff] }
 0x99f   :  { %15606 = vmatpush1.bf16.msra.mxu1 %v18187_v46  ;;  %v12181_v46 = vld [vmem:[#allocation17 + $0x718] sm:$0xff] }
 0x9a0   :  { %18595 = vmatpush3.bf16.msra.mxu0 %v18702_v22  ;;  %15607 = vmatprep.subr.bf16.mxu1 %v18180_v0  ;;  %v18251_v22 = vcombine.low %v12189_v20, %v12193_v21  ;;  %v18244_v0 = vcombine.high %v12181_v46, %v12185_v13  ;;  %v12389_v5 = vld [vmem:[#allocation17 + $0xd98] sm:$0xff] }
 0x9a1   :  { %18596 = vmatprep.subr.bf16.mxu0 %v18703_v42  ;;  %v12173_v42 = vld [vmem:[#allocation17 + $0x6d8] sm:$0xff] }
 0x9a2   :  { %v12393_v60 = vld [vmem:[#allocation17 + $0xdb8] sm:$0xff] }
 0x9a3   :  { %15608 = vmatpush1.bf16.msra.mxu1 %v18179_v23  ;;  %v18735_v23 = vld [vmem:[#allocation20 + $0x160] sm:$0xff]   ;;  %v12381_v61 = vld [vmem:[#allocation17 + $0xd58] sm:$0xff]  ;;  %v18451_v20 = vcombine.low %v12389_v5, %v12393_v60 }
 0x9a4   :  { %18597 = vmatpush3.bf16.msra.mxu0 %v18704_v57  ;;  %15609 = vmatprep.subr.bf16.mxu1 %v18172_v17  ;;  %v18243_v57 = vcombine.low %v12181_v46, %v12185_v13  ;;  %v18236_v17 = vcombine.high %v12173_v42, %v12177_v51  ;;  %v12385_v45 = vld [vmem:[#allocation17 + $0xd78] sm:$0xff] }
 0x9a5   :  { %18598 = vmatprep.subr.bf16.mxu0 %v18705_v39  ;;  %v12165_v39 = vld [vmem:[#allocation17 + $0x698] sm:$0xff]  ;;  %v18443_v46 = vcombine.low %v12381_v61, %v12385_v45 }
 0x9a7   :  { %15610 = vmatpush1.bf16.msra.mxu1 %v18171_v25  ;;  %v18737_v25 = vld [vmem:[#allocation20 + $0x158] sm:$0xff]  }
 0x9a8   :  { %18599 = vmatpush3.bf16.msra.mxu0 %v18706_v35  ;;  %15611 = vmatprep.subr.bf16.mxu1 %v18164_v7  ;;  %v18235_v35 = vcombine.low %v12173_v42, %v12177_v51  ;;  %v18228_v7 = vcombine.high %v12165_v39, %v12169_v9  ;;  %v18744_v42 = vld [vmem:[#allocation20 + $0x100] sm:$0xff]  }
 0x9a9   :  { %18600 = vmatprep.subr.bf16.mxu0 %v18707_v11  ;;  %v12157_v11 = vld [vmem:[#allocation17 + $0x658] sm:$0xff] }
 0x9aa   :  { %v18219_v15 = vcombine.low %v12157_v11, %v12161_v12 }
 0x9ab   :  { %15612 = vmatpush1.bf16.msra.mxu1 %v18163_v40  ;;  %v18739_v40 = vld [vmem:[#allocation20 + $0x150] sm:$0xff]  }
 0x9ac   :  { %18601 = vmatpush3.bf16.msra.mxu0 %v18708_v59  ;;  %15613 = vmatprep.subr.bf16.mxu1 %v18156_v30  ;;  %v18227_v59 = vcombine.low %v12165_v39, %v12169_v9  ;;  %v18220_v30 = vcombine.high %v12157_v11, %v12161_v12  ;;  %v12349_v9 = vld [vmem:[#allocation17 + $0xc58] sm:$0xff] }
 0x9ad   :  { %18602 = vmatprep.subr.bf16.mxu0 %v18709_v41  ;;  %v12149_v41 = vld [vmem:[#allocation17 + $0x618] sm:$0xff] }
 0x9ae   :  { %v12345_v11 = vld [vmem:[#allocation17 + $0xc38] sm:$0xff] }
 0x9af   :  { %15614 = vmatpush1.bf16.msra.mxu1 %v18155_v43  ;;  %v18212_v43 = vcombine.high %v12149_v41, %v12153_v38 }
 0x9b0   :  { %18603 = vmatpush3.bf16.msra.mxu0 %v18710_v24  ;;  %15615 = vmatprep.subr.bf16.mxu1 %v18148_v34  ;;  %v12397_v24 = vld [vmem:[#allocation17 + $0xdd8] sm:$0xff] }
 0x9b1   :  { %18604 = vmatprep.subr.bf16.mxu0 %v18711_v31  ;;  %v12401_v34 = vld [vmem:[#allocation17 + $0xdf8] sm:$0xff]  ;;  %v18211_v31 = vcombine.low %v12149_v41, %v12153_v38 }
 0x9b2   :  { %v18460_v10 = vcombine.high %v12397_v24, %v12401_v34  ;;  %v12453_v38 = vld [vmem:[#allocation17 + $0xf98] sm:$0xff] }
 0x9b3   :  { %15616 = vmatpush1.bf16.msra.mxu1 %v18147_v8  ;;  %v18459_v8 = vcombine.low %v12397_v24, %v12401_v34  ;;  %v12445_v34 = vld [vmem:[#allocation17 + $0xf58] sm:$0xff] }
 0x9b4   :  { %18605 = vmatpush3.bf16.msra.mxu0 %v18712_v50  ;;  %15617 = vmatprep.subr.bf16.mxu1 %v18268_v47  ;;  %v18452_v50 = vcombine.high %v12389_v5, %v12393_v60  ;;  %v15349_v47 = vadd.f32 %v19799_v58, %v19825_v4  ;;  %v12373_v4 = vld [vmem:[#allocation17 + $0xd18] sm:$0xff] }
 0x9b5   :  { %18634 = vmatprep.subr.bf16.mxu0 %v18729_v36  ;;  %v18444_v36 = vcombine.high %v12381_v61, %v12385_v45  ;;  %v12437_v60 = vld [vmem:[#allocation17 + $0xf18] sm:$0xff] }
 0x9b6   :  { %v12429_v61 = vld [vmem:[#allocation17 + $0xed8] sm:$0xff] }
 0x9b7   :  { %16308 = vmatmul.mubr.bf16.vlgmr.msra.gmra.mxu0 %v15748_v27  ;;  %15618 = vmatpush2.bf16.msra.mxu1 %v18267_v55  ;;  %v18740_v55 = vld [vmem:[#allocation20 + $0x110] sm:$0xff]  }
 0x9b8   :  { %15619 = vmatprep.subr.bf16.mxu1 %v18260_v26  ;;  %18635 = vmatpush3.bf16.msra.mxu0 %v18730_v44  ;;  %v12377_v44 = vld [vmem:[#allocation17 + $0xd38] sm:$0xff] }
 0x9b9   :  { %18636 = vmatprep.subr.bf16.mxu0 %v18731_v3  ;;  %v18741_v3 = vld [vmem:[#allocation20 + $0x148] sm:$0xff]   ;;  %v18435_v51 = vcombine.low %v12373_v4, %v12377_v44  ;;  %v12433_v45 = vld [vmem:[#allocation17 + $0xef8] sm:$0xff] }
 0x9bb   :  { %15620 = vmatpush2.bf16.msra.mxu1 %v18259_v32  ;;  %v18742_v32 = vld [vmem:[#allocation20 + $0x108] sm:$0xff]  }
 0x9bc   :  { %15621 = vmatprep.subr.bf16.mxu1 %v18252_v28  ;;  %18637 = vmatpush3.bf16.msra.mxu0 %v18732_v18  ;;  %v12365_v18 = vld [vmem:[#allocation17 + $0xcd8] sm:$0xff] }
 0x9bd   :  { %18638 = vmatprep.subr.bf16.mxu0 %v18733_v53 }
 0x9bf   :  { %15622 = vmatpush2.bf16.msra.mxu1 %v18251_v22  ;;  %v12369_v22 = vld [vmem:[#allocation17 + $0xcf8] sm:$0xff] }
 0x9c0   :  { %15623 = vmatprep.subr.bf16.mxu1 %v18244_v0  ;;  %18639 = vmatpush3.bf16.msra.mxu0 %v18734_v6  ;;  %v18743_v0 = vld [vmem:[#allocation20 + $0x140] sm:$0xff]   ;;  %v18428_v6 = vcombine.high %v12365_v18, %v12369_v22 }
 0x9c1   :  { %18640 = vmatprep.subr.bf16.mxu0 %v18735_v23  ;;  %v12357_v23 = vld [vmem:[#allocation17 + $0xc98] sm:$0xff] }
 0x9c3   :  { %15624 = vmatpush2.bf16.msra.mxu1 %v18243_v57  ;;  %v12361_v57 = vld [vmem:[#allocation17 + $0xcb8] sm:$0xff] }
 0x9c4   :  { %15625 = vmatprep.subr.bf16.mxu1 %v18236_v17  ;;  %18641 = vmatpush3.bf16.msra.mxu0 %v18736_v63  ;;  %v18427_v17 = vcombine.low %v12365_v18, %v12369_v22  ;;  %v18420_v39 = vcombine.high %v12357_v23, %v12361_v57  ;;  %v12353_v63 = vld [vmem:[#allocation17 + $0xc78] sm:$0xff] }
 0x9c5   :  { %18642 = vmatprep.subr.bf16.mxu0 %v18737_v25  ;;  %v18419_v25 = vcombine.low %v12357_v23, %v12361_v57  ;;  %v18411_v12 = vcombine.low %v12349_v9, %v12353_v63  ;;  %v18714_v23 = vld [vmem:[#allocation20 + $0xb8] sm:$0xff]  }
 0x9c7   :  { %15626 = vmatpush2.bf16.msra.mxu1 %v18235_v35  ;;  %v18412_v35 = vcombine.high %v12349_v9, %v12353_v63 }
 0x9c8   :  { %15627 = vmatprep.subr.bf16.mxu1 %v18228_v7  ;;  %18643 = vmatpush3.bf16.msra.mxu0 %v18738_v16  ;;  %v12341_v7 = vld [vmem:[#allocation17 + $0xc18] sm:$0xff] }
 0x9c9   :  { %18644 = vmatprep.subr.bf16.mxu0 %v18739_v40  ;;  %v18404_v16 = vcombine.high %v12341_v7, %v12345_v11  ;;  %v12461_v40 = vld [vmem:[#allocation17 + $0xfd8] sm:$0xff] }
 0x9cb   :  { %15628 = vmatpush2.bf16.msra.mxu1 %v18227_v59  ;;  %v12465_v59 = vld [vmem:[#allocation17 + $0xff8] sm:$0xff] }
 0x9cc   :  { %15629 = vmatprep.subr.bf16.mxu1 %v18220_v30  ;;  %18645 = vmatpush3.bf16.msra.mxu0 %v18740_v55  ;;  %v18403_v30 = vcombine.low %v12341_v7, %v12345_v11  ;;  %v18524_v41 = vcombine.high %v12461_v40, %v12465_v59  ;;  %v18492_v55 = vcombine.high %v12429_v61, %v12433_v45 }
 0x9cd   :  { %18646 = vmatprep.subr.bf16.mxu0 %v18741_v3  ;;  %v12413_v3 = vld [vmem:[#allocation17 + $0xe58] sm:$0xff] }
 0x9cf   :  { %15630 = vmatpush2.bf16.msra.mxu1 %v18219_v15  ;;  %v12457_v15 = vld [vmem:[#allocation17 + $0xfb8] sm:$0xff] }
 0x9d0   :  { %15631 = vmatprep.subr.bf16.mxu1 %v18212_v43  ;;  %18647 = vmatpush3.bf16.msra.mxu0 %v18742_v32  ;;  %v18523_v43 = vcombine.low %v12461_v40, %v12465_v59  ;;  %v18516_v24 = vcombine.high %v12453_v38, %v12457_v15  ;;  %v18719_v59 = vld [vmem:[#allocation20 + $0xe0] sm:$0xff]  }
 0x9d1   :  { %18648 = vmatprep.subr.bf16.mxu0 %v18743_v0 }
 0x9d3   :  { %15632 = vmatpush2.bf16.msra.mxu1 %v18211_v31  ;;  %v12449_v31 = vld [vmem:[#allocation17 + $0xf78] sm:$0xff] }
 0x9d4   :  { %15683 = vmatprep.subr.bf16.mxu1 %v18460_v10  ;;  %18649 = vmatpush3.bf16.msra.mxu0 %v18744_v42  ;;  %v18515_v10 = vcombine.low %v12453_v38, %v12457_v15  ;;  %v18508_v5 = vcombine.high %v12445_v34, %v12449_v31  ;;  %v18721_v38 = vld [vmem:[#allocation20 + $0xd8] sm:$0xff]  }
 0x9d5   :  { %v18722_v15 = vld [vmem:[#allocation20 + $0x98] sm:$0xff]  }
 0x9d6   :  { %v15389_v49 = vpop.f32.mrf.mxu1  ;;  %15634 = vmatmul.mubr.bf16.vlgmr.msra.gmra.mxu1 %v19722_v54 }
 0x9d7   :  { %v19839_v26 = vadd.f32 %v15389_v49, %v15349_v47  ;;  %v19841_v27 = vpop.f32.mrf.mxu0  ;;  %15684 = vmatpush1.bf16.msra.mxu1 %v18459_v8  ;;  %15715 = vmatprep.mubr.bf16.mxu1 %v19767_v1  ;;  %v18436_v1 = vcombine.high %v12373_v4, %v12377_v44  ;;  %v12441_v8 = vld [vmem:[#allocation17 + $0xf38] sm:$0xff]  ;;  %v18491_v4 = vcombine.low %v12429_v61, %v12433_v45  ;;  %v18749_v45 = vld [vmem:[#allocation20 + $0x1e8] sm:$0xff]  }
 0x9d8   :  { %v19844_v21 = vpop.f32.mrf.mxu1  ;;  %15685 = vmatprep.subr.bf16.mxu1 %v18452_v50  ;;  %v18507_v50 = vcombine.low %v12445_v34, %v12449_v31  ;;  %v18500_v47 = vcombine.high %v12437_v60, %v12441_v8  ;;  %v18499_v49 = vcombine.low %v12437_v60, %v12441_v8  ;;  %v18726_v34 = vld [vmem:[#allocation20 + $0x88] sm:$0xff]   ;;  %v18746_v8 = vld [vmem:[#allocation20 + $0x1b8] sm:$0xff]   ;;  %v18748_v61 = vld [vmem:[#allocation20 + $0x1b0] sm:$0xff]  }
 0x9d9   :  { %v19846_v58 = vpop.f32.mrf.mxu0  ;;  %v15734_v31 = vmul.f32 0.2, %v19839_v26  ;;  %vm15726_vm4 = vcmp.gt.f32.partialorder %v19839_v26, 0.0 }
 0x9da   :  { %v15393_v54 = vpop.f32.mrf.mxu1 }
 0x9db   :  { %v15516_v28 = vpop.f32.mrf.mxu0  ;;  %15686 = vmatpush1.bf16.msra.mxu1 %v18451_v20  ;;  %v12421_v20 = vld [vmem:[#allocation17 + $0xe98] sm:$0xff]  ;;  %v15742_v60 = vsel %vm15726_vm4, %v19839_v26, %v15734_v31  ;;  %v18754_v26 = vld [vmem:[#allocation20 + $0x198] sm:$0xff]  }
 0x9dc   :  { %v15394_v13 = vpop.f32.mrf.mxu1  ;;  %15687 = vmatprep.subr.bf16.mxu1 %v18444_v36  ;;  %v12425_v36 = vld [vmem:[#allocation17 + $0xeb8] sm:$0xff]  ;;  %v15351_v28 = vadd.f32 %v19807_v56, %v19831_v52  ;;  %v12491_v52 = vrot.slane %v19814_v37, %v19252_v62  ;;  %v18717_v62 = vld [vmem:[#allocation20 + $0xe8] sm:$0xff]  }
 0x9dd   :  { %v15517_v53 = vpop.f32.mrf.mxu0  ;;  %v18484_v44 = vcombine.high %v12421_v20, %v12425_v36  ;;  %v12417_v54 = vld [vmem:[#allocation17 + $0xe78] sm:$0xff]  ;;  %v18483_v32 = vcombine.low %v12421_v20, %v12425_v36  ;;  %v18752_v20 = vld [vmem:[#allocation20 + $0x1a0] sm:$0xff]   ;;  %v18753_v36 = vld [vmem:[#allocation20 + $0x1d8] sm:$0xff]  }
 0x9de   :  { %v12405_v13 = vld [vmem:[#allocation17 + $0xe18] sm:$0xff]  ;;  %v15392_v18 = vadd.f32 %v19844_v21, %v15351_v28  ;;  %v18475_v53 = vcombine.low %v12413_v3, %v12417_v54  ;;  %v15433_v9 = vadd.f32 %v19829_v19, %v12491_v52  ;;  %v18760_v52 = vld [vmem:[#allocation20 + $0x180] sm:$0xff]  }
 0x9df   :  { %15688 = vmatpush1.bf16.msra.mxu1 %v18443_v46  ;;  %v18476_v46 = vcombine.high %v12413_v3, %v12417_v54  ;;  %v18715_v21 = vld [vmem:[#allocation20 + $0xf0] sm:$0xff]  }
 0x9e0   :  { %15689 = vmatprep.subr.bf16.mxu1 %v18436_v1  ;;  %v12409_v1 = vld [vmem:[#allocation17 + $0xe38] sm:$0xff]  ;;  %v15735_v0 = vmul.f32 0.2, %v15392_v18  ;;  %vm15727_vm3 = vcmp.gt.f32.partialorder %v15392_v18, 0.0 }
 0x9e1   :  { %v18468_v22 = vcombine.high %v12405_v13, %v12409_v1  ;;  %v18467_v42 = vcombine.low %v12405_v13, %v12409_v1  ;;  %v18756_v3 = vld [vmem:[#allocation20 + $0x190] sm:$0xff]  }
 0x9e2   :  { %v15743_v56 = vsel %vm15727_vm3, %v15392_v18, %v15735_v0  ;;  %v18757_v18 = vld [vmem:[#allocation20 + $0x1c8] sm:$0xff]  }
 0x9e3   :  { %15690 = vmatpush1.bf16.msra.mxu1 %v18435_v51  ;;  %v18713_v51 = vld [vmem:[#allocation20 + $0xf8] sm:$0xff]  }
 0x9e4   :  { %15691 = vmatprep.subr.bf16.mxu1 %v18428_v6  ;;  %v12487_v6 = vrot.slane %v19814_v37, %v19290_v29  ;;  %v18716_v29 = vld [vmem:[#allocation20 + $0xb0] sm:$0xff]  }
 0x9e6   :  { %v15431_v57 = vadd.f32 %v19822_v48, %v12487_v6 }
 0x9e7   :  { %15692 = vmatpush1.bf16.msra.mxu1 %v18427_v17  ;;  %v15751_v17 = vpack.c.bf16 %v15743_v56, %v15743_v56  ;;  %v18759_v56 = vld [vmem:[#allocation20 + $0x1c0] sm:$0xff]  }
 0x9e8   :  { %15693 = vmatprep.subr.bf16.mxu1 %v18420_v39 }
 0x9eb   :  { %15694 = vmatpush1.bf16.msra.mxu1 %v18419_v25 }
 0x9ec   :  { %15695 = vmatprep.subr.bf16.mxu1 %v18412_v35 }
 0x9ef   :  { %15696 = vmatpush1.bf16.msra.mxu1 %v18411_v12 }
 0x9f0   :  { %15697 = vmatprep.subr.bf16.mxu1 %v18404_v16 }
 0x9f3   :  { %15698 = vmatpush1.bf16.msra.mxu1 %v18403_v30 }
 0x9f4   :  { %15699 = vmatprep.subr.bf16.mxu1 %v18524_v41  ;;  %v18720_v41 = vld [vmem:[#allocation20 + $0xa0] sm:$0xff]  }
 0x9f7   :  { %15700 = vmatpush2.bf16.msra.mxu1 %v18523_v43  ;;  %v18723_v43 = vld [vmem:[#allocation20 + $0xd0] sm:$0xff]  }
 0x9f8   :  { %15701 = vmatprep.subr.bf16.mxu1 %v18516_v24  ;;  %v18725_v24 = vld [vmem:[#allocation20 + $0xc8] sm:$0xff]  }
 0x9fb   :  { %15702 = vmatpush2.bf16.msra.mxu1 %v18515_v10  ;;  %v18728_v10 = vld [vmem:[#allocation20 + $0x80] sm:$0xff]  }
 0x9fc   :  { %15703 = vmatprep.subr.bf16.mxu1 %v18508_v5  ;;  %v18745_v5 = vld [vmem:[#allocation20 + $0x1f8] sm:$0xff]  }
 0x9ff   :  { %15704 = vmatpush2.bf16.msra.mxu1 %v18507_v50  ;;  %v15750_v50 = vpack.c.bf16 %v15742_v60, %v15742_v60 }
 0xa00   :  { %15705 = vmatprep.subr.bf16.mxu1 %v18500_v47  ;;  %v18747_v47 = vld [vmem:[#allocation20 + $0x1f0] sm:$0xff]  }
 0xa03   :  { %15706 = vmatpush2.bf16.msra.mxu1 %v18499_v49  ;;  %v18750_v49 = vld [vmem:[#allocation20 + $0x1a8] sm:$0xff]  }
 0xa04   :  { %15707 = vmatprep.subr.bf16.mxu1 %v18492_v55  ;;  %v18751_v55 = vld [vmem:[#allocation20 + $0x1e0] sm:$0xff]  }
 0xa07   :  { %15708 = vmatpush2.bf16.msra.mxu1 %v18491_v4  ;;  %v18755_v4 = vld [vmem:[#allocation20 + $0x1d0] sm:$0xff]  }
 0xa08   :  { %15709 = vmatprep.subr.bf16.mxu1 %v18484_v44 }
 0xa0b   :  { %15710 = vmatpush2.bf16.msra.mxu1 %v18483_v32 }
 0xa0c   :  { %15711 = vmatprep.subr.bf16.mxu1 %v18476_v46 }
 0xa0f   :  { %15712 = vmatpush2.bf16.msra.mxu1 %v18475_v53 }
 0xa10   :  { %15713 = vmatprep.subr.bf16.mxu1 %v18468_v22  ;;  %v18758_v22 = vld [vmem:[#allocation20 + $0x188] sm:$0xff]  }
 0xa13   :  { %15714 = vmatpush2.bf16.msra.mxu1 %v18467_v42 }
 0xa14   :  { %18612 = vmatprep.subr.bf16.mxu1 %v18713_v51 }
 0xa16   :  { %v15471_v39 = vpop.f32.mrf.mxu1  ;;  %15716 = vmatmul.mubr.bf16.vlgmr.msra.gmra.mxu1 %v19769_v14  ;;  %v18718_v14 = vld [vmem:[#allocation20 + $0xa8] sm:$0xff]  }
 0xa17   :  { %v15472_v63 = vadd.f32 %v15471_v39, %v15431_v57  ;;  %v19858_v25 = vpop.f32.mrf.mxu0  ;;  %18613 = vmatpush3.bf16.msra.mxu1 %v18714_v23  ;;  %16347 = vmatprep.mubr.bf16.mxu1 %v15751_v17 }
 0xa18   :  { %v15473_v35 = vpop.f32.mrf.mxu1  ;;  %18614 = vmatprep.subr.bf16.mxu1 %v18715_v21 }
 0xa19   :  { %v15474_v7 = vadd.f32 %v15473_v35, %v15433_v9  ;;  %v19860_v11 = vpop.f32.mrf.mxu0  ;;  %v15513_v48 = vadd.f32 %v19841_v27, %v15472_v63  ;;  %v18724_v27 = vld [vmem:[#allocation20 + $0x90] sm:$0xff]  }
 0xa1a   :  { %v15475_v12 = vpop.f32.mrf.mxu1 }
 0xa1b   :  { %v15598_v16 = vpop.f32.mrf.mxu0  ;;  %18615 = vmatpush3.bf16.msra.mxu1 %v18716_v29  ;;  %v15515_v19 = vadd.f32 %v19846_v58, %v15474_v7  ;;  %v18727_v58 = vld [vmem:[#allocation20 + $0xc0] sm:$0xff]   ;;  %v12499_v7 = vrot.slane %v19814_v37, %v19255_v2 }
 0xa1c   :  { %v15476_v40 = vpop.f32.mrf.mxu1  ;;  %18616 = vmatprep.subr.bf16.mxu1 %v18717_v62  ;;  %v12495_v62 = vrot.slane %v19814_v37, %v19293_v33 }
 0xa1d   :  { %v15599_v30 = vpop.f32.mrf.mxu0  ;;  %v15597_v16 = vadd.f32 %v19860_v11, %v12499_v7 }
 0xa1f   :  { %18617 = vmatpush3.bf16.msra.mxu1 %v18718_v14 }
 0xa20   :  { %18618 = vmatprep.subr.bf16.mxu1 %v18719_v59 }
 0xa23   :  { %18619 = vmatpush3.bf16.msra.mxu1 %v18720_v41 }
 0xa24   :  { %18620 = vmatprep.subr.bf16.mxu1 %v18721_v38 }
 0xa27   :  { %18621 = vmatpush3.bf16.msra.mxu1 %v18722_v15 }
 0xa28   :  { %18622 = vmatprep.subr.bf16.mxu1 %v18723_v43 }
 0xa2b   :  { %18623 = vmatpush3.bf16.msra.mxu1 %v18724_v27 }
 0xa2c   :  { %18624 = vmatprep.subr.bf16.mxu1 %v18725_v24 }
 0xa2f   :  { %18625 = vmatpush3.bf16.msra.mxu1 %v18726_v34 }
 0xa30   :  { %18626 = vmatprep.subr.bf16.mxu1 %v18727_v58 }
 0xa33   :  { %18627 = vmatpush3.bf16.msra.mxu1 %v18728_v10  ;;  %v18525_v10 = vld [vmem:[#allocation22] ss:$0 sm:$0xff] }
 0xa34   :  { %18656 = vmatprep.subr.bf16.mxu1 %v18745_v5 }
 0xa36   :  { %16348 = vmatmul.mubr.bf16.vlgmr.msra.gmra.mxu1 %v15750_v50 }
 0xa37   :  { %18657 = vmatpush3.bf16.msra.mxu1 %v18746_v8 }
 0xa38   :  { %18658 = vmatprep.subr.bf16.mxu1 %v18747_v47 }
 0xa3b   :  { %18659 = vmatpush3.bf16.msra.mxu1 %v18748_v61 }
 0xa3c   :  { %18660 = vmatprep.subr.bf16.mxu1 %v18749_v45 }
 0xa3f   :  { %18661 = vmatpush3.bf16.msra.mxu1 %v18750_v49 }
 0xa40   :  { %18662 = vmatprep.subr.bf16.mxu1 %v18751_v55 }
 0xa43   :  { %18663 = vmatpush3.bf16.msra.mxu1 %v18752_v20 }
 0xa44   :  { %18664 = vmatprep.subr.bf16.mxu1 %v18753_v36 }
 0xa47   :  { %18665 = vmatpush3.bf16.msra.mxu1 %v18754_v26 }
 0xa48   :  { %18666 = vmatprep.subr.bf16.mxu1 %v18755_v4 }
 0xa4b   :  { %18667 = vmatpush3.bf16.msra.mxu1 %v18756_v3 }
 0xa4c   :  { %18668 = vmatprep.subr.bf16.mxu1 %v18757_v18 }
 0xa4f   :  { %18669 = vmatpush3.bf16.msra.mxu1 %v18758_v22 }
 0xa50   :  { %18670 = vmatprep.subr.bf16.mxu1 %v18759_v56 }
 0xa53   :  { %18671 = vmatpush3.bf16.msra.mxu1 %v18760_v52 }
 0xa56   :  { %v15553_v44 = vpop.f32.mrf.mxu1 }
 0xa57   :  { %v15554_v54 = vadd.f32 %v15553_v44, %v15513_v48  ;;  %v15676_v32 = vpop.f32.mrf.mxu0  ;;  %v15595_v48 = vadd.f32 %v19858_v25, %v12495_v62 }
 0xa58   :  { %v15555_v28 = vpop.f32.mrf.mxu1 }
 0xa59   :  { %vm15728_vm5 = vcmp.gt.f32.partialorder %v15554_v54, 0.0  ;;  %v15736_v46 = vmul.f32 0.2, %v15554_v54  ;;  %v15556_v13 = vadd.f32 %v15555_v28, %v15515_v19  ;;  %v15678_v1 = vpop.f32.mrf.mxu0 }
 0xa5a   :  { %v15557_v53 = vpop.f32.mrf.mxu1 }
 0xa5b   :  { %vm15729_vm6 = vcmp.gt.f32.partialorder %v15556_v13, 0.0  ;;  %v15737_v0 = vmul.f32 0.2, %v15556_v13  ;;  %v15680_v42 = vpop.f32.mrf.mxu0  ;;  %v15744_v51 = vsel %vm15728_vm5, %v15554_v54, %v15736_v46 }
 0xa5c   :  { %v15558_v6 = vpop.f32.mrf.mxu1  ;;  %v15752_v17 = vpack.c.bf16 %v15744_v51, %v15744_v51 }
 0xa5d   :  { %v15681_v23 = vpop.f32.mrf.mxu0  ;;  %v15745_v21 = vsel %vm15729_vm6, %v15556_v13, %v15737_v0 }
 0xa5e   :  { %v15753_v57 = vpack.c.bf16 %v15745_v21, %v15745_v21 }
 0xa60   :  { %16387 = vmatprep.mubr.bf16.mxu0 %v15753_v57 }
 0xa61   :  { %16388 = vmatmul.mubr.bf16.vlgmr.msra.gmra.mxu0 %v15752_v17 }
 0xa77   :  { %v18606_v39 = vpop.f32.mrf.mxu0 }
 0xa79   :  { %v18607_v9 = vpop.f32.mrf.mxu0 }
 0xa7a   :  { %v18608_v63 = vadd.f32 %v18607_v9, %v18606_v39 }
 0xa7b   :  { %v18609_v29 = vpop.f32.mrf.mxu0 }
 0xa7c   :  { %v16310_v8 = vadd.f32 %v18608_v63, %v18525_v10 }
 0xa7d   :  { %v18610_v35 = vpop.f32.mrf.mxu0 }
 0xa96   :  { %v15635_v12 = vpop.f32.mrf.mxu1 }
 0xa97   :  { %v15636_v14 = vadd.f32 %v15635_v12, %v15595_v48 }
 0xa98   :  { %v15637_v19 = vpop.f32.mrf.mxu1 }
 0xa99   :  { %v15638_v40 = vadd.f32 %v15637_v19, %v15597_v16  ;;  %v15677_v59 = vadd.f32 %v15676_v32, %v15636_v14 }
 0xa9a   :  { %v15639_v30 = vpop.f32.mrf.mxu1 }
 0xa9b   :  { %v15679_v41 = vadd.f32 %v15678_v1, %v15638_v40 }
 0xa9c   :  { %v15640_v38 = vpop.f32.mrf.mxu1 }
 0xad6   :  { %v15717_v15 = vpop.f32.mrf.mxu1 }
 0xad7   :  { %v15718_v43 = vadd.f32 %v15717_v15, %v15677_v59 }
 0xad8   :  { %v15719_v27 = vpop.f32.mrf.mxu1 }
 0xad9   :  { %vm15730_vm7 = vcmp.gt.f32.partialorder %v15718_v43, 0.0  ;;  %v15738_v33 = vmul.f32 0.2, %v15718_v43  ;;  %v15720_v24 = vadd.f32 %v15719_v27, %v15679_v41 }
 0xada   :  { %v15721_v34 = vpop.f32.mrf.mxu1 }
 0xadb   :  { %vm15731_vm8 = vcmp.gt.f32.partialorder %v15720_v24, 0.0  ;;  %v15739_v2 = vmul.f32 0.2, %v15720_v24  ;;  %v15746_v37 = vsel %vm15730_vm7, %v15718_v43, %v15738_v33 }
 0xadc   :  { %v15722_v25 = vpop.f32.mrf.mxu1  ;;  %v15754_v31 = vpack.c.bf16 %v15746_v37, %v15746_v37 }
 0xadd   :  { %v15747_v58 = vsel %vm15731_vm8, %v15720_v24, %v15739_v2 }
 0xade   :  { %v15755_v11 = vpack.c.bf16 %v15747_v58, %v15747_v58 }
 0xae0   :  { %16427 = vmatprep.mubr.bf16.mxu1 %v15755_v11 }
 0xae1   :  { %16428 = vmatmul.mubr.bf16.vlgmr.msra.gmra.mxu1 %v15754_v31 }
 0xaf6   :  { %v18628_v5 = vpop.f32.mrf.mxu1 }
 0xaf8   :  { %v18629_v60 = vpop.f32.mrf.mxu1 }
 0xaf9   :  { %v18630_v50 = vadd.f32 %v18629_v60, %v18628_v5 }
 0xafa   :  { %v18631_v47 = vpop.f32.mrf.mxu1 }
 0xafb   :  { %v16350_v61 = vadd.f32 %v18630_v50, %v16310_v8 }
 0xafc   :  { %v18632_v45 = vpop.f32.mrf.mxu1 }
 0xb21   :  { %v18650_v49 = vpop.f32.mrf.mxu0 }
 0xb23   :  { %v18651_v55 = vpop.f32.mrf.mxu0 }
 0xb24   :  { %v18652_v20 = vadd.f32 %v18651_v55, %v18650_v49 }
 0xb25   :  { %v18653_v36 = vpop.f32.mrf.mxu0 }
 0xb26   :  { %v16390_v26 = vadd.f32 %v18652_v20, %v16350_v61 }
 0xb27   :  { %v18654_v4 = vpop.f32.mrf.mxu0 }
 0xba1   :  { %v18672_v44 = vpop.f32.mrf.mxu1 }
 0xba3   :  { %v18673_v3 = vpop.f32.mrf.mxu1 }
 0xba4   :  { %v18674_v54 = vadd.f32 %v18673_v3, %v18672_v44 }
 0xba5   :  { %v18675_v32 = vpop.f32.mrf.mxu1 }
 0xba6   :  { %v16430_v28 = vadd.f32 %v18674_v54, %v16390_v26 }
 0xba7   :  { %v18676_v46 = vpop.f32.mrf.mxu1 }
 0xba8   :  { %16435 = vst [vmem:[#allocation23] sm:$0xff] %v16430_v28 }
 0xba9   :  { %19039 = shalt.err (!%p19036_p13)
}
 0xbaa   :  { %16445 = dma.vmem_to_hbm [thread:$0]  %s16443_s12, 128, %s19889_s13, [#allocation4]  }
 0xbab   :  { %19062 = dma.done.wait [#allocation4], 128  }
 0xbac   :  { %19063 = vsyncadd [#allocation4], 4294967168 }
 0xbad   :  { %16449 = vsyncpa [#allocation3], 1 }
 0xbae   :  { %16450 = vsyncpa [#allocation6], 1 }
 0xbaf   :  { %16451 = vsyncpa [#allocation9], 1 }
 0xbb0   :  { %16452 = vsyncpa [#allocation12], 1 }
 0xbb1   :  { %16453 = vsyncpa [#allocation15], 1 }
 0xbb2   :  { %16454 = vsyncpa [#allocation18], 1 }
 0xbb3   :  { %16455 = vsyncpa [#allocation21], 1 }
 0xbb4   :  { %16456 = vsyncpa [#allocation4], 1 }

</bundles_post_ra>
